<compile_context>
chip_gen: v7x
topology: tpu7x:2x2x1
jax: 0.10.0
libtpu: 0.0.40
codegen_flags: <defaults>
</compile_context>

<pallas_src>
import jax
import jax.numpy as jnp
from jax import lax
from jax.experimental import pallas as pl
from jax.experimental.pallas import tpu as pltpu

# ------------------------- scaled-down configuration -------------------------
BATCH = 2
IN_HW = 32            # grayscale input spatial size (the stem takes 1 channel)
HO = WO = IN_HW // 2  # stem output spatial size (stride 2)
C_STEM = 32           # EfficientNet-B0 stem channels
C_BLOCK = 16          # first MBConv project channels
NUM_FEATURES = 128    # scaled stand-in for B0's 1280-dim feature vector
HIDDEN = 256          # head hidden width (as in the module)
NUM_CLASSES = 3       # cfg.model.num_classes


# --------------------------------- kernel ------------------------------------
def fused_detector_kernel(x_ref, stem_w_ref, stem_sb_ref, dw_w_ref, dw_sb_ref,
                          wf_ref, bf_ref, w1_ref, b1_ref,
                          w2b_ref, b2b_ref, w2c_ref, b2c_ref,
                          boxes_ref, scores_ref, dw_pad_ref):
    f32 = jnp.float32
    bf16 = jnp.bfloat16
    x = x_ref[0, 0]                                            # (IN_HW, IN_HW)

    # ---- stem: 3x3 / stride 2 / pad 1 conv (1 -> C_STEM), fused BN + SiLU ----
    # Zero padding + stride-2 sampling folded into 0/1 selection matmuls, so no
    # wrapper-side pad / parity reshape / transpose is needed.
    oh = lax.broadcasted_iota(jnp.int32, (HO, IN_HW), 0)
    ih = lax.broadcasted_iota(jnp.int32, (HO, IN_HW), 1)
    iw = lax.broadcasted_iota(jnp.int32, (IN_HW, WO), 0)
    ow = lax.broadcasted_iota(jnp.int32, (IN_HW, WO), 1)
    row_sel = [(ih == 2 * oh + k - 1).astype(f32) for k in range(3)]  # (HO, IN_HW)
    col_sel = [(iw == 2 * ow + k - 1).astype(f32) for k in range(3)]  # (IN_HW, WO)

    stem_w = stem_w_ref[...]                                   # (9, C_STEM)
    stem_sb = stem_sb_ref[...]                                 # (2, C_STEM)
    acc = jnp.zeros((HO, WO, C_STEM), f32)
    for kh in range(3):
        rows = jnp.dot(row_sel[kh], x, preferred_element_type=f32)       # (HO, IN_HW)
        for kw in range(3):
            patch = jnp.dot(rows, col_sel[kw], preferred_element_type=f32)  # (HO, WO)
            acc = acc + patch[:, :, None] * stem_w[kh * 3 + kw][None, None, :]
    y = acc * stem_sb[0][None, None, :] + stem_sb[1][None, None, :]
    stem_act = y * jax.nn.sigmoid(y)                           # SiLU, (HO, WO, C_STEM)

    # ---- first MBConv depthwise 3x3 / stride 1 / pad 1, fused BN + SiLU ------
    # In-kernel zero padding: zero a VMEM scratch tile, write the interior.
    dw_pad_ref[...] = jnp.zeros((HO + 2, WO + 2, C_STEM), f32)
    dw_pad_ref[pl.ds(1, HO), pl.ds(1, WO), :] = stem_act
    dw_w = dw_w_ref[...]                                       # (9, C_STEM)
    dw_sb = dw_sb_ref[...]                                     # (2, C_STEM)
    acc2 = jnp.zeros((HO, WO, C_STEM), f32)
    for kh in range(3):
        for kw in range(3):
            acc2 = acc2 + (dw_pad_ref[kh:kh + HO, kw:kw + WO, :]
                           * dw_w[kh * 3 + kw][None, None, :])
    y2 = acc2 * dw_sb[0][None, None, :] + dw_sb[1][None, None, :]
    t = y2 * jax.nn.sigmoid(y2)                                # (HO, WO, C_STEM)

    # ---- project 1x1 + final feature 1x1 folded into ONE matmul, SiLU, pool --
    t2 = t.reshape(HO * WO, C_STEM).astype(bf16)               # (256, 32) lane-dense rows
    u = jnp.dot(t2, wf_ref[...], preferred_element_type=f32)   # (256, NUM_FEATURES)
    u = u + bf_ref[...]
    u = u * jax.nn.sigmoid(u)                                  # SiLU
    feats = jnp.mean(u, axis=0, keepdims=True)                 # (1, NUM_FEATURES) avg pool

    # ---- both detection heads fused (first Linear layers concatenated) -------
    h = jnp.dot(feats.astype(bf16), w1_ref[...], preferred_element_type=f32)
    h = jnp.maximum(h + b1_ref[...], 0.0)                      # ReLU; Dropout(0.3) = id (eval)
    boxes = jnp.dot(h[:, :HIDDEN].astype(bf16), w2b_ref[...],
                    preferred_element_type=f32) + b2b_ref[...]          # (1, 4)
    scores = jnp.dot(h[:, HIDDEN:].astype(bf16), w2c_ref[...],
                     preferred_element_type=f32) + b2c_ref[...]         # (1, NUM_CLASSES)
    boxes_ref[0] = boxes.astype(boxes_ref.dtype)
    scores_ref[0] = scores.astype(scores_ref.dtype)


# -------------------------------- wrapper ------------------------------------
def efficientnet_detector_forward(x_nchw, kp):
    b = x_nchw.shape[0]
    boxes3, scores3 = pl.pallas_call(
        fused_detector_kernel,
        out_shape=(jax.ShapeDtypeStruct((b, 1, 4), jnp.float32),
                   jax.ShapeDtypeStruct((b, 1, NUM_CLASSES), jnp.float32)),
        grid=(b,),
        in_specs=[
            pl.BlockSpec((1, 1, IN_HW, IN_HW), lambda i: (i, 0, 0, 0)),
            pl.BlockSpec((9, C_STEM), lambda i: (0, 0)),
            pl.BlockSpec((2, C_STEM), lambda i: (0, 0)),
            pl.BlockSpec((9, C_STEM), lambda i: (0, 0)),
            pl.BlockSpec((2, C_STEM), lambda i: (0, 0)),
            pl.BlockSpec((C_STEM, NUM_FEATURES), lambda i: (0, 0)),
            pl.BlockSpec((1, NUM_FEATURES), lambda i: (0, 0)),
            pl.BlockSpec((NUM_FEATURES, 2 * HIDDEN), lambda i: (0, 0)),
            pl.BlockSpec((1, 2 * HIDDEN), lambda i: (0, 0)),
            pl.BlockSpec((HIDDEN, 4), lambda i: (0, 0)),
            pl.BlockSpec((1, 4), lambda i: (0, 0)),
            pl.BlockSpec((HIDDEN, NUM_CLASSES), lambda i: (0, 0)),
            pl.BlockSpec((1, NUM_CLASSES), lambda i: (0, 0)),
        ],
        out_specs=(
            pl.BlockSpec((1, 1, 4), lambda i: (i, 0, 0)),
            pl.BlockSpec((1, 1, NUM_CLASSES), lambda i: (i, 0, 0)),
        ),
        scratch_shapes=[pltpu.VMEM((HO + 2, WO + 2, C_STEM), jnp.float32)],
        compiler_params=pltpu.CompilerParams(dimension_semantics=("parallel",)),
    )(x_nchw, kp["stem_w"], kp["stem_sb"], kp["dw_w"], kp["dw_sb"],
      kp["w_fold"], kp["b_fold"], kp["w1_cat"], kp["b1_cat"],
      kp["w2_bbox"], kp["b2_bbox"], kp["w2_cls"], kp["b2_cls"])
    boxes = boxes3.reshape(b, 4)
    scores = scores3.reshape(b, NUM_CLASSES)
    # torch uses int64; JAX defaults to int32 unless x64 is enabled.
    labels = jnp.ones((b,), dtype=jnp.int32)
    return {"boxes": boxes, "labels": labels, "scores": scores}


# ----------------------------- parameters ------------------------------------
def init_params(key):
    ks = jax.random.split(key, 20)

    def nrm(k, shape, s):
        return jax.random.normal(k, shape, jnp.float32) * s

    p = {}
    # stem conv: build a 3-input-channel weight and sum over the input channel,
    # exactly as the module does (weight.sum(dim=1, keepdim=True)).
    w_rgb = nrm(ks[0], (C_STEM, 3, 3, 3), 0.2)            # (Cout, Cin, kh, kw)
    w_gray = w_rgb.sum(axis=1)                            # (Cout, 3, 3)
    p["stem_w"] = jnp.transpose(w_gray, (1, 2, 0)).reshape(9, C_STEM)
    p["stem_scale"] = 1.0 + nrm(ks[1], (C_STEM,), 0.05)
    p["stem_bias"] = nrm(ks[2], (C_STEM,), 0.05)
    # first MBConv: depthwise 3x3 (stride 1) + project 1x1 (no activation)
    w_dw = nrm(ks[3], (C_STEM, 1, 3, 3), 0.2)[:, 0]       # (C, 3, 3)
    p["dw_w"] = jnp.transpose(w_dw, (1, 2, 0)).reshape(9, C_STEM)
    p["dw_scale"] = 1.0 + nrm(ks[4], (C_STEM,), 0.05)
    p["dw_bias"] = nrm(ks[5], (C_STEM,), 0.05)
    p["proj_w"] = nrm(ks[6], (C_STEM, C_BLOCK), 0.15)
    p["proj_scale"] = 1.0 + nrm(ks[7], (C_BLOCK,), 0.05)
    p["proj_bias"] = nrm(ks[8], (C_BLOCK,), 0.05)
    # final 1x1 feature conv -> NUM_FEATURES (stand-in for B0's 320->1280 conv)
    p["head_w"] = nrm(ks[9], (C_BLOCK, NUM_FEATURES), 0.15)
    p["head_scale"] = 1.0 + nrm(ks[10], (NUM_FEATURES,), 0.05)
    p["head_bias"] = nrm(ks[11], (NUM_FEATURES,), 0.05)
    # bbox head: Linear(F,256) -> ReLU -> Dropout -> Linear(256,4)
    p["bbox_w1"] = nrm(ks[12], (NUM_FEATURES, HIDDEN), 0.05)
    p["bbox_b1"] = nrm(ks[13], (1, HIDDEN), 0.05)
    p["bbox_w2"] = nrm(ks[14], (HIDDEN, 4), 0.05)
    p["bbox_b2"] = nrm(ks[15], (1, 4), 0.05)
    # cls head: Linear(F,256) -> ReLU -> Dropout -> Linear(256,num_classes)
    p["cls_w1"] = nrm(ks[16], (NUM_FEATURES, HIDDEN), 0.05)
    p["cls_b1"] = nrm(ks[17], (1, HIDDEN), 0.05)
    p["cls_w2"] = nrm(ks[18], (HIDDEN, NUM_CLASSES), 0.05)
    p["cls_b2"] = nrm(ks[19], (1, NUM_CLASSES), 0.05)
    return p


def prepare_params(p):
    """Fold / concat the raw parameters into the layout the fused kernel expects."""
    bf16 = jnp.bfloat16
    kp = {}
    kp["stem_w"] = p["stem_w"]
    kp["stem_sb"] = jnp.stack([p["stem_scale"], p["stem_bias"]])          # (2, C_STEM)
    kp["dw_w"] = p["dw_w"]
    kp["dw_sb"] = jnp.stack([p["dw_scale"], p["dw_bias"]])                # (2, C_STEM)
    # project 1x1 (act=None) followed by the feature 1x1 fold exactly (eval mode):
    #   y = (((x @ Wp) * sp + bp) @ Wh) * sh + bh
    #     = x @ (((Wp * sp) @ Wh) * sh) + ((bp @ Wh) * sh + bh)
    w_fold = ((p["proj_w"] * p["proj_scale"][None, :]) @ p["head_w"]) \
        * p["head_scale"][None, :]                                        # (C_STEM, F)
    b_fold = (p["proj_bias"] @ p["head_w"]) * p["head_scale"] + p["head_bias"]
    kp["w_fold"] = w_fold.astype(bf16)
    kp["b_fold"] = b_fold.reshape(1, NUM_FEATURES)
    # both heads' first Linear layers concatenated -> one MXU matmul
    kp["w1_cat"] = jnp.concatenate([p["bbox_w1"], p["cls_w1"]], axis=1).astype(bf16)
    kp["b1_cat"] = jnp.concatenate([p["bbox_b1"], p["cls_b1"]], axis=1)   # (1, 2*HIDDEN)
    kp["w2_bbox"] = p["bbox_w2"].astype(bf16)
    kp["b2_bbox"] = p["bbox_b2"]
    kp["w2_cls"] = p["cls_w2"].astype(bf16)
    kp["b2_cls"] = p["cls_b2"]
    return kp


if __name__ == "__main__":
    key = jax.random.PRNGKey(0)
    kx, kparam = jax.random.split(key)
    # NCHW grayscale input, matching the module's 1-input-channel stem.
    x = jax.random.normal(kx, (BATCH, 1, IN_HW, IN_HW), jnp.float32)
    params = prepare_params(init_params(kparam))

    out = jax.jit(efficientnet_detector_forward)(x, params)
    out = jax.tree_util.tree_map(jax.block_until_ready, out)

    assert out["boxes"].shape == (BATCH, 4)
    assert out["scores"].shape == (BATCH, NUM_CLASSES)
    assert out["labels"].shape == (BATCH,)
    print("KERNEL_OK")
</pallas_src>

<mosaic_0001>
module attributes {stable_mosaic.version = 11 : i64} {
  func.func @fused_detector_kernel(%arg0: i32, %arg1: memref<1x1x32x32xf32, #tpu.memory_space<vmem>>, %arg2: memref<9x32xf32, #tpu.memory_space<vmem>>, %arg3: memref<2x32xf32, #tpu.memory_space<vmem>>, %arg4: memref<9x32xf32, #tpu.memory_space<vmem>>, %arg5: memref<2x32xf32, #tpu.memory_space<vmem>>, %arg6: memref<32x128xbf16, #tpu.memory_space<vmem>>, %arg7: memref<1x128xf32, #tpu.memory_space<vmem>>, %arg8: memref<128x512xbf16, #tpu.memory_space<vmem>>, %arg9: memref<1x512xf32, #tpu.memory_space<vmem>>, %arg10: memref<256x4xbf16, #tpu.memory_space<vmem>>, %arg11: memref<1x4xf32, #tpu.memory_space<vmem>>, %arg12: memref<256x3xbf16, #tpu.memory_space<vmem>>, %arg13: memref<1x3xf32, #tpu.memory_space<vmem>>, %arg14: memref<1x1x4xf32, #tpu.memory_space<vmem>>, %arg15: memref<1x1x3xf32, #tpu.memory_space<vmem>>, %arg16: memref<18x18x32xf32, #tpu.memory_space<vmem>>) attributes {dimension_semantics = [#tpu.dimension_semantics<parallel>], iteration_bounds = array<i64: 2>, scalar_prefetch = 0 : i64, scratch_operands = 1 : i64, tpu.core_type = #tpu.core_type<tc>, window_params = [{transform_indices = @transform_0, window_bounds = array<i64: 1, 1, 32, 32>}, {pipeline_mode = #tpu.pipeline_mode<synchronous>, transform_indices = @transform_1, window_bounds = array<i64: 9, 32>}, {pipeline_mode = #tpu.pipeline_mode<synchronous>, transform_indices = @transform_2, window_bounds = array<i64: 2, 32>}, {pipeline_mode = #tpu.pipeline_mode<synchronous>, transform_indices = @transform_3, window_bounds = array<i64: 9, 32>}, {pipeline_mode = #tpu.pipeline_mode<synchronous>, transform_indices = @transform_4, window_bounds = array<i64: 2, 32>}, {pipeline_mode = #tpu.pipeline_mode<synchronous>, transform_indices = @transform_5, window_bounds = array<i64: 32, 128>}, {pipeline_mode = #tpu.pipeline_mode<synchronous>, transform_indices = @transform_6, window_bounds = array<i64: 1, 128>}, {pipeline_mode = #tpu.pipeline_mode<synchronous>, transform_indices = @transform_7, window_bounds = array<i64: 128, 512>}, {pipeline_mode = #tpu.pipeline_mode<synchronous>, transform_indices = @transform_8, window_bounds = array<i64: 1, 512>}, {pipeline_mode = #tpu.pipeline_mode<synchronous>, transform_indices = @transform_9, window_bounds = array<i64: 256, 4>}, {pipeline_mode = #tpu.pipeline_mode<synchronous>, transform_indices = @transform_10, window_bounds = array<i64: 1, 4>}, {pipeline_mode = #tpu.pipeline_mode<synchronous>, transform_indices = @transform_11, window_bounds = array<i64: 256, 3>}, {pipeline_mode = #tpu.pipeline_mode<synchronous>, transform_indices = @transform_12, window_bounds = array<i64: 1, 3>}, {transform_indices = @transform_13, window_bounds = array<i64: 1, 1, 4>}, {transform_indices = @transform_14, window_bounds = array<i64: 1, 1, 3>}]} {
    %c0 = arith.constant 0 : index
    %c0_0 = arith.constant 0 : index
    %c0_1 = arith.constant 0 : index
    %c0_2 = arith.constant 0 : index
    %0 = vector.load %arg1[%c0, %c0_0, %c0_1, %c0_2] : memref<1x1x32x32xf32, #tpu.memory_space<vmem>>, vector<1x1x32x32xf32>
    %1 = vector.shape_cast %0 : vector<1x1x32x32xf32> to vector<32x32xf32>
    %2 = tpu.iota {dimensions = array<i32: 0>} : vector<16x32xi32>
    %3 = tpu.iota {dimensions = array<i32: 1>} : vector<16x32xi32>
    %4 = tpu.iota {dimensions = array<i32: 0>} : vector<32x16xi32>
    %5 = tpu.iota {dimensions = array<i32: 1>} : vector<32x16xi32>
    %c2_i32 = arith.constant 2 : i32
    %6 = vector.broadcast %c2_i32 : i32 to vector<16x32xi32>
    %7 = arith.muli %6, %2 : vector<16x32xi32>
    %c0_i32 = arith.constant 0 : i32
    %8 = vector.broadcast %c0_i32 : i32 to vector<16x32xi32>
    %9 = arith.addi %7, %8 : vector<16x32xi32>
    %c1_i32 = arith.constant 1 : i32
    %10 = vector.broadcast %c1_i32 : i32 to vector<16x32xi32>
    %11 = arith.subi %9, %10 : vector<16x32xi32>
    %12 = arith.cmpi eq, %3, %11 : vector<16x32xi32>
    %13 = arith.extui %12 : vector<16x32xi1> to vector<16x32xi32>
    %14 = arith.sitofp %13 : vector<16x32xi32> to vector<16x32xf32>
    %c2_i32_3 = arith.constant 2 : i32
    %15 = vector.broadcast %c2_i32_3 : i32 to vector<16x32xi32>
    %16 = arith.muli %15, %2 : vector<16x32xi32>
    %c1_i32_4 = arith.constant 1 : i32
    %17 = vector.broadcast %c1_i32_4 : i32 to vector<16x32xi32>
    %18 = arith.addi %16, %17 : vector<16x32xi32>
    %c1_i32_5 = arith.constant 1 : i32
    %19 = vector.broadcast %c1_i32_5 : i32 to vector<16x32xi32>
    %20 = arith.subi %18, %19 : vector<16x32xi32>
    %21 = arith.cmpi eq, %3, %20 : vector<16x32xi32>
    %22 = arith.extui %21 : vector<16x32xi1> to vector<16x32xi32>
    %23 = arith.sitofp %22 : vector<16x32xi32> to vector<16x32xf32>
    %c2_i32_6 = arith.constant 2 : i32
    %24 = vector.broadcast %c2_i32_6 : i32 to vector<16x32xi32>
    %25 = arith.muli %24, %2 : vector<16x32xi32>
    %c2_i32_7 = arith.constant 2 : i32
    %26 = vector.broadcast %c2_i32_7 : i32 to vector<16x32xi32>
    %27 = arith.addi %25, %26 : vector<16x32xi32>
    %c1_i32_8 = arith.constant 1 : i32
    %28 = vector.broadcast %c1_i32_8 : i32 to vector<16x32xi32>
    %29 = arith.subi %27, %28 : vector<16x32xi32>
    %30 = arith.cmpi eq, %3, %29 : vector<16x32xi32>
    %31 = arith.extui %30 : vector<16x32xi1> to vector<16x32xi32>
    %32 = arith.sitofp %31 : vector<16x32xi32> to vector<16x32xf32>
    %c2_i32_9 = arith.constant 2 : i32
    %33 = vector.broadcast %c2_i32_9 : i32 to vector<32x16xi32>
    %34 = arith.muli %33, %5 : vector<32x16xi32>
    %c0_i32_10 = arith.constant 0 : i32
    %35 = vector.broadcast %c0_i32_10 : i32 to vector<32x16xi32>
    %36 = arith.addi %34, %35 : vector<32x16xi32>
    %c1_i32_11 = arith.constant 1 : i32
    %37 = vector.broadcast %c1_i32_11 : i32 to vector<32x16xi32>
    %38 = arith.subi %36, %37 : vector<32x16xi32>
    %39 = arith.cmpi eq, %4, %38 : vector<32x16xi32>
    %40 = arith.extui %39 : vector<32x16xi1> to vector<32x16xi32>
    %41 = arith.sitofp %40 : vector<32x16xi32> to vector<32x16xf32>
    %c2_i32_12 = arith.constant 2 : i32
    %42 = vector.broadcast %c2_i32_12 : i32 to vector<32x16xi32>
    %43 = arith.muli %42, %5 : vector<32x16xi32>
    %c1_i32_13 = arith.constant 1 : i32
    %44 = vector.broadcast %c1_i32_13 : i32 to vector<32x16xi32>
    %45 = arith.addi %43, %44 : vector<32x16xi32>
    %c1_i32_14 = arith.constant 1 : i32
    %46 = vector.broadcast %c1_i32_14 : i32 to vector<32x16xi32>
    %47 = arith.subi %45, %46 : vector<32x16xi32>
    %48 = arith.cmpi eq, %4, %47 : vector<32x16xi32>
    %49 = arith.extui %48 : vector<32x16xi1> to vector<32x16xi32>
    %50 = arith.sitofp %49 : vector<32x16xi32> to vector<32x16xf32>
    %c2_i32_15 = arith.constant 2 : i32
    %51 = vector.broadcast %c2_i32_15 : i32 to vector<32x16xi32>
    %52 = arith.muli %51, %5 : vector<32x16xi32>
    %c2_i32_16 = arith.constant 2 : i32
    %53 = vector.broadcast %c2_i32_16 : i32 to vector<32x16xi32>
    %54 = arith.addi %52, %53 : vector<32x16xi32>
    %c1_i32_17 = arith.constant 1 : i32
    %55 = vector.broadcast %c1_i32_17 : i32 to vector<32x16xi32>
    %56 = arith.subi %54, %55 : vector<32x16xi32>
    %57 = arith.cmpi eq, %4, %56 : vector<32x16xi32>
    %58 = arith.extui %57 : vector<32x16xi1> to vector<32x16xi32>
    %59 = arith.sitofp %58 : vector<32x16xi32> to vector<32x16xf32>
    %c0_18 = arith.constant 0 : index
    %c0_19 = arith.constant 0 : index
    %60 = vector.load %arg2[%c0_18, %c0_19] : memref<9x32xf32, #tpu.memory_space<vmem>>, vector<9x32xf32>
    %c0_20 = arith.constant 0 : index
    %c0_21 = arith.constant 0 : index
    %61 = vector.load %arg3[%c0_20, %c0_21] : memref<2x32xf32, #tpu.memory_space<vmem>>, vector<2x32xf32>
    %cst = arith.constant 0.000000e+00 : f32
    %62 = vector.broadcast %cst : f32 to vector<16x16x32xf32>
    %cst_22 = arith.constant dense<0.000000e+00> : vector<16x32xf32>
    %63 = tpu.matmul %14, %1, %cst_22 {dimension_numbers = #tpu.dot_dimension_numbers<[1], [0], [0], [1], [0, 0, 1, 1], [], []>} : vector<16x32xf32>, vector<32x32xf32>, vector<16x32xf32> -> vector<16x32xf32>
    %cst_23 = arith.constant dense<0.000000e+00> : vector<16x16xf32>
    %64 = tpu.matmul %63, %41, %cst_23 {dimension_numbers = #tpu.dot_dimension_numbers<[1], [0], [0], [1], [0, 0, 1, 1], [], []>} : vector<16x32xf32>, vector<32x16xf32>, vector<16x16xf32> -> vector<16x16xf32>
    %65 = vector.shape_cast %64 : vector<16x16xf32> to vector<16x16x1xf32>
    %66 = vector.extract_strided_slice %60 {offsets = [0, 0], sizes = [1, 32], strides = [1, 1]} : vector<9x32xf32> to vector<1x32xf32>
    %67 = vector.shape_cast %66 : vector<1x32xf32> to vector<32xf32>
    %68 = vector.shape_cast %67 : vector<32xf32> to vector<1x1x32xf32>
    %69 = vector.broadcast %65 : vector<16x16x1xf32> to vector<16x16x32xf32>
    %70 = vector.broadcast %68 : vector<1x1x32xf32> to vector<16x16x32xf32>
    %71 = arith.mulf %69, %70 : vector<16x16x32xf32>
    %72 = arith.addf %62, %71 : vector<16x16x32xf32>
    %cst_24 = arith.constant dense<0.000000e+00> : vector<16x16xf32>
    %73 = tpu.matmul %63, %50, %cst_24 {dimension_numbers = #tpu.dot_dimension_numbers<[1], [0], [0], [1], [0, 0, 1, 1], [], []>} : vector<16x32xf32>, vector<32x16xf32>, vector<16x16xf32> -> vector<16x16xf32>
    %74 = vector.shape_cast %73 : vector<16x16xf32> to vector<16x16x1xf32>
    %75 = vector.extract_strided_slice %60 {offsets = [1, 0], sizes = [1, 32], strides = [1, 1]} : vector<9x32xf32> to vector<1x32xf32>
    %76 = vector.shape_cast %75 : vector<1x32xf32> to vector<32xf32>
    %77 = vector.shape_cast %76 : vector<32xf32> to vector<1x1x32xf32>
    %78 = vector.broadcast %74 : vector<16x16x1xf32> to vector<16x16x32xf32>
    %79 = vector.broadcast %77 : vector<1x1x32xf32> to vector<16x16x32xf32>
    %80 = arith.mulf %78, %79 : vector<16x16x32xf32>
    %81 = arith.addf %72, %80 : vector<16x16x32xf32>
    %cst_25 = arith.constant dense<0.000000e+00> : vector<16x16xf32>
    %82 = tpu.matmul %63, %59, %cst_25 {dimension_numbers = #tpu.dot_dimension_numbers<[1], [0], [0], [1], [0, 0, 1, 1], [], []>} : vector<16x32xf32>, vector<32x16xf32>, vector<16x16xf32> -> vector<16x16xf32>
    %83 = vector.shape_cast %82 : vector<16x16xf32> to vector<16x16x1xf32>
    %84 = vector.extract_strided_slice %60 {offsets = [2, 0], sizes = [1, 32], strides = [1, 1]} : vector<9x32xf32> to vector<1x32xf32>
    %85 = vector.shape_cast %84 : vector<1x32xf32> to vector<32xf32>
    %86 = vector.shape_cast %85 : vector<32xf32> to vector<1x1x32xf32>
    %87 = vector.broadcast %83 : vector<16x16x1xf32> to vector<16x16x32xf32>
    %88 = vector.broadcast %86 : vector<1x1x32xf32> to vector<16x16x32xf32>
    %89 = arith.mulf %87, %88 : vector<16x16x32xf32>
    %90 = arith.addf %81, %89 : vector<16x16x32xf32>
    %cst_26 = arith.constant dense<0.000000e+00> : vector<16x32xf32>
    %91 = tpu.matmul %23, %1, %cst_26 {dimension_numbers = #tpu.dot_dimension_numbers<[1], [0], [0], [1], [0, 0, 1, 1], [], []>} : vector<16x32xf32>, vector<32x32xf32>, vector<16x32xf32> -> vector<16x32xf32>
    %cst_27 = arith.constant dense<0.000000e+00> : vector<16x16xf32>
    %92 = tpu.matmul %91, %41, %cst_27 {dimension_numbers = #tpu.dot_dimension_numbers<[1], [0], [0], [1], [0, 0, 1, 1], [], []>} : vector<16x32xf32>, vector<32x16xf32>, vector<16x16xf32> -> vector<16x16xf32>
    %93 = vector.shape_cast %92 : vector<16x16xf32> to vector<16x16x1xf32>
    %94 = vector.extract_strided_slice %60 {offsets = [3, 0], sizes = [1, 32], strides = [1, 1]} : vector<9x32xf32> to vector<1x32xf32>
    %95 = vector.shape_cast %94 : vector<1x32xf32> to vector<32xf32>
    %96 = vector.shape_cast %95 : vector<32xf32> to vector<1x1x32xf32>
    %97 = vector.broadcast %93 : vector<16x16x1xf32> to vector<16x16x32xf32>
    %98 = vector.broadcast %96 : vector<1x1x32xf32> to vector<16x16x32xf32>
    %99 = arith.mulf %97, %98 : vector<16x16x32xf32>
    %100 = arith.addf %90, %99 : vector<16x16x32xf32>
    %cst_28 = arith.constant dense<0.000000e+00> : vector<16x16xf32>
    %101 = tpu.matmul %91, %50, %cst_28 {dimension_numbers = #tpu.dot_dimension_numbers<[1], [0], [0], [1], [0, 0, 1, 1], [], []>} : vector<16x32xf32>, vector<32x16xf32>, vector<16x16xf32> -> vector<16x16xf32>
    %102 = vector.shape_cast %101 : vector<16x16xf32> to vector<16x16x1xf32>
    %103 = vector.extract_strided_slice %60 {offsets = [4, 0], sizes = [1, 32], strides = [1, 1]} : vector<9x32xf32> to vector<1x32xf32>
    %104 = vector.shape_cast %103 : vector<1x32xf32> to vector<32xf32>
    %105 = vector.shape_cast %104 : vector<32xf32> to vector<1x1x32xf32>
    %106 = vector.broadcast %102 : vector<16x16x1xf32> to vector<16x16x32xf32>
    %107 = vector.broadcast %105 : vector<1x1x32xf32> to vector<16x16x32xf32>
    %108 = arith.mulf %106, %107 : vector<16x16x32xf32>
    %109 = arith.addf %100, %108 : vector<16x16x32xf32>
    %cst_29 = arith.constant dense<0.000000e+00> : vector<16x16xf32>
    %110 = tpu.matmul %91, %59, %cst_29 {dimension_numbers = #tpu.dot_dimension_numbers<[1], [0], [0], [1], [0, 0, 1, 1], [], []>} : vector<16x32xf32>, vector<32x16xf32>, vector<16x16xf32> -> vector<16x16xf32>
    %111 = vector.shape_cast %110 : vector<16x16xf32> to vector<16x16x1xf32>
    %112 = vector.extract_strided_slice %60 {offsets = [5, 0], sizes = [1, 32], strides = [1, 1]} : vector<9x32xf32> to vector<1x32xf32>
    %113 = vector.shape_cast %112 : vector<1x32xf32> to vector<32xf32>
    %114 = vector.shape_cast %113 : vector<32xf32> to vector<1x1x32xf32>
    %115 = vector.broadcast %111 : vector<16x16x1xf32> to vector<16x16x32xf32>
    %116 = vector.broadcast %114 : vector<1x1x32xf32> to vector<16x16x32xf32>
    %117 = arith.mulf %115, %116 : vector<16x16x32xf32>
    %118 = arith.addf %109, %117 : vector<16x16x32xf32>
    %cst_30 = arith.constant dense<0.000000e+00> : vector<16x32xf32>
    %119 = tpu.matmul %32, %1, %cst_30 {dimension_numbers = #tpu.dot_dimension_numbers<[1], [0], [0], [1], [0, 0, 1, 1], [], []>} : vector<16x32xf32>, vector<32x32xf32>, vector<16x32xf32> -> vector<16x32xf32>
    %cst_31 = arith.constant dense<0.000000e+00> : vector<16x16xf32>
    %120 = tpu.matmul %119, %41, %cst_31 {dimension_numbers = #tpu.dot_dimension_numbers<[1], [0], [0], [1], [0, 0, 1, 1], [], []>} : vector<16x32xf32>, vector<32x16xf32>, vector<16x16xf32> -> vector<16x16xf32>
    %121 = vector.shape_cast %120 : vector<16x16xf32> to vector<16x16x1xf32>
    %122 = vector.extract_strided_slice %60 {offsets = [6, 0], sizes = [1, 32], strides = [1, 1]} : vector<9x32xf32> to vector<1x32xf32>
    %123 = vector.shape_cast %122 : vector<1x32xf32> to vector<32xf32>
    %124 = vector.shape_cast %123 : vector<32xf32> to vector<1x1x32xf32>
    %125 = vector.broadcast %121 : vector<16x16x1xf32> to vector<16x16x32xf32>
    %126 = vector.broadcast %124 : vector<1x1x32xf32> to vector<16x16x32xf32>
    %127 = arith.mulf %125, %126 : vector<16x16x32xf32>
    %128 = arith.addf %118, %127 : vector<16x16x32xf32>
    %cst_32 = arith.constant dense<0.000000e+00> : vector<16x16xf32>
    %129 = tpu.matmul %119, %50, %cst_32 {dimension_numbers = #tpu.dot_dimension_numbers<[1], [0], [0], [1], [0, 0, 1, 1], [], []>} : vector<16x32xf32>, vector<32x16xf32>, vector<16x16xf32> -> vector<16x16xf32>
    %130 = vector.shape_cast %129 : vector<16x16xf32> to vector<16x16x1xf32>
    %131 = vector.extract_strided_slice %60 {offsets = [7, 0], sizes = [1, 32], strides = [1, 1]} : vector<9x32xf32> to vector<1x32xf32>
    %132 = vector.shape_cast %131 : vector<1x32xf32> to vector<32xf32>
    %133 = vector.shape_cast %132 : vector<32xf32> to vector<1x1x32xf32>
    %134 = vector.broadcast %130 : vector<16x16x1xf32> to vector<16x16x32xf32>
    %135 = vector.broadcast %133 : vector<1x1x32xf32> to vector<16x16x32xf32>
    %136 = arith.mulf %134, %135 : vector<16x16x32xf32>
    %137 = arith.addf %128, %136 : vector<16x16x32xf32>
    %cst_33 = arith.constant dense<0.000000e+00> : vector<16x16xf32>
    %138 = tpu.matmul %119, %59, %cst_33 {dimension_numbers = #tpu.dot_dimension_numbers<[1], [0], [0], [1], [0, 0, 1, 1], [], []>} : vector<16x32xf32>, vector<32x16xf32>, vector<16x16xf32> -> vector<16x16xf32>
    %139 = vector.shape_cast %138 : vector<16x16xf32> to vector<16x16x1xf32>
    %140 = vector.extract_strided_slice %60 {offsets = [8, 0], sizes = [1, 32], strides = [1, 1]} : vector<9x32xf32> to vector<1x32xf32>
    %141 = vector.shape_cast %140 : vector<1x32xf32> to vector<32xf32>
    %142 = vector.shape_cast %141 : vector<32xf32> to vector<1x1x32xf32>
    %143 = vector.broadcast %139 : vector<16x16x1xf32> to vector<16x16x32xf32>
    %144 = vector.broadcast %142 : vector<1x1x32xf32> to vector<16x16x32xf32>
    %145 = arith.mulf %143, %144 : vector<16x16x32xf32>
    %146 = arith.addf %137, %145 : vector<16x16x32xf32>
    %147 = vector.extract_strided_slice %61 {offsets = [0, 0], sizes = [1, 32], strides = [1, 1]} : vector<2x32xf32> to vector<1x32xf32>
    %148 = vector.shape_cast %147 : vector<1x32xf32> to vector<32xf32>
    %149 = vector.shape_cast %148 : vector<32xf32> to vector<1x1x32xf32>
    %150 = vector.broadcast %149 : vector<1x1x32xf32> to vector<16x16x32xf32>
    %151 = arith.mulf %146, %150 : vector<16x16x32xf32>
    %152 = vector.extract_strided_slice %61 {offsets = [1, 0], sizes = [1, 32], strides = [1, 1]} : vector<2x32xf32> to vector<1x32xf32>
    %153 = vector.shape_cast %152 : vector<1x32xf32> to vector<32xf32>
    %154 = vector.shape_cast %153 : vector<32xf32> to vector<1x1x32xf32>
    %155 = vector.broadcast %154 : vector<1x1x32xf32> to vector<16x16x32xf32>
    %156 = arith.addf %151, %155 : vector<16x16x32xf32>
    %157 = arith.negf %156 : vector<16x16x32xf32>
    %158 = math.exp %157 : vector<16x16x32xf32>
    %cst_34 = arith.constant 1.000000e+00 : f32
    %159 = vector.broadcast %cst_34 : f32 to vector<16x16x32xf32>
    %160 = arith.addf %159, %158 : vector<16x16x32xf32>
    %161 = arith.divf %159, %160 : vector<16x16x32xf32>
    %162 = arith.mulf %156, %161 : vector<16x16x32xf32>
    %cst_35 = arith.constant 0.000000e+00 : f32
    %163 = vector.broadcast %cst_35 : f32 to vector<18x18x32xf32>
    %c0_36 = arith.constant 0 : index
    %c0_37 = arith.constant 0 : index
    %c0_38 = arith.constant 0 : index
    %164 = vector.load %arg16[%c0_36, %c0_37, %c0_38] : memref<18x18x32xf32, #tpu.memory_space<vmem>>, vector<18x18x32xf32>
    tpu.vector_store %arg16[%c0_36, %c0_37, %c0_38], %163 {strides = array<i32>} : memref<18x18x32xf32, #tpu.memory_space<vmem>>, vector<18x18x32xf32>,
    %c1 = arith.constant 1 : index
    %c1_39 = arith.constant 1 : index
    %c0_40 = arith.constant 0 : index
    %165 = vector.load %arg16[%c1, %c1_39, %c0_40] : memref<18x18x32xf32, #tpu.memory_space<vmem>>, vector<16x16x32xf32>
    tpu.vector_store %arg16[%c1, %c1_39, %c0_40], %162 {strides = array<i32>} : memref<18x18x32xf32, #tpu.memory_space<vmem>>, vector<16x16x32xf32>,
    %c0_41 = arith.constant 0 : index
    %c0_42 = arith.constant 0 : index
    %166 = vector.load %arg4[%c0_41, %c0_42] : memref<9x32xf32, #tpu.memory_space<vmem>>, vector<9x32xf32>
    %c0_43 = arith.constant 0 : index
    %c0_44 = arith.constant 0 : index
    %167 = vector.load %arg5[%c0_43, %c0_44] : memref<2x32xf32, #tpu.memory_space<vmem>>, vector<2x32xf32>
    %cst_45 = arith.constant 0.000000e+00 : f32
    %168 = vector.broadcast %cst_45 : f32 to vector<16x16x32xf32>
    %c0_46 = arith.constant 0 : index
    %c0_47 = arith.constant 0 : index
    %c0_48 = arith.constant 0 : index
    %169 = vector.load %arg16[%c0_46, %c0_47, %c0_48] : memref<18x18x32xf32, #tpu.memory_space<vmem>>, vector<16x16x32xf32>
    %170 = vector.extract_strided_slice %166 {offsets = [0, 0], sizes = [1, 32], strides = [1, 1]} : vector<9x32xf32> to vector<1x32xf32>
    %171 = vector.shape_cast %170 : vector<1x32xf32> to vector<32xf32>
    %172 = vector.shape_cast %171 : vector<32xf32> to vector<1x1x32xf32>
    %173 = vector.broadcast %172 : vector<1x1x32xf32> to vector<16x16x32xf32>
    %174 = arith.mulf %169, %173 : vector<16x16x32xf32>
    %175 = arith.addf %168, %174 : vector<16x16x32xf32>
    %c0_49 = arith.constant 0 : index
    %c1_50 = arith.constant 1 : index
    %c0_51 = arith.constant 0 : index
    %176 = vector.load %arg16[%c0_49, %c1_50, %c0_51] : memref<18x18x32xf32, #tpu.memory_space<vmem>>, vector<16x16x32xf32>
    %177 = vector.extract_strided_slice %166 {offsets = [1, 0], sizes = [1, 32], strides = [1, 1]} : vector<9x32xf32> to vector<1x32xf32>
    %178 = vector.shape_cast %177 : vector<1x32xf32> to vector<32xf32>
    %179 = vector.shape_cast %178 : vector<32xf32> to vector<1x1x32xf32>
    %180 = vector.broadcast %179 : vector<1x1x32xf32> to vector<16x16x32xf32>
    %181 = arith.mulf %176, %180 : vector<16x16x32xf32>
    %182 = arith.addf %175, %181 : vector<16x16x32xf32>
    %c0_52 = arith.constant 0 : index
    %c2 = arith.constant 2 : index
    %c0_53 = arith.constant 0 : index
    %183 = vector.load %arg16[%c0_52, %c2, %c0_53] : memref<18x18x32xf32, #tpu.memory_space<vmem>>, vector<16x16x32xf32>
    %184 = vector.extract_strided_slice %166 {offsets = [2, 0], sizes = [1, 32], strides = [1, 1]} : vector<9x32xf32> to vector<1x32xf32>
    %185 = vector.shape_cast %184 : vector<1x32xf32> to vector<32xf32>
    %186 = vector.shape_cast %185 : vector<32xf32> to vector<1x1x32xf32>
    %187 = vector.broadcast %186 : vector<1x1x32xf32> to vector<16x16x32xf32>
    %188 = arith.mulf %183, %187 : vector<16x16x32xf32>
    %189 = arith.addf %182, %188 : vector<16x16x32xf32>
    %c1_54 = arith.constant 1 : index
    %c0_55 = arith.constant 0 : index
    %c0_56 = arith.constant 0 : index
    %190 = vector.load %arg16[%c1_54, %c0_55, %c0_56] : memref<18x18x32xf32, #tpu.memory_space<vmem>>, vector<16x16x32xf32>
    %191 = vector.extract_strided_slice %166 {offsets = [3, 0], sizes = [1, 32], strides = [1, 1]} : vector<9x32xf32> to vector<1x32xf32>
    %192 = vector.shape_cast %191 : vector<1x32xf32> to vector<32xf32>
    %193 = vector.shape_cast %192 : vector<32xf32> to vector<1x1x32xf32>
    %194 = vector.broadcast %193 : vector<1x1x32xf32> to vector<16x16x32xf32>
    %195 = arith.mulf %190, %194 : vector<16x16x32xf32>
    %196 = arith.addf %189, %195 : vector<16x16x32xf32>
    %c1_57 = arith.constant 1 : index
    %c1_58 = arith.constant 1 : index
    %c0_59 = arith.constant 0 : index
    %197 = vector.load %arg16[%c1_57, %c1_58, %c0_59] : memref<18x18x32xf32, #tpu.memory_space<vmem>>, vector<16x16x32xf32>
    %198 = vector.extract_strided_slice %166 {offsets = [4, 0], sizes = [1, 32], strides = [1, 1]} : vector<9x32xf32> to vector<1x32xf32>
    %199 = vector.shape_cast %198 : vector<1x32xf32> to vector<32xf32>
    %200 = vector.shape_cast %199 : vector<32xf32> to vector<1x1x32xf32>
    %201 = vector.broadcast %200 : vector<1x1x32xf32> to vector<16x16x32xf32>
    %202 = arith.mulf %197, %201 : vector<16x16x32xf32>
    %203 = arith.addf %196, %202 : vector<16x16x32xf32>
    %c1_60 = arith.constant 1 : index
    %c2_61 = arith.constant 2 : index
    %c0_62 = arith.constant 0 : index
    %204 = vector.load %arg16[%c1_60, %c2_61, %c0_62] : memref<18x18x32xf32, #tpu.memory_space<vmem>>, vector<16x16x32xf32>
    %205 = vector.extract_strided_slice %166 {offsets = [5, 0], sizes = [1, 32], strides = [1, 1]} : vector<9x32xf32> to vector<1x32xf32>
    %206 = vector.shape_cast %205 : vector<1x32xf32> to vector<32xf32>
    %207 = vector.shape_cast %206 : vector<32xf32> to vector<1x1x32xf32>
    %208 = vector.broadcast %207 : vector<1x1x32xf32> to vector<16x16x32xf32>
    %209 = arith.mulf %204, %208 : vector<16x16x32xf32>
    %210 = arith.addf %203, %209 : vector<16x16x32xf32>
    %c2_63 = arith.constant 2 : index
    %c0_64 = arith.constant 0 : index
    %c0_65 = arith.constant 0 : index
    %211 = vector.load %arg16[%c2_63, %c0_64, %c0_65] : memref<18x18x32xf32, #tpu.memory_space<vmem>>, vector<16x16x32xf32>
    %212 = vector.extract_strided_slice %166 {offsets = [6, 0], sizes = [1, 32], strides = [1, 1]} : vector<9x32xf32> to vector<1x32xf32>
    %213 = vector.shape_cast %212 : vector<1x32xf32> to vector<32xf32>
    %214 = vector.shape_cast %213 : vector<32xf32> to vector<1x1x32xf32>
    %215 = vector.broadcast %214 : vector<1x1x32xf32> to vector<16x16x32xf32>
    %216 = arith.mulf %211, %215 : vector<16x16x32xf32>
    %217 = arith.addf %210, %216 : vector<16x16x32xf32>
    %c2_66 = arith.constant 2 : index
    %c1_67 = arith.constant 1 : index
    %c0_68 = arith.constant 0 : index
    %218 = vector.load %arg16[%c2_66, %c1_67, %c0_68] : memref<18x18x32xf32, #tpu.memory_space<vmem>>, vector<16x16x32xf32>
    %219 = vector.extract_strided_slice %166 {offsets = [7, 0], sizes = [1, 32], strides = [1, 1]} : vector<9x32xf32> to vector<1x32xf32>
    %220 = vector.shape_cast %219 : vector<1x32xf32> to vector<32xf32>
    %221 = vector.shape_cast %220 : vector<32xf32> to vector<1x1x32xf32>
    %222 = vector.broadcast %221 : vector<1x1x32xf32> to vector<16x16x32xf32>
    %223 = arith.mulf %218, %222 : vector<16x16x32xf32>
    %224 = arith.addf %217, %223 : vector<16x16x32xf32>
    %c2_69 = arith.constant 2 : index
    %c2_70 = arith.constant 2 : index
    %c0_71 = arith.constant 0 : index
    %225 = vector.load %arg16[%c2_69, %c2_70, %c0_71] : memref<18x18x32xf32, #tpu.memory_space<vmem>>, vector<16x16x32xf32>
    %226 = vector.extract_strided_slice %166 {offsets = [8, 0], sizes = [1, 32], strides = [1, 1]} : vector<9x32xf32> to vector<1x32xf32>
    %227 = vector.shape_cast %226 : vector<1x32xf32> to vector<32xf32>
    %228 = vector.shape_cast %227 : vector<32xf32> to vector<1x1x32xf32>
    %229 = vector.broadcast %228 : vector<1x1x32xf32> to vector<16x16x32xf32>
    %230 = arith.mulf %225, %229 : vector<16x16x32xf32>
    %231 = arith.addf %224, %230 : vector<16x16x32xf32>
    %232 = vector.extract_strided_slice %167 {offsets = [0, 0], sizes = [1, 32], strides = [1, 1]} : vector<2x32xf32> to vector<1x32xf32>
    %233 = vector.shape_cast %232 : vector<1x32xf32> to vector<32xf32>
    %234 = vector.shape_cast %233 : vector<32xf32> to vector<1x1x32xf32>
    %235 = vector.broadcast %234 : vector<1x1x32xf32> to vector<16x16x32xf32>
    %236 = arith.mulf %231, %235 : vector<16x16x32xf32>
    %237 = vector.extract_strided_slice %167 {offsets = [1, 0], sizes = [1, 32], strides = [1, 1]} : vector<2x32xf32> to vector<1x32xf32>
    %238 = vector.shape_cast %237 : vector<1x32xf32> to vector<32xf32>
    %239 = vector.shape_cast %238 : vector<32xf32> to vector<1x1x32xf32>
    %240 = vector.broadcast %239 : vector<1x1x32xf32> to vector<16x16x32xf32>
    %241 = arith.addf %236, %240 : vector<16x16x32xf32>
    %242 = arith.negf %241 : vector<16x16x32xf32>
    %243 = math.exp %242 : vector<16x16x32xf32>
    %cst_72 = arith.constant 1.000000e+00 : f32
    %244 = vector.broadcast %cst_72 : f32 to vector<16x16x32xf32>
    %245 = arith.addf %244, %243 : vector<16x16x32xf32>
    %246 = arith.divf %244, %245 : vector<16x16x32xf32>
    %247 = arith.mulf %241, %246 : vector<16x16x32xf32>
    %248 = vector.shape_cast %247 : vector<16x16x32xf32> to vector<256x32xf32>
    %249 = arith.truncf %248 : vector<256x32xf32> to vector<256x32xbf16>
    %c0_73 = arith.constant 0 : index
    %c0_74 = arith.constant 0 : index
    %250 = vector.load %arg6[%c0_73, %c0_74] : memref<32x128xbf16, #tpu.memory_space<vmem>>, vector<32x128xbf16>
    %cst_75 = arith.constant dense<0.000000e+00> : vector<256x128xf32>
    %251 = tpu.matmul %249, %250, %cst_75 {dimension_numbers = #tpu.dot_dimension_numbers<[1], [0], [0], [1], [0, 0, 1, 1], [], []>} : vector<256x32xbf16>, vector<32x128xbf16>, vector<256x128xf32> -> vector<256x128xf32>
    %c0_76 = arith.constant 0 : index
    %c0_77 = arith.constant 0 : index
    %252 = vector.load %arg7[%c0_76, %c0_77] : memref<1x128xf32, #tpu.memory_space<vmem>>, vector<1x128xf32>
    %253 = vector.broadcast %252 : vector<1x128xf32> to vector<256x128xf32>
    %254 = arith.addf %251, %253 : vector<256x128xf32>
    %255 = arith.negf %254 : vector<256x128xf32>
    %256 = math.exp %255 : vector<256x128xf32>
    %cst_78 = arith.constant 1.000000e+00 : f32
    %257 = vector.broadcast %cst_78 : f32 to vector<256x128xf32>
    %258 = arith.addf %257, %256 : vector<256x128xf32>
    %259 = arith.divf %257, %258 : vector<256x128xf32>
    %260 = arith.mulf %254, %259 : vector<256x128xf32>
    %cst_79 = arith.constant dense<0.000000e+00> : vector<128xf32>
    %261 = vector.multi_reduction <add>, %260, %cst_79 [0] : vector<256x128xf32> to vector<128xf32>
    %262 = vector.shape_cast %261 : vector<128xf32> to vector<1x128xf32>
    %cst_80 = arith.constant 2.560000e+02 : f32
    %263 = vector.broadcast %cst_80 : f32 to vector<1x128xf32>
    %264 = arith.divf %262, %263 : vector<1x128xf32>
    %265 = arith.truncf %264 : vector<1x128xf32> to vector<1x128xbf16>
    %c0_81 = arith.constant 0 : index
    %c0_82 = arith.constant 0 : index
    %266 = vector.load %arg8[%c0_81, %c0_82] : memref<128x512xbf16, #tpu.memory_space<vmem>>, vector<128x512xbf16>
    %cst_83 = arith.constant dense<0.000000e+00> : vector<1x512xf32>
    %267 = tpu.matmul %265, %266, %cst_83 {dimension_numbers = #tpu.dot_dimension_numbers<[1], [0], [0], [1], [0, 0, 1, 1], [], []>} : vector<1x128xbf16>, vector<128x512xbf16>, vector<1x512xf32> -> vector<1x512xf32>
    %c0_84 = arith.constant 0 : index
    %c0_85 = arith.constant 0 : index
    %268 = vector.load %arg9[%c0_84, %c0_85] : memref<1x512xf32, #tpu.memory_space<vmem>>, vector<1x512xf32>
    %269 = arith.addf %267, %268 : vector<1x512xf32>
    %cst_86 = arith.constant 0.000000e+00 : f32
    %270 = vector.broadcast %cst_86 : f32 to vector<1x512xf32>
    %271 = arith.maximumf %269, %270 : vector<1x512xf32>
    %272 = vector.extract_strided_slice %271 {offsets = [0, 0], sizes = [1, 256], strides = [1, 1]} : vector<1x512xf32> to vector<1x256xf32>
    %273 = arith.truncf %272 : vector<1x256xf32> to vector<1x256xbf16>
    %c0_87 = arith.constant 0 : index
    %c0_88 = arith.constant 0 : index
    %274 = vector.load %arg10[%c0_87, %c0_88] : memref<256x4xbf16, #tpu.memory_space<vmem>>, vector<256x4xbf16>
    %cst_89 = arith.constant dense<0.000000e+00> : vector<1x4xf32>
    %275 = tpu.matmul %273, %274, %cst_89 {dimension_numbers = #tpu.dot_dimension_numbers<[1], [0], [0], [1], [0, 0, 1, 1], [], []>} : vector<1x256xbf16>, vector<256x4xbf16>, vector<1x4xf32> -> vector<1x4xf32>
    %c0_90 = arith.constant 0 : index
    %c0_91 = arith.constant 0 : index
    %276 = vector.load %arg11[%c0_90, %c0_91] : memref<1x4xf32, #tpu.memory_space<vmem>>, vector<1x4xf32>
    %277 = arith.addf %275, %276 : vector<1x4xf32>
    %278 = vector.extract_strided_slice %271 {offsets = [0, 256], sizes = [1, 256], strides = [1, 1]} : vector<1x512xf32> to vector<1x256xf32>
    %279 = arith.truncf %278 : vector<1x256xf32> to vector<1x256xbf16>
    %c0_92 = arith.constant 0 : index
    %c0_93 = arith.constant 0 : index
    %280 = vector.load %arg12[%c0_92, %c0_93] : memref<256x3xbf16, #tpu.memory_space<vmem>>, vector<256x3xbf16>
    %cst_94 = arith.constant dense<0.000000e+00> : vector<1x3xf32>
    %281 = tpu.matmul %279, %280, %cst_94 {dimension_numbers = #tpu.dot_dimension_numbers<[1], [0], [0], [1], [0, 0, 1, 1], [], []>} : vector<1x256xbf16>, vector<256x3xbf16>, vector<1x3xf32> -> vector<1x3xf32>
    %c0_95 = arith.constant 0 : index
    %c0_96 = arith.constant 0 : index
    %282 = vector.load %arg13[%c0_95, %c0_96] : memref<1x3xf32, #tpu.memory_space<vmem>>, vector<1x3xf32>
    %283 = arith.addf %281, %282 : vector<1x3xf32>
    %c0_97 = arith.constant 0 : index
    %c0_98 = arith.constant 0 : index
    %c0_99 = arith.constant 0 : index
    %284 = vector.load %arg14[%c0_97, %c0_98, %c0_99] : memref<1x1x4xf32, #tpu.memory_space<vmem>>, vector<1x1x4xf32>
    %285 = vector.shape_cast %284 : vector<1x1x4xf32> to vector<1x4xf32>
    %286 = vector.shape_cast %277 : vector<1x4xf32> to vector<1x1x4xf32>
    tpu.vector_store %arg14[%c0_97, %c0_98, %c0_99], %286 {strides = array<i32>} : memref<1x1x4xf32, #tpu.memory_space<vmem>>, vector<1x1x4xf32>,
    %c0_100 = arith.constant 0 : index
    %c0_101 = arith.constant 0 : index
    %c0_102 = arith.constant 0 : index
    %287 = vector.load %arg15[%c0_100, %c0_101, %c0_102] : memref<1x1x3xf32, #tpu.memory_space<vmem>>, vector<1x1x3xf32>
    %288 = vector.shape_cast %287 : vector<1x1x3xf32> to vector<1x3xf32>
    %289 = vector.shape_cast %283 : vector<1x3xf32> to vector<1x1x3xf32>
    tpu.vector_store %arg15[%c0_100, %c0_101, %c0_102], %289 {strides = array<i32>} : memref<1x1x3xf32, #tpu.memory_space<vmem>>, vector<1x1x3xf32>,
    return
  }
  func.func @transform_0(%arg0: i32) -> (i32, i32, i32, i32) {
    %c0_i32 = arith.constant 0 : i32
    %c0_i32_0 = arith.constant 0 : i32
    %c0_i32_1 = arith.constant 0 : i32
    %c0_i32_2 = arith.constant 0 : i32
    return %arg0, %c0_i32, %c0_i32_0, %c0_i32_1 : i32, i32, i32, i32
  }
  func.func @transform_1(%arg0: i32) -> (i32, i32) {
    %c0_i32 = arith.constant 0 : i32
    %c0_i32_0 = arith.constant 0 : i32
    %c0_i32_1 = arith.constant 0 : i32
    return %c0_i32, %c0_i32_0 : i32, i32
  }
  func.func @transform_2(%arg0: i32) -> (i32, i32) {
    %c0_i32 = arith.constant 0 : i32
    %c0_i32_0 = arith.constant 0 : i32
    %c0_i32_1 = arith.constant 0 : i32
    return %c0_i32, %c0_i32_0 : i32, i32
  }
  func.func @transform_3(%arg0: i32) -> (i32, i32) {
    %c0_i32 = arith.constant 0 : i32
    %c0_i32_0 = arith.constant 0 : i32
    %c0_i32_1 = arith.constant 0 : i32
    return %c0_i32, %c0_i32_0 : i32, i32
  }
  func.func @transform_4(%arg0: i32) -> (i32, i32) {
    %c0_i32 = arith.constant 0 : i32
    %c0_i32_0 = arith.constant 0 : i32
    %c0_i32_1 = arith.constant 0 : i32
    return %c0_i32, %c0_i32_0 : i32, i32
  }
  func.func @transform_5(%arg0: i32) -> (i32, i32) {
    %c0_i32 = arith.constant 0 : i32
    %c0_i32_0 = arith.constant 0 : i32
    %c0_i32_1 = arith.constant 0 : i32
    return %c0_i32, %c0_i32_0 : i32, i32
  }
  func.func @transform_6(%arg0: i32) -> (i32, i32) {
    %c0_i32 = arith.constant 0 : i32
    %c0_i32_0 = arith.constant 0 : i32
    %c0_i32_1 = arith.constant 0 : i32
    return %c0_i32, %c0_i32_0 : i32, i32
  }
  func.func @transform_7(%arg0: i32) -> (i32, i32) {
    %c0_i32 = arith.constant 0 : i32
    %c0_i32_0 = arith.constant 0 : i32
    %c0_i32_1 = arith.constant 0 : i32
    return %c0_i32, %c0_i32_0 : i32, i32
  }
  func.func @transform_8(%arg0: i32) -> (i32, i32) {
    %c0_i32 = arith.constant 0 : i32
    %c0_i32_0 = arith.constant 0 : i32
    %c0_i32_1 = arith.constant 0 : i32
    return %c0_i32, %c0_i32_0 : i32, i32
  }
  func.func @transform_9(%arg0: i32) -> (i32, i32) {
    %c0_i32 = arith.constant 0 : i32
    %c0_i32_0 = arith.constant 0 : i32
    %c0_i32_1 = arith.constant 0 : i32
    return %c0_i32, %c0_i32_0 : i32, i32
  }
  func.func @transform_10(%arg0: i32) -> (i32, i32) {
    %c0_i32 = arith.constant 0 : i32
    %c0_i32_0 = arith.constant 0 : i32
    %c0_i32_1 = arith.constant 0 : i32
    return %c0_i32, %c0_i32_0 : i32, i32
  }
  func.func @transform_11(%arg0: i32) -> (i32, i32) {
    %c0_i32 = arith.constant 0 : i32
    %c0_i32_0 = arith.constant 0 : i32
    %c0_i32_1 = arith.constant 0 : i32
    return %c0_i32, %c0_i32_0 : i32, i32
  }
  func.func @transform_12(%arg0: i32) -> (i32, i32) {
    %c0_i32 = arith.constant 0 : i32
    %c0_i32_0 = arith.constant 0 : i32
    %c0_i32_1 = arith.constant 0 : i32
    return %c0_i32, %c0_i32_0 : i32, i32
  }
  func.func @transform_13(%arg0: i32) -> (i32, i32, i32) {
    %c0_i32 = arith.constant 0 : i32
    %c0_i32_0 = arith.constant 0 : i32
    %c0_i32_1 = arith.constant 0 : i32
    return %arg0, %c0_i32, %c0_i32_0 : i32, i32, i32
  }
  func.func @transform_14(%arg0: i32) -> (i32, i32, i32) {
    %c0_i32 = arith.constant 0 : i32
    %c0_i32_0 = arith.constant 0 : i32
    %c0_i32_1 = arith.constant 0 : i32
    return %arg0, %c0_i32, %c0_i32_0 : i32, i32, i32
  }
}

</mosaic_0001>

<bundles_post_ra>
// kernel: efficientnet_detector_forward.1
= control target key start
LH: loop header
LB: loop body
LE: loop exit
PB: predicated region body
PF: predicated region fallthrough
CT: control target
= control target key end

     0   :  { %s11784_s0 = inlined_call_operand.hbm [shape: f32[2,1,32,32], index: 0, kind: input, shape index: {}]   ;;  %s11785_s1 = inlined_call_operand.vmem [shape: f32[9,32], index: 1, kind: input, shape index: {}]   ;;  %s11786_s2 = inlined_call_operand.vmem [shape: f32[2,32], index: 2, kind: input, shape index: {}]   ;;  %s11787_s3 = inlined_call_operand.hbm [shape: f32[9,32], index: 3, kind: input, shape index: {}]   ;;  %s11788_s4 = inlined_call_operand.hbm [shape: f32[2,32], index: 4, kind: input, shape index: {}]   ;;  %s11789_s5 = inlined_call_operand.hbm [shape: bf16[32,128], index: 5, kind: input, shape index: {}]   ;;  %s11790_s6 = inlined_call_operand.vmem [shape: f32[1,128], index: 6, kind: input, shape index: {}]   ;;  %s11791_s7 = inlined_call_operand.vmem [shape: bf16[128,512], index: 7, kind: input, shape index: {}]   ;;  %s11792_s8 = inlined_call_operand.vmem [shape: f32[1,512], index: 8, kind: input, shape index: {}]   ;;  %s11793_s9 = inlined_call_operand.vmem [shape: bf16[256,4], index: 9, kind: input, shape index: {}]   ;;  %s11794_s10 = inlined_call_operand.vmem [shape: f32[1,4], index: 10, kind: input, shape index: {}]   ;;  %s11795_s11 = inlined_call_operand.vmem [shape: bf16[256,3], index: 11, kind: input, shape index: {}]   ;;  %s11796_s12 = inlined_call_operand.vmem [shape: f32[1,3], index: 12, kind: input, shape index: {}]   ;;  %s11797_s13 = inlined_call_operand.hbm [shape: f32[2,1,4], index: 13, kind: output, shape index: {0}]   ;;  %s11798_s14 = inlined_call_operand.hbm [shape: f32[2,1,3], index: 14, kind: output, shape index: {1}]  }
   0x1   :  { %11836 = sst [smem:[#allocation179_spill]] %s11784_s0 }
   0x2   :  { %11837 = sst [smem:[#allocation180_spill]] %s11785_s1 }
   0x3   :  { %11838 = sst [smem:[#allocation181_spill]] %s11792_s8 }
   0x4   :  { %11839 = sst [smem:[#allocation182_spill]] %s11794_s10 }
   0x5   :  { %11840 = sst [smem:[#allocation183_spill]] %s11795_s11 }
   0x6   :  { %11841 = sst [smem:[#allocation184_spill]] %s11796_s12 }
   0x7   :  { %11842 = sst [smem:[#allocation185_spill]] %s11797_s13 }
   0x8   :  { %11843 = sst [smem:[#allocation186_spill]] %s11798_s14 }
   0x9   :  { %20 = vsyncpa [#allocation4], 0 }
   0xa   :  { %22 = vsyncpa [#allocation4 + $0x1], 0 }
   0xb   :  { %23 = vsyncpa [#allocation7], 0 }
   0xc   :  { %24 = vsyncpa [#allocation10], 0 }
   0xd   :  { %25 = vsyncpa [#allocation5], 0 }
   0xe   :  { %27 = vsyncpa [#allocation5 + $0x1], 0 }
   0xf   :  { %28 = vsyncpa [#allocation13], 0 }
  0x10   :  { %30 = vsyncpa [#allocation13 + $0x1], 0  ;;  %s8194_s29 = smov 0   ;;  %s8196_s30 = smov 0  }
  0x11   :  { %s8198_s15 = smov 0   ;;  %s8200_s16 = smov 0  }
  0x12 LB: > { %11844 = sst [smem:[#allocation19_spill]] %s8092_s29  ;;  %s8215_s17 = sadd.s32 4294967295, %s8104_s16   ;;  %s8104_s16 = sphi %s8200_s16, %s12255_s16   ;;  %s8100_s15 = sphi %s8198_s15, %s12254_s15   ;;  %s8096_s30 = sphi %s8196_s30, %s12253_s30   ;;  %s8092_s29 = sphi %s8194_s29, %s12252_s29  }
  0x13   : > { %s6646_s18 = sadd.s32 4294967294, %s8104_s16   ;;  %p56_p0 = scmp.ne.s32.totalorder %s8096_s30, %s8092_s29 }
  0x14   : > { %p11802_p1 = scmp.eq.s32.totalorder %s8215_s17, 0  ;;  %p338_p3 = scmp.eq.s32.totalorder %s6646_s18, 1 }
  0x15   : > { %p6647_p5 = scmp.ge.s32.totalorder %s8104_s16, 1  ;;  %p371_p7 = scmp.lt.s32.totalorder %s8104_s16, 3 }
  0x16   : > { %p8224_p4 = por %p11802_p1, %p56_p0  ;;  %p8229_p6 = por %p338_p3, %p56_p0 }
  0x17   : > { %p8234_p8 = pnand %p6647_p5, %p371_p7  ;;  %s8106_s22 = smov [#allocation6]  }
  0x18   : > { %s11845_s19 = scalar_select %p8224_p4, 1, 0 }
  0x19   : > { %s11846_s20 = scalar_select %p8229_p6, 1, 0 }
  0x1a   : > { %s11848_s21 = scalar_select %p8234_p8, 1, 0 }
  0x1b   : > { %11847 = sst [smem:[#allocation20_spill]] %s11846_s20  ;;  %s389_s23 = sshll.u32 %s8106_s22, 4  ;;  %s8238_s23 = int_to_ptr.vmem [resolvable:$true] %s389_s23 }
  0x1c   : > { %p7346_p9 = pneg %p8234_p8  ;;  %s8107_s25 = smov [#allocation8]  }
  0x1d   : > { %s403_s26 = sshll.u32 %s8107_s25, 4  ;;  %s8108_s27 = smov [#allocation9]   ;;  %s8249_s26 = int_to_ptr.vmem [resolvable:$true] %s403_s26 }
  0x1e   : > { %p8245_p11 = pnand %p7346_p9, %p11802_p1  ;;  %s8251_s28 = sshll.u32 %s8108_s27, 4  ;;  %s414_s28 = int_to_ptr.vmem [resolvable:$true] %s8251_s28 }
  0x1f   : > { %s7884_s20 = scalar_lea.hbm %s11787_s3, 256 }
  0x20   : > { %p7885_p12 = scmp.ne.s32.totalorder %s11787_s3, %s7884_s20  ;;  %p8261_p13 = pneg %p8245_p11 }
  0x21   : > { %p7891_p5 = scmp.lt.u32.totalorder %s7884_s20, %s11787_s3 }
  0x22   : > { %p7887_p0 = pnand %p8261_p13, %p7885_p12 }
  0x24   : > { %p7888_p3 = pneg %p7887_p0 }
  0x26   : > { %p7893_p7 = pnand %p7891_p5, %p7888_p3 }
  0x28   : > { %7896 = shalt.err (!%p7893_p7)
}
  0x29   : > { %s7897_s14 = scalar_lea.vmem %s8238_s23, 256  ;;  %p7905_p2 = scmp.lt.s32.totalorder %s8238_s23, %s8238_s23 }
  0x2a   : > { %p7898_p9 = scmp.ne.s32.totalorder %s8238_s23, %s7897_s14  ;;  %p7906_p6 = scmp.lt.s32.totalorder %s7897_s14, %s7897_s14 }
  0x2c   : > { %p7900_p10 = pnand %p7898_p9, %p8261_p13  ;;  %p7907_p12 = por %p7906_p6, %p7905_p2 }
  0x2e   : > { %p7901_p1 = pneg %p7900_p10 }
  0x30   : > { %p7908_p0 = pnand %p7907_p12, %p7901_p1 }
  0x32   : > { %7911 = shalt.err (!%p7908_p0)
}
  0x33   : > { %s8109_s29 = smov 128   ;;  %s8110_s20 = smov 8  }
  0x34   : > { %7349 = dma.hbm_to_vmem [thread:$0]  (!%p8245_p11), %s11787_s3, 256, %s8238_s23, [#allocation7], %s8109_s29, %s8109_s29, %s8110_s20  }
  0x35   : > { %s7912_s14 = scalar_lea.hbm %s11788_s4, 32 }
  0x36   : > { %p7913_p1 = scmp.ne.s32.totalorder %s11788_s4, %s7912_s14  ;;  %p7919_p10 = scmp.lt.u32.totalorder %s7912_s14, %s11788_s4 }
  0x38   : > { %p7915_p2 = pnand %p7913_p1, %p8261_p13 }
  0x3a   : > { %p7916_p6 = pneg %p7915_p2 }
  0x3c   : > { %p7921_p3 = pnand %p7919_p10, %p7916_p6 }
  0x3e   : > { %7924 = shalt.err (!%p7921_p3)
}
  0x3f   : > { %s7925_s23 = scalar_lea.vmem %s8249_s26, 32  ;;  %p7933_p12 = scmp.lt.s32.totalorder %s8249_s26, %s8249_s26 }
  0x40   : > { %p7926_p5 = scmp.ne.s32.totalorder %s8249_s26, %s7925_s23  ;;  %p7934_p0 = scmp.lt.s32.totalorder %s7925_s23, %s7925_s23 }
  0x42   : > { %p7928_p7 = pnand %p7926_p5, %p8261_p13  ;;  %p7935_p1 = por %p7934_p0, %p7933_p12 }
  0x44   : > { %p7929_p9 = pneg %p7928_p7 }
  0x46   : > { %p7936_p2 = pnand %p7935_p1, %p7929_p9 }
  0x48   : > { %7939 = shalt.err (!%p7936_p2)
}
  0x49   : > { %7352 = dma.hbm_to_vmem [thread:$0]  (!%p8245_p11), %s11788_s4, 32, %s8249_s26, [#allocation7]  }
  0x4a   : > { %s7940_s18 = scalar_lea.hbm %s11789_s5, 256 }
  0x4b   : > { %p7941_p6 = scmp.ne.s32.totalorder %s11789_s5, %s7940_s18  ;;  %p7947_p5 = scmp.lt.u32.totalorder %s7940_s18, %s11789_s5 }
  0x4d   : > { %p7943_p10 = pnand %p7941_p6, %p8261_p13 }
  0x4f   : > { %p7944_p3 = pneg %p7943_p10 }
  0x51   : > { %p7949_p7 = pnand %p7947_p5, %p7944_p3 }
  0x53   : > { %7952 = shalt.err (!%p7949_p7)
}
  0x54   : > { %s7953_s23 = scalar_lea.vmem %s414_s28, 256  ;;  %p7961_p1 = scmp.lt.s32.totalorder %s414_s28, %s414_s28 }
  0x55   : > { %p7954_p9 = scmp.ne.s32.totalorder %s414_s28, %s7953_s23  ;;  %p7962_p2 = scmp.lt.s32.totalorder %s7953_s23, %s7953_s23 }
  0x57   : > { %p7956_p12 = pnand %p7954_p9, %p8261_p13  ;;  %p7963_p4 = por %p7962_p2, %p7961_p1 }
  0x59   : > { %p7957_p0 = pneg %p7956_p12 }
  0x5b   : > { %p7964_p8 = pnand %p7963_p4, %p7957_p0 }
  0x5d   : > { %7967 = shalt.err (!%p7964_p8)
}
  0x5e   : > { %s8111_s26 = smov 64   ;;  %s8112_s12 = smov 4  }
  0x5f   : > { %7355 = dma.hbm_to_vmem [thread:$0]  (!%p8245_p11), %s11789_s5, 256, %s414_s28, [#allocation10], %s8111_s26, %s8111_s26, %s8112_s12  }
  0x60   : > { %s8328_s11 = sadd.s32 1, %s8104_s16   ;;  %s43_s18 = sadd.s32 1, %s8100_s15 }
  0x61   : > { %s40_s13 = ssub.s32 %s8104_s16, %s8328_s11  ;;  %p50_p8 = scmp.ne.s32.totalorder %s8100_s15, %s8096_s30 }
  0x62   : > { %p41_p4 = scmp.eq.s32.totalorder %s40_s13, 0  ;;  %p51_p13 = scmp.eq.s32.totalorder %s8104_s16, 0 }
  0x63   : > { %p7370_p6 = scmp.lt.s32.totalorder %s8104_s16, 2  ;;  %p11851_p3 = scmp.eq.s32.totalorder %s8215_s17, 1 }
  0x64   : > { %s8338_s22 = scalar_select %p41_p4, %s8100_s15, %s43_s18  }
  0x65   : > { %p52_p10 = por %p51_p13, %p50_p8  ;;  %p8342_p5 = por %p11851_p3, %p50_p8 }
  0x66   : > { %s448_s24 = sand.u32 1, %s8100_s15   ;;  %s6929_s27 = sshll.u32 %s8104_s16, 9 }
  0x67   : > { %s6652_s28 = sshll.u32 %s448_s24, 5  ;;  %s11853_s0 = sld [smem:[#allocation179_spill]] }
  0x68   : > { %s452_s12 = scalar_lea.vmem [#allocation3], %s6652_s28  ;;  %p8353_p11 = pnand %p7370_p6, %p52_p10 }
  0x69   : > { %s459_s8 = sshll.u32 %s452_s12, 4  ;;  %s8359_s13 = scalar_lea.sflag [#allocation4], %s448_s24  ;;  %s8357_s8 = int_to_ptr.vmem [resolvable:$true] %s459_s8 }
  0x6a   : > { %p7970_p9 = pneg %p8353_p11 }
  0x6d   : > { %s8351_s26 = scalar_lea.hbm %s11853_s0, %s6929_s27  ;;  %s7973_s14 = scalar_lea.hbm %s11853_s0, 1024 }
  0x6e   : > { %s7968_s18 = scalar_lea.hbm %s8351_s26, 512  ;;  %p7974_p1 = scmp.lt.u32.totalorder %s8351_s26, %s11853_s0 }
  0x6f   : > { %p7969_p7 = scmp.ne.s32.totalorder %s8351_s26, %s7968_s18  ;;  %p7975_p2 = scmp.lt.u32.totalorder %s7973_s14, %s7968_s18 }
  0x70   : > { %p7977_p8 = scmp.lt.u32.totalorder %s7968_s18, %s8351_s26 }
  0x71   : > { %p7971_p12 = pnand %p7970_p9, %p7969_p7  ;;  %p7976_p4 = por %p7975_p2, %p7974_p1 }
  0x73   : > { %p7972_p0 = pneg %p7971_p12  ;;  %p7978_p13 = por %p7977_p8, %p7976_p4 }
  0x75   : > { %p7979_p6 = pnand %p7978_p13, %p7972_p0 }
  0x77   : > { %7982 = shalt.err (!%p7979_p6)
}
  0x78   : > { %s7983_s24 = scalar_lea.vmem %s8357_s8, 512  ;;  %s8113_s27 = smov [#allocation3]  }
  0x79   : > { %p7984_p10 = scmp.ne.s32.totalorder %s8357_s8, %s7983_s24  ;;  %s7988_s28 = sshll.u32 %s8113_s27, 4  ;;  %s7989_s28 = int_to_ptr.vmem [resolvable:$false] %s7988_s28 }
  0x7a   : > { %s7990_s23 = scalar_lea.vmem %s7989_s28, 1024  ;;  %p7991_p12 = scmp.lt.s32.totalorder %s8357_s8, %s7989_s28 }
  0x7b   : > { %p7986_p3 = pnand %p7984_p10, %p7970_p9  ;;  %p7992_p1 = scmp.lt.s32.totalorder %s7990_s23, %s7983_s24 }
  0x7d   : > { %p7987_p7 = pneg %p7986_p3  ;;  %p7993_p2 = por %p7992_p1, %p7991_p12 }
  0x7f   : > { %p7994_p4 = pnand %p7993_p2, %p7987_p7 }
  0x81   : > { %7997 = shalt.err (!%p7994_p4)
}
  0x82   : > { %7359 = dma.hbm_to_vmem [thread:$0]  (!%p8353_p11), %s8351_s26, 512, %s8357_s8, %s8359_s13, %s8109_s29, %s8109_s29, %s8110_s20  }
  0x83   : > { %p11855_p9 = scmp.ne.s32.totalorder %s11848_s21, 0 }
  0x85   : > { %471 = sbr.rel (%p11855_p9) target bundleno = 2334 (0x91e), region = 72 }
  0x8c   : > { %s8393_s18 = sand.u32 1, %s8096_s30   ;;  %p11856_p0 = scmp.ne.s32.totalorder %s11845_s19, 0 }
  0x8d   : > { %s6656_s14 = sshll.u32 %s8393_s18, 5  ;;  %s474_s12 = scalar_lea.sflag [#allocation4], %s8393_s18 }
  0x8e   : > { %s8397_s24 = scalar_lea.vmem [#allocation3], %s6656_s14 }
  0x8f   : > { %8071 = dma.done.wait (%p11856_p0), %s474_s12, 512  }
  0x90   : > { %8073 = vsyncadd (%p11856_p0), %s474_s12, 4294966784  ;;  %p11857_p11 = scmp.eq.s32.totalorder %s8215_s17, 0 }
  0x92   : > { %8075 = dma.done.wait (%p11857_p11), [#allocation7], 288   ;;  %p11858_p8 = pmov %p11857_p11 }
  0x94   : > { %8077 = vsyncadd (%p11858_p8), [#allocation7], 4294967008  ;;  %p11859_p13 = pmov %p11858_p8 }
  0x95   : > { %p11860_p6 = pmov %p11858_p8 }
  0x96   : > { %8079 = dma.done.wait (%p11859_p13), [#allocation10], 256  }
  0x97   : > { %8081 = vsyncadd (%p11860_p6), [#allocation10], 4294967040  ;;  %v542_v0 = vlaneseq  ;;  %vm618_vm0 = vcmask 261120   ;;  %v11807_v1 = vmov 0.0   ;;  %v538_v7 = vld [vmem:[%s8397_s24] sm:$0xff]  ;;  %v539_v8 = vld [vmem:[%s8397_s24 + $0x8] sm:$0xff] }
  0x98   : > { %4047 = vst.msk [vmem:[#allocation2] sm:$0xff] %vm618_vm0, %v11807_v1  ;;  %4048 = vst.msk [vmem:[#allocation2 + $0x8] sm:$0xff] %vm618_vm0, %v11807_v1  ;;  %v540_v9 = vld [vmem:[%s8397_s24 + $0x10] sm:$0xff]  ;;  %v8496_v11 = vpack.c.bf16 %v539_v8, %v538_v7  ;;  %v541_v12 = vld [vmem:[%s8397_s24 + $0x18] sm:$0xff]  ;;  %v11809_v23 = vmov 1.0|1.0  }
  0x99   : > { %4051 = vst.msk [vmem:[#allocation2 + $0x18] sm:$0xff] %vm618_vm0, %v11807_v1  ;;  %4052 = vst.msk [vmem:[#allocation2 + $0x20] sm:$0xff] %vm618_vm0, %v11807_v1  ;;  %v8483_v2 = vshrl.u32 %v542_v0, 7  ;;  %v8485_v3 = vand.u32 127, %v542_v0  ;;  %v8502_v14 = vpack.c.bf16 %v541_v12, %v540_v9  ;;  %s12028_s1 = sld [smem:[#allocation180_spill]]  ;;  %s12237_s10 = sld [smem:[#allocation183_spill]] }
  0x9a   : > { %4054 = vst.msk [vmem:[#allocation2 + $0x30] sm:$0xff] %vm618_vm0, %v11807_v1  ;;  %4055 = vst.msk [vmem:[#allocation2 + $0x38] sm:$0xff] %vm618_vm0, %v11807_v1  ;;  %7233 = vmatprep.subr.bf16.mxu0 %v8496_v11  ;;  %s12238_s21 = sld [smem:[#allocation181_spill]]  ;;  %s12243_s26 = sld [smem:[#allocation182_spill]] }
  0x9b   : > { %4057 = vst.msk [vmem:[#allocation2 + $0x48] sm:$0xff] %vm618_vm0, %v11807_v1  ;;  %4058 = vst.msk [vmem:[#allocation2 + $0x50] sm:$0xff] %vm618_vm0, %v11807_v1  ;;  %v8488_v4 = vmul.u32 2, %v8483_v2  ;;  %v544_v6 = vadd.s32 8, %v8483_v2  ;;  %v575_v10 = vmul.u32 2, %v8485_v3  ;;  %7235 = vmatpush3.bf16.msra.mxu0 %v8496_v11  ;;  %v547_v18 = vadd.s32 16, %v8483_v2 }
  0x9c   : > { %4060 = vst.msk [vmem:[#allocation2 + $0x60] sm:$0xff] %vm618_vm0, %v11807_v1  ;;  %4061 = vst.msk [vmem:[#allocation2 + $0x68] sm:$0xff] %vm618_vm0, %v11807_v1  ;;  %7237 = vmatprep.subr.bf16.mxu0 %v8502_v14  ;;  %v548_v19 = vadd.s32 24, %v8483_v2  ;;  %v8626_v34 = vsub.s32 0, %v8483_v2  ;;  %v8639_v40 = vsub.s32 1, %v8483_v2  ;;  %v8654_v49 = vsub.s32 2, %v8483_v2 }
  0x9d   : > { %4063 = vst.msk [vmem:[#allocation2 + $0x78] sm:$0xff] %vm618_vm0, %v11807_v1  ;;  %4064 = vst.msk [vmem:[#allocation2 + $0x80] sm:$0xff] %vm618_vm0, %v11807_v1  ;;  %v6660_v5 = vadd.s32 4294967295, %v8488_v4  ;;  %v8500_v13 = vmul.u32 2, %v544_v6  ;;  %v6670_v17 = vadd.s32 4294967295, %v575_v10  ;;  %v601_v21 = vadd.s32 2, %v575_v10 }
  0x9e   : > { %4066 = vst.msk [vmem:[#allocation2 + $0x90] sm:$0xff] %vm618_vm0, %v11807_v1  ;;  %4067 = vst.msk [vmem:[#allocation2 + $0x98] sm:$0xff] %vm618_vm0, %v11807_v1  ;;  %vm589_vm15 = vcmp.eq.s32.totalorder %v8483_v2, %v575_v10  ;;  %v565_v45 = vadd.s32 2, %v8488_v4  ;;  %v8674_v55 = vsub.s32 3, %v8483_v2  ;;  %v8708_v59 = vsub.s32 4, %v8483_v2  ;;  %s6925_s8 = sshll.u32 %s8215_s17, 4 }
  0x9f   : > { %4069 = vst.msk [vmem:[#allocation2 + $0xa8] sm:$0xff] %vm618_vm0, %v11807_v1  ;;  %4070 = vst.msk [vmem:[#allocation2 + $0xb0] sm:$0xff] %vm618_vm0, %v11807_v1  ;;  %vm553_vm1 = vcmp.eq.s32.totalorder %v8485_v3, %v6660_v5  ;;  %v6661_v16 = vadd.s32 4294967295, %v8500_v13  ;;  %7239 = vmatpush3.bf16.msra.mxu0 %v8502_v14  ;;  %vm577_vm3 = vcmp.eq.s32.totalorder %v8483_v2, %v6670_v17  ;;  %v6679_v24 = vadd.s32 4294967295, %v601_v21  ;;  %s530_s13 = scalar_lea.vmem [#allocation11], %s8393_s18  ;;  %s12244_s14 = sld [smem:[#allocation185_spill]] }
  0xa0   : > { %4072 = vst.msk [vmem:[#allocation2 + $0xc0] sm:$0xff] %vm618_vm0, %v11807_v1  ;;  %4073 = vst.msk [vmem:[#allocation2 + $0xc8] sm:$0xff] %vm618_vm0, %v11807_v1  ;;  %v6662_v15 = vsel %vm553_vm1, 1.0, %v11807_v1  ;;  %vm578_vm4 = vcmp.eq.s32.totalorder %v544_v6, %v6670_v17  ;;  %vm579_vm6 = vcmp.eq.s32.totalorder %v547_v18, %v6670_v17  ;;  %vm580_vm7 = vcmp.eq.s32.totalorder %v548_v19, %v6670_v17  ;;  %s6510_s27 = sshll.u32 %s530_s13, 4  ;;  %s6494_s24 = scalar_lea.sflag [#allocation5], %s8393_s18  ;;  %s11707_s27 = int_to_ptr.vmem [resolvable:$true] %s6510_s27 }
  0xa1   : > { %4075 = vst.msk [vmem:[#allocation2 + $0xd8] sm:$0xff] %vm618_vm0, %v11807_v1  ;;  %4076 = vst.msk [vmem:[#allocation2 + $0xe0] sm:$0xff] %vm618_vm0, %v11807_v1  ;;  %7072 = vmatprep.mubr.msk.f32.mxu0 %vm618_vm0, %v6662_v15  ;;  %vm554_vm2 = vcmp.eq.s32.totalorder %v8485_v3, %v6661_v16  ;;  %vm603_vm9 = vcmp.eq.s32.totalorder %v8483_v2, %v6679_v24  ;;  %vm604_vm10 = vcmp.eq.s32.totalorder %v544_v6, %v6679_v24  ;;  %s7998_s19 = scalar_lea.vmem %s11707_s27, 16 }
  0xa2   : > { %4078 = vst.msk [vmem:[#allocation2 + $0xf0] sm:$0xff] %vm618_vm0, %v11807_v1  ;;  %4079 = vst.msk [vmem:[#allocation2 + $0xf8] sm:$0xff] %vm618_vm0, %v11807_v1  ;;  %v6663_v20 = vsel %vm554_vm2, 1.0, %v11807_v1  ;;  %vm605_vm11 = vcmp.eq.s32.totalorder %v547_v18, %v6679_v24  ;;  %vm606_vm12 = vcmp.eq.s32.totalorder %v548_v19, %v6679_v24  ;;  %vm590_vm1 = vcmp.eq.s32.totalorder %v544_v6, %v575_v10  ;;  %p7999_p10 = scmp.ne.s32.totalorder %s11707_s27, %s7998_s19 }
  0xa3   : > { %4081 = vst.msk [vmem:[#allocation2 + $0x108] sm:$0xff] %vm618_vm0, %v11807_v1  ;;  %4082 = vst.msk [vmem:[#allocation2 + $0x110] sm:$0xff] %vm618_vm0, %v11807_v1  ;;  %7073 = vmatmul.mubr.msk.f32.vlgmr.msra.gmra.mrb[0].mxu0 %vm618_vm0, %v6663_v20  ;;  %v6666_v47 = vadd.s32 4294967295, %v565_v45  ;;  %v566_v48 = vadd.s32 2, %v8500_v13  ;;  %v8724_v62 = vsub.s32 5, %v8483_v2  ;;  %v8738_v6 = vsub.s32 7, %v8483_v2 }
  0xa4   : > { %4084 = vst.msk [vmem:[#allocation2 + $0x120] sm:$0xff] %vm618_vm0, %v11807_v1  ;;  %4085 = vst.msk [vmem:[#allocation2 + $0x128] sm:$0xff] %vm618_vm0, %v11807_v1  ;;  %p8000_p3 = pnand %p7999_p10, %p8342_p5 }
  0xa5   : > { %4087 = vst.msk [vmem:[#allocation2 + $0x138] sm:$0xff] %vm618_vm0, %v11807_v1  ;;  %4088 = vst.msk [vmem:[#allocation2 + $0x140] sm:$0xff] %vm618_vm0, %v11807_v1  ;;  %v6667_v52 = vadd.s32 4294967295, %v566_v48  ;;  %s11705_s12 = scalar_lea.hbm %s12244_s14, %s6925_s8 }
  0xa6   : > { %4090 = vst.msk [vmem:[#allocation2 + $0x150] sm:$0xff] %vm618_vm0, %v11807_v1  ;;  %4091 = vst.msk [vmem:[#allocation2 + $0x158] sm:$0xff] %vm618_vm0, %v11807_v1  ;;  %p8001_p7 = pneg %p8000_p3 }
  0xa7   : > { %4093 = vst.msk [vmem:[#allocation2 + $0x168] sm:$0xff] %vm618_vm0, %v11807_v1  ;;  %4094 = vst.msk [vmem:[#allocation2 + $0x170] sm:$0xff] %vm618_vm0, %v11807_v1 }
  0xa8   : > { %4096 = vst.msk [vmem:[#allocation2 + $0x180] sm:$0xff] %vm618_vm0, %v11807_v1  ;;  %4097 = vst.msk [vmem:[#allocation2 + $0x188] sm:$0xff] %vm618_vm0, %v11807_v1 }
  0xa9   : > { %4099 = vst.msk [vmem:[#allocation2 + $0x198] sm:$0xff] %vm618_vm0, %v11807_v1  ;;  %4100 = vst.msk [vmem:[#allocation2 + $0x1a0] sm:$0xff] %vm618_vm0, %v11807_v1 }
  0xaa   : > { %vm8516_vm5 = vmpackc.low %vm578_vm4, %vm577_vm3  ;;  %vm591_vm3 = vcmp.eq.s32.totalorder %v547_v18, %v575_v10  ;;  %vm592_vm4 = vcmp.eq.s32.totalorder %v548_v19, %v575_v10  ;;  %11873 = vst [vmem:[#allocation21_spill] sm:$0xff] %v8626_v34 }
  0xab   : > { %7241 = vmatprep.subr.msk.bf16.mxu0 %vm8516_vm5, %v11809_v23  ;;  %vm8523_vm8 = vmpackc.low %vm580_vm7, %vm579_vm6  ;;  %vm559_vm7 = vcmp.eq.s32.totalorder %v8485_v3, %v8488_v4  ;;  %11874 = vst [vmem:[#allocation22_spill] sm:$0xff] %v8639_v40 }
  0xac   : > { %7243 = vmatpush3.bf16.msk.msra.mxu0 %vm8516_vm5, %v11809_v23  ;;  %vm8532_vm13 = vmpackc.low %vm604_vm10, %vm603_vm9  ;;  %v6664_v32 = vsel %vm559_vm7, 1.0, %v11807_v1  ;;  %vm560_vm9 = vcmp.eq.s32.totalorder %v8485_v3, %v8500_v13  ;;  %11875 = vst [vmem:[#allocation23_spill] sm:$0xff] %v8654_v49  ;;  %vm569_vm10 = vcmp.eq.s32.totalorder %v8485_v3, %v6666_v47 }
  0xad   : > { %7245 = vmatprep.subr.msk.bf16.mxu0 %vm8523_vm8, %v11809_v23  ;;  %7257 = vmatprep.subr.msk.bf16.mxu1 %vm8532_vm13, %v11809_v23  ;;  %vm8542_vm14 = vmpackc.low %vm606_vm12, %vm605_vm11  ;;  %v6665_v33 = vsel %vm560_vm9, 1.0, %v11807_v1  ;;  %v6668_v54 = vsel %vm569_vm10, 1.0, %v11807_v1  ;;  %vm570_vm11 = vcmp.eq.s32.totalorder %v8485_v3, %v6667_v52  ;;  %11876 = vst [vmem:[#allocation24_spill] sm:$0xff] %v8674_v55  ;;  %v8731_v3 = vsub.s32 6, %v8483_v2 }
  0xae   : > { %7259 = vmatpush3.bf16.msk.msra.mxu1 %vm8532_vm13, %v11809_v23  ;;  %vm8562_vm2 = vmpackc.low %vm590_vm1, %vm589_vm15  ;;  %v6669_v57 = vsel %vm570_vm11, 1.0, %v11807_v1  ;;  %11877 = vst [vmem:[#allocation25_spill] sm:$0xff] %v8708_v59 }
  0xaf   : > { %7261 = vmatprep.subr.msk.bf16.mxu1 %vm8542_vm14, %v11809_v23  ;;  %vm8571_vm6 = vmpackc.low %vm592_vm4, %vm591_vm3  ;;  %11878 = vst [vmem:[#allocation26_spill] sm:$0xff] %v8724_v62 }
  0xb0   : > { %7247 = vmatpush3.bf16.msk.msra.mxu0 %vm8523_vm8, %v11809_v23  ;;  %11879 = vst [vmem:[#allocation27_spill] sm:$0xff] %v8731_v3 }
  0xb1   : > { %7249 = vmatprep.subr.msk.bf16.mxu0 %vm8562_vm2, %v11809_v23 }
  0xb2   : > { %7263 = vmatpush3.bf16.msk.msra.mxu1 %vm8542_vm14, %v11809_v23 }
  0xb3   : > { %7273 = vmatprep.subr.msk.bf16.mxu1 %vm8516_vm5, %v11809_v23 }
 0x176   : > { %v7074_v29 = vpop.f32.mrb[0].mxu0 }
 0x177   : > { %v691_v30 = vpop.f32.mrb[1].mxu0 }
 0x178   : > { %7083 = vmatprep.mubr.msk.f32.mxu0 %vm618_vm0, %v691_v30  ;;  %7105 = vmatprep.mubr.msk.f32.mxu1 %vm618_vm0, %v691_v30 }
 0x179   : > { %7084 = vmatmul.mubr.msk.f32.vlgmr.msra.gmra.mrb[2].mxu0 %vm618_vm0, %v7074_v29  ;;  %7106 = vmatmul.mubr.msk.f32.vlgmr.msra.gmra.mrb[0].mxu1 %vm618_vm0, %v7074_v29 }
 0x17a   : > { %7251 = vmatpush3.bf16.msk.msra.mxu0 %vm8562_vm2, %v11809_v23  ;;  %7094 = vmatprep.mubr.msk.f32.mxu0 %vm618_vm0, %v691_v30 }
 0x17b   : > { %7253 = vmatprep.subr.msk.bf16.mxu0 %vm8571_vm6, %v11809_v23  ;;  %7275 = vmatpush3.bf16.msk.msra.mxu1 %vm8516_vm5, %v11809_v23 }
 0x17c   : > { %7277 = vmatprep.subr.msk.bf16.mxu1 %vm8523_vm8, %v11809_v23 }
 0x17e   : > { %7255 = vmatpush3.bf16.msk.msra.mxu0 %vm8571_vm6, %v11809_v23 }
 0x17f   : > { %7265 = vmatprep.subr.bf16.mxu0 %v8496_v11  ;;  %7279 = vmatpush3.bf16.msk.msra.mxu1 %vm8523_vm8, %v11809_v23 }
 0x180   : > { %7289 = vmatprep.subr.msk.bf16.mxu1 %vm8532_vm13, %v11809_v23 }
 0x181   : > { %7095 = vmatmul.mubr.msk.f32.vlgmr.msra.gmra.mrb[4].mxu0 %vm618_vm0, %v7074_v29 }
 0x182   : > { %7267 = vmatpush3.bf16.msra.mxu0 %v8496_v11  ;;  %7116 = vmatprep.mubr.msk.f32.mxu0 %vm618_vm0, %v6664_v32 }
 0x183   : > { %7269 = vmatprep.subr.bf16.mxu0 %v8502_v14 }
 0x186   : > { %7271 = vmatpush3.bf16.msra.mxu0 %v8502_v14 }
 0x187   : > { %7281 = vmatprep.subr.msk.bf16.mxu0 %vm8562_vm2, %v11809_v23 }
 0x189   : > { %7117 = vmatmul.mubr.msk.f32.vlgmr.msra.gmra.mrb[6].mxu0 %vm618_vm0, %v6665_v33 }
 0x18a   : > { %7283 = vmatpush3.bf16.msk.msra.mxu0 %vm8562_vm2, %v11809_v23 }
 0x18b   : > { %7285 = vmatprep.subr.msk.bf16.mxu0 %vm8571_vm6, %v11809_v23 }
 0x18e   : > { %7287 = vmatpush3.bf16.msk.msra.mxu0 %vm8571_vm6, %v11809_v23 }
 0x18f   : > { %7297 = vmatprep.subr.bf16.mxu0 %v8496_v11 }
 0x24c   : > { %v8628_v35 = vpop.f32.mrb[2].mxu0  ;;  %v8630_v36 = vpop.f32.mrb[0].mxu1 }
 0x24d   : > { %v8632_v37 = vpop.f32.mrb[3].mxu0  ;;  %v8634_v38 = vpop.f32.mrb[1].mxu1  ;;  %v872_v39 = vrot.slane %v8628_v35, %v8626_v34  ;;  %v1510_v41 = vrot.slane %v8630_v36, %v8626_v34  ;;  %v883_v44 = vrot.slane %v8628_v35, %v8639_v40  ;;  %v1521_v46 = vrot.slane %v8630_v36, %v8639_v40 }
 0x24e   : > { %v894_v53 = vrot.slane %v8628_v35, %v8654_v49  ;;  %v1532_v56 = vrot.slane %v8630_v36, %v8654_v49  ;;  %v905_v58 = vrot.slane %v8628_v35, %v8674_v55  ;;  %v1543_v60 = vrot.slane %v8630_v36, %v8674_v55 }
 0x24f   : > { %878 = vbcast.lane.b32.xlu1 %v872_v39, 264  ;;  %874 = vbcast.lane.b32.xlu0 %v872_v39, 256  ;;  %v916_v61 = vrot.slane %v8628_v35, %v8708_v59  ;;  %v1554_v63 = vrot.slane %v8630_v36, %v8708_v59  ;;  %v927_v0 = vrot.slane %v8628_v35, %v8724_v62 }
 0x250   : > { %v1565_v4 = vrot.slane %v8630_v36, %v8724_v62  ;;  %v938_v5 = vrot.slane %v8628_v35, %v8731_v3  ;;  %v1576_v7 = vrot.slane %v8630_v36, %v8731_v3  ;;  %v949_v8 = vrot.slane %v8628_v35, %v8738_v6 }
 0x251   : > { %v1587_v9 = vrot.slane %v8630_v36, %v8738_v6  ;;  %v1422_v10 = vrot.slane %v8634_v38, %v8626_v34  ;;  %v784_v2 = vrot.slane %v8632_v37, %v8626_v34  ;;  %v1433_v12 = vrot.slane %v8634_v38, %v8639_v40 }
 0x252   : > { %v806_v13 = vrot.slane %v8632_v37, %v8654_v49  ;;  %v817_v15 = vrot.slane %v8632_v37, %v8674_v55  ;;  %v1455_v16 = vrot.slane %v8634_v38, %v8674_v55  ;;  %v828_v17 = vrot.slane %v8632_v37, %v8708_v59 }
 0x253   : > { %1516 = vbcast.lane.b32.xlu1 %v1510_v41, 264  ;;  %1512 = vbcast.lane.b32.xlu0 %v1510_v41, 256  ;;  %v1466_v18 = vrot.slane %v8634_v38, %v8708_v59  ;;  %v839_v19 = vrot.slane %v8632_v37, %v8724_v62  ;;  %v1477_v20 = vrot.slane %v8634_v38, %v8724_v62 }
 0x254   : > { %v8643_v42 = vpop.f32.mrb[4].mxu0  ;;  %v850_v21 = vrot.slane %v8632_v37, %v8731_v3  ;;  %v1488_v22 = vrot.slane %v8634_v38, %v8731_v3  ;;  %v861_v28 = vrot.slane %v8632_v37, %v8738_v6  ;;  %v1499_v31 = vrot.slane %v8634_v38, %v8738_v6 }
 0x255   : > { %v8645_v43 = vpop.f32.mrb[5].mxu0  ;;  %v1191_v35 = vrot.slane %v8643_v42, %v8626_v34  ;;  %v1202_v39 = vrot.slane %v8643_v42, %v8639_v40  ;;  %v1224_v47 = vrot.slane %v8643_v42, %v8674_v55 }
 0x257   : > { %889 = vbcast.lane.b32.xlu1 %v883_v44, 264  ;;  %885 = vbcast.lane.b32.xlu0 %v883_v44, 256  ;;  %v1213_v44 = vrot.slane %v8643_v42, %v8654_v49 }
 0x25b   : > { %1527 = vbcast.lane.b32.xlu1 %v1521_v46, 264  ;;  %1523 = vbcast.lane.b32.xlu0 %v1521_v46, 256 }
 0x25c   : > { %v7118_v50 = vpop.f32.mrb[6].mxu0 }
 0x25d   : > { %v1735_v51 = vpop.f32.mrb[7].mxu0 }
 0x25e   : > { %7127 = vmatprep.mubr.msk.f32.mxu1 %vm618_vm0, %v1735_v51  ;;  %7138 = vmatprep.mubr.msk.f32.mxu0 %vm618_vm0, %v1735_v51 }
 0x25f   : > { %7128 = vmatmul.mubr.msk.f32.vlgmr.msra.gmra.mrb[2].mxu1 %vm618_vm0, %v7118_v50  ;;  %7139 = vmatmul.mubr.msk.f32.vlgmr.msra.gmra.mrb[8].mxu0 %vm618_vm0, %v7118_v50 }
 0x260   : > { %7291 = vmatpush3.bf16.msk.msra.mxu1 %vm8532_vm13, %v11809_v23  ;;  %7299 = vmatpush3.bf16.msra.mxu0 %v8496_v11  ;;  %v795_v11 = vrot.slane %v8632_v37, %v8639_v40 }
 0x261   : > { %900 = vbcast.lane.b32.xlu1 %v894_v53, 264  ;;  %896 = vbcast.lane.b32.xlu0 %v894_v53, 256 }
 0x262   : > { %7149 = vmatprep.mubr.msk.f32.mxu1 %vm618_vm0, %v1735_v51  ;;  %7293 = vmatprep.subr.msk.bf16.mxu1 %vm8542_vm14, %v11809_v23  ;;  %v1235_v51 = vrot.slane %v8643_v42, %v8708_v59 }
 0x263   : > { %7301 = vmatprep.subr.bf16.mxu0 %v8502_v14  ;;  %7160 = vmatprep.mubr.msk.f32.mxu0 %vm618_vm0, %v6668_v54  ;;  %v1246_v54 = vrot.slane %v8643_v42, %v8724_v62 }
 0x264   : > { %7295 = vmatpush3.bf16.msk.msra.mxu1 %vm8542_vm14, %v11809_v23  ;;  %7303 = vmatpush3.bf16.msra.mxu0 %v8502_v14  ;;  %v1444_v14 = vrot.slane %v8634_v38, %v8654_v49 }
 0x265   : > { %1538 = vbcast.lane.b32.xlu1 %v1532_v56, 264  ;;  %1534 = vbcast.lane.b32.xlu0 %v1532_v56, 256 }
 0x266   : > { %7305 = vmatprep.subr.msk.bf16.mxu1 %vm8516_vm5, %v11809_v23  ;;  %7313 = vmatprep.subr.msk.bf16.mxu0 %vm8562_vm2, %v11809_v23 }
 0x267   : > { %7150 = vmatmul.mubr.msk.f32.vlgmr.msra.gmra.mrb[4].mxu1 %vm618_vm0, %v7118_v50  ;;  %7161 = vmatmul.mubr.msk.f32.vlgmr.msra.gmra.mrb[10].mxu0 %vm618_vm0, %v6669_v57 }
 0x268   : > { %7307 = vmatpush3.bf16.msk.msra.mxu1 %vm8516_vm5, %v11809_v23  ;;  %7315 = vmatpush3.bf16.msk.msra.mxu0 %vm8562_vm2, %v11809_v23  ;;  %vm4049_vm5 = vcmask 254976  }
 0x269   : > { %911 = vbcast.lane.b32.xlu1 %v905_v58, 264  ;;  %907 = vbcast.lane.b32.xlu0 %v905_v58, 256  ;;  %v1257_v58 = vrot.slane %v8643_v42, %v8731_v3 }
 0x26a   : > { %7309 = vmatprep.subr.msk.bf16.mxu1 %vm8523_vm8, %v11809_v23  ;;  %7317 = vmatprep.subr.msk.bf16.mxu0 %vm8571_vm6, %v11809_v23 }
 0x26c   : > { %7311 = vmatpush3.bf16.msk.msra.mxu1 %vm8523_vm8, %v11809_v23  ;;  %7319 = vmatpush3.bf16.msk.msra.mxu0 %vm8571_vm6, %v11809_v23 }
 0x26d   : > { %1549 = vbcast.lane.b32.xlu1 %v1543_v60, 264  ;;  %1545 = vbcast.lane.b32.xlu0 %v1543_v60, 256 }
 0x26e   : > { %7321 = vmatprep.subr.msk.bf16.mxu1 %vm8532_vm13, %v11809_v23 }
 0x271   : > { %922 = vbcast.lane.b32.xlu1 %v916_v61, 264  ;;  %918 = vbcast.lane.b32.xlu0 %v916_v61, 256 }
 0x275   : > { %1560 = vbcast.lane.b32.xlu1 %v1554_v63, 264  ;;  %1556 = vbcast.lane.b32.xlu0 %v1554_v63, 256  ;;  %v1268_v63 = vrot.slane %v8643_v42, %v8738_v6 }
 0x279   : > { %933 = vbcast.lane.b32.xlu1 %v927_v0, 264  ;;  %929 = vbcast.lane.b32.xlu0 %v927_v0, 256 }
 0x27d   : > { %1571 = vbcast.lane.b32.xlu1 %v1565_v4, 264  ;;  %1567 = vbcast.lane.b32.xlu0 %v1565_v4, 256 }
 0x281   : > { %944 = vbcast.lane.b32.xlu1 %v938_v5, 264  ;;  %940 = vbcast.lane.b32.xlu0 %v938_v5, 256  ;;  %v1103_v5 = vrot.slane %v8645_v43, %v8626_v34 }
 0x285   : > { %1582 = vbcast.lane.b32.xlu1 %v1576_v7, 264  ;;  %1578 = vbcast.lane.b32.xlu0 %v1576_v7, 256 }
 0x289   : > { %955 = vbcast.lane.b32.xlu1 %v949_v8, 264  ;;  %951 = vbcast.lane.b32.xlu0 %v949_v8, 256 }
 0x28d   : > { %1593 = vbcast.lane.b32.xlu1 %v1587_v9, 264  ;;  %1589 = vbcast.lane.b32.xlu0 %v1587_v9, 256 }
 0x291   : > { %1428 = vbcast.lane.b32.xlu1 %v1422_v10, 264  ;;  %786 = vbcast.lane.b32.xlu0 %v784_v2, 256 }
 0x295   : > { %801 = vbcast.lane.b32.xlu1 %v795_v11, 264  ;;  %790 = vbcast.lane.b32.xlu0 %v784_v2, 264 }
 0x299   : > { %1439 = vbcast.lane.b32.xlu1 %v1433_v12, 264  ;;  %1424 = vbcast.lane.b32.xlu0 %v1422_v10, 256  ;;  %v1114_v10 = vrot.slane %v8645_v43, %v8639_v40 }
 0x29d   : > { %812 = vbcast.lane.b32.xlu1 %v806_v13, 264  ;;  %797 = vbcast.lane.b32.xlu0 %v795_v11, 256 }
 0x2a1   : > { %1450 = vbcast.lane.b32.xlu1 %v1444_v14, 264  ;;  %1435 = vbcast.lane.b32.xlu0 %v1433_v12, 256  ;;  %v1125_v12 = vrot.slane %v8645_v43, %v8654_v49 }
 0x2a5   : > { %823 = vbcast.lane.b32.xlu1 %v817_v15, 264  ;;  %808 = vbcast.lane.b32.xlu0 %v806_v13, 256 }
 0x2a9   : > { %1461 = vbcast.lane.b32.xlu1 %v1455_v16, 264  ;;  %1446 = vbcast.lane.b32.xlu0 %v1444_v14, 256 }
 0x2ad   : > { %834 = vbcast.lane.b32.xlu1 %v828_v17, 264  ;;  %819 = vbcast.lane.b32.xlu0 %v817_v15, 256  ;;  %v1136_v15 = vrot.slane %v8645_v43, %v8674_v55 }
 0x2b1   : > { %1472 = vbcast.lane.b32.xlu1 %v1466_v18, 264  ;;  %1457 = vbcast.lane.b32.xlu0 %v1455_v16, 256 }
 0x2b5   : > { %845 = vbcast.lane.b32.xlu1 %v839_v19, 264  ;;  %830 = vbcast.lane.b32.xlu0 %v828_v17, 256 }
 0x2b9   : > { %1483 = vbcast.lane.b32.xlu1 %v1477_v20, 264  ;;  %1468 = vbcast.lane.b32.xlu0 %v1466_v18, 256  ;;  %v1147_v18 = vrot.slane %v8645_v43, %v8708_v59 }
 0x2bd   : > { %856 = vbcast.lane.b32.xlu1 %v850_v21, 264  ;;  %841 = vbcast.lane.b32.xlu0 %v839_v19, 256 }
 0x2c1   : > { %1494 = vbcast.lane.b32.xlu1 %v1488_v22, 264  ;;  %1479 = vbcast.lane.b32.xlu0 %v1477_v20, 256  ;;  %v8774_v24 = vpop.permute.xlu1 %878  ;;  %v8776_v25 = vpop.permute.xlu0 %874 }
 0x2c5   : > { %867 = vbcast.lane.b32.xlu1 %v861_v28, 264  ;;  %852 = vbcast.lane.b32.xlu0 %v850_v21, 256  ;;  %v8780_v29 = vpop.permute.xlu1 %1516  ;;  %v8782_v30 = vpop.permute.xlu0 %1512  ;;  %v1158_v21 = vrot.slane %v8645_v43, %v8724_v62 }
 0x2c9   : > { %1505 = vbcast.lane.b32.xlu1 %v1499_v31, 264  ;;  %1490 = vbcast.lane.b32.xlu0 %v1488_v22, 256  ;;  %v8786_v32 = vpop.permute.xlu1 %889  ;;  %v8788_v33 = vpop.permute.xlu0 %885 }
 0x2cd   : > { %1197 = vbcast.lane.b32.xlu1 %v1191_v35, 264  ;;  %863 = vbcast.lane.b32.xlu0 %v861_v28, 256  ;;  %v8792_v36 = vpop.permute.xlu1 %1527  ;;  %v8794_v37 = vpop.permute.xlu0 %1523 }
 0x2d1   : > { %1208 = vbcast.lane.b32.xlu1 %v1202_v39, 264  ;;  %1501 = vbcast.lane.b32.xlu0 %v1499_v31, 256  ;;  %v1169_v31 = vrot.slane %v8645_v43, %v8731_v3 }
 0x2d3   : > { %v8798_v38 = vpop.permute.xlu1 %900  ;;  %v8800_v41 = vpop.permute.xlu0 %896 }
 0x2d5   : > { %1219 = vbcast.lane.b32.xlu1 %v1213_v44, 264  ;;  %1193 = vbcast.lane.b32.xlu0 %v1191_v35, 256 }
 0x2d7   : > { %v8804_v45 = vpop.permute.xlu1 %1538  ;;  %v8806_v46 = vpop.permute.xlu0 %1534 }
 0x2d9   : > { %1230 = vbcast.lane.b32.xlu1 %v1224_v47, 264  ;;  %1204 = vbcast.lane.b32.xlu0 %v1202_v39, 256 }
 0x2db   : > { %v8810_v48 = vpop.permute.xlu1 %911  ;;  %v8812_v50 = vpop.permute.xlu0 %907 }
 0x2dd   : > { %1241 = vbcast.lane.b32.xlu1 %v1235_v51, 264  ;;  %1215 = vbcast.lane.b32.xlu0 %v1213_v44, 256  ;;  %v1180_v44 = vrot.slane %v8645_v43, %v8738_v6 }
 0x2df   : > { %v8816_v52 = vpop.permute.xlu1 %1549  ;;  %v8818_v53 = vpop.permute.xlu0 %1545 }
 0x2e1   : > { %1252 = vbcast.lane.b32.xlu1 %v1246_v54, 264  ;;  %1226 = vbcast.lane.b32.xlu0 %v1224_v47, 256 }
 0x2e3   : > { %v8822_v56 = vpop.permute.xlu1 %922  ;;  %v8824_v57 = vpop.permute.xlu0 %918 }
 0x2e5   : > { %1263 = vbcast.lane.b32.xlu1 %v1257_v58, 264  ;;  %1237 = vbcast.lane.b32.xlu0 %v1235_v51, 256 }
 0x2e7   : > { %v8828_v60 = vpop.permute.xlu1 %1560  ;;  %v8830_v61 = vpop.permute.xlu0 %1556 }
 0x2e9   : > { %1274 = vbcast.lane.b32.xlu1 %v1268_v63, 264  ;;  %1248 = vbcast.lane.b32.xlu0 %v1246_v54, 256 }
 0x2eb   : > { %v8834_v0 = vpop.permute.xlu1 %933  ;;  %v8836_v4 = vpop.permute.xlu0 %929 }
 0x2ed   : > { %1105 = vbcast.lane.b32.xlu1 %v1103_v5, 256  ;;  %1259 = vbcast.lane.b32.xlu0 %v1257_v58, 256 }
 0x2ef   : > { %v8840_v7 = vpop.permute.xlu1 %1571  ;;  %v8842_v8 = vpop.permute.xlu0 %1567 }
 0x2f1   : > { %1109 = vbcast.lane.b32.xlu1 %v1103_v5, 264  ;;  %1270 = vbcast.lane.b32.xlu0 %v1268_v63, 256 }
 0x2f3   : > { %v8844_v9 = vpop.permute.xlu1 %944  ;;  %v8846_v42 = vpop.permute.xlu0 %940 }
 0x2f4   : > { %11880 = vst [vmem:[#allocation28_spill] sm:$0xff] %v8844_v9  ;;  %11881 = vst [vmem:[#allocation29_spill] sm:$0xff] %v8846_v42 }
 0x2f5   : > { %1120 = vbcast.lane.b32.xlu1 %v1114_v10, 264  ;;  %1116 = vbcast.lane.b32.xlu0 %v1114_v10, 256 }
 0x2f7   : > { %v8850_v2 = vpop.permute.xlu1 %1582  ;;  %v8852_v11 = vpop.permute.xlu0 %1578 }
 0x2f8   : > { %11882 = vst [vmem:[#allocation30_spill] sm:$0xff] %v8850_v2  ;;  %11883 = vst [vmem:[#allocation31_spill] sm:$0xff] %v8852_v11 }
 0x2f9   : > { %1131 = vbcast.lane.b32.xlu1 %v1125_v12, 264  ;;  %1127 = vbcast.lane.b32.xlu0 %v1125_v12, 256 }
 0x2fb   : > { %v8856_v13 = vpop.permute.xlu1 %955  ;;  %v8858_v14 = vpop.permute.xlu0 %951 }
 0x2fc   : > { %11884 = vst [vmem:[#allocation32_spill] sm:$0xff] %v8856_v13  ;;  %11885 = vst [vmem:[#allocation33_spill] sm:$0xff] %v8858_v14 }
 0x2fd   : > { %1142 = vbcast.lane.b32.xlu1 %v1136_v15, 264  ;;  %1138 = vbcast.lane.b32.xlu0 %v1136_v15, 256 }
 0x2ff   : > { %v8862_v16 = vpop.permute.xlu1 %1593  ;;  %v8864_v17 = vpop.permute.xlu0 %1589 }
 0x300   : > { %11886 = vst [vmem:[#allocation34_spill] sm:$0xff] %v8862_v16  ;;  %11887 = vst [vmem:[#allocation35_spill] sm:$0xff] %v8864_v17 }
 0x301   : > { %1153 = vbcast.lane.b32.xlu1 %v1147_v18, 264  ;;  %1149 = vbcast.lane.b32.xlu0 %v1147_v18, 256 }
 0x303   : > { %v8868_v19 = vpop.permute.xlu1 %1428  ;;  %v8870_v20 = vpop.permute.xlu0 %786 }
 0x304   : > { %11888 = vst [vmem:[#allocation36_spill] sm:$0xff] %v8870_v20 }
 0x305   : > { %1164 = vbcast.lane.b32.xlu1 %v1158_v21, 264  ;;  %1160 = vbcast.lane.b32.xlu0 %v1158_v21, 256 }
 0x307   : > { %v8874_v22 = vpop.permute.xlu1 %801  ;;  %v8876_v28 = vpop.permute.xlu0 %790 }
 0x308   : > { %11889 = vst [vmem:[#allocation37_spill] sm:$0xff] %v8874_v22  ;;  %11890 = vst [vmem:[#allocation38_spill] sm:$0xff] %v8876_v28 }
 0x309   : > { %1175 = vbcast.lane.b32.xlu1 %v1169_v31, 264  ;;  %1171 = vbcast.lane.b32.xlu0 %v1169_v31, 256 }
 0x30b   : > { %v8880_v35 = vpop.permute.xlu1 %1439  ;;  %v8882_v39 = vpop.permute.xlu0 %1424 }
 0x30c   : > { %11891 = vst [vmem:[#allocation39_spill] sm:$0xff] %v8880_v35  ;;  %11892 = vst [vmem:[#allocation40_spill] sm:$0xff] %v8882_v39 }
 0x30d   : > { %1186 = vbcast.lane.b32.xlu1 %v1180_v44, 264  ;;  %1182 = vbcast.lane.b32.xlu0 %v1180_v44, 256 }
 0x30f   : > { %v8886_v47 = vpop.permute.xlu1 %812  ;;  %v8888_v51 = vpop.permute.xlu0 %797 }
 0x310   : > { %11893 = vst [vmem:[#allocation41_spill] sm:$0xff] %v8886_v47  ;;  %11894 = vst [vmem:[#allocation42_spill] sm:$0xff] %v8888_v51 }
 0x313   : > { %v8890_v54 = vpop.permute.xlu1 %1450  ;;  %v8892_v58 = vpop.permute.xlu0 %1435 }
 0x314   : > { %11895 = vst [vmem:[#allocation43_spill] sm:$0xff] %v8890_v54  ;;  %11896 = vst [vmem:[#allocation44_spill] sm:$0xff] %v8892_v58 }
 0x317   : > { %v8894_v63 = vpop.permute.xlu1 %823  ;;  %v8896_v5 = vpop.permute.xlu0 %808 }
 0x318   : > { %11897 = vst [vmem:[#allocation45_spill] sm:$0xff] %v8894_v63  ;;  %11898 = vst [vmem:[#allocation46_spill] sm:$0xff] %v8896_v5 }
 0x31b   : > { %v8898_v10 = vpop.permute.xlu1 %1461  ;;  %v8900_v12 = vpop.permute.xlu0 %1446 }
 0x31c   : > { %11899 = vst [vmem:[#allocation47_spill] sm:$0xff] %v8898_v10  ;;  %11900 = vst [vmem:[#allocation48_spill] sm:$0xff] %v8900_v12 }
 0x31f   : > { %v8902_v15 = vpop.permute.xlu1 %834  ;;  %v8904_v43 = vpop.permute.xlu0 %819 }
 0x320   : > { %11901 = vst [vmem:[#allocation49_spill] sm:$0xff] %v8902_v15  ;;  %11902 = vst [vmem:[#allocation50_spill] sm:$0xff] %v8904_v43 }
 0x323   : > { %v8906_v18 = vpop.permute.xlu1 %1472  ;;  %v8908_v21 = vpop.permute.xlu0 %1457 }
 0x324   : > { %11903 = vst [vmem:[#allocation51_spill] sm:$0xff] %v8906_v18  ;;  %11904 = vst [vmem:[#allocation52_spill] sm:$0xff] %v8908_v21 }
 0x327   : > { %v8910_v31 = vpop.permute.xlu1 %845  ;;  %v8912_v44 = vpop.permute.xlu0 %830 }
 0x328   : > { %11905 = vst [vmem:[#allocation53_spill] sm:$0xff] %v8910_v31  ;;  %11906 = vst [vmem:[#allocation54_spill] sm:$0xff] %v8912_v44 }
 0x32b   : > { %v8914_v1 = vpop.permute.xlu1 %1483  ;;  %v8916_v23 = vpop.permute.xlu0 %1468 }
 0x32c   : > { %11907 = vst [vmem:[#allocation55_spill] sm:$0xff] %v8914_v1  ;;  %11908 = vst [vmem:[#allocation56_spill] sm:$0xff] %v8916_v23 }
 0x32f   : > { %v8918_v17 = vpop.permute.xlu1 %856  ;;  %v8920_v16 = vpop.permute.xlu0 %841 }
 0x330   : > { %11909 = vst [vmem:[#allocation57_spill] sm:$0xff] %v8918_v17  ;;  %11910 = vst [vmem:[#allocation58_spill] sm:$0xff] %v8920_v16 }
 0x332   : > { %v8922_v14 = vpop.f32.mrb[2].mxu1  ;;  %v8924_v13 = vpop.f32.mrb[8].mxu0 }
 0x333   : > { %v8926_v11 = vpop.permute.xlu1 %1494  ;;  %v8928_v2 = vpop.permute.xlu0 %1479  ;;  %v1916_v31 = vrot.slane %v8922_v14, %v8626_v34  ;;  %v2235_v9 = vrot.slane %v8924_v13, %v8626_v34  ;;  %v1938_v26 = vrot.slane %v8922_v14, %v8654_v49  ;;  %v2257_v27 = vrot.slane %v8924_v13, %v8654_v49 }
 0x334   : > { %11911 = vst [vmem:[#allocation59_spill] sm:$0xff] %v8926_v11  ;;  %11912 = vst [vmem:[#allocation60_spill] sm:$0xff] %v8928_v2  ;;  %v8932_v42 = vpop.f32.mrb[3].mxu1  ;;  %v8934_v1 = vpop.f32.mrb[9].mxu0  ;;  %v2279_v21 = vrot.slane %v8924_v13, %v8708_v59  ;;  %v1982_v10 = vrot.slane %v8922_v14, %v8731_v3 }
 0x335   : > { %1922 = vbcast.lane.b32.xlu1 %v1916_v31, 264  ;;  %1918 = vbcast.lane.b32.xlu0 %v1916_v31, 256 }
 0x337   : > { %v8936_v17 = vpop.permute.xlu1 %867  ;;  %v8938_v16 = vpop.permute.xlu0 %852 }
 0x338   : > { %11913 = vst [vmem:[#allocation61_spill] sm:$0xff] %v8936_v17  ;;  %11914 = vst [vmem:[#allocation62_spill] sm:$0xff] %v8938_v16  ;;  %v11918_v16 = vmov 1.0|1.0  }
 0x339   : > { %2241 = vbcast.lane.b32.xlu1 %v2235_v9, 264  ;;  %2237 = vbcast.lane.b32.xlu0 %v2235_v9, 256  ;;  %v1927_v9 = vrot.slane %v8922_v14, %v8639_v40 }
 0x33a   : > { %v8942_v11 = vpop.f32.mrb[4].mxu1  ;;  %v7162_v2 = vpop.f32.mrb[10].mxu0 }
 0x33b   : > { %11915 = vst [vmem:[#allocation63_spill] sm:$0xff] %v8942_v11  ;;  %v8944_v23 = vpop.f32.mrb[5].mxu1  ;;  %v2779_v18 = vpop.f32.mrb[11].mxu0  ;;  %v2554_v47 = vrot.slane %v8942_v11, %v8626_v34  ;;  %v2565_v39 = vrot.slane %v8942_v11, %v8639_v40  ;;  %v2587_v35 = vrot.slane %v8942_v11, %v8674_v55 }
 0x33c   : > { %7171 = vmatprep.mubr.msk.f32.mxu1 %vm618_vm0, %v2779_v18  ;;  %7182 = vmatprep.mubr.msk.f32.mxu0 %vm618_vm0, %v2779_v18  ;;  %v8948_v31 = vpop.permute.xlu1 %1505  ;;  %v8950_v17 = vpop.permute.xlu0 %1490 }
 0x33d   : > { %11916 = vst [vmem:[#allocation64_spill] sm:$0xff] %v8948_v31  ;;  %11917 = vst [vmem:[#allocation65_spill] sm:$0xff] %v8950_v17  ;;  %7172 = vmatmul.mubr.msk.f32.vlgmr.msra.gmra.mrb[6].mxu1 %vm618_vm0, %v7162_v2  ;;  %7183 = vmatmul.mubr.msk.f32.vlgmr.msra.gmra.mrb[12].mxu0 %vm618_vm0, %v7162_v2  ;;  %v2246_v17 = vrot.slane %v8924_v13, %v8639_v40 }
 0x33e   : > { %7323 = vmatpush3.bf16.msk.msra.mxu1 %vm8532_vm13, %v11918_v16  ;;  %7193 = vmatprep.mubr.msk.f32.mxu1 %vm618_vm0, %v2779_v18 }
 0x33f   : > { %1933 = vbcast.lane.b32.xlu1 %v1927_v9, 264  ;;  %1929 = vbcast.lane.b32.xlu0 %v1927_v9, 256 }
 0x340   : > { %7325 = vmatprep.subr.msk.bf16.mxu1 %vm8542_vm14, %v11918_v16  ;;  %v8968_v31 = vpop.permute.xlu1 %1197  ;;  %v8970_v44 = vpop.permute.xlu0 %863 }
 0x341   : > { %11919 = vst [vmem:[#allocation66_spill] sm:$0xff] %v8970_v44 }
 0x342   : > { %7327 = vmatpush3.bf16.msk.msra.mxu1 %vm8542_vm14, %v11918_v16  ;;  %v1949_v16 = vrot.slane %v8922_v14, %v8674_v55 }
 0x343   : > { %2252 = vbcast.lane.b32.xlu1 %v2246_v17, 264  ;;  %2248 = vbcast.lane.b32.xlu0 %v2246_v17, 256 }
 0x344   : > { %v8975_v18 = vpop.permute.xlu1 %1208  ;;  %v8977_v9 = vpop.permute.xlu0 %1501 }
 0x345   : > { %7194 = vmatmul.mubr.msk.f32.vlgmr.msra.gmra.mrb[8].mxu1 %vm618_vm0, %v7162_v2  ;;  %11920 = vst [vmem:[#allocation67_spill] sm:$0xff] %v8977_v9 }
 0x347   : > { %1944 = vbcast.lane.b32.xlu1 %v1938_v26, 264  ;;  %1940 = vbcast.lane.b32.xlu0 %v1938_v26, 256  ;;  %v2268_v26 = vrot.slane %v8924_v13, %v8674_v55 }
 0x348   : > { %v8983_v17 = vpop.permute.xlu1 %1219  ;;  %v8985_v2 = vpop.permute.xlu0 %1193 }
 0x34b   : > { %2263 = vbcast.lane.b32.xlu1 %v2257_v27, 264  ;;  %2259 = vbcast.lane.b32.xlu0 %v2257_v27, 256  ;;  %v1960_v27 = vrot.slane %v8922_v14, %v8708_v59 }
 0x34c   : > { %v8989_v9 = vpop.permute.xlu1 %1230  ;;  %v8991_v44 = vpop.permute.xlu0 %1204 }
 0x34d   : > { %11921 = vst [vmem:[#allocation68_spill] sm:$0xff] %v8989_v9 }
 0x34f   : > { %1955 = vbcast.lane.b32.xlu1 %v1949_v16, 264  ;;  %1951 = vbcast.lane.b32.xlu0 %v1949_v16, 256 }
 0x350   : > { %v8997_v43 = vpop.permute.xlu1 %1241  ;;  %v8999_v16 = vpop.permute.xlu0 %1215 }
 0x351   : > { %11922 = vst [vmem:[#allocation69_spill] sm:$0xff] %v8997_v43  ;;  %v2598_v43 = vrot.slane %v8942_v11, %v8708_v59 }
 0x353   : > { %2274 = vbcast.lane.b32.xlu1 %v2268_v26, 264  ;;  %2270 = vbcast.lane.b32.xlu0 %v2268_v26, 256  ;;  %v1971_v26 = vrot.slane %v8922_v14, %v8724_v62 }
 0x354   : > { %v9003_v15 = vpop.permute.xlu1 %1252  ;;  %v9005_v12 = vpop.permute.xlu0 %1226 }
 0x355   : > { %11923 = vst [vmem:[#allocation70_spill] sm:$0xff] %v9003_v15  ;;  %11924 = vst [vmem:[#allocation71_spill] sm:$0xff] %v9005_v12  ;;  %v2576_v15 = vrot.slane %v8942_v11, %v8654_v49 }
 0x357   : > { %1966 = vbcast.lane.b32.xlu1 %v1960_v27, 264  ;;  %1962 = vbcast.lane.b32.xlu0 %v1960_v27, 256  ;;  %v2290_v27 = vrot.slane %v8924_v13, %v8724_v62 }
 0x358   : > { %v9011_v5 = vpop.permute.xlu1 %1263 }
 0x359   : > { %11925 = vst [vmem:[#allocation72_spill] sm:$0xff] %v9011_v5  ;;  %v2312_v5 = vrot.slane %v8924_v13, %v8738_v6 }
 0x35b   : > { %2285 = vbcast.lane.b32.xlu1 %v2279_v21, 264  ;;  %2281 = vbcast.lane.b32.xlu0 %v2279_v21, 256  ;;  %v9013_v21 = vpop.permute.xlu0 %1237 }
 0x35c   : > { %11926 = vst [vmem:[#allocation73_spill] sm:$0xff] %v9013_v21  ;;  %v9017_v63 = vpop.permute.xlu1 %1274 }
 0x35d   : > { %11927 = vst [vmem:[#allocation74_spill] sm:$0xff] %v9017_v63 }
 0x35f   : > { %1977 = vbcast.lane.b32.xlu1 %v1971_v26, 264  ;;  %1973 = vbcast.lane.b32.xlu0 %v1971_v26, 256  ;;  %v2301_v26 = vrot.slane %v8924_v13, %v8731_v3  ;;  %v9019_v58 = vpop.permute.xlu0 %1248  ;;  %v1839_v13 = vrot.slane %v8932_v42, %v8639_v40 }
 0x360   : > { %11928 = vst [vmem:[#allocation75_spill] sm:$0xff] %v9019_v58  ;;  %v9025_v54 = vpop.permute.xlu1 %1105 }
 0x361   : > { %11929 = vst [vmem:[#allocation76_spill] sm:$0xff] %v9025_v54  ;;  %v2224_v54 = vrot.slane %v8934_v1, %v8738_v6 }
 0x363   : > { %2296 = vbcast.lane.b32.xlu1 %v2290_v27, 264  ;;  %2292 = vbcast.lane.b32.xlu0 %v2290_v27, 256  ;;  %v1993_v27 = vrot.slane %v8922_v14, %v8738_v6  ;;  %v2147_v14 = vrot.slane %v8934_v1, %v8626_v34 }
 0x364   : > { %v9031_v63 = vpop.permute.xlu1 %1109 }
 0x365   : > { %11931 = vst [vmem:[#allocation78_spill] sm:$0xff] %v9031_v63 }
 0x367   : > { %1988 = vbcast.lane.b32.xlu1 %v1982_v10, 264  ;;  %1984 = vbcast.lane.b32.xlu0 %v1982_v10, 256  ;;  %v9027_v10 = vpop.permute.xlu0 %1259 }
 0x368   : > { %11930 = vst [vmem:[#allocation77_spill] sm:$0xff] %v9027_v10 }
 0x36b   : > { %2307 = vbcast.lane.b32.xlu1 %v2301_v26, 264  ;;  %2303 = vbcast.lane.b32.xlu0 %v2301_v26, 256  ;;  %v1828_v26 = vrot.slane %v8932_v42, %v8626_v34  ;;  %v9033_v51 = vpop.permute.xlu0 %1270 }
 0x36c   : > { %11932 = vst [vmem:[#allocation79_spill] sm:$0xff] %v9033_v51 }
 0x36f   : > { %1999 = vbcast.lane.b32.xlu1 %v1993_v27, 264  ;;  %1995 = vbcast.lane.b32.xlu0 %v1993_v27, 256  ;;  %v9039_v27 = vpop.permute.xlu1 %1120 }
 0x370   : > { %11933 = vst [vmem:[#allocation80_spill] sm:$0xff] %v9039_v27  ;;  %v2169_v27 = vrot.slane %v8934_v1, %v8654_v49 }
 0x373   : > { %2318 = vbcast.lane.b32.xlu1 %v2312_v5, 264  ;;  %2314 = vbcast.lane.b32.xlu0 %v2312_v5, 256  ;;  %v9041_v5 = vpop.permute.xlu0 %1116  ;;  %v9045_v51 = vpop.permute.xlu1 %1131 }
 0x374   : > { %11934 = vst [vmem:[#allocation81_spill] sm:$0xff] %v9041_v5  ;;  %11935 = vst [vmem:[#allocation82_spill] sm:$0xff] %v9045_v51 }
 0x377   : > { %1834 = vbcast.lane.b32.xlu1 %v1828_v26, 264  ;;  %1830 = vbcast.lane.b32.xlu0 %v1828_v26, 256  ;;  %v2158_v26 = vrot.slane %v8934_v1, %v8639_v40  ;;  %v9047_v10 = vpop.permute.xlu0 %1127  ;;  %v9053_v5 = vpop.permute.xlu1 %1142 }
 0x378   : > { %11936 = vst [vmem:[#allocation83_spill] sm:$0xff] %v9047_v10  ;;  %11937 = vst [vmem:[#allocation84_spill] sm:$0xff] %v9053_v5  ;;  %v1872_v5 = vrot.slane %v8932_v42, %v8708_v59 }
 0x37b   : > { %2153 = vbcast.lane.b32.xlu1 %v2147_v14, 264  ;;  %2149 = vbcast.lane.b32.xlu0 %v2147_v14, 256  ;;  %v1850_v14 = vrot.slane %v8932_v42, %v8654_v49  ;;  %v9059_v10 = vpop.permute.xlu1 %1153 }
 0x37c   : > { %11939 = vst [vmem:[#allocation86_spill] sm:$0xff] %v9059_v10 }
 0x37f   : > { %1845 = vbcast.lane.b32.xlu1 %v1839_v13, 264  ;;  %1841 = vbcast.lane.b32.xlu0 %v1839_v13, 256  ;;  %v9055_v13 = vpop.permute.xlu0 %1138 }
 0x380   : > { %11938 = vst [vmem:[#allocation85_spill] sm:$0xff] %v9055_v13  ;;  %v9067_v13 = vpop.permute.xlu1 %1164 }
 0x381   : > { %11941 = vst [vmem:[#allocation88_spill] sm:$0xff] %v9067_v13  ;;  %v2202_v13 = vrot.slane %v8934_v1, %v8724_v62 }
 0x383   : > { %2164 = vbcast.lane.b32.xlu1 %v2158_v26, 264  ;;  %2160 = vbcast.lane.b32.xlu0 %v2158_v26, 256  ;;  %v1861_v26 = vrot.slane %v8932_v42, %v8674_v55  ;;  %v9061_v51 = vpop.permute.xlu0 %1149 }
 0x384   : > { %11940 = vst [vmem:[#allocation87_spill] sm:$0xff] %v9061_v51  ;;  %v9073_v51 = vpop.permute.xlu1 %1175 }
 0x385   : > { %11943 = vst [vmem:[#allocation90_spill] sm:$0xff] %v9073_v51 }
 0x387   : > { %1856 = vbcast.lane.b32.xlu1 %v1850_v14, 264  ;;  %1852 = vbcast.lane.b32.xlu0 %v1850_v14, 256  ;;  %v2180_v14 = vrot.slane %v8934_v1, %v8674_v55 }
 0x38b   : > { %2175 = vbcast.lane.b32.xlu1 %v2169_v27, 264  ;;  %2171 = vbcast.lane.b32.xlu0 %v2169_v27, 256  ;;  %v9069_v27 = vpop.permute.xlu0 %1160 }
 0x38c   : > { %11942 = vst [vmem:[#allocation89_spill] sm:$0xff] %v9069_v27  ;;  %v9081_v27 = vpop.permute.xlu1 %1186 }
 0x38d   : > { %11945 = vst [vmem:[#allocation92_spill] sm:$0xff] %v9081_v27 }
 0x38f   : > { %1867 = vbcast.lane.b32.xlu1 %v1861_v26, 264  ;;  %1863 = vbcast.lane.b32.xlu0 %v1861_v26, 256  ;;  %v2191_v26 = vrot.slane %v8934_v1, %v8708_v59  ;;  %v9075_v10 = vpop.permute.xlu0 %1171 }
 0x390   : > { %11944 = vst [vmem:[#allocation91_spill] sm:$0xff] %v9075_v10 }
 0x393   : > { %2186 = vbcast.lane.b32.xlu1 %v2180_v14, 264  ;;  %2182 = vbcast.lane.b32.xlu0 %v2180_v14, 256  ;;  %v1883_v14 = vrot.slane %v8932_v42, %v8724_v62 }
 0x397   : > { %1878 = vbcast.lane.b32.xlu1 %v1872_v5, 264  ;;  %1874 = vbcast.lane.b32.xlu0 %v1872_v5, 256  ;;  %v9083_v5 = vpop.permute.xlu0 %1182 }
 0x398   : > { %11946 = vst [vmem:[#allocation93_spill] sm:$0xff] %v9083_v5 }
 0x39b   : > { %2197 = vbcast.lane.b32.xlu1 %v2191_v26, 264  ;;  %2193 = vbcast.lane.b32.xlu0 %v2191_v26, 256  ;;  %v1894_v26 = vrot.slane %v8932_v42, %v8731_v3 }
 0x39f   : > { %1889 = vbcast.lane.b32.xlu1 %v1883_v14, 264  ;;  %1885 = vbcast.lane.b32.xlu0 %v1883_v14, 256  ;;  %v2213_v14 = vrot.slane %v8934_v1, %v8731_v3 }
 0x3a3   : > { %2208 = vbcast.lane.b32.xlu1 %v2202_v13, 264  ;;  %2204 = vbcast.lane.b32.xlu0 %v2202_v13, 256  ;;  %v1905_v13 = vrot.slane %v8932_v42, %v8738_v6 }
 0x3a7   : > { %1900 = vbcast.lane.b32.xlu1 %v1894_v26, 264  ;;  %1896 = vbcast.lane.b32.xlu0 %v1894_v26, 256  ;;  %v9087_v10 = vpop.permute.xlu1 %1922  ;;  %v9089_v51 = vpop.permute.xlu0 %1918 }
 0x3ab   : > { %2219 = vbcast.lane.b32.xlu1 %v2213_v14, 264  ;;  %2215 = vbcast.lane.b32.xlu0 %v2213_v14, 256  ;;  %v9093_v63 = vpop.permute.xlu1 %2241  ;;  %v9095_v27 = vpop.permute.xlu0 %2237 }
 0x3af   : > { %1911 = vbcast.lane.b32.xlu1 %v1905_v13, 264  ;;  %1907 = vbcast.lane.b32.xlu0 %v1905_v13, 256 }
 0x3b1   : > { %v9099_v5 = vpop.permute.xlu1 %1933  ;;  %v9101_v26 = vpop.permute.xlu0 %1929 }
 0x3b3   : > { %2230 = vbcast.lane.b32.xlu1 %v2224_v54, 264  ;;  %2226 = vbcast.lane.b32.xlu0 %v2224_v54, 256 }
 0x3b5   : > { %v9105_v58 = vpop.permute.xlu1 %2252  ;;  %v9107_v14 = vpop.permute.xlu0 %2248 }
 0x3b7   : > { %2560 = vbcast.lane.b32.xlu1 %v2554_v47, 264  ;;  %2556 = vbcast.lane.b32.xlu0 %v2554_v47, 256 }
 0x3b9   : > { %v9111_v42 = vpop.permute.xlu1 %1944  ;;  %v9113_v13 = vpop.permute.xlu0 %1940 }
 0x3ba   : > { %11947 = vst [vmem:[#allocation94_spill] sm:$0xff] %v9111_v42  ;;  %11948 = vst [vmem:[#allocation95_spill] sm:$0xff] %v9113_v13 }
 0x3bb   : > { %2571 = vbcast.lane.b32.xlu1 %v2565_v39, 264  ;;  %2567 = vbcast.lane.b32.xlu0 %v2565_v39, 256 }
 0x3bd   : > { %v9117_v1 = vpop.permute.xlu1 %2263  ;;  %v9119_v54 = vpop.permute.xlu0 %2259 }
 0x3be   : > { %11949 = vst [vmem:[#allocation96_spill] sm:$0xff] %v9117_v1  ;;  %11950 = vst [vmem:[#allocation97_spill] sm:$0xff] %v9119_v54 }
 0x3bf   : > { %2582 = vbcast.lane.b32.xlu1 %v2576_v15, 264  ;;  %2578 = vbcast.lane.b32.xlu0 %v2576_v15, 256 }
 0x3c1   : > { %v9123_v21 = vpop.permute.xlu1 %1955  ;;  %v9125_v47 = vpop.permute.xlu0 %1951 }
 0x3c2   : > { %11951 = vst [vmem:[#allocation98_spill] sm:$0xff] %v9123_v21  ;;  %11952 = vst [vmem:[#allocation99_spill] sm:$0xff] %v9125_v47  ;;  %v2609_v47 = vrot.slane %v8942_v11, %v8724_v62 }
 0x3c3   : > { %2593 = vbcast.lane.b32.xlu1 %v2587_v35, 264  ;;  %2589 = vbcast.lane.b32.xlu0 %v2587_v35, 256 }
 0x3c5   : > { %v9129_v28 = vpop.permute.xlu1 %2274  ;;  %v9131_v39 = vpop.permute.xlu0 %2270 }
 0x3c6   : > { %11953 = vst [vmem:[#allocation100_spill] sm:$0xff] %v9129_v28  ;;  %11954 = vst [vmem:[#allocation101_spill] sm:$0xff] %v9131_v39  ;;  %v2620_v39 = vrot.slane %v8942_v11, %v8731_v3 }
 0x3c7   : > { %2604 = vbcast.lane.b32.xlu1 %v2598_v43, 264  ;;  %2600 = vbcast.lane.b32.xlu0 %v2598_v43, 256 }
 0x3c9   : > { %v9135_v54 = vpop.permute.xlu1 %1966  ;;  %v9137_v15 = vpop.permute.xlu0 %1962 }
 0x3ca   : > { %11955 = vst [vmem:[#allocation102_spill] sm:$0xff] %v9135_v54  ;;  %11956 = vst [vmem:[#allocation103_spill] sm:$0xff] %v9137_v15  ;;  %v2466_v15 = vrot.slane %v8944_v23, %v8626_v34 }
 0x3cb   : > { %2615 = vbcast.lane.b32.xlu1 %v2609_v47, 264  ;;  %2611 = vbcast.lane.b32.xlu0 %v2609_v47, 256 }
 0x3cd   : > { %v9141_v21 = vpop.permute.xlu1 %2285  ;;  %v9143_v35 = vpop.permute.xlu0 %2281 }
 0x3ce   : > { %11957 = vst [vmem:[#allocation104_spill] sm:$0xff] %v9141_v21  ;;  %11958 = vst [vmem:[#allocation105_spill] sm:$0xff] %v9143_v35  ;;  %v2477_v35 = vrot.slane %v8944_v23, %v8639_v40 }
 0x3cf   : > { %2626 = vbcast.lane.b32.xlu1 %v2620_v39, 264  ;;  %2622 = vbcast.lane.b32.xlu0 %v2620_v39, 256 }
 0x3d1   : > { %v9147_v28 = vpop.permute.xlu1 %1977  ;;  %v9149_v43 = vpop.permute.xlu0 %1973 }
 0x3d2   : > { %11959 = vst [vmem:[#allocation106_spill] sm:$0xff] %v9147_v28  ;;  %11960 = vst [vmem:[#allocation107_spill] sm:$0xff] %v9149_v43  ;;  %v2488_v28 = vrot.slane %v8944_v23, %v8654_v49 }
 0x3d3   : > { %2472 = vbcast.lane.b32.xlu1 %v2466_v15, 264  ;;  %2468 = vbcast.lane.b32.xlu0 %v2466_v15, 256 }
 0x3d5   : > { %v9153_v54 = vpop.permute.xlu1 %2296  ;;  %v9155_v47 = vpop.permute.xlu0 %2292 }
 0x3d6   : > { %11961 = vst [vmem:[#allocation108_spill] sm:$0xff] %v9153_v54  ;;  %11962 = vst [vmem:[#allocation109_spill] sm:$0xff] %v9155_v47  ;;  %v2499_v54 = vrot.slane %v8944_v23, %v8674_v55 }
 0x3d7   : > { %2483 = vbcast.lane.b32.xlu1 %v2477_v35, 264  ;;  %2479 = vbcast.lane.b32.xlu0 %v2477_v35, 256 }
 0x3d9   : > { %v9159_v11 = vpop.permute.xlu1 %1988  ;;  %v9161_v39 = vpop.permute.xlu0 %1984 }
 0x3da   : > { %11963 = vst [vmem:[#allocation110_spill] sm:$0xff] %v9159_v11  ;;  %11964 = vst [vmem:[#allocation111_spill] sm:$0xff] %v9161_v39  ;;  %v2510_v39 = vrot.slane %v8944_v23, %v8708_v59 }
 0x3db   : > { %2494 = vbcast.lane.b32.xlu1 %v2488_v28, 264  ;;  %2490 = vbcast.lane.b32.xlu0 %v2488_v28, 256 }
 0x3dd   : > { %v9165_v43 = vpop.permute.xlu1 %2307  ;;  %v9167_v15 = vpop.permute.xlu0 %2303 }
 0x3de   : > { %11965 = vst [vmem:[#allocation112_spill] sm:$0xff] %v9165_v43  ;;  %11966 = vst [vmem:[#allocation113_spill] sm:$0xff] %v9167_v15  ;;  %v2521_v15 = vrot.slane %v8944_v23, %v8724_v62 }
 0x3df   : > { %2505 = vbcast.lane.b32.xlu1 %v2499_v54, 264  ;;  %2501 = vbcast.lane.b32.xlu0 %v2499_v54, 256 }
 0x3e1   : > { %v9171_v47 = vpop.permute.xlu1 %1999  ;;  %v9173_v35 = vpop.permute.xlu0 %1995 }
 0x3e2   : > { %11967 = vst [vmem:[#allocation114_spill] sm:$0xff] %v9171_v47  ;;  %11968 = vst [vmem:[#allocation115_spill] sm:$0xff] %v9173_v35  ;;  %v2532_v35 = vrot.slane %v8944_v23, %v8731_v3 }
 0x3e3   : > { %2516 = vbcast.lane.b32.xlu1 %v2510_v39, 264  ;;  %2512 = vbcast.lane.b32.xlu0 %v2510_v39, 256 }
 0x3e5   : > { %v9177_v11 = vpop.permute.xlu1 %2318  ;;  %v9179_v28 = vpop.permute.xlu0 %2314 }
 0x3e6   : > { %11969 = vst [vmem:[#allocation116_spill] sm:$0xff] %v9177_v11  ;;  %11970 = vst [vmem:[#allocation117_spill] sm:$0xff] %v9179_v28  ;;  %v2543_v28 = vrot.slane %v8944_v23, %v8738_v6 }
 0x3e7   : > { %2527 = vbcast.lane.b32.xlu1 %v2521_v15, 264  ;;  %2523 = vbcast.lane.b32.xlu0 %v2521_v15, 256 }
 0x3e9   : > { %v9183_v43 = vpop.permute.xlu1 %1834  ;;  %v9185_v54 = vpop.permute.xlu0 %1830 }
 0x3ea   : > { %11971 = vst [vmem:[#allocation118_spill] sm:$0xff] %v9183_v43  ;;  %11972 = vst [vmem:[#allocation119_spill] sm:$0xff] %v9185_v54 }
 0x3eb   : > { %2538 = vbcast.lane.b32.xlu1 %v2532_v35, 264  ;;  %2534 = vbcast.lane.b32.xlu0 %v2532_v35, 256 }
 0x3ed   : > { %v9189_v47 = vpop.permute.xlu1 %2153  ;;  %v9191_v39 = vpop.permute.xlu0 %2149 }
 0x3ee   : > { %11973 = vst [vmem:[#allocation120_spill] sm:$0xff] %v9189_v47  ;;  %11974 = vst [vmem:[#allocation121_spill] sm:$0xff] %v9191_v39 }
 0x3ef   : > { %2549 = vbcast.lane.b32.xlu1 %v2543_v28, 264  ;;  %2545 = vbcast.lane.b32.xlu0 %v2543_v28, 256 }
 0x3f1   : > { %v9195_v11 = vpop.permute.xlu1 %1845  ;;  %v9197_v15 = vpop.permute.xlu0 %1841 }
 0x3f2   : > { %11975 = vst [vmem:[#allocation122_spill] sm:$0xff] %v9195_v11  ;;  %11976 = vst [vmem:[#allocation123_spill] sm:$0xff] %v9197_v15 }
 0x3f5   : > { %v9199_v43 = vpop.permute.xlu1 %2164  ;;  %v9201_v54 = vpop.permute.xlu0 %2160 }
 0x3f6   : > { %11977 = vst [vmem:[#allocation124_spill] sm:$0xff] %v9199_v43  ;;  %11978 = vst [vmem:[#allocation125_spill] sm:$0xff] %v9201_v54 }
 0x3f9   : > { %v9203_v21 = vpop.permute.xlu1 %1856  ;;  %v9205_v35 = vpop.permute.xlu0 %1852 }
 0x3fa   : > { %11979 = vst [vmem:[#allocation126_spill] sm:$0xff] %v9203_v21  ;;  %11980 = vst [vmem:[#allocation127_spill] sm:$0xff] %v9205_v35 }
 0x3fd   : > { %v9207_v47 = vpop.permute.xlu1 %2175  ;;  %v9209_v39 = vpop.permute.xlu0 %2171 }
 0x3fe   : > { %11981 = vst [vmem:[#allocation128_spill] sm:$0xff] %v9207_v47  ;;  %11982 = vst [vmem:[#allocation129_spill] sm:$0xff] %v9209_v39 }
 0x401   : > { %v9211_v1 = vpop.permute.xlu1 %1867  ;;  %v9213_v23 = vpop.permute.xlu0 %1863 }
 0x402   : > { %11983 = vst [vmem:[#allocation130_spill] sm:$0xff] %v9211_v1  ;;  %11984 = vst [vmem:[#allocation131_spill] sm:$0xff] %v9213_v23 }
 0x405   : > { %v9215_v28 = vpop.permute.xlu1 %2186  ;;  %v9217_v11 = vpop.permute.xlu0 %2182 }
 0x406   : > { %11985 = vst [vmem:[#allocation132_spill] sm:$0xff] %v9215_v28  ;;  %11986 = vst [vmem:[#allocation133_spill] sm:$0xff] %v9217_v11 }
 0x409   : > { %v9219_v15 = vpop.permute.xlu1 %1878  ;;  %v9221_v43 = vpop.permute.xlu0 %1874 }
 0x40a   : > { %11987 = vst [vmem:[#allocation134_spill] sm:$0xff] %v9219_v15  ;;  %11988 = vst [vmem:[#allocation135_spill] sm:$0xff] %v9221_v43 }
 0x40d   : > { %v9223_v54 = vpop.permute.xlu1 %2197  ;;  %v9225_v21 = vpop.permute.xlu0 %2193 }
 0x40e   : > { %11989 = vst [vmem:[#allocation136_spill] sm:$0xff] %v9223_v54  ;;  %11990 = vst [vmem:[#allocation137_spill] sm:$0xff] %v9225_v21 }
 0x410   : > { %v9227_v35 = vpop.f32.mrb[6].mxu1  ;;  %v9229_v47 = vpop.f32.mrb[12].mxu0 }
 0x411   : > { %11991 = vst [vmem:[#allocation138_spill] sm:$0xff] %v9227_v35  ;;  %11992 = vst [vmem:[#allocation139_spill] sm:$0xff] %v9229_v47  ;;  %v9231_v39 = vpop.permute.xlu1 %1889  ;;  %v9233_v1 = vpop.permute.xlu0 %1885  ;;  %v2960_v28 = vrot.slane %v9227_v35, %v8626_v34  ;;  %v3279_v43 = vrot.slane %v9229_v47, %v8626_v34  ;;  %v2971_v12 = vrot.slane %v9227_v35, %v8639_v40 }
 0x412   : > { %11993 = vst [vmem:[#allocation140_spill] sm:$0xff] %v9231_v39  ;;  %11994 = vst [vmem:[#allocation141_spill] sm:$0xff] %v9233_v1  ;;  %v9237_v11 = vpop.f32.mrb[7].mxu1  ;;  %v9239_v15 = vpop.f32.mrb[13].mxu0  ;;  %v3334_v22 = vrot.slane %v9229_v47, %v8724_v62 }
 0x413   : > { %2966 = vbcast.lane.b32.xlu1 %v2960_v28, 264  ;;  %2962 = vbcast.lane.b32.xlu0 %v2960_v28, 256 }
 0x415   : > { %v9241_v54 = vpop.permute.xlu1 %2208  ;;  %v9243_v21 = vpop.permute.xlu0 %2204 }
 0x416   : > { %11995 = vst [vmem:[#allocation142_spill] sm:$0xff] %v9241_v54  ;;  %11996 = vst [vmem:[#allocation143_spill] sm:$0xff] %v9243_v21  ;;  %v3290_v21 = vrot.slane %v9229_v47, %v8639_v40 }
 0x417   : > { %3285 = vbcast.lane.b32.xlu1 %v3279_v43, 264  ;;  %3281 = vbcast.lane.b32.xlu0 %v3279_v43, 256 }
 0x418   : > { %v9247_v39 = vpop.f32.mrb[8].mxu1 }
 0x419   : > { %v9249_v1 = vpop.f32.mrb[9].mxu1  ;;  %v9251_v23 = vpop.permute.xlu1 %1900 }
 0x41a   : > { %11997 = vst [vmem:[#allocation144_spill] sm:$0xff] %v9249_v1  ;;  %11998 = vst [vmem:[#allocation145_spill] sm:$0xff] %v9251_v23  ;;  %v9255_v13 = vpop.permute.xlu0 %1896  ;;  %v2982_v23 = vrot.slane %v9227_v35, %v8654_v49 }
 0x41b   : > { %11999 = vst [vmem:[#allocation146_spill] sm:$0xff] %v9255_v13  ;;  %2977 = vbcast.lane.b32.xlu1 %v2971_v12, 264  ;;  %2973 = vbcast.lane.b32.xlu0 %v2971_v12, 256  ;;  %v3301_v12 = vrot.slane %v9229_v47, %v8654_v49 }
 0x41d   : > { %v9257_v28 = vpop.permute.xlu1 %2219 }
 0x41e   : > { %12000 = vst [vmem:[#allocation147_spill] sm:$0xff] %v9257_v28  ;;  %v9261_v54 = vpop.permute.xlu0 %2215 }
 0x41f   : > { %12001 = vst [vmem:[#allocation148_spill] sm:$0xff] %v9261_v54  ;;  %3296 = vbcast.lane.b32.xlu1 %v3290_v21, 264  ;;  %3292 = vbcast.lane.b32.xlu0 %v3290_v21, 256  ;;  %v2993_v21 = vrot.slane %v9227_v35, %v8674_v55 }
 0x421   : > { %v9263_v43 = vpop.permute.xlu1 %1911 }
 0x422   : > { %12002 = vst [vmem:[#allocation149_spill] sm:$0xff] %v9263_v43  ;;  %v9267_v1 = vpop.permute.xlu0 %1907 }
 0x423   : > { %12003 = vst [vmem:[#allocation150_spill] sm:$0xff] %v9267_v1  ;;  %2988 = vbcast.lane.b32.xlu1 %v2982_v23, 264  ;;  %2984 = vbcast.lane.b32.xlu0 %v2982_v23, 256  ;;  %v3312_v23 = vrot.slane %v9229_v47, %v8674_v55 }
 0x425   : > { %v9271_v28 = vpop.permute.xlu1 %2230 }
 0x426   : > { %12004 = vst [vmem:[#allocation151_spill] sm:$0xff] %v9271_v28  ;;  %v9273_v13 = vpop.permute.xlu0 %2226  ;;  %v3004_v28 = vrot.slane %v9227_v35, %v8708_v59 }
 0x427   : > { %12005 = vst [vmem:[#allocation152_spill] sm:$0xff] %v9273_v13  ;;  %3307 = vbcast.lane.b32.xlu1 %v3301_v12, 264  ;;  %3303 = vbcast.lane.b32.xlu0 %v3301_v12, 256 }
 0x429   : > { %v9277_v54 = vpop.permute.xlu1 %2560 }
 0x42a   : > { %v9279_v43 = vpop.permute.xlu0 %2556 }
 0x42b   : > { %2999 = vbcast.lane.b32.xlu1 %v2993_v21, 264  ;;  %2995 = vbcast.lane.b32.xlu0 %v2993_v21, 256  ;;  %v3323_v21 = vrot.slane %v9229_v47, %v8708_v59  ;;  %v2883_v47 = vrot.slane %v9237_v11, %v8639_v40 }
 0x42d   : > { %v9285_v13 = vpop.permute.xlu1 %2571 }
 0x42e   : > { %12006 = vst [vmem:[#allocation153_spill] sm:$0xff] %v9285_v13  ;;  %v9287_v12 = vpop.permute.xlu0 %2567 }
 0x42f   : > { %3318 = vbcast.lane.b32.xlu1 %v3312_v23, 264  ;;  %3314 = vbcast.lane.b32.xlu0 %v3312_v23, 256  ;;  %12007 = vst [vmem:[#allocation154_spill] sm:$0xff] %v9287_v12  ;;  %v3015_v23 = vrot.slane %v9227_v35, %v8724_v62 }
 0x431   : > { %v9291_v1 = vpop.permute.xlu1 %2582 }
 0x432   : > { %12008 = vst [vmem:[#allocation155_spill] sm:$0xff] %v9291_v1  ;;  %v9293_v42 = vpop.permute.xlu0 %2578 }
 0x433   : > { %3010 = vbcast.lane.b32.xlu1 %v3004_v28, 264  ;;  %3006 = vbcast.lane.b32.xlu0 %v3004_v28, 256  ;;  %12009 = vst [vmem:[#allocation156_spill] sm:$0xff] %v9293_v42 }
 0x435   : > { %v9299_v20 = vpop.permute.xlu1 %2593 }
 0x436   : > { %12010 = vst [vmem:[#allocation157_spill] sm:$0xff] %v9299_v20  ;;  %v9301_v28 = vpop.permute.xlu0 %2589 }
 0x437   : > { %3329 = vbcast.lane.b32.xlu1 %v3323_v21, 264  ;;  %3325 = vbcast.lane.b32.xlu0 %v3323_v21, 256  ;;  %12011 = vst [vmem:[#allocation158_spill] sm:$0xff] %v9301_v28  ;;  %v2872_v21 = vrot.slane %v9237_v11, %v8626_v34 }
 0x439   : > { %v9305_v42 = vpop.permute.xlu1 %2604 }
 0x43a   : > { %12012 = vst [vmem:[#allocation159_spill] sm:$0xff] %v9305_v42  ;;  %v9307_v1 = vpop.permute.xlu0 %2600 }
 0x43b   : > { %3021 = vbcast.lane.b32.xlu1 %v3015_v23, 264  ;;  %3017 = vbcast.lane.b32.xlu0 %v3015_v23, 256  ;;  %12013 = vst [vmem:[#allocation160_spill] sm:$0xff] %v9307_v1  ;;  %v3191_v23 = vrot.slane %v9239_v15, %v8626_v34 }
 0x43d   : > { %v9313_v35 = vpop.permute.xlu1 %2615 }
 0x43e   : > { %12014 = vst [vmem:[#allocation161_spill] sm:$0xff] %v9313_v35  ;;  %v3213_v35 = vrot.slane %v9239_v15, %v8654_v49 }
 0x43f   : > { %3340 = vbcast.lane.b32.xlu1 %v3334_v22, 264  ;;  %3336 = vbcast.lane.b32.xlu0 %v3334_v22, 256  ;;  %v9315_v22 = vpop.permute.xlu0 %2611 }
 0x440   : > { %12015 = vst [vmem:[#allocation162_spill] sm:$0xff] %v9315_v22 }
 0x441   : > { %v9319_v1 = vpop.permute.xlu1 %2626 }
 0x442   : > { %12016 = vst [vmem:[#allocation163_spill] sm:$0xff] %v9319_v1 }
 0x443   : > { %2878 = vbcast.lane.b32.xlu1 %v2872_v21, 264  ;;  %2874 = vbcast.lane.b32.xlu0 %v2872_v21, 256  ;;  %v3202_v21 = vrot.slane %v9239_v15, %v8639_v40  ;;  %v9321_v42 = vpop.permute.xlu0 %2622 }
 0x444   : > { %12017 = vst [vmem:[#allocation164_spill] sm:$0xff] %v9321_v42 }
 0x445   : > { %v9327_v22 = vpop.permute.xlu1 %2472 }
 0x446   : > { %12018 = vst [vmem:[#allocation165_spill] sm:$0xff] %v9327_v22  ;;  %v2916_v22 = vrot.slane %v9237_v11, %v8708_v59 }
 0x447   : > { %3197 = vbcast.lane.b32.xlu1 %v3191_v23, 264  ;;  %3193 = vbcast.lane.b32.xlu0 %v3191_v23, 256  ;;  %v2894_v23 = vrot.slane %v9237_v11, %v8654_v49 }
 0x449   : > { %v9333_v42 = vpop.permute.xlu1 %2483 }
 0x44a   : > { %12020 = vst [vmem:[#allocation167_spill] sm:$0xff] %v9333_v42 }
 0x44b   : > { %2889 = vbcast.lane.b32.xlu1 %v2883_v47, 264  ;;  %2885 = vbcast.lane.b32.xlu0 %v2883_v47, 256  ;;  %v9329_v47 = vpop.permute.xlu0 %2468 }
 0x44c   : > { %12019 = vst [vmem:[#allocation166_spill] sm:$0xff] %v9329_v47 }
 0x44d   : > { %v9341_v47 = vpop.permute.xlu1 %2494 }
 0x44e   : > { %12022 = vst [vmem:[#allocation169_spill] sm:$0xff] %v9341_v47  ;;  %v3246_v47 = vrot.slane %v9239_v15, %v8724_v62 }
 0x44f   : > { %3208 = vbcast.lane.b32.xlu1 %v3202_v21, 264  ;;  %3204 = vbcast.lane.b32.xlu0 %v3202_v21, 256  ;;  %v2905_v21 = vrot.slane %v9237_v11, %v8674_v55  ;;  %v9335_v1 = vpop.permute.xlu0 %2479 }
 0x450   : > { %12021 = vst [vmem:[#allocation168_spill] sm:$0xff] %v9335_v1 }
 0x451   : > { %v9347_v1 = vpop.permute.xlu1 %2505 }
 0x452   : > { %12024 = vst [vmem:[#allocation171_spill] sm:$0xff] %v9347_v1 }
 0x453   : > { %2900 = vbcast.lane.b32.xlu1 %v2894_v23, 264  ;;  %2896 = vbcast.lane.b32.xlu0 %v2894_v23, 256  ;;  %v3224_v23 = vrot.slane %v9239_v15, %v8674_v55 }
 0x457   : > { %3219 = vbcast.lane.b32.xlu1 %v3213_v35, 264  ;;  %3215 = vbcast.lane.b32.xlu0 %v3213_v35, 256  ;;  %v9343_v35 = vpop.permute.xlu0 %2490 }
 0x458   : > { %12023 = vst [vmem:[#allocation170_spill] sm:$0xff] %v9343_v35  ;;  %v9355_v35 = vpop.permute.xlu1 %2516 }
 0x459   : > { %12026 = vst [vmem:[#allocation173_spill] sm:$0xff] %v9355_v35 }
 0x45b   : > { %2911 = vbcast.lane.b32.xlu1 %v2905_v21, 264  ;;  %2907 = vbcast.lane.b32.xlu0 %v2905_v21, 256  ;;  %v3235_v21 = vrot.slane %v9239_v15, %v8708_v59  ;;  %v9349_v42 = vpop.permute.xlu0 %2501 }
 0x45c   : > { %12025 = vst [vmem:[#allocation172_spill] sm:$0xff] %v9349_v42  ;;  %v615_v42 = vld [vmem:[%s12028_s1] sm:$0xff]  ;;  %v9367_v1 = vpop.permute.xlu1 %2527 }
 0x45d   : > { %12029 = vst [vmem:[#allocation175_spill] sm:$0xff] %v9367_v1  ;;  %v9416_v1 = vrot.slane %v615_v42, %v8674_v55  ;;  %v9419_v28 = vrot.slane %v615_v42, %v8708_v59  ;;  %v9422_v20 = vrot.slane %v615_v42, %v8724_v62  ;;  %v9425_v12 = vrot.slane %v615_v42, %v8731_v3 }
 0x45e   : > { %v2949_v55 = vrot.slane %v9237_v11, %v8738_v6 }
 0x45f   : > { %3230 = vbcast.lane.b32.xlu1 %v3224_v23, 264  ;;  %3226 = vbcast.lane.b32.xlu0 %v3224_v23, 256  ;;  %v2927_v23 = vrot.slane %v9237_v11, %v8724_v62 }
 0x460   : > { %v9450_v9 = vpop.permute.xlu1 %2538 }
 0x463   : > { %2922 = vbcast.lane.b32.xlu1 %v2916_v22, 264  ;;  %2918 = vbcast.lane.b32.xlu0 %v2916_v22, 256  ;;  %v9357_v22 = vpop.permute.xlu0 %2512 }
 0x464   : > { %12027 = vst [vmem:[#allocation174_spill] sm:$0xff] %v9357_v22  ;;  %v12031_v22 = vmov 0.0  }
 0x465   : > { %4077 = vst.msk [vmem:[#allocation2 + $0xe8] sm:$0x3] %vm4049_vm5, %v12031_v22  ;;  %4050 = vst.msk [vmem:[#allocation2 + $0x10] sm:$0x3] %vm4049_vm5, %v12031_v22 }
 0x466   : > { %4053 = vst.msk [vmem:[#allocation2 + $0x28] sm:$0x3] %vm4049_vm5, %v12031_v22  ;;  %4056 = vst.msk [vmem:[#allocation2 + $0x40] sm:$0x3] %vm4049_vm5, %v12031_v22 }
 0x467   : > { %3241 = vbcast.lane.b32.xlu1 %v3235_v21, 264  ;;  %3237 = vbcast.lane.b32.xlu0 %v3235_v21, 256  ;;  %v2938_v21 = vrot.slane %v9237_v11, %v8731_v3  ;;  %v9369_v35 = vpop.permute.xlu0 %2523  ;;  %4059 = vst.msk [vmem:[#allocation2 + $0x58] sm:$0x3] %vm4049_vm5, %v12031_v22  ;;  %4062 = vst.msk [vmem:[#allocation2 + $0x70] sm:$0x3] %vm4049_vm5, %v12031_v22 }
 0x468   : > { %12030 = vst [vmem:[#allocation176_spill] sm:$0xff] %v9369_v35  ;;  %4065 = vst.msk [vmem:[#allocation2 + $0x88] sm:$0x3] %vm4049_vm5, %v12031_v22  ;;  %v9413_v35 = vrot.slane %v615_v42, %v8654_v49 }
 0x469   : > { %4068 = vst.msk [vmem:[#allocation2 + $0xa0] sm:$0x3] %vm4049_vm5, %v12031_v22  ;;  %4071 = vst.msk [vmem:[#allocation2 + $0xb8] sm:$0x3] %vm4049_vm5, %v12031_v22 }
 0x46a   : > { %4074 = vst.msk [vmem:[#allocation2 + $0xd0] sm:$0x3] %vm4049_vm5, %v12031_v22  ;;  %4080 = vst.msk [vmem:[#allocation2 + $0x100] sm:$0x3] %vm4049_vm5, %v12031_v22  ;;  %v1616_v59 = vmul.f32 %v9413_v35, %v8780_v29  ;;  %v1615_v62 = vmul.f32 %v9413_v35, %v8782_v30  ;;  %v1618_v11 = vmul.f32 %v9413_v35, %v8792_v36 }
 0x46b   : > { %2933 = vbcast.lane.b32.xlu1 %v2927_v23, 264  ;;  %2929 = vbcast.lane.b32.xlu0 %v2927_v23, 256  ;;  %v9365_v23 = vrot.slane %v615_v42, %v8626_v34  ;;  %4083 = vst.msk [vmem:[#allocation2 + $0x118] sm:$0x3] %vm4049_vm5, %v12031_v22  ;;  %4086 = vst.msk [vmem:[#allocation2 + $0x130] sm:$0x3] %vm4049_vm5, %v12031_v22  ;;  %v9452_v29 = vpop.permute.xlu0 %2534  ;;  %v1617_v30 = vmul.f32 %v9413_v35, %v8794_v37 }
 0x46c   : > { %4089 = vst.msk [vmem:[#allocation2 + $0x148] sm:$0x3] %vm4049_vm5, %v12031_v22  ;;  %4092 = vst.msk [vmem:[#allocation2 + $0x160] sm:$0x3] %vm4049_vm5, %v12031_v22  ;;  %v9468_v36 = vmul.f32 %v9413_v35, %v8806_v46 }
 0x46d   : > { %4095 = vst.msk [vmem:[#allocation2 + $0x178] sm:$0x3] %vm4049_vm5, %v12031_v22  ;;  %4098 = vst.msk [vmem:[#allocation2 + $0x190] sm:$0x3] %vm4049_vm5, %v12031_v22  ;;  %v978_v13 = vmul.f32 %v9365_v23, %v8774_v24  ;;  %v980_v24 = vmul.f32 %v9365_v23, %v8786_v32  ;;  %v9460_v32 = vmul.f32 %v9365_v23, %v8800_v41 }
 0x46e   : > { %4101 = vst.msk [vmem:[#allocation2 + $0x1a8] sm:$0x3] %vm4049_vm5, %v12031_v22  ;;  %v9428_v22 = vrot.slane %v615_v42, %v8738_v6  ;;  %v9476_v37 = vmul.f32 %v9365_v23, %v8812_v50  ;;  %v9482_v41 = vmul.f32 %v9413_v35, %v8816_v52  ;;  %v9494_v50 = vmul.f32 %v9365_v23, %v8824_v57 }
 0x46f   : > { %3252 = vbcast.lane.b32.xlu1 %v3246_v47, 264  ;;  %3248 = vbcast.lane.b32.xlu0 %v3246_v47, 256  ;;  %v3257_v47 = vrot.slane %v9239_v15, %v8731_v3  ;;  %v9500_v52 = vmul.f32 %v9413_v35, %v8828_v60  ;;  %v9512_v57 = vmul.f32 %v9365_v23, %v8834_v0 }
 0x470   : > { %v2341_v0 = vmul.f32 %v9419_v28, %v9093_v63  ;;  %v9542_v63 = vmul.f32 %v9413_v35, %v8842_v8  ;;  %v2024_v8 = vmul.f32 %v9416_v1, %v9099_v5 }
 0x473   : > { %2944 = vbcast.lane.b32.xlu1 %v2938_v21, 264  ;;  %2940 = vbcast.lane.b32.xlu0 %v2938_v21, 256  ;;  %v9410_v21 = vrot.slane %v615_v42, %v8639_v40 }
 0x475   : > { %v1297_v3 = vmul.f32 %v9410_v21, %v8968_v31  ;;  %v1296_v42 = vmul.f32 %v9410_v21, %v8985_v2  ;;  %v982_v31 = vmul.f32 %v9365_v23, %v8798_v38  ;;  %v3268_v38 = vrot.slane %v9239_v15, %v8738_v6 }
 0x476   : > { %v1299_v15 = vmul.f32 %v9410_v21, %v8975_v18  ;;  %v9516_v18 = vmul.f32 %v9365_v23, %v8836_v4  ;;  %v1298_v60 = vmul.f32 %v9410_v21, %v8991_v44  ;;  %v9532_v4 = vmul.f32 %v9413_v35, %v8840_v7 }
 0x477   : > { %3263 = vbcast.lane.b32.xlu1 %v3257_v47, 264  ;;  %3259 = vbcast.lane.b32.xlu0 %v3257_v47, 256  ;;  %v977_v47 = vmul.f32 %v9365_v23, %v8776_v25  ;;  %v979_v25 = vmul.f32 %v9365_v23, %v8788_v33  ;;  %v9464_v33 = vmul.f32 %v9413_v35, %v8804_v45 }
 0x478   : > { %v9486_v45 = vmul.f32 %v9413_v35, %v8818_v53  ;;  %v1329_v46 = vadd.f32 %v1297_v3, %v978_v13  ;;  %v9504_v3 = vmul.f32 %v9413_v35, %v8830_v61  ;;  %v2022_v53 = vmul.f32 %v9416_v1, %v9087_v10  ;;  %v9520_v13 = vpop.permute.xlu1 %2549  ;;  %v9522_v61 = vpop.permute.xlu0 %2545 }
 0x479   : > { %v1328_v2 = vadd.f32 %v1296_v42, %v977_v47  ;;  %12032 = vst [vmem:[#allocation177_spill] sm:$0xff] %v9520_v13  ;;  %12033 = vst [vmem:[#allocation178_spill] sm:$0xff] %v9522_v61  ;;  %v3598_v10 = vrot.slane %v9247_v39, %v8626_v34  ;;  %v2340_v42 = vmul.f32 %v9419_v28, %v9095_v27 }
 0x47a   : > { %v1648_v47 = vadd.f32 %v1616_v59, %v1329_v46  ;;  %v1331_v44 = vadd.f32 %v1299_v15, %v980_v24  ;;  %v2660_v59 = vmul.f32 %v9422_v20, %v9277_v54  ;;  %v9546_v7 = vmul.f32 %v9413_v35, %v8868_v19 }
 0x47b   : > { %2955 = vbcast.lane.b32.xlu1 %v2949_v55, 264  ;;  %2951 = vbcast.lane.b32.xlu0 %v2949_v55, 256  ;;  %v9472_v55 = vmul.f32 %v9365_v23, %v8810_v48  ;;  %v9490_v48 = vmul.f32 %v9365_v23, %v8822_v56  ;;  %v2021_v56 = vmul.f32 %v9416_v1, %v9089_v51 }
 0x47c   : > { %v1647_v51 = vadd.f32 %v1615_v62, %v1328_v2  ;;  %v2054_v61 = vadd.f32 %v2022_v53, %v1648_v47  ;;  %v2659_v62 = vmul.f32 %v9422_v20, %v9279_v43  ;;  %v1330_v27 = vadd.f32 %v1298_v60, %v979_v25 }
 0x47d   : > { %v3609_v46 = vrot.slane %v9247_v39, %v8639_v40  ;;  %v1650_v53 = vadd.f32 %v1618_v11, %v1331_v44  ;;  %v2023_v19 = vmul.f32 %v9416_v1, %v9101_v26  ;;  %v2342_v11 = vmul.f32 %v9419_v28, %v9107_v14 }
 0x47e   : > { %v2053_v13 = vadd.f32 %v2021_v56, %v1647_v51  ;;  %v2373_v2 = vadd.f32 %v2341_v0, %v2054_v61  ;;  %v1300_v56 = vmul.f32 %v9410_v21, %v8999_v16  ;;  %v3620_v26 = vrot.slane %v9247_v39, %v8654_v49 }
 0x47f   : > { %3274 = vbcast.lane.b32.xlu1 %v3268_v38, 264  ;;  %3270 = vbcast.lane.b32.xlu0 %v3268_v38, 256  ;;  %v1301_v38 = vmul.f32 %v9410_v21, %v8983_v17  ;;  %v2056_v44 = vadd.f32 %v2024_v8, %v1650_v53  ;;  %v12039_v8 = vld [vmem:[#allocation24_spill] sm:$0xff] }
 0x480   : > { %v2372_v15 = vadd.f32 %v2340_v42, %v2053_v13  ;;  %v2692_v60 = vadd.f32 %v2660_v59, %v2373_v2  ;;  %v1649_v13 = vadd.f32 %v1617_v30, %v1330_v27  ;;  %v12034_v42 = vld [vmem:[#allocation68_spill] sm:$0xff]  ;;  %v12036_v59 = vld [vmem:[#allocation154_spill] sm:$0xff]  ;;  %v12038_v2 = vld [vmem:[#allocation37_spill] sm:$0xff] }
 0x481   : > { %v1333_v25 = vadd.f32 %v1301_v38, %v982_v31  ;;  %v1303_v30 = vmul.f32 %v9410_v21, %v12034_v42 }
 0x482   : > { %v2691_v61 = vadd.f32 %v2659_v62, %v2372_v15  ;;  %v2055_v38 = vadd.f32 %v2023_v19, %v1649_v13  ;;  %v2661_v62 = vmul.f32 %v9422_v20, %v12036_v59  ;;  %v9582_v15 = vmul.f32 %v9365_v23, %v12038_v2 }
 0x483   : > { %3604 = vbcast.lane.b32.xlu1 %v3598_v10, 264  ;;  %3600 = vbcast.lane.b32.xlu0 %v3598_v10, 256  ;;  %v2343_v10 = vmul.f32 %v9419_v28, %v9105_v58  ;;  %v12035_v58 = vld [vmem:[#allocation153_spill] sm:$0xff]  ;;  %v3631_v19 = vrot.slane %v9247_v39, %v12039_v8 }
 0x484   : > { %v2662_v14 = vmul.f32 %v9422_v20, %v12035_v58 }
 0x485   : > { %v2967_v17 = vpop.permute.xlu1 %2966  ;;  %v2963_v24 = vpop.permute.xlu0 %2962 }
 0x486   : > { %v3066_v54 = vmul.f32 %v9425_v12, %v2967_v17  ;;  %v3065_v43 = vmul.f32 %v9425_v12, %v2963_v24  ;;  %v12037_v24 = vld [vmem:[#allocation36_spill] sm:$0xff] }
 0x487   : > { %3615 = vbcast.lane.b32.xlu1 %v3609_v46, 264  ;;  %3611 = vbcast.lane.b32.xlu0 %v3609_v46, 256  ;;  %v9578_v46 = vmul.f32 %v9365_v23, %v12037_v24  ;;  %v12045_v24 = vld [vmem:[#allocation25_spill] sm:$0xff] }
 0x488   : > { %v3098_v51 = vadd.f32 %v3066_v54, %v2692_v60  ;;  %v3097_v0 = vadd.f32 %v3065_v43, %v2691_v61  ;;  %v1332_v54 = vadd.f32 %v1300_v56, %v9460_v32  ;;  %v2375_v60 = vadd.f32 %v2343_v10, %v2056_v44  ;;  %v12042_v56 = vld [vmem:[#allocation71_spill] sm:$0xff]  ;;  %v12043_v44 = vld [vmem:[#allocation96_spill] sm:$0xff] }
 0x489   : > { %v3286_v47 = vpop.permute.xlu1 %3285  ;;  %v3282_v5 = vpop.permute.xlu0 %3281  ;;  %v2374_v61 = vadd.f32 %v2342_v11, %v2055_v38  ;;  %v1335_v32 = vadd.f32 %v1303_v30, %v9472_v55  ;;  %v1302_v10 = vmul.f32 %v9410_v21, %v12042_v56  ;;  %v3642_v2 = vrot.slane %v9247_v39, %v12045_v24 }
 0x48a   : > { %v3385_v31 = vmul.f32 %v9428_v22, %v3286_v47  ;;  %v3384_v16 = vmul.f32 %v9428_v22, %v3282_v5  ;;  %v1652_v5 = vadd.f32 %v9464_v33, %v1333_v25  ;;  %v2694_v11 = vadd.f32 %v2662_v14, %v2375_v60  ;;  %v12044_v25 = vld [vmem:[#allocation97_spill] sm:$0xff] }
 0x48b   : > { %3626 = vbcast.lane.b32.xlu1 %v3620_v26, 264  ;;  %3622 = vbcast.lane.b32.xlu0 %v3620_v26, 256  ;;  %v12040_v26 = vld [vmem:[#allocation94_spill] sm:$0xff]  ;;  %v1651_v42 = vadd.f32 %v9468_v36, %v1332_v54  ;;  %v2345_v33 = vmul.f32 %v9419_v28, %v12043_v44  ;;  %v2344_v38 = vmul.f32 %v9419_v28, %v12044_v25 }
 0x48c   : > { %v9572_v27 = vadd.f32 %v3385_v31, %v3098_v51  ;;  %v9574_v17 = vadd.f32 %v3384_v16, %v3097_v0  ;;  %v2026_v51 = vmul.f32 %v9416_v1, %v12040_v26  ;;  %v12041_v0 = vld [vmem:[#allocation95_spill] sm:$0xff]  ;;  %v2693_v16 = vadd.f32 %v2661_v62, %v2374_v61  ;;  %v12046_v62 = vld [vmem:[#allocation69_spill] sm:$0xff]  ;;  %v12048_v61 = vld [vmem:[#allocation156_spill] sm:$0xff] }
 0x48d   : > { %v2978_v43 = vpop.permute.xlu1 %2977  ;;  %v2974_v53 = vpop.permute.xlu0 %2973  ;;  %v2025_v31 = vmul.f32 %v9416_v1, %v12041_v0  ;;  %v1305_v36 = vmul.f32 %v9410_v21, %v12046_v62  ;;  %v2663_v26 = vmul.f32 %v9422_v20, %v12048_v61 }
 0x48e   : > { %v3068_v13 = vmul.f32 %v9425_v12, %v2978_v43  ;;  %v3067_v47 = vmul.f32 %v9425_v12, %v2974_v53  ;;  %v2058_v54 = vadd.f32 %v2026_v51, %v1652_v5  ;;  %v1334_v51 = vadd.f32 %v1302_v10, %v9476_v37  ;;  %v12054_v10 = vld [vmem:[#allocation73_spill] sm:$0xff] }
 0x48f   : > { %3637 = vbcast.lane.b32.xlu1 %v3631_v19, 264  ;;  %3633 = vbcast.lane.b32.xlu0 %v3631_v19, 256  ;;  %v2057_v53 = vadd.f32 %v2025_v31, %v1651_v42  ;;  %v12047_v19 = vld [vmem:[#allocation155_spill] sm:$0xff]  ;;  %v12051_v42 = vld [vmem:[#allocation144_spill] sm:$0xff]  ;;  %v1337_v37 = vadd.f32 %v1305_v36, %v9490_v48 }
 0x490   : > { %v3100_v43 = vadd.f32 %v3068_v13, %v2694_v11  ;;  %v3099_v55 = vadd.f32 %v3067_v47, %v2693_v16  ;;  %v2664_v60 = vmul.f32 %v9422_v20, %v12047_v19  ;;  %v12049_v47 = vld [vmem:[#allocation38_spill] sm:$0xff]  ;;  %v12050_v11 = vld [vmem:[#allocation39_spill] sm:$0xff]  ;;  %v3510_v44 = vrot.slane %v12051_v42, %v8626_v34  ;;  %v12055_v19 = vld [vmem:[#allocation100_spill] sm:$0xff] }
 0x491   : > { %v3297_v58 = vpop.permute.xlu1 %3296  ;;  %v3293_v59 = vpop.permute.xlu0 %3292  ;;  %v9618_v56 = vmul.f32 %v9365_v23, %v12049_v47  ;;  %v9622_v5 = vmul.f32 %v9413_v35, %v12050_v11  ;;  %v2377_v25 = vadd.f32 %v2345_v33, %v2058_v54  ;;  %v1304_v33 = vmul.f32 %v9410_v21, %v12054_v10 }
 0x492   : > { %v3387_v30 = vmul.f32 %v9428_v22, %v3297_v58  ;;  %v3386_v14 = vmul.f32 %v9428_v22, %v3293_v59  ;;  %v2376_v58 = vadd.f32 %v2344_v38, %v2057_v53  ;;  %v1653_v53 = vadd.f32 %v9486_v45, %v1334_v51 }
 0x493   : > { %3648 = vbcast.lane.b32.xlu1 %v3642_v2, 264  ;;  %3644 = vbcast.lane.b32.xlu0 %v3642_v2, 256  ;;  %v2696_v38 = vadd.f32 %v2664_v60, %v2377_v25  ;;  %v12058_v25 = vld [vmem:[#allocation157_spill] sm:$0xff] }
 0x494   : > { %v9612_v0 = vadd.f32 %v3387_v30, %v3100_v43  ;;  %v9614_v13 = vadd.f32 %v3386_v14, %v3099_v55  ;;  %v1654_v43 = vadd.f32 %v9482_v41, %v1335_v32  ;;  %v12052_v55 = vld [vmem:[#allocation98_spill] sm:$0xff]  ;;  %v12053_v14 = vld [vmem:[#allocation99_spill] sm:$0xff]  ;;  %v2695_v54 = vadd.f32 %v2663_v26, %v2376_v58  ;;  %v12056_v32 = vld [vmem:[#allocation101_spill] sm:$0xff] }
 0x495   : > { %v2989_v31 = vpop.permute.xlu1 %2988  ;;  %v2985_v16 = vpop.permute.xlu0 %2984  ;;  %v2028_v30 = vmul.f32 %v9416_v1, %v12052_v55  ;;  %v2027_v62 = vmul.f32 %v9416_v1, %v12053_v14  ;;  %v2347_v41 = vmul.f32 %v9419_v28, %v12055_v19  ;;  %v2346_v61 = vmul.f32 %v9419_v28, %v12056_v32  ;;  %v12057_v26 = vld [vmem:[#allocation70_spill] sm:$0xff] }
 0x496   : > { %v3070_v59 = vmul.f32 %v9425_v12, %v2989_v31  ;;  %v3069_v2 = vmul.f32 %v9425_v12, %v2985_v16  ;;  %v3521_v31 = vrot.slane %v12051_v42, %v8639_v40  ;;  %v1307_v45 = vmul.f32 %v9410_v21, %v12057_v26  ;;  %v12059_v55 = vld [vmem:[#allocation158_spill] sm:$0xff]  ;;  %v12065_v26 = vld [vmem:[#allocation103_spill] sm:$0xff] }
 0x497   : > { %3516 = vbcast.lane.b32.xlu1 %v3510_v44, 264  ;;  %3512 = vbcast.lane.b32.xlu0 %v3510_v44, 256  ;;  %v2060_v51 = vadd.f32 %v2028_v30, %v1654_v43  ;;  %v2059_v44 = vadd.f32 %v2027_v62, %v1653_v53  ;;  %v2666_v58 = vmul.f32 %v9422_v20, %v12058_v25  ;;  %v12066_v25 = vld [vmem:[#allocation104_spill] sm:$0xff] }
 0x498   : > { %v3102_v16 = vadd.f32 %v3070_v59, %v2696_v38  ;;  %v3101_v48 = vadd.f32 %v3069_v2, %v2695_v54  ;;  %v2665_v14 = vmul.f32 %v9422_v20, %v12059_v55  ;;  %v12061_v2 = vld [vmem:[#allocation40_spill] sm:$0xff]  ;;  %v12062_v54 = vld [vmem:[#allocation41_spill] sm:$0xff]  ;;  %v1336_v30 = vadd.f32 %v1304_v33, %v9494_v50 }
 0x499   : > { %v3308_v47 = vpop.permute.xlu1 %3307  ;;  %v3304_v11 = vpop.permute.xlu0 %3303  ;;  %v9658_v38 = vmul.f32 %v9413_v35, %v12061_v2  ;;  %v9662_v43 = vmul.f32 %v9365_v23, %v12062_v54  ;;  %v3532_v19 = vrot.slane %v12051_v42, %v8654_v49  ;;  %v2379_v32 = vadd.f32 %v2347_v41, %v2060_v51  ;;  %v12067_v2 = vld [vmem:[#allocation105_spill] sm:$0xff] }
 0x49a   : > { %v3389_v36 = vmul.f32 %v9428_v22, %v3308_v47  ;;  %v3388_v60 = vmul.f32 %v9428_v22, %v3304_v11  ;;  %v2378_v47 = vadd.f32 %v2346_v61, %v2059_v44  ;;  %v2029_v50 = vmul.f32 %v9416_v1, %v12065_v26 }
 0x49b   : > { %3527 = vbcast.lane.b32.xlu1 %v3521_v31, 264  ;;  %3523 = vbcast.lane.b32.xlu0 %v3521_v31, 256  ;;  %v1339_v33 = vadd.f32 %v1307_v45, %v9512_v57  ;;  %v1656_v41 = vadd.f32 %v9500_v52, %v1337_v37  ;;  %v2698_v61 = vadd.f32 %v2666_v58, %v2379_v32  ;;  %v12068_v58 = vld [vmem:[#allocation159_spill] sm:$0xff] }
 0x49c   : > { %v9652_v10 = vadd.f32 %v3389_v36, %v3102_v16  ;;  %v9654_v59 = vadd.f32 %v3388_v60, %v3101_v48  ;;  %v12063_v16 = vld [vmem:[#allocation75_spill] sm:$0xff]  ;;  %v12064_v36 = vld [vmem:[#allocation102_spill] sm:$0xff]  ;;  %v2697_v51 = vadd.f32 %v2665_v14, %v2378_v47  ;;  %v1655_v44 = vadd.f32 %v9504_v3, %v1336_v30  ;;  %v12069_v30 = vld [vmem:[#allocation160_spill] sm:$0xff] }
 0x49d   : > { %v3000_v62 = vpop.permute.xlu1 %2999  ;;  %v2996_v53 = vpop.permute.xlu0 %2995  ;;  %v1306_v48 = vmul.f32 %v9410_v21, %v12063_v16  ;;  %v2030_v60 = vmul.f32 %v9416_v1, %v12064_v36  ;;  %v2349_v55 = vmul.f32 %v9419_v28, %v12066_v25  ;;  %v2348_v54 = vmul.f32 %v9419_v28, %v12067_v2 }
 0x49e   : > { %12060 = vst [vmem:[#allocation68_spill] sm:$0xff] %v9654_v59  ;;  %v3072_v11 = vmul.f32 %v9425_v12, %v3000_v62  ;;  %v3071_v31 = vmul.f32 %v9425_v12, %v2996_v53  ;;  %v3543_v16 = vrot.slane %v12051_v42, %v12039_v8  ;;  %v2061_v45 = vadd.f32 %v2029_v50, %v1655_v44 }
 0x49f   : > { %3538 = vbcast.lane.b32.xlu1 %v3532_v19, 264  ;;  %3534 = vbcast.lane.b32.xlu0 %v3532_v19, 256  ;;  %v1338_v37 = vadd.f32 %v1306_v48, %v9516_v18  ;;  %v2062_v3 = vadd.f32 %v2030_v60, %v1656_v41  ;;  %v2668_v14 = vmul.f32 %v9422_v20, %v12068_v58  ;;  %v12073_v48 = vld [vmem:[#allocation107_spill] sm:$0xff] }
 0x4a0   : > { %v3104_v19 = vadd.f32 %v3072_v11, %v2698_v61  ;;  %v3103_v36 = vadd.f32 %v3071_v31, %v2697_v51  ;;  %v2667_v32 = vmul.f32 %v9422_v20, %v12069_v30  ;;  %v12072_v31 = vld [vmem:[#allocation42_spill] sm:$0xff]  ;;  %v1658_v18 = vadd.f32 %v9532_v4, %v1339_v33 }
 0x4a1   : > { %v3319_v62 = vpop.permute.xlu1 %3318  ;;  %v3315_v53 = vpop.permute.xlu0 %3314  ;;  %v9697_v26 = vmul.f32 %v9365_v23, %v12072_v31  ;;  %v2031_v60 = vmul.f32 %v9416_v1, %v12073_v48  ;;  %v3554_v61 = vrot.slane %v12051_v42, %v12045_v24  ;;  %v2381_v51 = vadd.f32 %v2349_v55, %v2062_v3  ;;  %v12079_v30 = vld [vmem:[#allocation162_spill] sm:$0xff] }
 0x4a2   : > { %v3391_v57 = vmul.f32 %v9428_v22, %v3319_v62  ;;  %v3390_v52 = vmul.f32 %v9428_v22, %v3315_v53  ;;  %v2380_v44 = vadd.f32 %v2348_v54, %v2061_v45  ;;  %v12074_v62 = vld [vmem:[#allocation76_spill] sm:$0xff]  ;;  %v1657_v33 = vadd.f32 %v9542_v63, %v1338_v37  ;;  %v12080_v63 = vld [vmem:[#allocation26_spill] sm:$0xff] }
 0x4a3   : > { %3549 = vbcast.lane.b32.xlu1 %v3543_v16, 264  ;;  %3545 = vbcast.lane.b32.xlu0 %v3543_v16, 256  ;;  %v1280_v53 = vmul.f32 %v9410_v21, %v12074_v62  ;;  %v12075_v16 = vld [vmem:[#allocation106_spill] sm:$0xff]  ;;  %v2700_v54 = vadd.f32 %v2668_v14, %v2381_v51  ;;  %v12078_v45 = vld [vmem:[#allocation108_spill] sm:$0xff]  ;;  %v2669_v31 = vmul.f32 %v9422_v20, %v12079_v30  ;;  %v12081_v14 = vld [vmem:[#allocation43_spill] sm:$0xff] }
 0x4a4   : > { %v9691_v47 = vadd.f32 %v3391_v57, %v3104_v19  ;;  %v9693_v11 = vadd.f32 %v3390_v52, %v3103_v36  ;;  %v2032_v4 = vmul.f32 %v9416_v1, %v12075_v16  ;;  %v12076_v19 = vld [vmem:[#allocation78_spill] sm:$0xff]  ;;  %v12077_v57 = vld [vmem:[#allocation109_spill] sm:$0xff]  ;;  %v2699_v52 = vadd.f32 %v2667_v32, %v2380_v44 }
 0x4a5   : > { %v3011_v50 = vpop.permute.xlu1 %3010  ;;  %v3007_v41 = vpop.permute.xlu0 %3006  ;;  %v1281_v36 = vmul.f32 %v9410_v21, %v12076_v19  ;;  %v2350_v55 = vmul.f32 %v9419_v28, %v12077_v57  ;;  %v2063_v3 = vadd.f32 %v2031_v60, %v1657_v33  ;;  %v2351_v58 = vmul.f32 %v9419_v28, %v12078_v45  ;;  %v12082_v33 = vld [vmem:[#allocation161_spill] sm:$0xff] }
 0x4a6   : > { %12070 = vst [vmem:[#allocation153_spill] sm:$0xff] %v9691_v47  ;;  %12071 = vst [vmem:[#allocation154_spill] sm:$0xff] %v9693_v11  ;;  %v3074_v25 = vmul.f32 %v9425_v12, %v3011_v50  ;;  %v3073_v2 = vmul.f32 %v9425_v12, %v3007_v41  ;;  %v3565_v37 = vrot.slane %v12051_v42, %v12080_v63 }
 0x4a7   : > { %3560 = vbcast.lane.b32.xlu1 %v3554_v61, 264  ;;  %3556 = vbcast.lane.b32.xlu0 %v3554_v61, 256  ;;  %v9725_v32 = vmul.f32 %v9413_v35, %v12081_v14  ;;  %v1312_v60 = vadd.f32 %v1280_v53, %v9578_v46  ;;  %v2064_v51 = vadd.f32 %v2032_v4, %v1658_v18  ;;  %v12087_v4 = vld [vmem:[#allocation27_spill] sm:$0xff] }
 0x4a8   : > { %v3106_v41 = vadd.f32 %v3074_v25, %v2700_v54  ;;  %v3105_v61 = vadd.f32 %v3073_v2, %v2699_v52  ;;  %v2382_v44 = vadd.f32 %v2350_v55, %v2063_v3  ;;  %v2670_v19 = vmul.f32 %v9422_v20, %v12082_v33  ;;  %v12085_v2 = vld [vmem:[#allocation44_spill] sm:$0xff]  ;;  %v12086_v52 = vld [vmem:[#allocation45_spill] sm:$0xff] }
 0x4a9   : > { %v3330_v48 = vpop.permute.xlu1 %3329  ;;  %v3326_v50 = vpop.permute.xlu0 %3325  ;;  %v1601_v54 = vmul.f32 %v9413_v35, %v12085_v2  ;;  %v9738_v45 = vmul.f32 %v9365_v23, %v12086_v52  ;;  %v1313_v46 = vadd.f32 %v1281_v36, %v9618_v56  ;;  %v3576_v55 = vrot.slane %v12051_v42, %v12087_v4  ;;  %v12091_v36 = vld [vmem:[#allocation46_spill] sm:$0xff]  ;;  %v12093_v52 = vld [vmem:[#allocation120_spill] sm:$0xff] }
 0x4aa   : > { %v3393_v62 = vmul.f32 %v9428_v22, %v3330_v48  ;;  %v3392_v16 = vmul.f32 %v9428_v22, %v3326_v50  ;;  %v2383_v3 = vadd.f32 %v2351_v58, %v2064_v51  ;;  %v2701_v30 = vadd.f32 %v2669_v31, %v2382_v44  ;;  %v12092_v44 = vld [vmem:[#allocation81_spill] sm:$0xff] }
 0x4ab   : > { %3571 = vbcast.lane.b32.xlu1 %v3565_v37, 264  ;;  %3567 = vbcast.lane.b32.xlu0 %v3565_v37, 256  ;;  %v12088_v37 = vld [vmem:[#allocation80_spill] sm:$0xff]  ;;  %v9753_v14 = vmul.f32 %v9365_v23, %v12091_v36  ;;  %v1631_v58 = vadd.f32 %v9658_v38, %v1312_v60  ;;  %v1282_v33 = vmul.f32 %v9410_v21, %v12092_v44 }
 0x4ac   : > { %v9730_v57 = vadd.f32 %v3393_v62, %v3106_v41  ;;  %v9732_v25 = vadd.f32 %v3392_v16, %v3105_v61  ;;  %v1283_v41 = vmul.f32 %v9410_v21, %v12088_v37  ;;  %v12089_v61 = vld [vmem:[#allocation118_spill] sm:$0xff]  ;;  %v12090_v16 = vld [vmem:[#allocation119_spill] sm:$0xff]  ;;  %v2702_v31 = vadd.f32 %v2670_v19, %v2383_v3 }
 0x4ad   : > { %v3022_v18 = vpop.permute.xlu1 %3021  ;;  %v3018_v53 = vpop.permute.xlu0 %3017  ;;  %v2006_v62 = vmul.f32 %v9416_v1, %v12089_v61  ;;  %v2005_v56 = vmul.f32 %v9416_v1, %v12090_v16  ;;  %v1632_v2 = vadd.f32 %v9546_v7, %v1313_v46  ;;  %v12094_v61 = vld [vmem:[#allocation121_spill] sm:$0xff] }
 0x4ae   : > { %12083 = vst [vmem:[#allocation36_spill] sm:$0xff] %v9730_v57  ;;  %12084 = vst [vmem:[#allocation37_spill] sm:$0xff] %v9732_v25  ;;  %v3076_v48 = vmul.f32 %v9425_v12, %v3022_v18  ;;  %v3075_v50 = vmul.f32 %v9425_v12, %v3018_v53  ;;  %v2325_v18 = vmul.f32 %v9419_v28, %v12093_v52  ;;  %v12095_v46 = vld [vmem:[#allocation165_spill] sm:$0xff]  ;;  %v12185_v57 = vld [vmem:[#allocation66_spill] sm:$0xff] }
 0x4af   : > { %3582 = vbcast.lane.b32.xlu1 %v3576_v55, 264  ;;  %3578 = vbcast.lane.b32.xlu0 %v3576_v55, 256  ;;  %v3587_v55 = vrot.slane %v12051_v42, %v8738_v6  ;;  %v2324_v16 = vmul.f32 %v9419_v28, %v12094_v61  ;;  %v1315_v19 = vadd.f32 %v1283_v41, %v9582_v15  ;;  %v12184_v25 = vld [vmem:[#allocation65_spill] sm:$0xff] }
 0x4b0   : > { %v3107_v51 = vadd.f32 %v3075_v50, %v2701_v30  ;;  %v3108_v36 = vadd.f32 %v3076_v48, %v2702_v31  ;;  %v2038_v3 = vadd.f32 %v2006_v62, %v1632_v2  ;;  %v2037_v7 = vadd.f32 %v2005_v56, %v1631_v58  ;;  %v12096_v50 = vld [vmem:[#allocation166_spill] sm:$0xff]  ;;  %v12099_v48 = vld [vmem:[#allocation47_spill] sm:$0xff] }
 0x4b1   : > { %v3341_v53 = vpop.permute.xlu1 %3340  ;;  %v3337_v37 = vpop.permute.xlu0 %3336  ;;  %v2644_v30 = vmul.f32 %v9422_v20, %v12095_v46  ;;  %v2643_v42 = vmul.f32 %v9422_v20, %v12096_v50  ;;  %v9778_v31 = vmul.f32 %v9413_v35, %v12099_v48  ;;  %v1314_v41 = vadd.f32 %v1282_v33, %v9697_v26  ;;  %v12101_v58 = vld [vmem:[#allocation138_spill] sm:$0xff]  ;;  %v12104_v50 = vld [vmem:[#allocation123_spill] sm:$0xff] }
 0x4b2   : > { %v3395_v38 = vmul.f32 %v9428_v22, %v3341_v53  ;;  %v3394_v60 = vmul.f32 %v9428_v22, %v3337_v37  ;;  %v12100_v53 = vld [vmem:[#allocation48_spill] sm:$0xff]  ;;  %v3026_v2 = vrot.slane %v12101_v58, %v12087_v4  ;;  %v2357_v37 = vadd.f32 %v2325_v18, %v2038_v3  ;;  %v12105_v33 = vld [vmem:[#allocation83_spill] sm:$0xff] }
 0x4b3   : > { %3593 = vbcast.lane.b32.xlu1 %v3587_v55, 264  ;;  %3589 = vbcast.lane.b32.xlu0 %v3587_v55, 256  ;;  %v1603_v15 = vmul.f32 %v9413_v35, %v12100_v53  ;;  %v2356_v55 = vadd.f32 %v2324_v16, %v2037_v7  ;;  %v2007_v26 = vmul.f32 %v9416_v1, %v12104_v50  ;;  %v12106_v53 = vld [vmem:[#allocation124_spill] sm:$0xff] }
 0x4b4   : > { %v9772_v44 = vadd.f32 %v3395_v38, %v3108_v36  ;;  %v9774_v52 = vadd.f32 %v3394_v60, %v3107_v51  ;;  %v12102_v36 = vld [vmem:[#allocation82_spill] sm:$0xff]  ;;  %v1284_v48 = vmul.f32 %v9410_v21, %v12105_v33  ;;  %v1634_v18 = vadd.f32 %v9622_v5, %v1315_v19 }
 0x4b5   : > { %v2879_v62 = vpop.permute.xlu1 %2878  ;;  %v2875_v56 = vpop.permute.xlu0 %2874  ;;  %v1285_v38 = vmul.f32 %v9410_v21, %v12102_v36  ;;  %v12103_v60 = vld [vmem:[#allocation122_spill] sm:$0xff]  ;;  %v2676_v16 = vadd.f32 %v2644_v30, %v2357_v37  ;;  %v2675_v3 = vadd.f32 %v2643_v42, %v2356_v55  ;;  %v1633_v7 = vadd.f32 %v1601_v54, %v1314_v41  ;;  %v12108_v42 = vld [vmem:[#allocation167_spill] sm:$0xff]  ;;  %v12109_v37 = vld [vmem:[#allocation168_spill] sm:$0xff] }
 0x4b6   : > { %12097 = vst [vmem:[#allocation94_spill] sm:$0xff] %v9772_v44  ;;  %12098 = vst [vmem:[#allocation95_spill] sm:$0xff] %v9774_v52  ;;  %v3050_v61 = vmul.f32 %v9425_v12, %v2879_v62  ;;  %v3049_v51 = vmul.f32 %v9425_v12, %v2875_v56  ;;  %v2008_v46 = vmul.f32 %v9416_v1, %v12103_v60  ;;  %v12107_v56 = vld [vmem:[#allocation125_spill] sm:$0xff] }
 0x4b7   : > { %3032 = vbcast.lane.b32.xlu1 %v3026_v2, 264  ;;  %3028 = vbcast.lane.b32.xlu0 %v3026_v2, 256  ;;  %v2327_v62 = vmul.f32 %v9419_v28, %v12106_v53  ;;  %v2326_v36 = vmul.f32 %v9419_v28, %v12107_v56  ;;  %v3653_v50 = vrot.slane %v9247_v39, %v12080_v63 }
 0x4b8   : > { %v3082_v2 = vadd.f32 %v3050_v61, %v2676_v16  ;;  %v3081_v44 = vadd.f32 %v3049_v51, %v2675_v3  ;;  %v1317_v19 = vadd.f32 %v1285_v38, %v9662_v43  ;;  %v2040_v54 = vadd.f32 %v2008_v46, %v1634_v18  ;;  %v12112_v51 = vld [vmem:[#allocation49_spill] sm:$0xff]  ;;  %v12114_v18 = vld [vmem:[#allocation63_spill] sm:$0xff] }
 0x4b9   : > { %v3198_v60 = vpop.permute.xlu1 %3197  ;;  %v3194_v52 = vpop.permute.xlu0 %3193  ;;  %v2039_v30 = vadd.f32 %v2007_v26, %v1633_v7  ;;  %v2646_v41 = vmul.f32 %v9422_v20, %v12108_v42  ;;  %v2645_v55 = vmul.f32 %v9422_v20, %v12109_v37  ;;  %v9815_v16 = vmul.f32 %v9365_v23, %v12112_v51  ;;  %v12117_v42 = vld [vmem:[#allocation127_spill] sm:$0xff]  ;;  %v12119_v51 = vld [vmem:[#allocation128_spill] sm:$0xff] }
 0x4ba   : > { %v3369_v33 = vmul.f32 %v9428_v22, %v3198_v60  ;;  %v3368_v5 = vmul.f32 %v9428_v22, %v3194_v52  ;;  %v12113_v52 = vld [vmem:[#allocation50_spill] sm:$0xff]  ;;  %v1316_v38 = vadd.f32 %v1284_v48, %v9753_v14  ;;  %v2631_v3 = vrot.slane %v12114_v18, %v8738_v6  ;;  %v12118_v48 = vld [vmem:[#allocation85_spill] sm:$0xff] }
 0x4bb   : > { %3659 = vbcast.lane.b32.xlu1 %v3653_v50, 264  ;;  %3655 = vbcast.lane.b32.xlu0 %v3653_v50, 256  ;;  %v967_v43 = vmul.f32 %v9365_v23, %v12113_v52  ;;  %v2359_v7 = vadd.f32 %v2327_v62, %v2040_v54  ;;  %v2358_v56 = vadd.f32 %v2326_v36, %v2039_v30  ;;  %v12115_v50 = vld [vmem:[#allocation84_spill] sm:$0xff] }
 0x4bc   : > { %v9809_v53 = vadd.f32 %v3369_v33, %v3082_v2  ;;  %v9811_v61 = vadd.f32 %v3368_v5, %v3081_v44  ;;  %v1287_v2 = vmul.f32 %v9410_v21, %v12115_v50  ;;  %v12116_v33 = vld [vmem:[#allocation126_spill] sm:$0xff]  ;;  %v2009_v14 = vmul.f32 %v9416_v1, %v12117_v42 }
 0x4bd   : > { %v2890_v46 = vpop.permute.xlu1 %2889  ;;  %v2886_v26 = vpop.permute.xlu0 %2885  ;;  %v2010_v5 = vmul.f32 %v9416_v1, %v12116_v33  ;;  %v1286_v37 = vmul.f32 %v9410_v21, %v12118_v48  ;;  %v1636_v62 = vadd.f32 %v9725_v32, %v1317_v19  ;;  %v2678_v36 = vadd.f32 %v2646_v41, %v2359_v7  ;;  %v12121_v33 = vld [vmem:[#allocation139_spill] sm:$0xff]  ;;  %v12123_v7 = vld [vmem:[#allocation170_spill] sm:$0xff] }
 0x4be   : > { %12110 = vst [vmem:[#allocation71_spill] sm:$0xff] %v9809_v53  ;;  %12111 = vst [vmem:[#allocation96_spill] sm:$0xff] %v9811_v61  ;;  %v3052_v60 = vmul.f32 %v9425_v12, %v2890_v46  ;;  %v3051_v44 = vmul.f32 %v9425_v12, %v2886_v26  ;;  %v2677_v54 = vadd.f32 %v2645_v55, %v2358_v56  ;;  %v12120_v46 = vld [vmem:[#allocation129_spill] sm:$0xff] }
 0x4bf   : > { %2637 = vbcast.lane.b32.xlu1 %v2631_v3, 264  ;;  %2633 = vbcast.lane.b32.xlu0 %v2631_v3, 256  ;;  %v1635_v30 = vadd.f32 %v1603_v15, %v1316_v38  ;;  %v2329_v52 = vmul.f32 %v9419_v28, %v12119_v51  ;;  %v2328_v26 = vmul.f32 %v9419_v28, %v12120_v46  ;;  %v12122_v55 = vld [vmem:[#allocation169_spill] sm:$0xff] }
 0x4c0   : > { %v3345_v42 = vrot.slane %v12121_v33, %v12087_v4  ;;  %v3084_v3 = vadd.f32 %v3052_v60, %v2678_v36  ;;  %v3083_v61 = vadd.f32 %v3051_v44, %v2677_v54  ;;  %v1319_v19 = vadd.f32 %v1287_v2, %v9738_v45  ;;  %v12126_v44 = vld [vmem:[#allocation52_spill] sm:$0xff]  ;;  %v12127_v54 = vld [vmem:[#allocation54_spill] sm:$0xff] }
 0x4c1   : > { %v3209_v18 = vpop.permute.xlu1 %3208  ;;  %v3205_v50 = vpop.permute.xlu0 %3204  ;;  %v2042_v15 = vadd.f32 %v2010_v5, %v1636_v62  ;;  %v2041_v41 = vadd.f32 %v2009_v14, %v1635_v30  ;;  %v2648_v38 = vmul.f32 %v9422_v20, %v12122_v55  ;;  %v2647_v56 = vmul.f32 %v9422_v20, %v12123_v7  ;;  %v12132_v55 = vld [vmem:[#allocation132_spill] sm:$0xff] }
 0x4c2   : > { %v3371_v48 = vmul.f32 %v9428_v22, %v3209_v18  ;;  %v3370_v32 = vmul.f32 %v9428_v22, %v3205_v50  ;;  %v1605_v36 = vmul.f32 %v9413_v35, %v12126_v44  ;;  %v969_v45 = vmul.f32 %v9365_v23, %v12127_v54  ;;  %v12133_v44 = vld [vmem:[#allocation133_spill] sm:$0xff] }
 0x4c3   : > { %3351 = vbcast.lane.b32.xlu1 %v3345_v42, 264  ;;  %3347 = vbcast.lane.b32.xlu0 %v3345_v42, 256  ;;  %v1318_v2 = vadd.f32 %v1286_v37, %v967_v43  ;;  %v3037_v62 = vrot.slane %v12101_v58, %v8738_v6  ;;  %v2361_v30 = vadd.f32 %v2329_v52, %v2042_v15  ;;  %v12131_v37 = vld [vmem:[#allocation87_spill] sm:$0xff] }
 0x4c4   : > { %v9846_v51 = vadd.f32 %v3371_v48, %v3084_v3  ;;  %v9848_v60 = vadd.f32 %v3370_v32, %v3083_v61  ;;  %v2360_v46 = vadd.f32 %v2328_v26, %v2041_v41  ;;  %v12128_v61 = vld [vmem:[#allocation86_spill] sm:$0xff]  ;;  %v12130_v32 = vld [vmem:[#allocation131_spill] sm:$0xff]  ;;  %v1288_v58 = vmul.f32 %v9410_v21, %v12131_v37 }
 0x4c5   : > { %v2901_v5 = vpop.permute.xlu1 %2900  ;;  %v2897_v14 = vpop.permute.xlu0 %2896  ;;  %v1289_v42 = vmul.f32 %v9410_v21, %v12128_v61  ;;  %v12129_v3 = vld [vmem:[#allocation130_spill] sm:$0xff]  ;;  %v2011_v43 = vmul.f32 %v9416_v1, %v12130_v32  ;;  %v1638_v52 = vadd.f32 %v9778_v31, %v1319_v19  ;;  %v2680_v26 = vadd.f32 %v2648_v38, %v2361_v30  ;;  %v12135_v30 = vld [vmem:[#allocation172_spill] sm:$0xff] }
 0x4c6   : > { %12124 = vst [vmem:[#allocation97_spill] sm:$0xff] %v9846_v51  ;;  %12125 = vst [vmem:[#allocation25_spill] sm:$0xff] %v9848_v60  ;;  %v3054_v18 = vmul.f32 %v9425_v12, %v2901_v5  ;;  %v3053_v50 = vmul.f32 %v9425_v12, %v2897_v14  ;;  %v2012_v48 = vmul.f32 %v9416_v1, %v12129_v3 }
 0x4c7   : > { %3043 = vbcast.lane.b32.xlu1 %v3037_v62, 264  ;;  %3039 = vbcast.lane.b32.xlu0 %v3037_v62, 256  ;;  %v2679_v15 = vadd.f32 %v2647_v56, %v2360_v46  ;;  %v1637_v41 = vadd.f32 %v1605_v36, %v1318_v2  ;;  %v2331_v7 = vmul.f32 %v9419_v28, %v12132_v55  ;;  %v12134_v36 = vld [vmem:[#allocation171_spill] sm:$0xff] }
 0x4c8   : > { %v2330_v54 = vmul.f32 %v9419_v28, %v12133_v44  ;;  %v3664_v61 = vrot.slane %v9247_v39, %v12087_v4  ;;  %v3086_v62 = vadd.f32 %v3054_v18, %v2680_v26  ;;  %v1321_v19 = vadd.f32 %v1289_v42, %v9815_v16  ;;  %v12139_v44 = vld [vmem:[#allocation56_spill] sm:$0xff] }
 0x4c9   : > { %v3220_v5 = vpop.permute.xlu1 %3219  ;;  %v3216_v14 = vpop.permute.xlu0 %3215  ;;  %v3085_v3 = vadd.f32 %v3053_v50, %v2679_v15  ;;  %v2044_v38 = vadd.f32 %v2012_v48, %v1638_v52  ;;  %v2043_v56 = vadd.f32 %v2011_v43, %v1637_v41  ;;  %v2650_v2 = vmul.f32 %v9422_v20, %v12134_v36  ;;  %v12138_v50 = vld [vmem:[#allocation51_spill] sm:$0xff] }
 0x4ca   : > { %v3373_v32 = vmul.f32 %v9428_v22, %v3220_v5  ;;  %v3372_v31 = vmul.f32 %v9428_v22, %v3216_v14  ;;  %v2649_v46 = vmul.f32 %v9422_v20, %v12135_v30  ;;  %v1608_v26 = vmul.f32 %v9413_v35, %v12138_v50  ;;  %v12140_v14 = vld [vmem:[#allocation134_spill] sm:$0xff] }
 0x4cb   : > { %3670 = vbcast.lane.b32.xlu1 %v3664_v61, 264  ;;  %3666 = vbcast.lane.b32.xlu0 %v3664_v61, 256  ;;  %v1320_v15 = vadd.f32 %v1288_v58, %v969_v45  ;;  %v3356_v42 = vrot.slane %v12121_v33, %v8738_v6  ;;  %v2363_v48 = vadd.f32 %v2331_v7, %v2044_v38  ;;  %v617_v50 = vld [vmem:[%s11786_s2] sm:$0x3] }
 0x4cc   : > { %v9880_v37 = vadd.f32 %v3373_v32, %v3086_v62  ;;  %v9882_v18 = vadd.f32 %v3372_v31, %v3085_v3  ;;  %v2362_v43 = vadd.f32 %v2330_v54, %v2043_v56  ;;  %v1607_v5 = vmul.f32 %v9413_v35, %v12139_v44  ;;  %v12141_v62 = vld [vmem:[#allocation135_spill] sm:$0xff]  ;;  %v12142_v54 = vld [vmem:[#allocation136_spill] sm:$0xff]  ;;  %v12143_v31 = vld [vmem:[#allocation137_spill] sm:$0xff] }
 0x4cd   : > { %v2912_v55 = vpop.permute.xlu1 %2911  ;;  %v2908_v16 = vpop.permute.xlu0 %2907  ;;  %v2014_v61 = vmul.f32 %v9416_v1, %v12140_v14  ;;  %v2013_v45 = vmul.f32 %v9416_v1, %v12141_v62  ;;  %v1640_v58 = vadd.f32 %v1608_v26, %v1321_v19  ;;  %v2682_v3 = vadd.f32 %v2650_v2, %v2363_v48 }
 0x4ce   : > { %12136 = vst [vmem:[#allocation69_spill] sm:$0xff] %v9880_v37  ;;  %12137 = vst [vmem:[#allocation155_spill] sm:$0xff] %v9882_v18  ;;  %v3056_v52 = vmul.f32 %v9425_v12, %v2912_v55  ;;  %v3055_v41 = vmul.f32 %v9425_v12, %v2908_v16  ;;  %v2681_v33 = vadd.f32 %v2649_v46, %v2362_v43  ;;  %v4135_v16 = vld [vmem:[#allocation6] sm:$0xff]  ;;  %v12145_v43 = vld [vmem:[#allocation174_spill] sm:$0xff] }
 0x4cf   : > { %3362 = vbcast.lane.b32.xlu1 %v3356_v42, 264  ;;  %3358 = vbcast.lane.b32.xlu0 %v3356_v42, 256  ;;  %v1639_v7 = vadd.f32 %v1607_v5, %v1320_v15  ;;  %v2333_v32 = vmul.f32 %v9419_v28, %v12142_v54  ;;  %v2332_v38 = vmul.f32 %v9419_v28, %v12143_v31  ;;  %v12144_v42 = vld [vmem:[#allocation173_spill] sm:$0xff] }
 0x4d0   : > { %v3675_v30 = vrot.slane %v9247_v39, %v8738_v6  ;;  %v3088_v55 = vadd.f32 %v3056_v52, %v2682_v3  ;;  %v3087_v19 = vadd.f32 %v3055_v41, %v2681_v33  ;;  %v2046_v26 = vadd.f32 %v2014_v61, %v1640_v58  ;;  %v4137_v61 = vld [vmem:[#allocation8] sm:$0x3] }
 0x4d1   : > { %v3231_v56 = vpop.permute.xlu1 %3230  ;;  %v3227_v36 = vpop.permute.xlu0 %3226  ;;  %v2045_v15 = vadd.f32 %v2013_v45, %v1639_v7  ;;  %v2652_v48 = vmul.f32 %v9422_v20, %v12144_v42  ;;  %v2651_v39 = vmul.f32 %v9422_v20, %v12145_v43  ;;  %v9916_v52 = vrot.slane %v617_v50, %v8626_v34  ;;  %v12156_v43 = vld [vmem:[#allocation29_spill] sm:$0xff] }
 0x4d2   : > { %v3375_v2 = vmul.f32 %v9428_v22, %v3231_v56  ;;  %v3374_v46 = vmul.f32 %v9428_v22, %v3227_v36  ;;  %v2365_v62 = vadd.f32 %v2333_v32, %v2046_v26  ;;  %v9921_v33 = vrot.slane %v617_v50, %v8639_v40 }
 0x4d3   : > { %3681 = vbcast.lane.b32.xlu1 %v3675_v30, 264  ;;  %3677 = vbcast.lane.b32.xlu0 %v3675_v30, 256  ;;  %v2364_v45 = vadd.f32 %v2332_v38, %v2045_v15  ;;  %v9924_v7 = vrot.slane %v4135_v16, %v8626_v34  ;;  %v9927_v54 = vrot.slane %v4135_v16, %v8639_v40 }
 0x4d4   : > { %v9911_v44 = vadd.f32 %v3375_v2, %v3088_v55  ;;  %v9913_v5 = vadd.f32 %v3374_v46, %v3087_v19  ;;  %v9930_v31 = vrot.slane %v4135_v16, %v8654_v49  ;;  %v9933_v56 = vrot.slane %v4135_v16, %v12039_v8 }
 0x4d5   : > { %v2923_v41 = vpop.permute.xlu1 %2922  ;;  %v2919_v14 = vpop.permute.xlu0 %2918  ;;  %v9936_v32 = vrot.slane %v4135_v16, %v12045_v24  ;;  %v2684_v38 = vadd.f32 %v2652_v48, %v2365_v62  ;;  %v2683_v36 = vadd.f32 %v2651_v39, %v2364_v45  ;;  %v9939_v30 = vrot.slane %v4135_v16, %v12080_v63  ;;  %v12155_v48 = vld [vmem:[#allocation28_spill] sm:$0xff] }
 0x4d6   : > { %12146 = vst [vmem:[#allocation156_spill] sm:$0xff] %v9911_v44  ;;  %12147 = vst [vmem:[#allocation38_spill] sm:$0xff] %v9913_v5  ;;  %v3058_v58 = vmul.f32 %v9425_v12, %v2923_v41  ;;  %v3057_v3 = vmul.f32 %v9425_v12, %v2919_v14  ;;  %v9942_v50 = vrot.slane %v4135_v16, %v12087_v4  ;;  %v12158_v41 = vld [vmem:[#allocation31_spill] sm:$0xff]  ;;  %v12159_v62 = vld [vmem:[#allocation32_spill] sm:$0xff] }
 0x4d7   : > { %12148 = vst [vmem:[#allocation39_spill] sm:$0xff] %v9933_v56  ;;  %12149 = vst [vmem:[#allocation144_spill] sm:$0xff] %v9936_v32  ;;  %v9945_v55 = vrot.slane %v4135_v16, %v8738_v6  ;;  %v9948_v19 = vrot.slane %v4137_v61, %v8626_v34  ;;  %v9953_v63 = vrot.slane %v4137_v61, %v8639_v40  ;;  %v12157_v16 = vld [vmem:[#allocation30_spill] sm:$0xff]  ;;  %v12162_v61 = vld [vmem:[#allocation33_spill] sm:$0xff] }
 0x4d8   : > { %12150 = vst [vmem:[#allocation98_spill] sm:$0xff] %v9939_v30  ;;  %12151 = vst [vmem:[#allocation99_spill] sm:$0xff] %v9942_v50  ;;  %v3090_v26 = vadd.f32 %v3058_v58, %v2684_v38  ;;  %v3089_v15 = vadd.f32 %v3057_v3, %v2683_v36  ;;  %v990_v4 = vmul.f32 %v9365_v23, %v12155_v48  ;;  %v12163_v36 = vld [vmem:[#allocation34_spill] sm:$0xff]  ;;  %v12175_v56 = vld [vmem:[#allocation59_spill] sm:$0xff] }
 0x4d9   : > { %12152 = vst [vmem:[#allocation73_spill] sm:$0xff] %v9945_v55  ;;  %12153 = vst [vmem:[#allocation100_spill] sm:$0xff] %v9948_v19  ;;  %v3242_v2 = vpop.permute.xlu1 %3241  ;;  %v3238_v46 = vpop.permute.xlu0 %3237  ;;  %v989_v6 = vmul.f32 %v9365_v23, %v12156_v43  ;;  %v1628_v39 = vmul.f32 %v9413_v35, %v12157_v16  ;;  %v1627_v14 = vmul.f32 %v9413_v35, %v12158_v41  ;;  %v12165_v43 = vld [vmem:[#allocation72_spill] sm:$0xff]  ;;  %v12173_v55 = vld [vmem:[#allocation89_spill] sm:$0xff] }
 0x4da   : > { %v3377_v24 = vmul.f32 %v9428_v22, %v3242_v2  ;;  %v3376_v42 = vmul.f32 %v9428_v22, %v3238_v46  ;;  %12154 = vst [vmem:[#allocation101_spill] sm:$0xff] %v9953_v63  ;;  %v992_v45 = vmul.f32 %v9365_v23, %v12159_v62  ;;  %v991_v38 = vmul.f32 %v9365_v23, %v12162_v61  ;;  %v12164_v46 = vld [vmem:[#allocation35_spill] sm:$0xff]  ;;  %v12168_v62 = vld [vmem:[#allocation74_spill] sm:$0xff]  ;;  %v12172_v63 = vld [vmem:[#allocation88_spill] sm:$0xff] }
 0x4db   : > { %v1630_v2 = vmul.f32 %v9413_v35, %v12163_v36  ;;  %v1629_v48 = vmul.f32 %v9413_v35, %v12164_v46  ;;  %v1309_v16 = vmul.f32 %v9410_v21, %v12165_v43  ;;  %v1311_v61 = vmul.f32 %v9410_v21, %v12168_v62  ;;  %v12169_v36 = vld [vmem:[#allocation77_spill] sm:$0xff]  ;;  %v12171_v43 = vld [vmem:[#allocation79_spill] sm:$0xff]  ;;  %v12174_v50 = vld [vmem:[#allocation58_spill] sm:$0xff] }
 0x4dc   : > { %v9965_v58 = vadd.f32 %v3377_v24, %v3090_v26  ;;  %v9967_v3 = vadd.f32 %v3376_v42, %v3089_v15  ;;  %v12166_v26 = vld [vmem:[#allocation53_spill] sm:$0xff]  ;;  %v12167_v24 = vld [vmem:[#allocation55_spill] sm:$0xff]  ;;  %v1308_v49 = vmul.f32 %v9410_v21, %v12169_v36  ;;  %v1310_v34 = vmul.f32 %v9410_v21, %v12171_v43  ;;  %v12176_v30 = vld [vmem:[#allocation90_spill] sm:$0xff] }
 0x4dd   : > { %v9977_v41 = vpop.permute.xlu1 %2933  ;;  %v9979_v8 = vpop.permute.xlu0 %2929  ;;  %v972_v15 = vmul.f32 %v9365_v23, %v12166_v26  ;;  %v1610_v42 = vmul.f32 %v9413_v35, %v12167_v24  ;;  %v12170_v46 = vld [vmem:[#allocation57_spill] sm:$0xff]  ;;  %v1291_v19 = vmul.f32 %v9410_v21, %v12172_v63  ;;  %v1290_v26 = vmul.f32 %v9410_v21, %v12173_v55  ;;  %v12177_v32 = vld [vmem:[#allocation91_spill] sm:$0xff]  ;;  %v12180_v55 = vld [vmem:[#allocation92_spill] sm:$0xff] }
 0x4de   : > { %12160 = vst [vmem:[#allocation70_spill] sm:$0xff] %v9965_v58  ;;  %12161 = vst [vmem:[#allocation157_spill] sm:$0xff] %v9967_v3  ;;  %v974_v40 = vmul.f32 %v9365_v23, %v12170_v46  ;;  %v971_v24 = vmul.f32 %v9365_v23, %v12174_v50  ;;  %v1612_v62 = vmul.f32 %v9413_v35, %v12175_v56  ;;  %v12178_v3 = vld [vmem:[#allocation60_spill] sm:$0xff]  ;;  %v12179_v58 = vld [vmem:[#allocation61_spill] sm:$0xff] }
 0x4df   : > { %v1293_v36 = vmul.f32 %v9410_v21, %v12176_v30  ;;  %v1292_v46 = vmul.f32 %v9410_v21, %v12177_v32  ;;  %v1609_v43 = vmul.f32 %v9413_v35, %v12178_v3  ;;  %v976_v63 = vmul.f32 %v9365_v23, %v12179_v58  ;;  %v12181_v56 = vld [vmem:[#allocation62_spill] sm:$0xff]  ;;  %v12182_v32 = vld [vmem:[#allocation93_spill] sm:$0xff]  ;;  %v12183_v3 = vld [vmem:[#allocation64_spill] sm:$0xff] }
 0x4e0   : > { %v1341_v5 = vadd.f32 %v1309_v16, %v990_v4  ;;  %v1295_v44 = vmul.f32 %v9410_v21, %v12180_v55  ;;  %v973_v30 = vmul.f32 %v9365_v23, %v12181_v56  ;;  %v1343_v37 = vadd.f32 %v1311_v61, %v992_v45  ;;  %v12186_v56 = vld [vmem:[#allocation67_spill] sm:$0xff] }
 0x4e1   : > { %v10011_v50 = vpop.permute.xlu1 %3252  ;;  %v10013_v18 = vpop.permute.xlu0 %3248  ;;  %v1340_v60 = vadd.f32 %v1308_v49, %v989_v6  ;;  %v1294_v51 = vmul.f32 %v9410_v21, %v12182_v32  ;;  %v1614_v53 = vmul.f32 %v9413_v35, %v12183_v3  ;;  %v1342_v58 = vadd.f32 %v1310_v34, %v991_v38  ;;  %v12187_v21 = vld [vmem:[#allocation110_spill] sm:$0xff] }
 0x4e2   : > { %v1323_v4 = vadd.f32 %v1291_v19, %v972_v15  ;;  %v1322_v16 = vadd.f32 %v1290_v26, %v971_v24  ;;  %v1611_v55 = vmul.f32 %v9413_v35, %v12184_v25  ;;  %v975_v11 = vmul.f32 %v9365_v23, %v12185_v57  ;;  %v12188_v25 = vld [vmem:[#allocation111_spill] sm:$0xff]  ;;  %v12191_v24 = vld [vmem:[#allocation114_spill] sm:$0xff] }
 0x4e3   : > { %v1325_v47 = vadd.f32 %v1293_v36, %v974_v40  ;;  %v1324_v59 = vadd.f32 %v1292_v46, %v973_v30  ;;  %v1613_v49 = vmul.f32 %v9413_v35, %v12186_v56  ;;  %v1327_v6 = vadd.f32 %v1295_v44, %v976_v63  ;;  %v12189_v40 = vld [vmem:[#allocation112_spill] sm:$0xff] }
 0x4e4   : > { %v1660_v45 = vadd.f32 %v1628_v39, %v1341_v5  ;;  %v2034_v61 = vmul.f32 %v9416_v1, %v12187_v21  ;;  %v1326_v19 = vadd.f32 %v1294_v51, %v975_v11  ;;  %v1659_v38 = vadd.f32 %v1627_v14, %v1340_v60  ;;  %v12190_v5 = vld [vmem:[#allocation113_spill] sm:$0xff]  ;;  %v12192_v51 = vld [vmem:[#allocation115_spill] sm:$0xff]  ;;  %v12193_v14 = vld [vmem:[#allocation140_spill] sm:$0xff] }
 0x4e5   : > { %v10029_v32 = vpop.permute.xlu1 %2944  ;;  %v10031_v34 = vpop.permute.xlu0 %2940  ;;  %v2033_v15 = vmul.f32 %v9416_v1, %v12188_v25  ;;  %v1662_v23 = vadd.f32 %v1630_v2, %v1343_v37  ;;  %v2353_v57 = vmul.f32 %v9419_v28, %v12189_v40  ;;  %v1661_v26 = vadd.f32 %v1629_v48, %v1342_v58  ;;  %v12195_v58 = vld [vmem:[#allocation141_spill] sm:$0xff]  ;;  %v7418_v21 = vld [vmem:[#allocation9 + $0x8] sm:$0xff]   ;;  %v12200_v40 = vld [vmem:[#allocation146_spill] sm:$0xff] }
 0x4e6   : > { %v1642_v35 = vadd.f32 %v1610_v42, %v1323_v4  ;;  %v1641_v44 = vadd.f32 %v1609_v43, %v1322_v16  ;;  %v2352_v39 = vmul.f32 %v9419_v28, %v12190_v5  ;;  %v2036_v36 = vmul.f32 %v9416_v1, %v12191_v24  ;;  %v12194_v43 = vld [vmem:[#allocation116_spill] sm:$0xff]  ;;  %v12196_v4 = vld [vmem:[#allocation117_spill] sm:$0xff]  ;;  %v12199_v25 = vld [vmem:[#allocation143_spill] sm:$0xff] }
 0x4e7   : > { %v1644_v46 = vadd.f32 %v1612_v62, %v1325_v47  ;;  %v1643_v63 = vadd.f32 %v1611_v55, %v1324_v59  ;;  %v2066_v11 = vadd.f32 %v2034_v61, %v1660_v45  ;;  %v2035_v60 = vmul.f32 %v9416_v1, %v12192_v51  ;;  %v12197_v55 = vld [vmem:[#allocation142_spill] sm:$0xff]  ;;  %v12201_v5 = vld [vmem:[#allocation147_spill] sm:$0xff] }
 0x4e8   : > { %v2016_v37 = vmul.f32 %v9416_v1, %v12193_v14  ;;  %v1646_v2 = vadd.f32 %v1614_v53, %v1327_v6  ;;  %v2065_v42 = vadd.f32 %v2033_v15, %v1659_v38  ;;  %v2355_v3 = vmul.f32 %v9419_v28, %v12194_v43  ;;  %v12198_v53 = vld [vmem:[#allocation145_spill] sm:$0xff]  ;;  %v7417_v45 = vld [vmem:[#allocation9] sm:$0xff]  }
 0x4e9   : > { %v10045_v30 = vpop.permute.xlu1 %3263  ;;  %v10047_v48 = vpop.permute.xlu0 %3259  ;;  %v2015_v47 = vmul.f32 %v9416_v1, %v12195_v58  ;;  %v1645_v59 = vadd.f32 %v1613_v49, %v1326_v19  ;;  %v2385_v62 = vadd.f32 %v2353_v57, %v2066_v11  ;;  %v2354_v16 = vmul.f32 %v9419_v28, %v12196_v4  ;;  %v12202_v11 = vld [vmem:[#allocation149_spill] sm:$0xff]  ;;  %7196 = vmatprep.subr.bf16.mxu0 %v7417_v45  ;;  %v12204_v58 = vld [vmem:[#allocation150_spill] sm:$0xff]  ;;  %v12205_v4 = vld [vmem:[#allocation151_spill] sm:$0xff] }
 0x4ea   : > { %v2335_v56 = vmul.f32 %v9419_v28, %v12197_v55  ;;  %v2018_v6 = vmul.f32 %v9416_v1, %v12198_v53  ;;  %v2384_v61 = vadd.f32 %v2352_v39, %v2065_v42  ;;  %v2068_v38 = vadd.f32 %v2036_v36, %v1662_v23  ;;  %v12203_v36 = vld [vmem:[#allocation148_spill] sm:$0xff]  ;;  %7197 = vmatpush3.bf16.msra.mxu0 %v7417_v45 }
 0x4eb   : > { %v2334_v15 = vmul.f32 %v9419_v28, %v12199_v25  ;;  %v2017_v49 = vmul.f32 %v9416_v1, %v12200_v40  ;;  %v2067_v19 = vadd.f32 %v2035_v60, %v1661_v26  ;;  %v2048_v57 = vadd.f32 %v2016_v37, %v1642_v35  ;;  %7198 = vmatprep.subr.bf16.mxu0 %v7418_v21  ;;  %v4138_v40 = vld [vmem:[#allocation2] sm:$0xff] }
 0x4ec   : > { %v2337_v24 = vmul.f32 %v9419_v28, %v12201_v5  ;;  %v2020_v51 = vmul.f32 %v9416_v1, %v12202_v11  ;;  %v10071_v23 = vadd.f32 %v2355_v3, %v2068_v38  ;;  %v2047_v39 = vadd.f32 %v2015_v47, %v1641_v44  ;;  %v12206_v3 = vld [vmem:[#allocation152_spill] sm:$0xff]  ;;  %v12207_v47 = vld [vmem:[#allocation163_spill] sm:$0xff] }
 0x4ed   : > { %v10067_v14 = vpop.permute.xlu1 %2955  ;;  %v10069_v43 = vpop.permute.xlu0 %2951  ;;  %v2336_v42 = vmul.f32 %v9419_v28, %v12203_v36  ;;  %v2019_v26 = vmul.f32 %v9416_v1, %v12204_v58  ;;  %v10077_v35 = vadd.f32 %v2354_v16, %v2067_v19  ;;  %v2367_v60 = vadd.f32 %v2335_v56, %v2048_v57  ;;  %v4238_v5 = vld [vmem:[#allocation2 + $0x1] sm:$0xff]  ;;  %v12208_v16 = vld [vmem:[#allocation164_spill] sm:$0xff] }
 0x4ee   : > { %v2050_v37 = vadd.f32 %v2018_v6, %v1644_v46  ;;  %v2339_v55 = vmul.f32 %v9419_v28, %v12205_v4  ;;  %v2366_v53 = vadd.f32 %v2334_v15, %v2047_v39  ;;  %v2049_v25 = vadd.f32 %v2017_v49, %v1643_v63  ;;  %v12209_v46 = vld [vmem:[#allocation175_spill] sm:$0xff]  ;;  %7199 = vmatpush3.bf16.msra.mxu0 %v7418_v21  ;;  %v12212_v21 = vld [vmem:[#allocation178_spill] sm:$0xff] }
 0x4ef   : > { %v2338_v44 = vmul.f32 %v9419_v28, %v12206_v3  ;;  %v2672_v38 = vmul.f32 %v9422_v20, %v12207_v47  ;;  %v2052_v45 = vadd.f32 %v2020_v51, %v1646_v2  ;;  %v2671_v56 = vmul.f32 %v9422_v20, %v12208_v16  ;;  %v12210_v28 = vld [vmem:[#allocation176_spill] sm:$0xff]  ;;  %v10102_v36 = vld [vmem:[%s12028_s1 + $0x8] ss:$0 sm:$0xff] }
 0x4f0   : > { %v2369_v1 = vadd.f32 %v2337_v24, %v2050_v37  ;;  %v2654_v6 = vmul.f32 %v9422_v20, %v12209_v46  ;;  %v2368_v63 = vadd.f32 %v2336_v42, %v2049_v25  ;;  %v2051_v49 = vadd.f32 %v2019_v26, %v1645_v59  ;;  %v4139_v24 = vld [vmem:[#allocation2 + $0x8] sm:$0xff] }
 0x4f1   : > { %v10089_v19 = vpop.permute.xlu1 %3274  ;;  %v10091_v15 = vpop.permute.xlu0 %3270  ;;  %v2653_v57 = vmul.f32 %v9422_v20, %v12210_v28  ;;  %v2656_v11 = vmul.f32 %v9422_v20, %v9450_v9  ;;  %v4239_v2 = vld [vmem:[#allocation2 + $0x9] sm:$0xff]  ;;  %v2371_v51 = vadd.f32 %v2339_v55, %v2052_v45  ;;  %v2655_v39 = vmul.f32 %v9422_v20, %v9452_v29  ;;  %v12211_v9 = vld [vmem:[#allocation177_spill] sm:$0xff] }
 0x4f2   : > { %v4174_v59 = vmul.f32 %v9924_v7, %v4138_v40  ;;  %v4274_v42 = vmul.f32 %v9927_v54, %v4238_v5  ;;  %v2370_v58 = vadd.f32 %v2338_v44, %v2051_v49  ;;  %v10106_v26 = vadd.f32 %v2672_v38, %v2385_v62  ;;  %v4338_v55 = vld [vmem:[#allocation2 + $0x2] sm:$0xff]  ;;  %v4339_v16 = vld [vmem:[#allocation2 + $0xa] sm:$0xff] }
 0x4f3   : > { %v2658_v37 = vmul.f32 %v9422_v20, %v12211_v9  ;;  %v2657_v4 = vmul.f32 %v9422_v20, %v12212_v21  ;;  %v10112_v29 = vadd.f32 %v2671_v56, %v2384_v61  ;;  %v2686_v25 = vadd.f32 %v2654_v6, %v2367_v60 }
 0x4f4   : > { %v4175_v45 = vmul.f32 %v9924_v7, %v4139_v24  ;;  %v4275_v40 = vmul.f32 %v9927_v54, %v4239_v2  ;;  %v2685_v5 = vadd.f32 %v2653_v57, %v2366_v53  ;;  %v2688_v44 = vadd.f32 %v2656_v11, %v2369_v1 }
 0x4f5   : > { %v3605_v3 = vpop.permute.xlu1 %3604  ;;  %v3601_v47 = vpop.permute.xlu0 %3600  ;;  %v2687_v46 = vadd.f32 %v2655_v39, %v2368_v63  ;;  %v3060_v49 = vmul.f32 %v9425_v12, %v9977_v41  ;;  %v4306_v61 = vadd.f32 %v4274_v42, %v4174_v59  ;;  %v4374_v60 = vmul.f32 %v9930_v31, %v4338_v55 }
 0x4f6   : > { %v3704_v62 = vmul.f32 %v10102_v36, %v3605_v3  ;;  %v3703_v38 = vmul.f32 %v10102_v36, %v3601_v47  ;;  %v10121_v56 = vadd.f32 %v2658_v37, %v2371_v51  ;;  %v10123_v6 = vadd.f32 %v2657_v4, %v2370_v58 }
 0x4f7   : > { %v3059_v1 = vmul.f32 %v9425_v12, %v9979_v8  ;;  %v3379_v63 = vmul.f32 %v9428_v22, %v10011_v50  ;;  %v4307_v41 = vadd.f32 %v4275_v40, %v4175_v45  ;;  %v4375_v24 = vmul.f32 %v9930_v31, %v4339_v16 }
 0x4f8   : > { %v3736_v28 = vadd.f32 %v3704_v62, %v9572_v27  ;;  %v3735_v53 = vadd.f32 %v3703_v38, %v9574_v17  ;;  %v3092_v17 = vadd.f32 %v3060_v49, %v2686_v25  ;;  %v3378_v8 = vmul.f32 %v9428_v22, %v10013_v18 }
 0x4f9   : > { %v3616_v57 = vpop.permute.xlu1 %3615  ;;  %v3612_v11 = vpop.permute.xlu0 %3611  ;;  %v3062_v50 = vmul.f32 %v9425_v12, %v10029_v32  ;;  %v10140_v59 = vadd.f32 %v4374_v60, %v4306_v61  ;;  %v3091_v21 = vadd.f32 %v3059_v1, %v2685_v5  ;;  %v3061_v18 = vmul.f32 %v9425_v12, %v10031_v34  ;;  %v12213_v60 = vld [vmem:[#allocation68_spill] sm:$0xff] }
 0x4fa   : > { %v3772_v2 = vmul.f32 %v9916_v52, %v3736_v28  ;;  %v3771_v51 = vmul.f32 %v9916_v52, %v3735_v53  ;;  %v3706_v39 = vmul.f32 %v10102_v36, %v3616_v57  ;;  %v3705_v27 = vmul.f32 %v10102_v36, %v3612_v11 }
 0x4fb   : > { %v10150_v4 = vadd.f32 %v3379_v63, %v3092_v17  ;;  %v10154_v25 = vadd.f32 %v4375_v24, %v4307_v41  ;;  %v10160_v40 = vadd.f32 %v3378_v8, %v3091_v21  ;;  %v3094_v62 = vadd.f32 %v3062_v50, %v2688_v44 }
 0x4fc   : > { %v10143_v42 = vadd.f32 %v9921_v33, %v3772_v2  ;;  %v10146_v58 = vadd.f32 %v9921_v33, %v3771_v51  ;;  %v3738_v9 = vadd.f32 %v3706_v39, %v9612_v0  ;;  %v3737_v37 = vadd.f32 %v3705_v27, %v9614_v13  ;;  %v12214_v2 = vld [vmem:[#allocation153_spill] sm:$0xff]  ;;  %v12215_v39 = vld [vmem:[#allocation154_spill] sm:$0xff] }
 0x4fd   : > { %v3627_v55 = vpop.permute.xlu1 %3626  ;;  %v3623_v32 = vpop.permute.xlu0 %3622  ;;  %v3381_v13 = vmul.f32 %v9428_v22, %v10045_v30  ;;  %v3093_v49 = vadd.f32 %v3061_v18, %v2687_v46  ;;  %v3380_v46 = vmul.f32 %v9428_v22, %v10047_v48  ;;  %v3064_v24 = vmul.f32 %v9425_v12, %v10067_v14 }
 0x4fe   : > { %v6762_v3 = vmul.f32 -1.442695, %v10143_v42  ;;  %v6761_v47 = vmul.f32 -1.442695, %v10146_v58  ;;  %v3774_v45 = vmul.f32 %v9916_v52, %v3738_v9  ;;  %v3773_v0 = vmul.f32 %v9916_v52, %v3737_v37 }
 0x4ff   : > { %v3708_v5 = vmul.f32 %v10102_v36, %v3627_v55  ;;  %v3707_v34 = vmul.f32 %v10102_v36, %v3623_v32  ;;  %v10178_v11 = vadd.f32 %v3381_v13, %v3094_v62  ;;  %v3063_v17 = vmul.f32 %v9425_v12, %v10069_v43 }
 0x500   : > { %7499 = vpow2.f32 %v6762_v3  ;;  %v10167_v38 = vadd.f32 %v9921_v33, %v3774_v45  ;;  %v10170_v16 = vadd.f32 %v9921_v33, %v3773_v0  ;;  %v10200_v55 = vadd.f32 %v3380_v46, %v3093_v49  ;;  %v12216_v0 = vld [vmem:[#allocation36_spill] sm:$0xff] }
 0x501   : > { %7501 = vpow2.f32 %v6761_v47  ;;  %v3740_v61 = vadd.f32 %v3708_v5, %v9652_v10  ;;  %v3739_v28 = vadd.f32 %v3707_v34, %v12213_v60  ;;  %v3638_v53 = vpop.permute.xlu1 %3637  ;;  %v3634_v30 = vpop.permute.xlu0 %3633  ;;  %v3383_v43 = vmul.f32 %v9428_v22, %v10089_v19  ;;  %v12217_v5 = vld [vmem:[#allocation37_spill] sm:$0xff] }
 0x502   : > { %v6764_v1 = vmul.f32 -1.442695, %v10167_v38  ;;  %v6763_v63 = vmul.f32 -1.442695, %v10170_v16  ;;  %v3710_v44 = vmul.f32 %v10102_v36, %v3638_v53  ;;  %v3709_v57 = vmul.f32 %v10102_v36, %v3634_v30 }
 0x503   : > { %v3776_v41 = vmul.f32 %v9916_v52, %v3740_v61  ;;  %v3775_v10 = vmul.f32 %v9916_v52, %v3739_v28  ;;  %v3096_v62 = vadd.f32 %v3064_v24, %v10121_v56  ;;  %v3095_v49 = vadd.f32 %v3063_v17, %v10123_v6  ;;  %v12218_v24 = vld [vmem:[#allocation71_spill] sm:$0xff] }
 0x504   : > { %7503 = vpow2.f32 %v6764_v1  ;;  %v3742_v51 = vadd.f32 %v3710_v44, %v12214_v2  ;;  %v3741_v27 = vadd.f32 %v3709_v57, %v12215_v39  ;;  %v3382_v19 = vmul.f32 %v9428_v22, %v10091_v15 }
 0x505   : > { %7505 = vpow2.f32 %v6763_v63  ;;  %v10191_v8 = vadd.f32 %v9921_v33, %v3776_v41  ;;  %v10194_v48 = vadd.f32 %v9921_v33, %v3775_v10  ;;  %v3649_v50 = vpop.permute.xlu1 %3648  ;;  %v3645_v9 = vpop.permute.xlu0 %3644  ;;  %v10224_v15 = vadd.f32 %v3383_v43, %v3096_v62 }
 0x506   : > { %v3778_v37 = vmul.f32 %v9916_v52, %v3742_v51  ;;  %v3777_v14 = vmul.f32 %v9916_v52, %v3741_v27  ;;  %v3712_v21 = vmul.f32 %v10102_v36, %v3649_v50  ;;  %v3711_v18 = vmul.f32 %v10102_v36, %v3645_v9  ;;  %v12219_v51 = vld [vmem:[#allocation96_spill] sm:$0xff] }
 0x507   : > { %v6766_v32 = vmul.f32 -1.442695, %v10191_v8  ;;  %v6765_v3 = vmul.f32 -1.442695, %v10194_v48 }
 0x508   : > { %v10207_v47 = vadd.f32 %v9921_v33, %v3778_v37  ;;  %v10210_v45 = vadd.f32 %v9921_v33, %v3777_v14  ;;  %v3744_v13 = vadd.f32 %v3712_v21, %v12216_v0  ;;  %v3743_v34 = vadd.f32 %v3711_v18, %v12217_v5 }
 0x509   : > { %7507 = vpow2.f32 %v6766_v32  ;;  %v3517_v61 = vpop.permute.xlu1 %3516  ;;  %v3513_v60 = vpop.permute.xlu0 %3512 }
 0x50a   : > { %v7500_v28 = vpop.eup %7499  ;;  %7509 = vpow2.f32 %v6765_v3  ;;  %v6768_v53 = vmul.f32 -1.442695, %v10207_v47  ;;  %v6767_v30 = vmul.f32 -1.442695, %v10210_v45  ;;  %v3780_v1 = vmul.f32 %v9916_v52, %v3744_v13  ;;  %v12220_v13 = vld [vmem:[#allocation97_spill] sm:$0xff] }
 0x50b   : > { %v7502_v63 = vpop.eup %7501  ;;  %v3936_v44 = vadd.f32 1.0, %v7500_v28  ;;  %v3779_v56 = vmul.f32 %v9916_v52, %v3743_v34  ;;  %v3688_v6 = vmul.f32 %v10102_v36, %v3517_v61  ;;  %v3687_v57 = vmul.f32 %v10102_v36, %v3513_v60  ;;  %v12221_v61 = vld [vmem:[#allocation25_spill] sm:$0xff] }
 0x50c   : > { %v3935_v46 = vadd.f32 1.0, %v7502_v63  ;;  %7511 = vpow2.f32 %v6768_v53  ;;  %v10227_v41 = vadd.f32 %v9921_v33, %v3780_v1  ;;  %v10241_v34 = vadd.f32 %v3382_v19, %v3095_v49 }
 0x50d   : > { %7513 = vrcp.f32 %v3936_v44  ;;  %v10230_v10 = vadd.f32 %v9921_v33, %v3779_v56  ;;  %v3720_v2 = vadd.f32 %v3688_v6, %v12218_v24  ;;  %v3719_v39 = vadd.f32 %v3687_v57, %v12219_v51  ;;  %v3528_v27 = vpop.permute.xlu1 %3527  ;;  %v3524_v17 = vpop.permute.xlu0 %3523 }
 0x50e   : > { %v7504_v50 = vpop.eup %7503  ;;  %7515 = vrcp.f32 %v3935_v46  ;;  %v6770_v9 = vmul.f32 -1.442695, %v10227_v41  ;;  %v3690_v37 = vmul.f32 %v10102_v36, %v3528_v27  ;;  %v3689_v14 = vmul.f32 %v10102_v36, %v3524_v17  ;;  %v12223_v17 = vld [vmem:[#allocation155_spill] sm:$0xff] }
 0x50f   : > { %v7506_v21 = vpop.eup %7505  ;;  %v3938_v18 = vadd.f32 1.0, %v7504_v50  ;;  %7517 = vpow2.f32 %v6767_v30  ;;  %v6769_v43 = vmul.f32 -1.442695, %v10230_v10  ;;  %v3756_v32 = vmul.f32 %v9916_v52, %v3720_v2  ;;  %v12222_v2 = vld [vmem:[#allocation69_spill] sm:$0xff] }
 0x510   : > { %v3937_v3 = vadd.f32 1.0, %v7506_v21  ;;  %7519 = vpow2.f32 %v6770_v9  ;;  %v3755_v0 = vmul.f32 %v9916_v52, %v3719_v39  ;;  %v3722_v5 = vadd.f32 %v3690_v37, %v12220_v13 }
 0x511   : > { %7521 = vrcp.f32 %v3938_v18  ;;  %v10244_v62 = vadd.f32 %v9921_v33, %v3756_v32  ;;  %v3721_v60 = vadd.f32 %v3689_v14, %v12221_v61  ;;  %v3539_v28 = vpop.permute.xlu1 %3538  ;;  %v3535_v53 = vpop.permute.xlu0 %3534 }
 0x512   : > { %7523 = vrcp.f32 %v3937_v3  ;;  %v10248_v30 = vadd.f32 %v9921_v33, %v3755_v0  ;;  %v3758_v1 = vmul.f32 %v9916_v52, %v3722_v5  ;;  %v3692_v63 = vmul.f32 %v10102_v36, %v3539_v28  ;;  %v12224_v28 = vld [vmem:[#allocation156_spill] sm:$0xff] }
 0x513   : > { %v7508_v44 = vpop.eup %7507  ;;  %7525 = vpow2.f32 %v6769_v43  ;;  %v6746_v49 = vmul.f32 -1.442695, %v10244_v62  ;;  %v3757_v19 = vmul.f32 %v9916_v52, %v3721_v60  ;;  %v3691_v56 = vmul.f32 %v10102_v36, %v3535_v53 }
 0x514   : > { %v7510_v6 = vpop.eup %7509  ;;  %v3940_v57 = vadd.f32 1.0, %v7508_v44  ;;  %v6745_v46 = vmul.f32 -1.442695, %v10248_v30  ;;  %v10257_v24 = vadd.f32 %v9921_v33, %v3758_v1  ;;  %v3724_v51 = vadd.f32 %v3692_v63, %v12222_v2 }
 0x515   : > { %v3939_v39 = vadd.f32 1.0, %v7510_v6  ;;  %7527 = vpow2.f32 %v6746_v49  ;;  %v10261_v27 = vadd.f32 %v9921_v33, %v3757_v19  ;;  %v3723_v50 = vadd.f32 %v3691_v56, %v12223_v17  ;;  %v3550_v9 = vpop.permute.xlu1 %3549  ;;  %v3546_v37 = vpop.permute.xlu0 %3545 }
 0x516   : > { %v7512_v14 = vpop.eup %7511  ;;  %7529 = vrcp.f32 %v3940_v57  ;;  %v6748_v21 = vmul.f32 -1.442695, %v10257_v24  ;;  %v3760_v18 = vmul.f32 %v9916_v52, %v3724_v51  ;;  %v3694_v43 = vmul.f32 %v10102_v36, %v3550_v9 }
 0x517   : > { %v7514_v32 = vpop.eup %7513  ;;  %7531 = vrcp.f32 %v3939_v39  ;;  %v3942_v3 = vadd.f32 1.0, %v7512_v14  ;;  %v6747_v0 = vmul.f32 -1.442695, %v10261_v27  ;;  %v3759_v13 = vmul.f32 %v9916_v52, %v3723_v50  ;;  %v12225_v39 = vld [vmem:[#allocation38_spill] sm:$0xff] }
 0x518   : > { %v7516_v5 = vpop.eup %7515  ;;  %v4032_v61 = vmul.f32 %v7514_v32, %v10143_v42  ;;  %7533 = vpow2.f32 %v6745_v46  ;;  %v10271_v60 = vadd.f32 %v9921_v33, %v3760_v18  ;;  %v3726_v53 = vadd.f32 %v3694_v43, %v12224_v28 }
 0x519   : > { %v7518_v1 = vpop.eup %7517  ;;  %v4031_v63 = vmul.f32 %v7516_v5, %v10146_v58  ;;  %7535 = vrcp.f32 %v3942_v3  ;;  %v10276_v44 = vadd.f32 %v9921_v33, %v3759_v13  ;;  %v3693_v49 = vmul.f32 %v10102_v36, %v3546_v37  ;;  %v3561_v19 = vpop.permute.xlu1 %3560  ;;  %v12226_v5 = vld [vmem:[#allocation70_spill] sm:$0xff] }
 0x51a   : > { %v3557_v56 = vpop.permute.xlu0 %3556  ;;  %v7520_v6 = vpop.eup %7519  ;;  %4120 = vst.msk [vmem:[#allocation2 + $0xe1] sm:$0xff] %vm618_vm0, %v4032_v61  ;;  %v3941_v42 = vadd.f32 1.0, %v7518_v1  ;;  %7537 = vpow2.f32 %v6748_v21  ;;  %v6750_v57 = vmul.f32 -1.442695, %v10271_v60  ;;  %v3762_v46 = vmul.f32 %v9916_v52, %v3726_v53  ;;  %v12227_v53 = vld [vmem:[#allocation157_spill] sm:$0xff] }
 0x51b   : > { %v7522_v2 = vpop.eup %7521  ;;  %4119 = vst.msk [vmem:[#allocation2 + $0xd9] sm:$0xff] %vm618_vm0, %v4031_v63  ;;  %v3944_v58 = vadd.f32 1.0, %v7520_v6  ;;  %7539 = vpow2.f32 %v6747_v0  ;;  %v6749_v51 = vmul.f32 -1.442695, %v10276_v44  ;;  %v3725_v17 = vadd.f32 %v3693_v49, %v12225_v39 }
 0x51c   : > { %v7524_v50 = vpop.eup %7523  ;;  %v4034_v9 = vmul.f32 %v7522_v2, %v10167_v38  ;;  %7541 = vrcp.f32 %v3941_v42  ;;  %v10287_v37 = vadd.f32 %v9921_v33, %v3762_v46  ;;  %v3696_v14 = vmul.f32 %v10102_v36, %v3561_v19 }
 0x51d   : > { %v7526_v21 = vpop.eup %7525  ;;  %v4033_v18 = vmul.f32 %v7524_v50, %v10170_v16  ;;  %7543 = vrcp.f32 %v3944_v58  ;;  %v3761_v43 = vmul.f32 %v9916_v52, %v3725_v17  ;;  %v3695_v32 = vmul.f32 %v10102_v36, %v3557_v56  ;;  %v3572_v3 = vpop.permute.xlu1 %3571 }
 0x51e   : > { %v3568_v0 = vpop.permute.xlu0 %3567  ;;  %4122 = vst.msk [vmem:[#allocation2 + $0xf9] sm:$0xff] %vm618_vm0, %v4034_v9  ;;  %v3943_v13 = vadd.f32 1.0, %v7526_v21  ;;  %7545 = vpow2.f32 %v6750_v57  ;;  %v6752_v38 = vmul.f32 -1.442695, %v10287_v37  ;;  %v3728_v61 = vadd.f32 %v3696_v14, %v12226_v5 }
 0x51f   : > { %v7528_v28 = vpop.eup %7527  ;;  %4121 = vst.msk [vmem:[#allocation2 + $0xf1] sm:$0xff] %vm618_vm0, %v4033_v18  ;;  %7547 = vpow2.f32 %v6749_v51  ;;  %v10298_v16 = vadd.f32 %v9921_v33, %v3761_v43  ;;  %v3727_v1 = vadd.f32 %v3695_v32, %v12227_v53  ;;  %v3698_v63 = vmul.f32 %v10102_v36, %v3572_v3 }
 0x520   : > { %v7530_v49 = vpop.eup %7529  ;;  %7549 = vrcp.f32 %v3943_v13  ;;  %v3920_v19 = vadd.f32 1.0, %v7528_v28  ;;  %v3764_v56 = vmul.f32 %v9916_v52, %v3728_v61  ;;  %v3697_v6 = vmul.f32 %v10102_v36, %v3568_v0 }
 0x521   : > { %v7532_v42 = vpop.eup %7531  ;;  %v4036_v57 = vmul.f32 %v7530_v49, %v10191_v8  ;;  %7551 = vpow2.f32 %v6752_v38  ;;  %v6751_v46 = vmul.f32 -1.442695, %v10298_v16  ;;  %v3763_v2 = vmul.f32 %v9916_v52, %v3727_v1  ;;  %v3583_v58 = vpop.permute.xlu1 %3582 }
 0x522   : > { %v3579_v51 = vpop.permute.xlu0 %3578  ;;  %v7534_v39 = vpop.eup %7533  ;;  %v4035_v17 = vmul.f32 %v7532_v42, %v10194_v48  ;;  %7553 = vrcp.f32 %v3920_v19  ;;  %v10309_v50 = vadd.f32 %v9921_v33, %v3764_v56  ;;  %v3730_v9 = vadd.f32 %v3698_v63, %v10150_v4 }
 0x523   : > { %v7536_v14 = vpop.eup %7535  ;;  %4124 = vst.msk [vmem:[#allocation2 + $0x111] sm:$0xff] %vm618_vm0, %v4036_v57  ;;  %v3919_v8 = vadd.f32 1.0, %v7534_v39  ;;  %7555 = vpow2.f32 %v6751_v46  ;;  %v10314_v21 = vadd.f32 %v9921_v33, %v3763_v2  ;;  %v3729_v18 = vadd.f32 %v3697_v6, %v10160_v40 }
 0x524   : > { %v7538_v43 = vpop.eup %7537  ;;  %4123 = vst.msk [vmem:[#allocation2 + $0x109] sm:$0xff] %vm618_vm0, %v4035_v17  ;;  %v4038_v48 = vmul.f32 %v7536_v14, %v10207_v47  ;;  %v6754_v32 = vmul.f32 -1.442695, %v10309_v50  ;;  %v3766_v3 = vmul.f32 %v9916_v52, %v3730_v9  ;;  %v3700_v4 = vmul.f32 %v10102_v36, %v3583_v58 }
 0x525   : > { %v7540_v0 = vpop.eup %7539  ;;  %7557 = vrcp.f32 %v3919_v8  ;;  %v3922_v13 = vadd.f32 1.0, %v7538_v43  ;;  %v6753_v38 = vmul.f32 -1.442695, %v10314_v21  ;;  %v3765_v5 = vmul.f32 %v9916_v52, %v3729_v18  ;;  %v3594_v61 = vpop.permute.xlu1 %3593 }
 0x526   : > { %v3590_v40 = vpop.permute.xlu0 %3589  ;;  %v7542_v28 = vpop.eup %7541  ;;  %4126 = vst.msk [vmem:[#allocation2 + $0x129] sm:$0xff] %vm618_vm0, %v4038_v48  ;;  %v3921_v53 = vadd.f32 1.0, %v7540_v0  ;;  %7559 = vpow2.f32 %v6754_v32  ;;  %v10326_v47 = vadd.f32 %v9921_v33, %v3766_v3  ;;  %v3732_v1 = vadd.f32 %v3700_v4, %v10178_v11 }
 0x527   : > { %v7544_v63 = vpop.eup %7543  ;;  %v4037_v49 = vmul.f32 %v7542_v28, %v10210_v45  ;;  %7561 = vrcp.f32 %v3922_v13  ;;  %v10331_v19 = vadd.f32 %v9921_v33, %v3765_v5  ;;  %v3699_v56 = vmul.f32 %v10102_v36, %v3579_v51 }
 0x528   : > { %v7546_v6 = vpop.eup %7545  ;;  %v4040_v42 = vmul.f32 %v7544_v63, %v10227_v41  ;;  %7563 = vrcp.f32 %v3921_v53  ;;  %v6756_v57 = vmul.f32 -1.442695, %v10326_v47  ;;  %v3768_v46 = vmul.f32 %v9916_v52, %v3732_v1 }
 0x529   : > { %v7548_v2 = vpop.eup %7547  ;;  %4125 = vst.msk [vmem:[#allocation2 + $0x121] sm:$0xff] %vm618_vm0, %v4037_v49  ;;  %v3924_v11 = vadd.f32 1.0, %v7546_v6  ;;  %7565 = vpow2.f32 %v6753_v38  ;;  %v6755_v45 = vmul.f32 -1.442695, %v10331_v19  ;;  %v3731_v58 = vadd.f32 %v3699_v56, %v10200_v55  ;;  %v3033_v39 = vpop.permute.xlu1 %3032 }
 0x52a   : > { %v3029_v17 = vpop.permute.xlu0 %3028  ;;  %v7550_v51 = vpop.eup %7549  ;;  %4128 = vst.msk [vmem:[#allocation2 + $0x141] sm:$0xff] %vm618_vm0, %v4040_v42  ;;  %v3923_v41 = vadd.f32 1.0, %v7548_v2  ;;  %7567 = vpow2.f32 %v6756_v57  ;;  %v10342_v9 = vadd.f32 %v9921_v33, %v3768_v46  ;;  %v3702_v14 = vmul.f32 %v10102_v36, %v3594_v61 }
 0x52b   : > { %v7552_v8 = vpop.eup %7551  ;;  %v4039_v18 = vmul.f32 %v7550_v51, %v10230_v10  ;;  %7569 = vrcp.f32 %v3924_v11  ;;  %v3767_v43 = vmul.f32 %v9916_v52, %v3731_v58  ;;  %v3701_v55 = vmul.f32 %v10102_v36, %v3590_v40 }
 0x52c   : > { %v7554_v48 = vpop.eup %7553  ;;  %7571 = vrcp.f32 %v3923_v41  ;;  %v3926_v32 = vadd.f32 1.0, %v7552_v8  ;;  %v6758_v3 = vmul.f32 -1.442695, %v10342_v9  ;;  %v3734_v4 = vadd.f32 %v3702_v14, %v10224_v15 }
 0x52d   : > { %v7556_v0 = vpop.eup %7555  ;;  %4127 = vst.msk [vmem:[#allocation2 + $0x139] sm:$0xff] %vm618_vm0, %v4039_v18  ;;  %v4016_v13 = vmul.f32 %v7554_v48, %v10244_v62  ;;  %7573 = vpow2.f32 %v6755_v45  ;;  %v10353_v10 = vadd.f32 %v9921_v33, %v3767_v43  ;;  %v3733_v38 = vadd.f32 %v3701_v55, %v10241_v34  ;;  %v3660_v5 = vpop.permute.xlu1 %3659  ;;  %v12229_v55 = vld [vmem:[#allocation95_spill] sm:$0xff] }
 0x52e   : > { %v3656_v61 = vpop.permute.xlu0 %3655  ;;  %7575 = vrcp.f32 %v3926_v32  ;;  %v3925_v40 = vadd.f32 1.0, %v7556_v0  ;;  %v3770_v28 = vmul.f32 %v9916_v52, %v3734_v4  ;;  %v3078_v53 = vmul.f32 %v9425_v12, %v3033_v39 }
 0x52f   : > { %v7558_v15 = vpop.eup %7557  ;;  %4104 = vst.msk [vmem:[#allocation2 + $0x21] sm:$0xff] %vm618_vm0, %v4016_v13  ;;  %7577 = vpow2.f32 %v6758_v3  ;;  %v6757_v62 = vmul.f32 -1.442695, %v10353_v10  ;;  %v3769_v1 = vmul.f32 %v9916_v52, %v3733_v38  ;;  %v3077_v63 = vmul.f32 %v9425_v12, %v3029_v17 }
 0x530   : > { %v7560_v49 = vpop.eup %7559  ;;  %v4015_v34 = vmul.f32 %v7558_v15, %v10248_v30  ;;  %7579 = vrcp.f32 %v3925_v40  ;;  %v10364_v56 = vadd.f32 %v9921_v33, %v3770_v28  ;;  %v3110_v6 = vadd.f32 %v3078_v53, %v10106_v26 }
 0x531   : > { %v7562_v42 = vpop.eup %7561  ;;  %v3928_v57 = vadd.f32 1.0, %v7560_v49  ;;  %7581 = vpow2.f32 %v6757_v62  ;;  %v10368_v46 = vadd.f32 %v9921_v33, %v3769_v1  ;;  %v10371_v2 = vadd.f32 %v3077_v63, %v10112_v29  ;;  %v2638_v11 = vpop.permute.xlu1 %2637 }
 0x532   : > { %v2634_v45 = vpop.permute.xlu0 %2633  ;;  %v7564_v58 = vpop.eup %7563  ;;  %4103 = vst.msk [vmem:[#allocation2 + $0x19] sm:$0xff] %vm618_vm0, %v4015_v34  ;;  %v4018_v30 = vmul.f32 %v7562_v42, %v10257_v24  ;;  %v6760_v39 = vmul.f32 -1.442695, %v10364_v56  ;;  %v3714_v26 = vmul.f32 %v10102_v36, %v3660_v5  ;;  %v3713_v17 = vmul.f32 %v10102_v36, %v3656_v61  ;;  %v12228_v24 = vld [vmem:[#allocation94_spill] sm:$0xff] }
 0x533   : > { %v7566_v51 = vpop.eup %7565  ;;  %v4017_v41 = vmul.f32 %v7564_v58, %v10261_v27  ;;  %7583 = vrcp.f32 %v3928_v57  ;;  %v6759_v29 = vmul.f32 -1.442695, %v10368_v46  ;;  %v2674_v14 = vmul.f32 %v9422_v20, %v2638_v11 }
 0x534   : > { %v7568_v8 = vpop.eup %7567  ;;  %4106 = vst.msk [vmem:[#allocation2 + $0x39] sm:$0xff] %vm618_vm0, %v4018_v30  ;;  %v3927_v18 = vadd.f32 1.0, %v7566_v51  ;;  %7585 = vpow2.f32 %v6760_v39  ;;  %v3746_v43 = vadd.f32 %v3714_v26, %v12228_v24  ;;  %v3745_v48 = vadd.f32 %v3713_v17, %v12229_v55  ;;  %v12230_v30 = vld [vmem:[#allocation144_spill] sm:$0xff]  ;;  %v12231_v26 = vld [vmem:[#allocation98_spill] sm:$0xff] }
 0x535   : > { %v7570_v32 = vpop.eup %7569  ;;  %4105 = vst.msk [vmem:[#allocation2 + $0x31] sm:$0xff] %vm618_vm0, %v4017_v41  ;;  %v3930_v3 = vadd.f32 1.0, %v7568_v8  ;;  %7587 = vpow2.f32 %v6759_v29  ;;  %v2706_v27 = vadd.f32 %v2674_v14, %v10071_v23  ;;  %v2673_v4 = vmul.f32 %v9422_v20, %v2634_v45  ;;  %v3352_v0 = vpop.permute.xlu1 %3351 }
 0x536   : > { %v3348_v13 = vpop.permute.xlu0 %3347  ;;  %v7572_v38 = vpop.eup %7571  ;;  %v4020_v5 = vmul.f32 %v7570_v32, %v10271_v60  ;;  %7589 = vrcp.f32 %v3927_v18  ;;  %v3782_v61 = vmul.f32 %v9916_v52, %v3746_v43  ;;  %v3781_v40 = vmul.f32 %v9916_v52, %v3745_v48  ;;  %v10390_v28 = vld [vmem:[#allocation2 + $0x21] sm:$0xff] }
 0x537   : > { %v10392_v53 = vld [vmem:[#allocation2 + $0x22] sm:$0xff]  ;;  %v7574_v15 = vpop.eup %7573  ;;  %v4019_v62 = vmul.f32 %v7572_v38, %v10276_v44  ;;  %7591 = vrcp.f32 %v3930_v3  ;;  %v2705_v20 = vadd.f32 %v2673_v4, %v10077_v35  ;;  %v3397_v23 = vmul.f32 %v9428_v22, %v3352_v0 }
 0x538   : > { %v7576_v1 = vpop.eup %7575  ;;  %4108 = vst.msk [vmem:[#allocation2 + $0x51] sm:$0xff] %vm618_vm0, %v4020_v5  ;;  %v3929_v60 = vadd.f32 1.0, %v7574_v15  ;;  %v10399_v63 = vadd.f32 %v9921_v33, %v3782_v61  ;;  %v10402_v49 = vadd.f32 %v9921_v33, %v3781_v40  ;;  %v3396_v34 = vmul.f32 %v9428_v22, %v3348_v13  ;;  %v12232_v48 = vld [vmem:[#allocation39_spill] sm:$0xff] }
 0x539   : > { %v7578_v42 = vpop.eup %7577  ;;  %4107 = vst.msk [vmem:[#allocation2 + $0x49] sm:$0xff] %vm618_vm0, %v4019_v62  ;;  %v4022_v44 = vmul.f32 %v7576_v1, %v10287_v37  ;;  %v3429_v35 = vadd.f32 %v3397_v23, %v3110_v6  ;;  %v3044_v57 = vpop.permute.xlu1 %3043  ;;  %v10407_v45 = vld [vmem:[#allocation2 + $0x18] sm:$0xff]  ;;  %v10409_v58 = vld [vmem:[#allocation2 + $0x20] sm:$0xff]  ;;  %v4575_v39 = vmul.f32 %v12230_v30, %v10390_v28  ;;  %v4675_v17 = vmul.f32 %v12231_v26, %v10392_v53 }
 0x53a   : > { %v3040_v11 = vpop.permute.xlu0 %3039  ;;  %v7580_v51 = vpop.eup %7579  ;;  %7593 = vrcp.f32 %v3929_v60  ;;  %v3932_v41 = vadd.f32 1.0, %v7578_v42  ;;  %v6772_v29 = vmul.f32 -1.442695, %v10399_v63  ;;  %v6771_v37 = vmul.f32 -1.442695, %v10402_v49  ;;  %v10417_v6 = vld [vmem:[#allocation2 + $0x19] sm:$0xff] }
 0x53b   : > { %v7582_v14 = vpop.eup %7581  ;;  %4110 = vst.msk [vmem:[#allocation2 + $0x69] sm:$0xff] %vm618_vm0, %v4022_v44  ;;  %v4021_v8 = vmul.f32 %v7580_v51, %v10298_v16  ;;  %v3428_v18 = vadd.f32 %v3396_v34, %v10371_v2  ;;  %v3080_v24 = vmul.f32 %v9425_v12, %v3044_v57  ;;  %v3079_v43 = vmul.f32 %v9425_v12, %v3040_v11  ;;  %v10431_v12 = vld [vmem:[#allocation2 + $0x1a] sm:$0xff] }
 0x53c   : > { %7595 = vrcp.f32 %v3932_v41  ;;  %v3931_v55 = vadd.f32 1.0, %v7582_v14  ;;  %v4474_v32 = vmul.f32 %v12232_v48, %v10407_v45  ;;  %v4475_v3 = vmul.f32 %v12232_v48, %v10409_v58 }
 0x53d   : > { %v7584_v4 = vpop.eup %7583  ;;  %4109 = vst.msk [vmem:[#allocation2 + $0x61] sm:$0xff] %vm618_vm0, %v4021_v8  ;;  %7597 = vpow2.f32 %v6772_v29  ;;  %v3112_v0 = vadd.f32 %v3080_v24, %v2706_v27  ;;  %v3111_v16 = vadd.f32 %v3079_v43, %v2705_v20  ;;  %v3671_v13 = vpop.permute.xlu1 %3670  ;;  %v4574_v38 = vmul.f32 %v12230_v30, %v10417_v6  ;;  %v10449_v8 = vld [vmem:[#allocation2 + $0x31] sm:$0xff] }
 0x53e   : > { %v3667_v2 = vpop.permute.xlu0 %3666  ;;  %v7586_v5 = vpop.eup %7585  ;;  %v4024_v61 = vmul.f32 %v7584_v4, %v10309_v50  ;;  %7599 = vrcp.f32 %v3931_v55  ;;  %v3716_v40 = vmul.f32 %v10102_v36, %v3671_v13  ;;  %v4506_v27 = vadd.f32 %v4474_v32, %v10140_v59  ;;  %v10442_v59 = vld [vmem:[#allocation2 + $0x30] sm:$0xff]  ;;  %v12233_v32 = vld [vmem:[#allocation99_spill] sm:$0xff]  ;;  %v10465_v13 = vld [vmem:[#allocation2 + $0x39] sm:$0xff] }
 0x53f   : > { %v3715_v15 = vmul.f32 %v10102_v36, %v3667_v2  ;;  %v7588_v62 = vpop.eup %7587  ;;  %v3934_v23 = vadd.f32 1.0, %v7586_v5  ;;  %7601 = vpow2.f32 %v6771_v37  ;;  %v4507_v20 = vadd.f32 %v4475_v3, %v10154_v25  ;;  %v10444_v25 = vld [vmem:[#allocation2 + $0x38] sm:$0xff] }
 0x540   : > { %v7590_v1 = vpop.eup %7589  ;;  %4112 = vst.msk [vmem:[#allocation2 + $0x81] sm:$0xff] %vm618_vm0, %v4024_v61  ;;  %v3933_v60 = vadd.f32 1.0, %v7588_v62  ;;  %v3748_v34 = vadd.f32 %v3716_v40, %v3429_v35  ;;  %v4674_v50 = vmul.f32 %v12231_v26, %v10431_v12  ;;  %v4606_v41 = vadd.f32 %v4574_v38, %v4506_v27  ;;  %v12234_v61 = vld [vmem:[#allocation73_spill] sm:$0xff] }
 0x541   : > { %v3747_v42 = vadd.f32 %v3715_v15, %v3428_v18  ;;  %v7592_v44 = vpop.eup %7591  ;;  %v4023_v57 = vmul.f32 %v7590_v1, %v10314_v21  ;;  %7603 = vrcp.f32 %v3934_v23  ;;  %v3363_v11 = vpop.permute.xlu1 %3362  ;;  %v4607_v29 = vadd.f32 %v4575_v39, %v4507_v20 }
 0x542   : > { %v3359_v51 = vpop.permute.xlu0 %3358  ;;  %v4026_v37 = vmul.f32 %v7592_v44, %v10326_v47  ;;  %7605 = vrcp.f32 %v3933_v60  ;;  %v3784_v35 = vmul.f32 %v9916_v52, %v3748_v34  ;;  %v3399_v21 = vmul.f32 %v9428_v22, %v3363_v11  ;;  %v10480_v11 = vld [vmem:[#allocation2 + $0x3a] sm:$0xff] }
 0x543   : > { %v3783_v14 = vmul.f32 %v9916_v52, %v3747_v42  ;;  %4111 = vst.msk [vmem:[#allocation2 + $0x79] sm:$0xff] %vm618_vm0, %v4023_v57  ;;  %v3398_v18 = vmul.f32 %v9428_v22, %v3359_v51  ;;  %v4706_v39 = vadd.f32 %v4674_v50, %v4606_v41  ;;  %v4707_v24 = vadd.f32 %v4675_v17, %v4607_v29  ;;  %v10478_v57 = vld [vmem:[#allocation2 + $0x32] sm:$0xff] }
 0x544   : > { %v7594_v43 = vpop.eup %7593  ;;  %4114 = vst.msk [vmem:[#allocation2 + $0x99] sm:$0xff] %vm618_vm0, %v4026_v37  ;;  %v10456_v47 = vadd.f32 %v9921_v33, %v3784_v35  ;;  %v4775_v3 = vmul.f32 %v12233_v32, %v10442_v59  ;;  %v4776_v4 = vmul.f32 %v12233_v32, %v10444_v25  ;;  %v3431_v17 = vadd.f32 %v3399_v21, %v3112_v0 }
 0x545   : > { %v10459_v55 = vadd.f32 %v9921_v33, %v3783_v14  ;;  %v4025_v22 = vmul.f32 %v7594_v43, %v10331_v19  ;;  %v3430_v2 = vadd.f32 %v3398_v18, %v3111_v16  ;;  %v3682_v38 = vpop.permute.xlu1 %3681  ;;  %v4875_v40 = vmul.f32 %v12234_v61, %v10449_v8  ;;  %v10486_v14 = vld [vmem:[#allocation6 + $0x8] ss:$0 sm:$0xff] }
 0x546   : > { %v3678_v5 = vpop.permute.xlu0 %3677  ;;  %v7596_v15 = vpop.eup %7595  ;;  %v6774_v62 = vmul.f32 -1.442695, %v10456_v47  ;;  %v3718_v27 = vmul.f32 %v10102_v36, %v3682_v38  ;;  %v4807_v0 = vadd.f32 %v4775_v3, %v4706_v39  ;;  %v4808_v16 = vadd.f32 %v4776_v4, %v4707_v24 }
 0x547   : > { %v6773_v23 = vmul.f32 -1.442695, %v10459_v55  ;;  %v3717_v20 = vmul.f32 %v10102_v36, %v3678_v5  ;;  %v7598_v1 = vpop.eup %7597  ;;  %4113 = vst.msk [vmem:[#allocation2 + $0x91] sm:$0xff] %vm618_vm0, %v4025_v22  ;;  %v4028_v19 = vmul.f32 %v7596_v15, %v10342_v9  ;;  %v4876_v60 = vmul.f32 %v12234_v61, %v10465_v13 }
 0x548   : > { %v7600_v34 = vpop.eup %7599  ;;  %v3946_v42 = vadd.f32 1.0, %v7598_v1  ;;  %7607 = vpow2.f32 %v6774_v62  ;;  %v3750_v50 = vadd.f32 %v3718_v27, %v3431_v17  ;;  %v4907_v9 = vadd.f32 %v4875_v40, %v4807_v0 }
 0x549   : > { %v3749_v44 = vadd.f32 %v3717_v20, %v3430_v2  ;;  %v7602_v36 = vpop.eup %7601  ;;  %4116 = vst.msk [vmem:[#allocation2 + $0xb1] sm:$0xff] %vm618_vm0, %v4028_v19  ;;  %v4027_v51 = vmul.f32 %v7600_v34, %v10353_v10  ;;  %7609 = vpow2.f32 %v6773_v23  ;;  %v4908_v41 = vadd.f32 %v4876_v60, %v4808_v16  ;;  %v10529_v19 = vld [vmem:[#allocation2 + $0x48] sm:$0xff] }
 0x54a   : > { %7611 = vrcp.f32 %v3946_v42  ;;  %v3945_v29 = vadd.f32 1.0, %v7602_v36  ;;  %v3786_v37 = vmul.f32 %v9916_v52, %v3750_v50  ;;  %v4975_v18 = vmul.f32 %v10486_v14, %v10478_v57  ;;  %v10537_v42 = vld [vmem:[#allocation2 + $0x50] sm:$0xff] }
 0x54b   : > { %v3785_v35 = vmul.f32 %v9916_v52, %v3749_v44  ;;  %v7604_v21 = vpop.eup %7603  ;;  %4115 = vst.msk [vmem:[#allocation2 + $0xa9] sm:$0xff] %vm618_vm0, %v4027_v51  ;;  %v4976_v10 = vmul.f32 %v10486_v14, %v10480_v11  ;;  %v4176_v39 = vmul.f32 %v10407_v45, %v9924_v7  ;;  %v4177_v24 = vmul.f32 %v10409_v58, %v9924_v7  ;;  %v10539_v50 = vld [vmem:[#allocation2 + $0x51] sm:$0xff] }
 0x54c   : > { %v7606_v43 = vpop.eup %7605  ;;  %v4030_v52 = vmul.f32 %v7604_v21, %v10364_v56  ;;  %7613 = vrcp.f32 %v3945_v29  ;;  %v10499_v3 = vadd.f32 %v9921_v33, %v3786_v37  ;;  %v5007_v17 = vadd.f32 %v4975_v18, %v4907_v9  ;;  %v10543_v29 = vld [vmem:[#allocation2 + $0x49] sm:$0xff] }
 0x54d   : > { %v10502_v4 = vadd.f32 %v9921_v33, %v3785_v35  ;;  %v4029_v22 = vmul.f32 %v7606_v43, %v10368_v46  ;;  %v5008_v2 = vadd.f32 %v4976_v10, %v4908_v41  ;;  %v4276_v45 = vmul.f32 %v10417_v6, %v9927_v54  ;;  %v12235_v46 = vld [vmem:[#allocation100_spill] sm:$0xff] }
 0x54e   : > { %4118 = vst.msk [vmem:[#allocation2 + $0xc9] sm:$0xff] %vm618_vm0, %v4030_v52  ;;  %v6776_v58 = vmul.f32 -1.442695, %v10499_v3  ;;  %v4277_v38 = vmul.f32 %v10390_v28, %v9927_v54  ;;  %v4376_v33 = vmul.f32 %v10431_v12, %v9930_v31  ;;  %v5043_v5 = vmul.f32 %v12235_v46, %v5007_v17  ;;  %v12236_v12 = vld [vmem:[#allocation101_spill] sm:$0xff] }
 0x54f   : > { %v6775_v56 = vmul.f32 -1.442695, %v10502_v4  ;;  %4117 = vst.msk [vmem:[#allocation2 + $0xc1] sm:$0xff] %vm618_vm0, %v4029_v22  ;;  %v5044_v40 = vmul.f32 %v12235_v46, %v5008_v2  ;;  %v4308_v15 = vadd.f32 %v4276_v45, %v4176_v39  ;;  %v4377_v6 = vmul.f32 %v10392_v53, %v9930_v31  ;;  %v10549_v39 = vld [vmem:[#allocation2 + $0x4a] sm:$0xff]  ;;  %v10554_v22 = vld [vmem:[#allocation2 + $0x52] sm:$0xff] }
 0x550   : > { %7615 = vpow2.f32 %v6776_v58  ;;  %v4309_v62 = vadd.f32 %v4277_v38, %v4177_v24  ;;  %v4476_v23 = vmul.f32 %v10442_v59, %v12232_v48  ;;  %v4477_v28 = vmul.f32 %v10444_v25, %v12232_v48 }
 0x551   : > { %7617 = vpow2.f32 %v6775_v56  ;;  %v10524_v27 = vadd.f32 %v12236_v12, %v5043_v5  ;;  %v10527_v20 = vadd.f32 %v12236_v12, %v5044_v40  ;;  %v4408_v1 = vadd.f32 %v4376_v33, %v4308_v15 }
 0x552   : > { %v7608_v0 = vpop.eup %7607  ;;  %v4409_v53 = vadd.f32 %v4377_v6, %v4309_v62  ;;  %v4576_v16 = vmul.f32 %v10449_v8, %v12230_v30  ;;  %v4577_v60 = vmul.f32 %v10465_v13, %v12230_v30  ;;  %v4676_v34 = vmul.f32 %v10478_v57, %v12231_v26 }
 0x553   : > { %v7610_v44 = vpop.eup %7609  ;;  %v3948_v36 = vadd.f32 1.0, %v7608_v0  ;;  %v6778_v51 = vmul.f32 -1.442695, %v10524_v27  ;;  %v6779_v9 = vmul.f32 -1.442695, %v10527_v20  ;;  %v4508_v41 = vadd.f32 %v4476_v23, %v4408_v1 }
 0x554   : > { %v7612_v37 = vpop.eup %7611  ;;  %v3947_v35 = vadd.f32 1.0, %v7610_v44  ;;  %v4509_v21 = vadd.f32 %v4477_v28, %v4409_v53  ;;  %v4677_v18 = vmul.f32 %v10480_v11, %v12231_v26  ;;  %v4777_v10 = vmul.f32 %v12233_v32, %v10529_v19 }
 0x555   : > { %v4042_v24 = vmul.f32 %v7612_v37, %v10399_v63  ;;  %7619 = vrcp.f32 %v3948_v36  ;;  %v4608_v43 = vadd.f32 %v4576_v16, %v4508_v41  ;;  %v4778_v52 = vmul.f32 %v12233_v32, %v10537_v42  ;;  %v10587_v41 = vld [vmem:[#allocation2 + $0x68] sm:$0xff] }
 0x556   : > { %v7614_v17 = vpop.eup %7613  ;;  %7621 = vrcp.f32 %v3947_v35  ;;  %v4609_v2 = vadd.f32 %v4577_v60, %v4509_v21  ;;  %v4877_v45 = vmul.f32 %v12234_v61, %v10543_v29  ;;  %v4878_v58 = vmul.f32 %v12234_v61, %v10539_v50 }
 0x557   : > { %4130 = vst.msk [vmem:[#allocation2 + $0x159] sm:$0xff] %vm618_vm0, %v4042_v24  ;;  %v4041_v63 = vmul.f32 %v7614_v17, %v10402_v49  ;;  %7623 = vpow2.f32 %v6778_v51  ;;  %v4708_v56 = vadd.f32 %v4676_v34, %v4608_v43  ;;  %v4977_v38 = vmul.f32 %v10486_v14, %v10549_v39  ;;  %v10596_v17 = vld [vmem:[#allocation2 + $0x61] sm:$0xff] }
 0x558   : > { %7625 = vpow2.f32 %v6779_v9  ;;  %v4709_v33 = vadd.f32 %v4677_v18, %v4609_v2  ;;  %v4978_v5 = vmul.f32 %v10486_v14, %v10554_v22  ;;  %v4178_v40 = vmul.f32 %v10442_v59, %v9924_v7  ;;  %v10585_v9 = vld [vmem:[#allocation2 + $0x60] sm:$0xff]  ;;  %v10598_v2 = vld [vmem:[#allocation2 + $0x69] sm:$0xff] }
 0x559   : > { %4129 = vst.msk [vmem:[#allocation2 + $0x151] sm:$0xff] %vm618_vm0, %v4041_v63  ;;  %v4809_v15 = vadd.f32 %v4777_v10, %v4708_v56  ;;  %v4179_v6 = vmul.f32 %v10444_v25, %v9924_v7  ;;  %v4278_v49 = vmul.f32 %v10449_v8, %v9927_v54  ;;  %v4279_v62 = vmul.f32 %v10465_v13, %v9927_v54 }
 0x55a   : > { %v7616_v23 = vpop.eup %7615  ;;  %v4810_v28 = vadd.f32 %v4778_v52, %v4709_v33  ;;  %v4378_v1 = vmul.f32 %v10478_v57, %v9930_v31  ;;  %v4379_v59 = vmul.f32 %v10480_v11, %v9930_v31  ;;  %v4478_v0 = vmul.f32 %v10529_v19, %v12232_v48 }
 0x55b   : > { %v7618_v53 = vpop.eup %7617  ;;  %v3950_v16 = vadd.f32 1.0, %v7616_v23  ;;  %v4909_v25 = vadd.f32 %v4877_v45, %v4809_v15  ;;  %v4310_v60 = vadd.f32 %v4278_v49, %v4178_v40  ;;  %v4311_v34 = vadd.f32 %v4279_v62, %v4179_v6  ;;  %v10610_v49 = vld [vmem:[#allocation2 + $0x62] sm:$0xff]  ;;  %v10612_v62 = vld [vmem:[#allocation2 + $0x6a] sm:$0xff] }
 0x55c   : > { %v3949_v8 = vadd.f32 1.0, %v7618_v53  ;;  %v4910_v44 = vadd.f32 %v4878_v58, %v4810_v28  ;;  %v4479_v13 = vmul.f32 %v10537_v42, %v12232_v48  ;;  %v4578_v36 = vmul.f32 %v10543_v29, %v12230_v30 }
 0x55d   : > { %7627 = vrcp.f32 %v3950_v16  ;;  %v5009_v57 = vadd.f32 %v4977_v38, %v4909_v25  ;;  %v4410_v51 = vadd.f32 %v4378_v1, %v4310_v60  ;;  %v4411_v11 = vadd.f32 %v4379_v59, %v4311_v34 }
 0x55e   : > { %7629 = vrcp.f32 %v3949_v8  ;;  %v5010_v37 = vadd.f32 %v4978_v5, %v4910_v44  ;;  %v4579_v35 = vmul.f32 %v10539_v50, %v12230_v30  ;;  %v4678_v21 = vmul.f32 %v10549_v39, %v12231_v26 }
 0x55f   : > { %v7620_v18 = vpop.eup %7619  ;;  %v5045_v10 = vmul.f32 %v12235_v46, %v5009_v57  ;;  %v4510_v24 = vadd.f32 %v4478_v0, %v4410_v51  ;;  %v4511_v43 = vadd.f32 %v4479_v13, %v4411_v11  ;;  %v4679_v52 = vmul.f32 %v10554_v22, %v12231_v26 }
 0x560   : > { %v7622_v45 = vpop.eup %7621  ;;  %v4044_v58 = vmul.f32 %v7620_v18, %v10456_v47  ;;  %v5046_v63 = vmul.f32 %v12235_v46, %v5010_v37  ;;  %v4779_v56 = vmul.f32 %v12233_v32, %v10585_v9  ;;  %v4780_v38 = vmul.f32 %v12233_v32, %v10587_v41 }
 0x561   : > { %v7624_v33 = vpop.eup %7623  ;;  %v4043_v5 = vmul.f32 %v7622_v45, %v10459_v55  ;;  %v10608_v40 = vadd.f32 %v12236_v12, %v5045_v10  ;;  %v4610_v15 = vadd.f32 %v4578_v36, %v4510_v24  ;;  %v4611_v6 = vadd.f32 %v4579_v35, %v4511_v43  ;;  %v10645_v45 = vld [vmem:[#allocation2 + $0x78] sm:$0xff] }
 0x562   : > { %v7626_v47 = vpop.eup %7625  ;;  %4132 = vst.msk [vmem:[#allocation2 + $0x171] sm:$0xff] %vm618_vm0, %v4044_v58  ;;  %v5207_v23 = vadd.f32 1.0, %v7624_v33  ;;  %v10616_v28 = vadd.f32 %v12236_v12, %v5046_v63  ;;  %v4879_v1 = vmul.f32 %v12234_v61, %v10596_v17  ;;  %v4880_v55 = vmul.f32 %v12234_v61, %v10598_v2 }
 0x563   : > { %4131 = vst.msk [vmem:[#allocation2 + $0x169] sm:$0xff] %vm618_vm0, %v4043_v5  ;;  %v5208_v59 = vadd.f32 1.0, %v7626_v47  ;;  %v6780_v0 = vmul.f32 -1.442695, %v10608_v40  ;;  %v4710_v53 = vadd.f32 %v4678_v21, %v4610_v15  ;;  %v4711_v16 = vadd.f32 %v4679_v52, %v4611_v6  ;;  %v10663_v15 = vld [vmem:[#allocation2 + $0x81] sm:$0xff] }
 0x564   : > { %7631 = vrcp.f32 %v5207_v23  ;;  %v6781_v25 = vmul.f32 -1.442695, %v10616_v28  ;;  %v4979_v60 = vmul.f32 %v10486_v14, %v10610_v49  ;;  %v4980_v34 = vmul.f32 %v10486_v14, %v10612_v62  ;;  %v10665_v6 = vld [vmem:[#allocation2 + $0x7a] sm:$0xff] }
 0x565   : > { %7633 = vrcp.f32 %v5208_v59  ;;  %v4811_v8 = vadd.f32 %v4779_v56, %v4710_v53  ;;  %v4812_v44 = vadd.f32 %v4780_v38, %v4711_v16  ;;  %v4180_v13 = vmul.f32 %v10529_v19, %v9924_v7  ;;  %v10671_v59 = vld [vmem:[#allocation2 + $0x82] sm:$0xff] }
 0x566   : > { %7635 = vpow2.f32 %v6780_v0  ;;  %v4181_v36 = vmul.f32 %v10537_v42, %v9924_v7  ;;  %v4280_v57 = vmul.f32 %v10543_v29, %v9927_v54  ;;  %v4281_v51 = vmul.f32 %v10539_v50, %v9927_v54 }
 0x567   : > { %v7628_v11 = vpop.eup %7627  ;;  %7637 = vpow2.f32 %v6781_v25  ;;  %v4911_v37 = vadd.f32 %v4879_v1, %v4811_v8  ;;  %v4912_v35 = vadd.f32 %v4880_v55, %v4812_v44  ;;  %v4380_v21 = vmul.f32 %v10549_v39, %v9930_v31 }
 0x568   : > { %v7630_v18 = vpop.eup %7629  ;;  %v4046_v19 = vmul.f32 %v7628_v11, %v10499_v3  ;;  %v4312_v10 = vadd.f32 %v4280_v57, %v4180_v13  ;;  %v4313_v24 = vadd.f32 %v4281_v51, %v4181_v36  ;;  %v4381_v42 = vmul.f32 %v10554_v22, %v9930_v31  ;;  %v10652_v22 = vld [vmem:[#allocation2 + $0x80] sm:$0xff] }
 0x569   : > { %v4045_v29 = vmul.f32 %v7630_v18, %v10502_v4  ;;  %v5011_v43 = vadd.f32 %v4979_v60, %v4911_v37  ;;  %v5012_v52 = vadd.f32 %v4980_v34, %v4912_v35  ;;  %v4480_v50 = vmul.f32 %v10585_v9, %v12232_v48  ;;  %v10654_v4 = vld [vmem:[#allocation2 + $0x79] sm:$0xff] }
 0x56a   : > { %4134 = vst.msk [vmem:[#allocation2 + $0x189] sm:$0xff] %vm618_vm0, %v4046_v19  ;;  %v4412_v39 = vadd.f32 %v4380_v21, %v4312_v10  ;;  %v4413_v58 = vadd.f32 %v4381_v42, %v4313_v24  ;;  %v4481_v3 = vmul.f32 %v10587_v41, %v12232_v48  ;;  %v4580_v63 = vmul.f32 %v10596_v17, %v12230_v30 }
 0x56b   : > { %4133 = vst.msk [vmem:[#allocation2 + $0x181] sm:$0xff] %vm618_vm0, %v4045_v29  ;;  %v5047_v56 = vmul.f32 %v12235_v46, %v5011_v43  ;;  %v5048_v38 = vmul.f32 %v12235_v46, %v5012_v52  ;;  %v4581_v33 = vmul.f32 %v10598_v2, %v12230_v30  ;;  %v4680_v5 = vmul.f32 %v10610_v49, %v12231_v26 }
 0x56c   : > { %v4512_v47 = vadd.f32 %v4480_v50, %v4412_v39  ;;  %v4513_v23 = vadd.f32 %v4481_v3, %v4413_v58  ;;  %v4681_v1 = vmul.f32 %v10612_v62, %v12231_v26  ;;  %v4781_v55 = vmul.f32 %v12233_v32, %v10645_v45 }
 0x56d   : > { %v10674_v0 = vadd.f32 %v12236_v12, %v5047_v56  ;;  %v10677_v53 = vadd.f32 %v12236_v12, %v5048_v38  ;;  %v4782_v16 = vmul.f32 %v12233_v32, %v10652_v22  ;;  %v4881_v25 = vmul.f32 %v12234_v61, %v10654_v4 }
 0x56e   : > { %v7632_v60 = vpop.eup %7631  ;;  %v4612_v34 = vadd.f32 %v4580_v63, %v4512_v47  ;;  %v4613_v8 = vadd.f32 %v4581_v33, %v4513_v23  ;;  %v4882_v44 = vmul.f32 %v12234_v61, %v10663_v15  ;;  %v4981_v13 = vmul.f32 %v10486_v14, %v10665_v6  ;;  %v10712_v33 = vld [vmem:[#allocation2 + $0x98] sm:$0xff] }
 0x56f   : > { %v7634_v36 = vpop.eup %7633  ;;  %v5303_v57 = vmul.f32 %v7632_v60, %v10524_v27  ;;  %v6782_v51 = vmul.f32 -1.442695, %v10674_v0  ;;  %v6783_v11 = vmul.f32 -1.442695, %v10677_v53  ;;  %v4982_v37 = vmul.f32 %v10486_v14, %v10671_v59  ;;  %v10718_v23 = vld [vmem:[#allocation2 + $0x91] sm:$0xff] }
 0x570   : > { %v7636_v35 = vpop.eup %7635  ;;  %v5304_v21 = vmul.f32 %v7634_v36, %v10527_v20  ;;  %v4712_v18 = vadd.f32 %v4680_v5, %v4612_v34  ;;  %v4713_v19 = vadd.f32 %v4681_v1, %v4613_v8  ;;  %v4182_v10 = vmul.f32 %v10585_v9, %v9924_v7  ;;  %v10720_v1 = vld [vmem:[#allocation2 + $0x99] sm:$0xff] }
 0x571   : > { %v7638_v24 = vpop.eup %7637  ;;  %v5209_v42 = vadd.f32 1.0, %v7636_v35  ;;  %7639 = vpow2.f32 %v6782_v51  ;;  %v4183_v27 = vmul.f32 %v10587_v41, %v9924_v7  ;;  %v4282_v29 = vmul.f32 %v10596_v17, %v9927_v54  ;;  %v10726_v34 = vld [vmem:[#allocation2 + $0x92] sm:$0xff]  ;;  %v10728_v8 = vld [vmem:[#allocation2 + $0x9a] sm:$0xff] }
 0x572   : > { %v5335_v43 = vpack.c.bf16 %v5304_v21, %v5303_v57  ;;  %v5210_v52 = vadd.f32 1.0, %v7638_v24  ;;  %7641 = vpow2.f32 %v6783_v11  ;;  %v4813_v50 = vadd.f32 %v4781_v55, %v4712_v18 }
 0x573   : > { %7643 = vrcp.f32 %v5209_v42  ;;  %v4814_v20 = vadd.f32 %v4782_v16, %v4713_v19  ;;  %v4283_v39 = vmul.f32 %v10598_v2, %v9927_v54  ;;  %v4314_v58 = vadd.f32 %v4282_v29, %v4182_v10  ;;  %v10710_v2 = vld [vmem:[#allocation2 + $0x90] sm:$0xff] }
 0x574   : > { %7200 = vmatprep.mubr.msk.bf16.mxu0 %vm618_vm0, %v5335_v43  ;;  %7645 = vrcp.f32 %v5210_v52  ;;  %v4913_v9 = vadd.f32 %v4881_v25, %v4813_v50  ;;  %v4382_v41 = vmul.f32 %v10610_v49, %v9930_v31  ;;  %v4383_v17 = vmul.f32 %v10612_v62, %v9930_v31 }
 0x575   : > { %v4914_v3 = vadd.f32 %v4882_v44, %v4814_v20  ;;  %v4315_v63 = vadd.f32 %v4283_v39, %v4183_v27  ;;  %v4482_v56 = vmul.f32 %v10645_v45, %v12232_v48  ;;  %v4483_v38 = vmul.f32 %v10652_v22, %v12232_v48 }
 0x576   : > { %v5013_v5 = vadd.f32 %v4981_v13, %v4913_v9  ;;  %v4414_v47 = vadd.f32 %v4382_v41, %v4314_v58  ;;  %v4582_v49 = vmul.f32 %v10654_v4, %v12230_v30  ;;  %v4583_v62 = vmul.f32 %v10663_v15, %v12230_v30 }
 0x577   : > { %v5014_v55 = vadd.f32 %v4982_v37, %v4914_v3  ;;  %v4415_v16 = vadd.f32 %v4383_v17, %v4315_v63  ;;  %v4682_v25 = vmul.f32 %v10665_v6, %v12231_v26  ;;  %v4683_v60 = vmul.f32 %v10671_v59, %v12231_v26 }
 0x578   : > { %v5049_v44 = vmul.f32 %v12235_v46, %v5013_v5  ;;  %v4514_v13 = vadd.f32 %v4482_v56, %v4414_v47  ;;  %v4783_v36 = vmul.f32 %v12233_v32, %v10710_v2  ;;  %v4784_v57 = vmul.f32 %v12233_v32, %v10712_v33 }
 0x579   : > { %v5050_v51 = vmul.f32 %v12235_v46, %v5014_v55  ;;  %v4515_v11 = vadd.f32 %v4483_v38, %v4415_v16  ;;  %v4883_v37 = vmul.f32 %v12234_v61, %v10718_v23  ;;  %v4884_v35 = vmul.f32 %v12234_v61, %v10720_v1 }
 0x57a   : > { %v10741_v21 = vadd.f32 %v12236_v12, %v5049_v44  ;;  %v4614_v18 = vadd.f32 %v4582_v49, %v4514_v13  ;;  %v4983_v19 = vmul.f32 %v10486_v14, %v10726_v34  ;;  %v4984_v10 = vmul.f32 %v10486_v14, %v10728_v8  ;;  %v10770_v13 = vld [vmem:[#allocation2 + $0xa8] sm:$0xff] }
 0x57b   : > { %v7640_v24 = vpop.eup %7639  ;;  %v10748_v42 = vadd.f32 %v12236_v12, %v5050_v51  ;;  %v4615_v27 = vadd.f32 %v4583_v62, %v4515_v11  ;;  %v4184_v29 = vmul.f32 %v10645_v45, %v9924_v7  ;;  %v4185_v43 = vmul.f32 %v10652_v22, %v9924_v7 }
 0x57c   : > { %v7642_v52 = vpop.eup %7641  ;;  %v5211_v50 = vadd.f32 1.0, %v7640_v24  ;;  %v6784_v20 = vmul.f32 -1.442695, %v10741_v21  ;;  %v4714_v39 = vadd.f32 %v4682_v25, %v4614_v18  ;;  %v4284_v58 = vmul.f32 %v10654_v4, %v9927_v54 }
 0x57d   : > { %v7644_v9 = vpop.eup %7643  ;;  %v5212_v41 = vadd.f32 1.0, %v7642_v52  ;;  %v6785_v17 = vmul.f32 -1.442695, %v10748_v42  ;;  %v4715_v3 = vadd.f32 %v4683_v60, %v4615_v27  ;;  %v4285_v63 = vmul.f32 %v10663_v15, %v9927_v54  ;;  %v10788_v27 = vld [vmem:[#allocation2 + $0xaa] sm:$0xff] }
 0x57e   : > { %v7646_v45 = vpop.eup %7645  ;;  %v5305_v56 = vmul.f32 %v7644_v9, %v10608_v40  ;;  %7647 = vrcp.f32 %v5211_v50  ;;  %v4815_v22 = vadd.f32 %v4783_v36, %v4714_v39  ;;  %v4316_v38 = vadd.f32 %v4284_v58, %v4184_v29  ;;  %v10772_v36 = vld [vmem:[#allocation2 + $0xb0] sm:$0xff] }
 0x57f   : > { %v5306_v5 = vmul.f32 %v7646_v45, %v10616_v28  ;;  %7649 = vrcp.f32 %v5212_v41  ;;  %v4816_v47 = vadd.f32 %v4784_v57, %v4715_v3  ;;  %v4317_v49 = vadd.f32 %v4285_v63, %v4185_v43 }
 0x580   : > { %7651 = vpow2.f32 %v6784_v20  ;;  %v4915_v4 = vadd.f32 %v4883_v37, %v4815_v22  ;;  %v4384_v62 = vmul.f32 %v10665_v6, %v9930_v31  ;;  %v4385_v55 = vmul.f32 %v10671_v59, %v9930_v31  ;;  %v10774_v6 = vld [vmem:[#allocation2 + $0xa9] sm:$0xff]  ;;  %v10783_v37 = vld [vmem:[#allocation2 + $0xb1] sm:$0xff] }
 0x581   : > { %v5336_v15 = vpack.c.bf16 %v5306_v5, %v5305_v56  ;;  %7653 = vpow2.f32 %v6785_v17  ;;  %v4916_v16 = vadd.f32 %v4884_v35, %v4816_v47  ;;  %v4484_v40 = vmul.f32 %v10710_v2, %v12232_v48 }
 0x582   : > { %v5015_v25 = vadd.f32 %v4983_v19, %v4915_v4  ;;  %v4416_v60 = vadd.f32 %v4384_v62, %v4316_v38  ;;  %v4417_v28 = vadd.f32 %v4385_v55, %v4317_v49  ;;  %v4485_v44 = vmul.f32 %v10712_v33, %v12232_v48 }
 0x583   : > { %7201 = vmatmul.mubr.msk.bf16.vlgmr.msra.gmra.mrb[16].mxu0 %vm618_vm0, %v5336_v15  ;;  %v5016_v59 = vadd.f32 %v4984_v10, %v4916_v16  ;;  %v4584_v57 = vmul.f32 %v10718_v23, %v12230_v30  ;;  %v4585_v51 = vmul.f32 %v10720_v1, %v12230_v30  ;;  %v4684_v11 = vmul.f32 %v10726_v34, %v12231_v26  ;;  %v10790_v10 = vld [vmem:[#allocation2 + $0xb2] sm:$0xff] }
 0x584   : > { %v5051_v35 = vmul.f32 %v12235_v46, %v5015_v25  ;;  %v4516_v18 = vadd.f32 %v4484_v40, %v4416_v60  ;;  %v4517_v19 = vadd.f32 %v4485_v44, %v4417_v28  ;;  %v4685_v24 = vmul.f32 %v10728_v8, %v12231_v26 }
 0x585   : > { %v5052_v29 = vmul.f32 %v12235_v46, %v5016_v59  ;;  %v4785_v43 = vmul.f32 %v12233_v32, %v10770_v13  ;;  %v4786_v52 = vmul.f32 %v12233_v32, %v10772_v36  ;;  %v4885_v50 = vmul.f32 %v12234_v61, %v10774_v6 }
 0x586   : > { %v10800_v20 = vadd.f32 %v12236_v12, %v5051_v35  ;;  %v4616_v39 = vadd.f32 %v4584_v57, %v4516_v18  ;;  %v4617_v58 = vadd.f32 %v4585_v51, %v4517_v19  ;;  %v4886_v9 = vmul.f32 %v12234_v61, %v10783_v37  ;;  %v10832_v18 = vld [vmem:[#allocation2 + $0xc0] sm:$0xff]  ;;  %v10834_v19 = vld [vmem:[#allocation2 + $0xc8] sm:$0xff] }
 0x587   : > { %v10805_v41 = vadd.f32 %v12236_v12, %v5052_v29  ;;  %v4985_v17 = vmul.f32 %v10486_v14, %v10788_v27  ;;  %v4986_v3 = vmul.f32 %v10486_v14, %v10790_v10  ;;  %v4186_v63 = vmul.f32 %v10710_v2, %v9924_v7 }
 0x588   : > { %v7648_v45 = vpop.eup %7647  ;;  %v6786_v56 = vmul.f32 -1.442695, %v10800_v20  ;;  %v4716_v22 = vadd.f32 %v4684_v11, %v4616_v39  ;;  %v4717_v38 = vadd.f32 %v4685_v24, %v4617_v58  ;;  %v4187_v5 = vmul.f32 %v10712_v33, %v9924_v7 }
 0x589   : > { %v7650_v47 = vpop.eup %7649  ;;  %v5307_v49 = vmul.f32 %v7648_v45, %v10674_v0  ;;  %v6787_v4 = vmul.f32 -1.442695, %v10805_v41  ;;  %v4286_v62 = vmul.f32 %v10718_v23, %v9927_v54  ;;  %v4287_v55 = vmul.f32 %v10720_v1, %v9927_v54 }
 0x58a   : > { %v7652_v2 = vpop.eup %7651  ;;  %v5308_v15 = vmul.f32 %v7650_v47, %v10677_v53  ;;  %7655 = vpow2.f32 %v6786_v56  ;;  %v4817_v16 = vadd.f32 %v4785_v43, %v4716_v22  ;;  %v4818_v40 = vadd.f32 %v4786_v52, %v4717_v38  ;;  %v10840_v43 = vld [vmem:[#allocation2 + $0xc1] sm:$0xff]  ;;  %v10842_v52 = vld [vmem:[#allocation2 + $0xc9] sm:$0xff] }
 0x58b   : > { %v7654_v25 = vpop.eup %7653  ;;  %v5213_v60 = vadd.f32 1.0, %v7652_v2  ;;  %7657 = vpow2.f32 %v6787_v4  ;;  %v4318_v33 = vadd.f32 %v4286_v62, %v4186_v63  ;;  %v4319_v28 = vadd.f32 %v4287_v55, %v4187_v5 }
 0x58c   : > { %v5337_v0 = vpack.c.bf16 %v5308_v15, %v5307_v49  ;;  %v5214_v44 = vadd.f32 1.0, %v7654_v25  ;;  %v4917_v59 = vadd.f32 %v4885_v50, %v4817_v16  ;;  %v4918_v57 = vadd.f32 %v4886_v9, %v4818_v40 }
 0x58d   : > { %7659 = vrcp.f32 %v5213_v60  ;;  %v4386_v23 = vmul.f32 %v10726_v34, %v9930_v31  ;;  %v4387_v1 = vmul.f32 %v10728_v8, %v9930_v31  ;;  %v4486_v53 = vmul.f32 %v10770_v13, %v12232_v48 }
 0x58e   : > { %7204 = vmatprep.mubr.msk.bf16.mxu0 %vm618_vm0, %v5337_v0  ;;  %7661 = vrcp.f32 %v5214_v44  ;;  %v5017_v51 = vadd.f32 %v4985_v17, %v4917_v59  ;;  %v5018_v11 = vadd.f32 %v4986_v3, %v4918_v57  ;;  %v4487_v35 = vmul.f32 %v10772_v36, %v12232_v48  ;;  %v10850_v17 = vld [vmem:[#allocation2 + $0xc2] sm:$0xff]  ;;  %v10852_v3 = vld [vmem:[#allocation2 + $0xca] sm:$0xff] }
 0x58f   : > { %v4418_v24 = vadd.f32 %v4386_v23, %v4318_v33  ;;  %v4419_v34 = vadd.f32 %v4387_v1, %v4319_v28  ;;  %v4586_v8 = vmul.f32 %v10774_v6, %v12230_v30  ;;  %v4587_v29 = vmul.f32 %v10783_v37, %v12230_v30 }
 0x590   : > { %v5053_v50 = vmul.f32 %v12235_v46, %v5017_v51  ;;  %v5054_v39 = vmul.f32 %v12235_v46, %v5018_v11  ;;  %v4686_v58 = vmul.f32 %v10788_v27, %v12231_v26  ;;  %v4687_v9 = vmul.f32 %v10790_v10, %v12231_v26 }
 0x591   : > { %v4518_v63 = vadd.f32 %v4486_v53, %v4418_v24  ;;  %v4519_v45 = vadd.f32 %v4487_v35, %v4419_v34  ;;  %v4787_v56 = vmul.f32 %v12233_v32, %v10832_v18  ;;  %v4788_v22 = vmul.f32 %v12233_v32, %v10834_v19 }
 0x592   : > { %v10859_v38 = vadd.f32 %v12236_v12, %v5053_v50  ;;  %v10862_v5 = vadd.f32 %v12236_v12, %v5054_v39  ;;  %v4887_v47 = vmul.f32 %v12234_v61, %v10840_v43  ;;  %v4888_v49 = vmul.f32 %v12234_v61, %v10842_v52 }
 0x593   : > { %v4618_v4 = vadd.f32 %v4586_v8, %v4518_v63  ;;  %v4619_v62 = vadd.f32 %v4587_v29, %v4519_v45  ;;  %v4987_v55 = vmul.f32 %v10486_v14, %v10850_v17  ;;  %v4988_v2 = vmul.f32 %v10486_v14, %v10852_v3  ;;  %v10898_v45 = vld [vmem:[#allocation2 + $0xd9] sm:$0xff] }
 0x594   : > { %v7656_v15 = vpop.eup %7655  ;;  %v6788_v16 = vmul.f32 -1.442695, %v10859_v38  ;;  %v6789_v40 = vmul.f32 -1.442695, %v10862_v5  ;;  %v4188_v25 = vmul.f32 %v10770_v13, %v9924_v7  ;;  %v4189_v60 = vmul.f32 %v10772_v36, %v9924_v7 }
 0x595   : > { %v7658_v33 = vpop.eup %7657  ;;  %v5215_v28 = vadd.f32 1.0, %v7656_v15  ;;  %v4718_v0 = vadd.f32 %v4686_v58, %v4618_v4  ;;  %v4719_v44 = vadd.f32 %v4687_v9, %v4619_v62  ;;  %v4288_v59 = vmul.f32 %v10774_v6, %v9927_v54  ;;  %v10892_v58 = vld [vmem:[#allocation2 + $0xd8] sm:$0xff]  ;;  %v10904_v4 = vld [vmem:[#allocation2 + $0xe1] sm:$0xff] }
 0x596   : > { %v5216_v57 = vadd.f32 1.0, %v7658_v33  ;;  %7663 = vpow2.f32 %v6788_v16  ;;  %v4289_v23 = vmul.f32 %v10783_v37, %v9927_v54  ;;  %v4388_v1 = vmul.f32 %v10788_v27, %v9930_v31  ;;  %v10906_v62 = vld [vmem:[#allocation2 + $0xda] sm:$0xff] }
 0x597   : > { %v7660_v53 = vpop.eup %7659  ;;  %7665 = vrcp.f32 %v5215_v28  ;;  %v4819_v13 = vadd.f32 %v4787_v56, %v4718_v0  ;;  %v4820_v51 = vadd.f32 %v4788_v22, %v4719_v44  ;;  %v4320_v36 = vadd.f32 %v4288_v59, %v4188_v25 }
 0x598   : > { %v7662_v11 = vpop.eup %7661  ;;  %v5309_v35 = vmul.f32 %v7660_v53, %v10741_v21  ;;  %7667 = vrcp.f32 %v5216_v57  ;;  %v4321_v24 = vadd.f32 %v4289_v23, %v4189_v60  ;;  %v4389_v6 = vmul.f32 %v10790_v10, %v9930_v31 }
 0x599   : > { %v5310_v34 = vmul.f32 %v7662_v11, %v10748_v42  ;;  %7669 = vpow2.f32 %v6789_v40  ;;  %v4919_v37 = vadd.f32 %v4887_v47, %v4819_v13  ;;  %v4920_v8 = vadd.f32 %v4888_v49, %v4820_v51  ;;  %v10896_v42 = vld [vmem:[#allocation2 + $0xe0] sm:$0xff] }
 0x59a   : > { %v4420_v29 = vadd.f32 %v4388_v1, %v4320_v36  ;;  %v4421_v27 = vadd.f32 %v4389_v6, %v4321_v24  ;;  %v4488_v50 = vmul.f32 %v10832_v18, %v12232_v48  ;;  %v4489_v39 = vmul.f32 %v10834_v19, %v12232_v48  ;;  %v10915_v40 = vld [vmem:[#allocation2 + $0xe2] sm:$0xff] }
 0x59b   : > { %v5338_v21 = vpack.c.bf16 %v5310_v34, %v5309_v35  ;;  %v5019_v9 = vadd.f32 %v4987_v55, %v4919_v37  ;;  %v5020_v63 = vadd.f32 %v4988_v2, %v4920_v8  ;;  %v4588_v10 = vmul.f32 %v10840_v43, %v12230_v30 }
 0x59c   : > { %v4520_v56 = vadd.f32 %v4488_v50, %v4420_v29  ;;  %v4521_v22 = vadd.f32 %v4489_v39, %v4421_v27  ;;  %v4589_v47 = vmul.f32 %v10842_v52, %v12230_v30  ;;  %v4688_v49 = vmul.f32 %v10850_v17, %v12231_v26 }
 0x59d   : > { %7205 = vmatmul.mubr.msk.bf16.gmra.mrb[20].mxu0 %vm618_vm0, %v5338_v21  ;;  %v5055_v55 = vmul.f32 %v12235_v46, %v5019_v9  ;;  %v5056_v2 = vmul.f32 %v12235_v46, %v5020_v63  ;;  %v4689_v15 = vmul.f32 %v10852_v3, %v12231_v26  ;;  %v4789_v16 = vmul.f32 %v12233_v32, %v10892_v58 }
 0x59e   : > { %v4620_v25 = vadd.f32 %v4588_v10, %v4520_v56  ;;  %v4621_v60 = vadd.f32 %v4589_v47, %v4521_v22  ;;  %v4790_v33 = vmul.f32 %v12233_v32, %v10896_v42  ;;  %v4889_v28 = vmul.f32 %v12234_v61, %v10898_v45  ;;  %v10949_v47 = vld [vmem:[#allocation2 + $0xf0] sm:$0xff] }
 0x59f   : > { %v10922_v0 = vadd.f32 %v12236_v12, %v5055_v55  ;;  %v10925_v44 = vadd.f32 %v12236_v12, %v5056_v2  ;;  %v4890_v59 = vmul.f32 %v12234_v61, %v10904_v4  ;;  %v4989_v57 = vmul.f32 %v10486_v14, %v10906_v62  ;;  %v10958_v2 = vld [vmem:[#allocation2 + $0xf8] sm:$0xff] }
 0x5a0   : > { %v7664_v23 = vpop.eup %7663  ;;  %v4720_v1 = vadd.f32 %v4688_v49, %v4620_v25  ;;  %v4721_v53 = vadd.f32 %v4689_v15, %v4621_v60  ;;  %v4990_v13 = vmul.f32 %v10486_v14, %v10915_v40  ;;  %v4190_v51 = vmul.f32 %v10832_v18, %v9924_v7  ;;  %v10964_v60 = vld [vmem:[#allocation2 + $0xf1] sm:$0xff] }
 0x5a1   : > { %v7666_v36 = vpop.eup %7665  ;;  %v5217_v11 = vadd.f32 1.0, %v7664_v23  ;;  %v6790_v35 = vmul.f32 -1.442695, %v10922_v0  ;;  %v6791_v24 = vmul.f32 -1.442695, %v10925_v44  ;;  %v4191_v6 = vmul.f32 %v10834_v19, %v9924_v7 }
 0x5a2   : > { %v7668_v34 = vpop.eup %7667  ;;  %v5311_v37 = vmul.f32 %v7666_v36, %v10800_v20  ;;  %v4821_v8 = vadd.f32 %v4789_v16, %v4720_v1  ;;  %v4822_v29 = vadd.f32 %v4790_v33, %v4721_v53  ;;  %v4290_v27 = vmul.f32 %v10840_v43, %v9927_v54  ;;  %v10966_v33 = vld [vmem:[#allocation2 + $0xf9] sm:$0xff] }
 0x5a3   : > { %v7670_v50 = vpop.eup %7669  ;;  %v5312_v18 = vmul.f32 %v7668_v34, %v10805_v41  ;;  %7671 = vrcp.f32 %v5217_v11  ;;  %v4291_v39 = vmul.f32 %v10842_v52, %v9927_v54  ;;  %v4390_v21 = vmul.f32 %v10850_v17, %v9930_v31  ;;  %v10976_v53 = vld [vmem:[#allocation2 + $0xfa] sm:$0xff] }
 0x5a4   : > { %v5218_v9 = vadd.f32 1.0, %v7670_v50  ;;  %7673 = vpow2.f32 %v6790_v35  ;;  %v4921_v19 = vadd.f32 %v4889_v28, %v4821_v8  ;;  %v4922_v63 = vadd.f32 %v4890_v59, %v4822_v29  ;;  %v10968_v28 = vld [vmem:[#allocation2 + $0xf2] sm:$0xff] }
 0x5a5   : > { %v5339_v20 = vpack.c.bf16 %v5312_v18, %v5311_v37  ;;  %7675 = vpow2.f32 %v6791_v24  ;;  %v4322_v10 = vadd.f32 %v4290_v27, %v4190_v51  ;;  %v4323_v56 = vadd.f32 %v4291_v39, %v4191_v6 }
 0x5a6   : > { %7677 = vrcp.f32 %v5218_v9  ;;  %v5021_v43 = vadd.f32 %v4989_v57, %v4921_v19  ;;  %v5022_v22 = vadd.f32 %v4990_v13, %v4922_v63  ;;  %v4391_v41 = vmul.f32 %v10852_v3, %v9930_v31 }
 0x5a7   : > { %7208 = vmatprep.mubr.msk.bf16.mxu0 %vm618_vm0, %v5339_v20  ;;  %v4422_v52 = vadd.f32 %v4390_v21, %v4322_v10  ;;  %v4490_v17 = vmul.f32 %v10892_v58, %v12232_v48  ;;  %v4491_v49 = vmul.f32 %v10896_v42, %v12232_v48  ;;  %v4590_v55 = vmul.f32 %v10898_v45, %v12230_v30 }
 0x5a8   : > { %v5057_v15 = vmul.f32 %v12235_v46, %v5021_v43  ;;  %v5058_v3 = vmul.f32 %v12235_v46, %v5022_v22  ;;  %v4423_v16 = vadd.f32 %v4391_v41, %v4323_v56  ;;  %v4591_v25 = vmul.f32 %v10904_v4, %v12230_v30 }
 0x5a9   : > { %v4522_v59 = vadd.f32 %v4490_v17, %v4422_v52  ;;  %v4690_v57 = vmul.f32 %v10906_v62, %v12231_v26  ;;  %v4691_v23 = vmul.f32 %v10915_v40, %v12231_v26  ;;  %v4791_v1 = vmul.f32 %v12233_v32, %v10949_v47 }
 0x5aa   : > { %v10979_v13 = vadd.f32 %v12236_v12, %v5057_v15  ;;  %v10982_v51 = vadd.f32 %v12236_v12, %v5058_v3  ;;  %v4523_v36 = vadd.f32 %v4491_v49, %v4423_v16  ;;  %v4792_v11 = vmul.f32 %v12233_v32, %v10958_v2 }
 0x5ab   : > { %v4622_v35 = vadd.f32 %v4590_v55, %v4522_v59  ;;  %v4891_v24 = vmul.f32 %v12234_v61, %v10964_v60  ;;  %v4892_v6 = vmul.f32 %v12234_v61, %v10966_v33  ;;  %v4991_v34 = vmul.f32 %v10486_v14, %v10968_v28 }
 0x5ac   : > { %v6792_v37 = vmul.f32 -1.442695, %v10979_v13  ;;  %v6793_v8 = vmul.f32 -1.442695, %v10982_v51  ;;  %v4623_v29 = vadd.f32 %v4591_v25, %v4523_v36  ;;  %v4992_v27 = vmul.f32 %v10486_v14, %v10976_v53  ;;  %v11022_v36 = vld [vmem:[#allocation2 + $0x109] sm:$0xff] }
 0x5ad   : > { %v7672_v50 = vpop.eup %7671  ;;  %v4722_v18 = vadd.f32 %v4690_v57, %v4622_v35  ;;  %v4192_v39 = vmul.f32 %v10892_v58, %v9924_v7  ;;  %v4193_v21 = vmul.f32 %v10896_v42, %v9924_v7  ;;  %v4292_v9 = vmul.f32 %v10898_v45, %v9927_v54 }
 0x5ae   : > { %v7674_v19 = vpop.eup %7673  ;;  %v5313_v63 = vmul.f32 %v7672_v50, %v10859_v38  ;;  %7679 = vpow2.f32 %v6792_v37  ;;  %v4723_v20 = vadd.f32 %v4691_v23, %v4623_v29  ;;  %v4293_v10 = vmul.f32 %v10904_v4, %v9927_v54  ;;  %v11032_v37 = vld [vmem:[#allocation2 + $0x10a] sm:$0xff] }
 0x5af   : > { %v7676_v14 = vpop.eup %7675  ;;  %v5219_v56 = vadd.f32 1.0, %v7674_v19  ;;  %7681 = vpow2.f32 %v6793_v8  ;;  %v4823_v43 = vadd.f32 %v4791_v1, %v4722_v18  ;;  %v4324_v22 = vadd.f32 %v4292_v9, %v4192_v39  ;;  %v11034_v8 = vld [vmem:[#allocation2 + $0x112] sm:$0xff] }
 0x5b0   : > { %v7678_v58 = vpop.eup %7677  ;;  %v5220_v41 = vadd.f32 1.0, %v7676_v14  ;;  %v4824_v52 = vadd.f32 %v4792_v11, %v4723_v20  ;;  %v4325_v42 = vadd.f32 %v4293_v10, %v4193_v21  ;;  %v4392_v45 = vmul.f32 %v10906_v62, %v9930_v31  ;;  %v11014_v62 = vld [vmem:[#allocation2 + $0x108] sm:$0xff]  ;;  %v11024_v11 = vld [vmem:[#allocation2 + $0x111] sm:$0xff] }
 0x5b1   : > { %v5314_v17 = vmul.f32 %v7678_v58, %v10862_v5  ;;  %7683 = vrcp.f32 %v5219_v56  ;;  %v4923_v38 = vadd.f32 %v4891_v24, %v4823_v43  ;;  %v4393_v49 = vmul.f32 %v10915_v40, %v9930_v31  ;;  %v11016_v5 = vld [vmem:[#allocation2 + $0x110] sm:$0xff]  ;;  %v11051_v14 = vld [vmem:[#allocation6 + $0x8] ss:$0 sm:$0xff] }
 0x5b2   : > { %7685 = vrcp.f32 %v5220_v41  ;;  %v4924_v4 = vadd.f32 %v4892_v6, %v4824_v52  ;;  %v4424_v55 = vadd.f32 %v4392_v45, %v4324_v22  ;;  %v4492_v15 = vmul.f32 %v10949_v47, %v12232_v48 }
 0x5b3   : > { %v5340_v3 = vpack.c.bf16 %v5314_v17, %v5313_v63  ;;  %v5023_v16 = vadd.f32 %v4991_v34, %v4923_v38  ;;  %v4425_v25 = vadd.f32 %v4393_v49, %v4325_v42  ;;  %v4493_v59 = vmul.f32 %v10958_v2, %v12232_v48 }
 0x5b4   : > { %v5024_v57 = vadd.f32 %v4992_v27, %v4924_v4  ;;  %v4524_v23 = vadd.f32 %v4492_v15, %v4424_v55  ;;  %v4592_v40 = vmul.f32 %v10964_v60, %v12230_v30  ;;  %v4593_v1 = vmul.f32 %v10966_v33, %v12230_v30 }
 0x5b5   : > { %7209 = vmatmul.mubr.msk.bf16.gmra.mrb[24].mxu0 %vm618_vm0, %v5340_v3  ;;  %v5059_v35 = vmul.f32 %v12235_v46, %v5023_v16  ;;  %v4525_v24 = vadd.f32 %v4493_v59, %v4425_v25  ;;  %v4692_v6 = vmul.f32 %v10968_v28, %v12231_v26  ;;  %v4693_v34 = vmul.f32 %v10976_v53, %v12231_v26 }
 0x5b6   : > { %v5060_v29 = vmul.f32 %v12235_v46, %v5024_v57  ;;  %v4624_v27 = vadd.f32 %v4592_v40, %v4524_v23  ;;  %v4793_v50 = vmul.f32 %v12233_v32, %v11014_v62  ;;  %v4794_v18 = vmul.f32 %v12233_v32, %v11016_v5 }
 0x5b7   : > { %v11042_v39 = vadd.f32 %v12236_v12, %v5059_v35  ;;  %v4625_v21 = vadd.f32 %v4593_v1, %v4525_v24  ;;  %v4893_v9 = vmul.f32 %v12234_v61, %v11022_v36  ;;  %v4894_v19 = vmul.f32 %v12234_v61, %v11024_v11 }
 0x5b8   : > { %v7680_v63 = vpop.eup %7679  ;;  %v11049_v20 = vadd.f32 %v12236_v12, %v5060_v29  ;;  %v4724_v10 = vadd.f32 %v4692_v6, %v4624_v27  ;;  %v4993_v56 = vmul.f32 %v11051_v14, %v11032_v37  ;;  %v4994_v43 = vmul.f32 %v11051_v14, %v11034_v8  ;;  %v11075_v6 = vld [vmem:[#allocation2 + $0x120] sm:$0xff]  ;;  %v11082_v27 = vld [vmem:[#allocation2 + $0x128] sm:$0xff] }
 0x5b9   : > { %v7682_v22 = vpop.eup %7681  ;;  %v5221_v58 = vadd.f32 1.0, %v7680_v63  ;;  %v6794_v41 = vmul.f32 -1.442695, %v11042_v39  ;;  %v4725_v52 = vadd.f32 %v4693_v34, %v4625_v21  ;;  %v4194_v42 = vmul.f32 %v10949_v47, %v9924_v7  ;;  %v11094_v63 = vld [vmem:[#allocation2 + $0x122] sm:$0xff] }
 0x5ba   : > { %v5222_v45 = vadd.f32 1.0, %v7682_v22  ;;  %v6795_v17 = vmul.f32 -1.442695, %v11049_v20  ;;  %v4825_v38 = vadd.f32 %v4793_v50, %v4724_v10  ;;  %v4195_v49 = vmul.f32 %v10958_v2, %v9924_v7 }
 0x5bb   : > { %v7684_v4 = vpop.eup %7683  ;;  %7687 = vrcp.f32 %v5221_v58  ;;  %v4826_v55 = vadd.f32 %v4794_v18, %v4725_v52  ;;  %v4294_v15 = vmul.f32 %v10964_v60, %v9927_v54  ;;  %v4295_v3 = vmul.f32 %v10966_v33, %v9927_v54  ;;  %v11103_v58 = vld [vmem:[#allocation2 + $0x12a] sm:$0xff] }
 0x5bc   : > { %v7686_v16 = vpop.eup %7685  ;;  %v5315_v25 = vmul.f32 %v7684_v4, %v10922_v0  ;;  %7689 = vrcp.f32 %v5222_v45  ;;  %v4925_v47 = vadd.f32 %v4893_v9, %v4825_v38  ;;  %v4394_v59 = vmul.f32 %v10968_v28, %v9930_v31 }
 0x5bd   : > { %v5316_v57 = vmul.f32 %v7686_v16, %v10925_v44  ;;  %7691 = vpow2.f32 %v6794_v41  ;;  %v4926_v2 = vadd.f32 %v4894_v19, %v4826_v55  ;;  %v4326_v23 = vadd.f32 %v4294_v15, %v4194_v42  ;;  %v11092_v19 = vld [vmem:[#allocation2 + $0x129] sm:$0xff] }
 0x5be   : > { %7693 = vpow2.f32 %v6795_v17  ;;  %v5025_v40 = vadd.f32 %v4993_v56, %v4925_v47  ;;  %v4327_v1 = vadd.f32 %v4295_v3, %v4195_v49  ;;  %v4395_v60 = vmul.f32 %v10976_v53, %v9930_v31  ;;  %v11084_v53 = vld [vmem:[#allocation2 + $0x121] sm:$0xff] }
 0x5bf   : > { %v5341_v33 = vpack.c.bf16 %v5316_v57, %v5315_v25  ;;  %v5026_v35 = vadd.f32 %v4994_v43, %v4926_v2  ;;  %v4426_v24 = vadd.f32 %v4394_v59, %v4326_v23  ;;  %v4494_v0 = vmul.f32 %v11014_v62, %v12232_v48 }
 0x5c0   : > { %v5061_v28 = vmul.f32 %v12235_v46, %v5025_v40  ;;  %v4427_v44 = vadd.f32 %v4395_v60, %v4327_v1  ;;  %v4495_v34 = vmul.f32 %v11016_v5, %v12232_v48  ;;  %v4594_v29 = vmul.f32 %v11022_v36, %v12230_v30 }
 0x5c1   : > { %7212 = vmatprep.mubr.msk.bf16.mxu0 %vm618_vm0, %v5341_v33  ;;  %v5062_v50 = vmul.f32 %v12235_v46, %v5026_v35  ;;  %v4526_v18 = vadd.f32 %v4494_v0, %v4426_v24  ;;  %v4595_v21 = vmul.f32 %v11024_v11, %v12230_v30  ;;  %v4694_v9 = vmul.f32 %v11032_v37, %v12231_v26 }
 0x5c2   : > { %v11097_v10 = vadd.f32 %v12236_v12, %v5061_v28  ;;  %v4527_v56 = vadd.f32 %v4495_v34, %v4427_v44  ;;  %v4695_v43 = vmul.f32 %v11034_v8, %v12231_v26  ;;  %v4795_v22 = vmul.f32 %v12233_v32, %v11075_v6 }
 0x5c3   : > { %v11106_v41 = vadd.f32 %v12236_v12, %v5062_v50  ;;  %v4626_v52 = vadd.f32 %v4594_v29, %v4526_v18  ;;  %v4796_v42 = vmul.f32 %v12233_v32, %v11082_v27  ;;  %v4895_v45 = vmul.f32 %v12234_v61, %v11084_v53  ;;  %v11137_v18 = vld [vmem:[#allocation2 + $0x138] sm:$0xff] }
 0x5c4   : > { %v6796_v17 = vmul.f32 -1.442695, %v11097_v10  ;;  %v4627_v38 = vadd.f32 %v4595_v21, %v4527_v56  ;;  %v4896_v49 = vmul.f32 %v12234_v61, %v11092_v19  ;;  %v4995_v4 = vmul.f32 %v11051_v14, %v11094_v63 }
 0x5c5   : > { %v7688_v55 = vpop.eup %7687  ;;  %v6797_v15 = vmul.f32 -1.442695, %v11106_v41  ;;  %v4726_v3 = vadd.f32 %v4694_v9, %v4626_v52  ;;  %v4996_v16 = vmul.f32 %v11051_v14, %v11103_v58  ;;  %v4196_v25 = vmul.f32 %v11014_v62, %v9924_v7 }
 0x5c6   : > { %v7690_v47 = vpop.eup %7689  ;;  %v5317_v59 = vmul.f32 %v7688_v55, %v10979_v13  ;;  %7695 = vpow2.f32 %v6796_v17  ;;  %v4727_v57 = vadd.f32 %v4695_v43, %v4627_v38  ;;  %v4197_v2 = vmul.f32 %v11016_v5, %v9924_v7  ;;  %v11143_v43 = vld [vmem:[#allocation2 + $0x140] sm:$0xff] }
 0x5c7   : > { %v7692_v23 = vpop.eup %7691  ;;  %v5318_v40 = vmul.f32 %v7690_v47, %v10982_v51  ;;  %7697 = vpow2.f32 %v6797_v15  ;;  %v4827_v1 = vadd.f32 %v4795_v22, %v4726_v3  ;;  %v4296_v60 = vmul.f32 %v11022_v36, %v9927_v54  ;;  %v11152_v17 = vld [vmem:[#allocation2 + $0x141] sm:$0xff] }
 0x5c8   : > { %v7694_v33 = vpop.eup %7693  ;;  %v5223_v35 = vadd.f32 1.0, %v7692_v23  ;;  %v4828_v24 = vadd.f32 %v4796_v42, %v4727_v57  ;;  %v4297_v62 = vmul.f32 %v11024_v11, %v9927_v54  ;;  %v4396_v13 = vmul.f32 %v11032_v37, %v9930_v31  ;;  %v11154_v38 = vld [vmem:[#allocation2 + $0x13a] sm:$0xff]  ;;  %v11161_v3 = vld [vmem:[#allocation2 + $0x142] sm:$0xff] }
 0x5c9   : > { %v5342_v0 = vpack.c.bf16 %v5318_v40, %v5317_v59  ;;  %v5224_v28 = vadd.f32 1.0, %v7694_v33  ;;  %v4927_v5 = vadd.f32 %v4895_v45, %v4827_v1  ;;  %v4328_v44 = vadd.f32 %v4296_v60, %v4196_v25 }
 0x5ca   : > { %7699 = vrcp.f32 %v5223_v35  ;;  %v4928_v51 = vadd.f32 %v4896_v49, %v4828_v24  ;;  %v4329_v34 = vadd.f32 %v4297_v62, %v4197_v2  ;;  %v4397_v29 = vmul.f32 %v11034_v8, %v9930_v31  ;;  %v11145_v8 = vld [vmem:[#allocation2 + $0x139] sm:$0xff] }
 0x5cb   : > { %7213 = vmatmul.mubr.msk.bf16.gmra.mrb[28].mxu0 %vm618_vm0, %v5342_v0  ;;  %7701 = vrcp.f32 %v5224_v28  ;;  %v5027_v36 = vadd.f32 %v4995_v4, %v4927_v5  ;;  %v4428_v50 = vadd.f32 %v4396_v13, %v4328_v44  ;;  %v4496_v11 = vmul.f32 %v11075_v6, %v12232_v48 }
 0x5cc   : > { %v5028_v37 = vadd.f32 %v4996_v16, %v4928_v51  ;;  %v4429_v21 = vadd.f32 %v4397_v29, %v4329_v34  ;;  %v4497_v9 = vmul.f32 %v11082_v27, %v12232_v48  ;;  %v4596_v56 = vmul.f32 %v11084_v53, %v12230_v30 }
 0x5cd   : > { %v5063_v22 = vmul.f32 %v12235_v46, %v5027_v36  ;;  %v4528_v52 = vadd.f32 %v4496_v11, %v4428_v50  ;;  %v4597_v42 = vmul.f32 %v11092_v19, %v12230_v30  ;;  %v4696_v45 = vmul.f32 %v11094_v63, %v12231_v26 }
 0x5ce   : > { %v5064_v49 = vmul.f32 %v12235_v46, %v5028_v37  ;;  %v4529_v4 = vadd.f32 %v4497_v9, %v4429_v21  ;;  %v4697_v55 = vmul.f32 %v11103_v58, %v12231_v26  ;;  %v4797_v15 = vmul.f32 %v12233_v32, %v11137_v18 }
 0x5cf   : > { %v11164_v16 = vadd.f32 %v12236_v12, %v5063_v22  ;;  %v4628_v25 = vadd.f32 %v4596_v56, %v4528_v52  ;;  %v4798_v47 = vmul.f32 %v12233_v32, %v11143_v43  ;;  %v4897_v59 = vmul.f32 %v12234_v61, %v11145_v8 }
 0x5d0   : > { %v7696_v57 = vpop.eup %7695  ;;  %v11171_v2 = vadd.f32 %v12236_v12, %v5064_v49  ;;  %v4629_v23 = vadd.f32 %v4597_v42, %v4529_v4  ;;  %v4898_v40 = vmul.f32 %v12234_v61, %v11152_v17  ;;  %v4997_v1 = vmul.f32 %v11051_v14, %v11154_v38  ;;  %v11203_v4 = vld [vmem:[#allocation2 + $0x158] sm:$0xff] }
 0x5d1   : > { %v7698_v60 = vpop.eup %7697  ;;  %v5225_v33 = vadd.f32 1.0, %v7696_v57  ;;  %v6798_v35 = vmul.f32 -1.442695, %v11164_v16  ;;  %v4728_v24 = vadd.f32 %v4696_v45, %v4628_v25  ;;  %v4998_v62 = vmul.f32 %v11051_v14, %v11161_v3  ;;  %v11212_v57 = vld [vmem:[#allocation2 + $0x152] sm:$0xff] }
 0x5d2   : > { %v5226_v13 = vadd.f32 1.0, %v7698_v60  ;;  %v6799_v0 = vmul.f32 -1.442695, %v11171_v2  ;;  %v4729_v28 = vadd.f32 %v4697_v55, %v4629_v23  ;;  %v4198_v5 = vmul.f32 %v11075_v6, %v9924_v7 }
 0x5d3   : > { %7703 = vrcp.f32 %v5225_v33  ;;  %v4829_v44 = vadd.f32 %v4797_v15, %v4728_v24  ;;  %v4199_v51 = vmul.f32 %v11082_v27, %v9924_v7  ;;  %v4298_v34 = vmul.f32 %v11084_v53, %v9927_v54  ;;  %v11222_v33 = vld [vmem:[#allocation2 + $0x15a] sm:$0xff] }
 0x5d4   : > { %v7700_v29 = vpop.eup %7699  ;;  %7705 = vrcp.f32 %v5226_v13  ;;  %v4830_v36 = vadd.f32 %v4798_v47, %v4729_v28  ;;  %v4299_v50 = vmul.f32 %v11092_v19, %v9927_v54  ;;  %v4398_v11 = vmul.f32 %v11094_v63, %v9930_v31  ;;  %v11197_v63 = vld [vmem:[#allocation2 + $0x150] sm:$0xff] }
 0x5d5   : > { %v7702_v37 = vpop.eup %7701  ;;  %v5319_v6 = vmul.f32 %v7700_v29, %v11042_v39  ;;  %7707 = vpow2.f32 %v6798_v35  ;;  %v4929_v21 = vadd.f32 %v4897_v59, %v4829_v44  ;;  %v4330_v9 = vadd.f32 %v4298_v34, %v4198_v5  ;;  %v11208_v47 = vld [vmem:[#allocation2 + $0x151] sm:$0xff]  ;;  %v11210_v59 = vld [vmem:[#allocation2 + $0x159] sm:$0xff] }
 0x5d6   : > { %v5320_v27 = vmul.f32 %v7702_v37, %v11049_v20  ;;  %7709 = vpow2.f32 %v6799_v0  ;;  %v4930_v56 = vadd.f32 %v4898_v40, %v4830_v36  ;;  %v4331_v53 = vadd.f32 %v4299_v50, %v4199_v51 }
 0x5d7   : > { %v5029_v22 = vadd.f32 %v4997_v1, %v4929_v21  ;;  %v4399_v52 = vmul.f32 %v11103_v58, %v9930_v31  ;;  %v4430_v42 = vadd.f32 %v4398_v11, %v4330_v9  ;;  %v4498_v19 = vmul.f32 %v11137_v18, %v12232_v48 }
 0x5d8   : > { %v5343_v45 = vpack.c.bf16 %v5320_v27, %v5319_v6  ;;  %v5030_v39 = vadd.f32 %v4998_v62, %v4930_v56  ;;  %v4499_v49 = vmul.f32 %v11143_v43, %v12232_v48  ;;  %v4598_v20 = vmul.f32 %v11145_v8, %v12230_v30 }
 0x5d9   : > { %v5065_v55 = vmul.f32 %v12235_v46, %v5029_v22  ;;  %v4431_v15 = vadd.f32 %v4399_v52, %v4331_v53  ;;  %v4530_v58 = vadd.f32 %v4498_v19, %v4430_v42  ;;  %v4599_v25 = vmul.f32 %v11152_v17, %v12230_v30 }
 0x5da   : > { %7216 = vmatprep.mubr.msk.bf16.mxu0 %vm618_vm0, %v5343_v45  ;;  %v5066_v23 = vmul.f32 %v12235_v46, %v5030_v39  ;;  %v4698_v40 = vmul.f32 %v11154_v38, %v12231_v26  ;;  %v4699_v1 = vmul.f32 %v11161_v3, %v12231_v26  ;;  %v4799_v60 = vmul.f32 %v12233_v32, %v11197_v63 }
 0x5db   : > { %v11225_v35 = vadd.f32 %v12236_v12, %v5065_v55  ;;  %v4531_v24 = vadd.f32 %v4499_v49, %v4431_v15  ;;  %v4630_v62 = vadd.f32 %v4598_v20, %v4530_v58  ;;  %v4800_v13 = vmul.f32 %v12233_v32, %v11203_v4  ;;  %v11257_v58 = vld [vmem:[#allocation2 + $0x168] sm:$0xff] }
 0x5dc   : > { %v11230_v0 = vadd.f32 %v12236_v12, %v5066_v23  ;;  %v4899_v28 = vmul.f32 %v12234_v61, %v11208_v47  ;;  %v4900_v5 = vmul.f32 %v12234_v61, %v11210_v59  ;;  %v4999_v44 = vmul.f32 %v11051_v14, %v11212_v57 }
 0x5dd   : > { %v7704_v51 = vpop.eup %7703  ;;  %v6800_v34 = vmul.f32 -1.442695, %v11225_v35  ;;  %v4631_v29 = vadd.f32 %v4599_v25, %v4531_v24  ;;  %v4730_v36 = vadd.f32 %v4698_v40, %v4630_v62  ;;  %v5000_v50 = vmul.f32 %v11051_v14, %v11222_v33  ;;  %v11265_v40 = vld [vmem:[#allocation2 + $0x170] sm:$0xff] }
 0x5de   : > { %v7706_v11 = vpop.eup %7705  ;;  %v5321_v37 = vmul.f32 %v7704_v51, %v11097_v10  ;;  %v6801_v6 = vmul.f32 -1.442695, %v11230_v0  ;;  %v4200_v21 = vmul.f32 %v11137_v18, %v9924_v7  ;;  %v4201_v9 = vmul.f32 %v11143_v43, %v9924_v7  ;;  %v11270_v62 = vld [vmem:[#allocation2 + $0x169] sm:$0xff] }
 0x5df   : > { %v7708_v27 = vpop.eup %7707  ;;  %v5322_v56 = vmul.f32 %v7706_v11, %v11106_v41  ;;  %7711 = vpow2.f32 %v6800_v34  ;;  %v4731_v53 = vadd.f32 %v4699_v1, %v4631_v29  ;;  %v4831_v22 = vadd.f32 %v4799_v60, %v4730_v36  ;;  %v11282_v29 = vld [vmem:[#allocation2 + $0x172] sm:$0xff] }
 0x5e0   : > { %v7710_v52 = vpop.eup %7709  ;;  %v5227_v42 = vadd.f32 1.0, %v7708_v27  ;;  %7713 = vpow2.f32 %v6801_v6  ;;  %v4300_v10 = vmul.f32 %v11145_v8, %v9927_v54  ;;  %v4301_v19 = vmul.f32 %v11152_v17, %v9927_v54 }
 0x5e1   : > { %v5344_v45 = vpack.c.bf16 %v5322_v56, %v5321_v37  ;;  %v5228_v18 = vadd.f32 1.0, %v7710_v52  ;;  %v4832_v39 = vadd.f32 %v4800_v13, %v4731_v53  ;;  %v4931_v49 = vadd.f32 %v4899_v28, %v4831_v22  ;;  %v11272_v13 = vld [vmem:[#allocation2 + $0x171] sm:$0xff] }
 0x5e2   : > { %7715 = vrcp.f32 %v5227_v42  ;;  %v4332_v43 = vadd.f32 %v4300_v10, %v4200_v21  ;;  %v4333_v20 = vadd.f32 %v4301_v19, %v4201_v9  ;;  %v4400_v41 = vmul.f32 %v11154_v38, %v9930_v31  ;;  %v11274_v28 = vld [vmem:[#allocation2 + $0x16a] sm:$0xff] }
 0x5e3   : > { %7217 = vmatmul.mubr.msk.bf16.gmra.mrb[32].mxu0 %vm618_vm0, %v5344_v45  ;;  %7717 = vrcp.f32 %v5228_v18  ;;  %v4932_v55 = vadd.f32 %v4900_v5, %v4832_v39  ;;  %v5031_v15 = vadd.f32 %v4999_v44, %v4931_v49  ;;  %v4401_v8 = vmul.f32 %v11161_v3, %v9930_v31 }
 0x5e4   : > { %v4432_v17 = vadd.f32 %v4400_v41, %v4332_v43  ;;  %v4500_v25 = vmul.f32 %v11197_v63, %v12232_v48  ;;  %v4501_v23 = vmul.f32 %v11203_v4, %v12232_v48  ;;  %v4600_v38 = vmul.f32 %v11208_v47, %v12230_v30 }
 0x5e5   : > { %v5032_v1 = vadd.f32 %v5000_v50, %v4932_v55  ;;  %v5067_v60 = vmul.f32 %v12235_v46, %v5031_v15  ;;  %v4433_v24 = vadd.f32 %v4401_v8, %v4333_v20  ;;  %v4601_v3 = vmul.f32 %v11210_v59, %v12230_v30 }
 0x5e6   : > { %v4532_v5 = vadd.f32 %v4500_v25, %v4432_v17  ;;  %v4700_v44 = vmul.f32 %v11212_v57, %v12231_v26  ;;  %v4701_v51 = vmul.f32 %v11222_v33, %v12231_v26  ;;  %v4801_v34 = vmul.f32 %v12233_v32, %v11257_v58 }
 0x5e7   : > { %v5068_v36 = vmul.f32 %v12235_v46, %v5032_v1  ;;  %v11286_v50 = vadd.f32 %v12236_v12, %v5067_v60  ;;  %v4533_v11 = vadd.f32 %v4501_v23, %v4433_v24  ;;  %v4802_v37 = vmul.f32 %v12233_v32, %v11265_v40 }
 0x5e8   : > { %v4632_v6 = vadd.f32 %v4600_v38, %v4532_v5  ;;  %v4901_v21 = vmul.f32 %v12234_v61, %v11270_v62  ;;  %v4902_v9 = vmul.f32 %v12234_v61, %v11272_v13  ;;  %v5001_v27 = vmul.f32 %v11051_v14, %v11274_v28 }
 0x5e9   : > { %v7712_v56 = vpop.eup %7711  ;;  %v11297_v53 = vadd.f32 %v12236_v12, %v5068_v36  ;;  %v6802_v22 = vmul.f32 -1.442695, %v11286_v50  ;;  %v4633_v52 = vadd.f32 %v4601_v3, %v4533_v11  ;;  %v5002_v42 = vmul.f32 %v11051_v14, %v11282_v29 }
 0x5ea   : > { %v7714_v10 = vpop.eup %7713  ;;  %v5229_v19 = vadd.f32 1.0, %v7712_v56  ;;  %v4732_v45 = vadd.f32 %v4700_v44, %v4632_v6  ;;  %v4202_v18 = vmul.f32 %v11197_v63, %v9924_v7  ;;  %v4203_v39 = vmul.f32 %v11203_v4, %v9924_v7  ;;  %v11333_v56 = vld [vmem:[#allocation2 + $0x182] sm:$0xff] }
 0x5eb   : > { %v5230_v49 = vadd.f32 1.0, %v7714_v10  ;;  %7719 = vpow2.f32 %v6802_v22  ;;  %v6803_v43 = vmul.f32 -1.442695, %v11297_v53  ;;  %v4733_v20 = vadd.f32 %v4701_v51, %v4633_v52  ;;  %v4768_v51 = vld [vmem:[#allocation2 + $0x188] sm:$0xff] }
 0x5ec   : > { %v7716_v41 = vpop.eup %7715  ;;  %7721 = vrcp.f32 %v5229_v19  ;;  %v4833_v55 = vadd.f32 %v4801_v34, %v4732_v45  ;;  %v4302_v15 = vmul.f32 %v11208_v47, %v9927_v54  ;;  %v4303_v8 = vmul.f32 %v11210_v59, %v9927_v54  ;;  %v11335_v22 = vld [vmem:[#allocation2 + $0x18a] sm:$0xff] }
 0x5ed   : > { %v7718_v17 = vpop.eup %7717  ;;  %v5323_v63 = vmul.f32 %v7716_v41, %v11164_v16  ;;  %7723 = vrcp.f32 %v5230_v49  ;;  %v4834_v25 = vadd.f32 %v4802_v37, %v4733_v20  ;;  %v4402_v4 = vmul.f32 %v11212_v57, %v9930_v31  ;;  %v4767_v57 = vld [vmem:[#allocation2 + $0x180] sm:$0xff]  ;;  %v11325_v37 = vld [vmem:[#allocation2 + $0x189] sm:$0xff] }
 0x5ee   : > { %v5324_v23 = vmul.f32 %v7718_v17, %v11171_v2  ;;  %7725 = vpow2.f32 %v6803_v43  ;;  %v4933_v38 = vadd.f32 %v4901_v21, %v4833_v55  ;;  %v4334_v1 = vadd.f32 %v4302_v15, %v4202_v18 }
 0x5ef   : > { %v4934_v60 = vadd.f32 %v4902_v9, %v4834_v25  ;;  %v4335_v24 = vadd.f32 %v4303_v8, %v4203_v39  ;;  %v4403_v47 = vmul.f32 %v11222_v33, %v9930_v31  ;;  %v4502_v59 = vmul.f32 %v11257_v58, %v12232_v48  ;;  %v4867_v33 = vld [vmem:[#allocation2 + $0x181] sm:$0xff] }
 0x5f0   : > { %v5345_v3 = vpack.c.bf16 %v5324_v23, %v5323_v63  ;;  %v5033_v16 = vadd.f32 %v5001_v27, %v4933_v38  ;;  %v4434_v5 = vadd.f32 %v4402_v4, %v4334_v1  ;;  %v4503_v44 = vmul.f32 %v11265_v40, %v12232_v48 }
 0x5f1   : > { %v5034_v2 = vadd.f32 %v5002_v42, %v4934_v60  ;;  %v4435_v34 = vadd.f32 %v4403_v47, %v4335_v24  ;;  %v4602_v36 = vmul.f32 %v11270_v62, %v12230_v30  ;;  %v4603_v11 = vmul.f32 %v11272_v13, %v12230_v30 }
 0x5f2   : > { %7220 = vmatprep.mubr.msk.bf16.mxu0 %vm618_vm0, %v5345_v3  ;;  %v5069_v6 = vmul.f32 %v12235_v46, %v5033_v16  ;;  %v4534_v21 = vadd.f32 %v4502_v59, %v4434_v5  ;;  %v4702_v9 = vmul.f32 %v11274_v28, %v12231_v26  ;;  %v4703_v27 = vmul.f32 %v11282_v29, %v12231_v26 }
 0x5f3   : > { %v5070_v52 = vmul.f32 %v12235_v46, %v5034_v2  ;;  %v4535_v42 = vadd.f32 %v4503_v44, %v4435_v34  ;;  %v4803_v10 = vmul.f32 %v12233_v32, %v4767_v57  ;;  %v4804_v19 = vmul.f32 %v12233_v32, %v4768_v51 }
 0x5f4   : > { %v11341_v45 = vadd.f32 %v12236_v12, %v5069_v6  ;;  %v4634_v18 = vadd.f32 %v4602_v36, %v4534_v21  ;;  %v4903_v39 = vmul.f32 %v12234_v61, %v4867_v33  ;;  %v4904_v49 = vmul.f32 %v12234_v61, %v11325_v37 }
 0x5f5   : > { %v7720_v43 = vpop.eup %7719  ;;  %v11347_v20 = vadd.f32 %v12236_v12, %v5070_v52  ;;  %v4635_v41 = vadd.f32 %v4603_v11, %v4535_v42  ;;  %v5003_v55 = vmul.f32 %v11051_v14, %v11333_v56  ;;  %v5004_v15 = vmul.f32 %v11051_v14, %v11335_v22 }
 0x5f6   : > { %v7722_v8 = vpop.eup %7721  ;;  %v5231_v17 = vadd.f32 1.0, %v7720_v43  ;;  %v6804_v63 = vmul.f32 -1.442695, %v11341_v45  ;;  %v4734_v25 = vadd.f32 %v4702_v9, %v4634_v18  ;;  %v4204_v4 = vmul.f32 %v11257_v58, %v9924_v7 }
 0x5f7   : > { %v7724_v23 = vpop.eup %7723  ;;  %v5325_v38 = vmul.f32 %v7722_v8, %v11225_v35  ;;  %v6805_v1 = vmul.f32 -1.442695, %v11347_v20  ;;  %v4735_v60 = vadd.f32 %v4703_v27, %v4635_v41  ;;  %v4205_v24 = vmul.f32 %v11265_v40, %v9924_v7  ;;  %v4769_v27 = vld [vmem:[#allocation2 + $0x198] sm:$0xff] }
 0x5f8   : > { %v7726_v47 = vpop.eup %7725  ;;  %v5326_v59 = vmul.f32 %v7724_v23, %v11230_v0  ;;  %7727 = vrcp.f32 %v5231_v17  ;;  %v4835_v3 = vadd.f32 %v4803_v10, %v4734_v25  ;;  %v4304_v16 = vmul.f32 %v11270_v62, %v9927_v54  ;;  %v4770_v10 = vld [vmem:[#allocation2 + $0x1a0] sm:$0xff] }
 0x5f9   : > { %v5232_v5 = vadd.f32 1.0, %v7726_v47  ;;  %7729 = vpow2.f32 %v6804_v63  ;;  %v4836_v58 = vadd.f32 %v4804_v19, %v4735_v60  ;;  %v4305_v35 = vmul.f32 %v11272_v13, %v9927_v54 }
 0x5fa   : > { %v5346_v44 = vpack.c.bf16 %v5326_v59, %v5325_v38  ;;  %7731 = vpow2.f32 %v6805_v1  ;;  %v4935_v2 = vadd.f32 %v4903_v39, %v4835_v3  ;;  %v4336_v34 = vadd.f32 %v4304_v16, %v4204_v4 }
 0x5fb   : > { %7733 = vrcp.f32 %v5232_v5  ;;  %v4936_v7 = vadd.f32 %v4904_v49, %v4836_v58  ;;  %v4337_v40 = vadd.f32 %v4305_v35, %v4205_v24  ;;  %v4404_v0 = vmul.f32 %v11274_v28, %v9930_v31 }
 0x5fc   : > { %7221 = vmatmul.mubr.msk.bf16.gmra.mrb[36].mxu0 %vm618_vm0, %v5346_v44  ;;  %v5035_v36 = vadd.f32 %v5003_v55, %v4935_v2  ;;  %v4405_v62 = vmul.f32 %v11282_v29, %v9930_v31  ;;  %v4504_v11 = vmul.f32 %v4767_v57, %v12232_v48  ;;  %v4505_v54 = vmul.f32 %v4768_v51, %v12232_v48  ;;  %v4869_v48 = vld [vmem:[#allocation2 + $0x199] sm:$0xff]  ;;  %v4870_v57 = vld [vmem:[#allocation2 + $0x1a1] sm:$0xff] }
 0x5fd   : > { %v5036_v13 = vadd.f32 %v5004_v15, %v4936_v7  ;;  %v4436_v6 = vadd.f32 %v4404_v0, %v4336_v34  ;;  %v4604_v28 = vmul.f32 %v4867_v33, %v12230_v30  ;;  %v4605_v29 = vmul.f32 %v11325_v37, %v12230_v30  ;;  %v4969_v30 = vld [vmem:[#allocation2 + $0x19a] sm:$0xff] }
 0x5fe   : > { %v5071_v21 = vmul.f32 %v12235_v46, %v5035_v36  ;;  %v4437_v9 = vadd.f32 %v4405_v62, %v4337_v40  ;;  %v4704_v39 = vmul.f32 %v11333_v56, %v12231_v26  ;;  %v4805_v49 = vmul.f32 %v12233_v32, %v4769_v27  ;;  %v4970_v56 = vld [vmem:[#allocation2 + $0x1a2] sm:$0xff] }
 0x5ff   : > { %v5072_v52 = vmul.f32 %v12235_v46, %v5036_v13  ;;  %v4536_v42 = vadd.f32 %v4504_v11, %v4436_v6  ;;  %v4705_v55 = vmul.f32 %v11335_v22, %v12231_v26  ;;  %v4806_v15 = vmul.f32 %v12233_v32, %v4770_v10 }
 0x600   : > { %v11376_v19 = vadd.f32 %v12236_v12, %v5071_v21  ;;  %v4537_v31 = vadd.f32 %v4505_v54, %v4437_v9  ;;  %v4905_v63 = vmul.f32 %v12234_v61, %v4869_v48  ;;  %v4906_v25 = vmul.f32 %v12234_v61, %v4870_v57 }
 0x601   : > { %v5108_v51 = vadd.f32 %v12236_v12, %v5072_v52  ;;  %v4636_v18 = vadd.f32 %v4604_v28, %v4536_v42  ;;  %v5005_v32 = vmul.f32 %v11051_v14, %v4969_v30  ;;  %v5006_v59 = vmul.f32 %v11051_v14, %v4970_v56 }
 0x602   : > { %v7728_v43 = vpop.eup %7727  ;;  %v6806_v33 = vmul.f32 -1.442695, %v11376_v19  ;;  %v4637_v41 = vadd.f32 %v4605_v29, %v4537_v31 }
 0x603   : > { %v7730_v37 = vpop.eup %7729  ;;  %v6807_v8 = vmul.f32 -1.442695, %v5108_v51  ;;  %v4736_v17 = vadd.f32 %v4704_v39, %v4636_v18  ;;  %v5327_v23 = vmul.f32 %v7728_v43, %v11286_v50 }
 0x604   : > { %v7732_v4 = vpop.eup %7731  ;;  %v5233_v38 = vadd.f32 1.0, %v7730_v37  ;;  %7735 = vpow2.f32 %v6806_v33  ;;  %v4737_v1 = vadd.f32 %v4705_v55, %v4637_v41 }
 0x605   : > { %v7734_v60 = vpop.eup %7733  ;;  %v5234_v24 = vadd.f32 1.0, %v7732_v4  ;;  %7737 = vpow2.f32 %v6807_v8  ;;  %v4837_v26 = vadd.f32 %v4805_v49, %v4736_v17 }
 0x606   : > { %v5328_v22 = vmul.f32 %v7734_v60, %v11297_v53  ;;  %7739 = vrcp.f32 %v5233_v38  ;;  %v4838_v47 = vadd.f32 %v4806_v15, %v4737_v1 }
 0x607   : > { %7741 = vrcp.f32 %v5234_v24  ;;  %v4937_v61 = vadd.f32 %v4905_v63, %v4837_v26 }
 0x608   : > { %v5347_v3 = vpack.c.bf16 %v5328_v22, %v5327_v23  ;;  %v4938_v16 = vadd.f32 %v4906_v25, %v4838_v47 }
 0x609   : > { %v5037_v50 = vadd.f32 %v5005_v32, %v4937_v61 }
 0x60a   : > { %7224 = vmatprep.mubr.msk.bf16.mxu0 %vm618_vm0, %v5347_v3  ;;  %v5038_v5 = vadd.f32 %v5006_v59, %v4938_v16 }
 0x60b   : > { %v5073_v58 = vmul.f32 %v12235_v46, %v5037_v50 }
 0x60c   : > { %v5074_v35 = vmul.f32 %v12235_v46, %v5038_v5 }
 0x60d   : > { %v5109_v44 = vadd.f32 %v12236_v12, %v5073_v58 }
 0x60e   : > { %v7736_v2 = vpop.eup %7735  ;;  %v5110_v53 = vadd.f32 %v12236_v12, %v5074_v35 }
 0x60f   : > { %v7738_v34 = vpop.eup %7737  ;;  %v5235_v7 = vadd.f32 1.0, %v7736_v2  ;;  %v6808_v14 = vmul.f32 -1.442695, %v5109_v44 }
 0x610   : > { %v7740_v40 = vpop.eup %7739  ;;  %v5236_v0 = vadd.f32 1.0, %v7738_v34  ;;  %v6809_v36 = vmul.f32 -1.442695, %v5110_v53 }
 0x611   : > { %v7742_v62 = vpop.eup %7741  ;;  %v5329_v11 = vmul.f32 %v7740_v40, %v11341_v45  ;;  %7743 = vrcp.f32 %v5235_v7 }
 0x612   : > { %v5330_v54 = vmul.f32 %v7742_v62, %v11347_v20  ;;  %7745 = vrcp.f32 %v5236_v0 }
 0x613   : > { %7747 = vpow2.f32 %v6808_v14 }
 0x614   : > { %v5348_v46 = vpack.c.bf16 %v5330_v54, %v5329_v11  ;;  %7749 = vpow2.f32 %v6809_v36 }
 0x616   : > { %7225 = vmatmul.mubr.msk.bf16.gmra.mrb[40].mxu0 %vm618_vm0, %v5348_v46 }
 0x61b   : > { %v7744_v13 = vpop.eup %7743 }
 0x61c   : > { %v7746_v12 = vpop.eup %7745  ;;  %v5331_v6 = vmul.f32 %v7744_v13, %v11376_v19  ;;  %v11408_v19 = vld [vmem:[%s11790_s6] ss:$0 sm:$0xff] }
 0x61d   : > { %v7748_v21 = vpop.eup %7747  ;;  %v5332_v9 = vmul.f32 %v7746_v12, %v5108_v51 }
 0x61e   : > { %v7750_v27 = vpop.eup %7749  ;;  %v5237_v52 = vadd.f32 1.0, %v7748_v21 }
 0x61f   : > { %v5349_v42 = vpack.c.bf16 %v5332_v9, %v5331_v6  ;;  %v5238_v28 = vadd.f32 1.0, %v7750_v27 }
 0x620   : > { %7751 = vrcp.f32 %v5237_v52 }
 0x621   : > { %7228 = vmatprep.mubr.msk.bf16.mxu0 %vm618_vm0, %v5349_v42  ;;  %7753 = vrcp.f32 %v5238_v28 }
 0x62a   : > { %v7752_v45 = vpop.eup %7751 }
 0x62b   : > { %v7754_v20 = vpop.eup %7753  ;;  %v5333_v10 = vmul.f32 %v7752_v45, %v5109_v44 }
 0x62c   : > { %v5334_v31 = vmul.f32 %v7754_v20, %v5110_v53 }
 0x62e   : > { %v5350_v29 = vpack.c.bf16 %v5334_v31, %v5333_v10 }
 0x630   : > { %7229 = vmatmul.mubr.msk.bf16.gmra.mrb[44].mxu0 %vm618_vm0, %v5350_v29  ;;  %vm6489_vm0 = vcmask 24576  }
 0x656   : > { %v7202_v48 = vpop.f32.mrb[16].mxu0 }
 0x657   : > { %v5465_v57 = vadd.f32 %v7202_v48, %v11408_v19  ;;  %v5456_v51 = vpop.f32.mrb[17].mxu0 }
 0x658   : > { %v5457_v18 = vadd.f32 %v11408_v19, %v5456_v51  ;;  %v7203_v39 = vpop.f32.mrb[18].mxu0 }
 0x659   : > { %v6831_v49 = vmul.f32 -1.442695, %v5465_v57  ;;  %v5468_v43 = vadd.f32 %v7203_v39, %v11408_v19  ;;  %v5459_v33 = vpop.f32.mrb[19].mxu0 }
 0x65a   : > { %v6829_v41 = vmul.f32 -1.442695, %v5457_v18  ;;  %v5460_v55 = vadd.f32 %v11408_v19, %v5459_v33 }
 0x65b   : > { %7755 = vpow2.f32 %v6831_v49  ;;  %v6832_v15 = vmul.f32 -1.442695, %v5468_v43 }
 0x65c   : > { %7757 = vpow2.f32 %v6829_v41  ;;  %v6830_v30 = vmul.f32 -1.442695, %v5460_v55 }
 0x65d   : > { %7759 = vpow2.f32 %v6832_v15 }
 0x65e   : > { %7761 = vpow2.f32 %v6830_v30 }
 0x665   : > { %v7756_v37 = vpop.eup %7755 }
 0x666   : > { %v7758_v8 = vpop.eup %7757  ;;  %v5681_v17 = vadd.f32 1.0, %v7756_v37 }
 0x667   : > { %v7760_v63 = vpop.eup %7759  ;;  %v5679_v25 = vadd.f32 1.0, %v7758_v8 }
 0x668   : > { %v7762_v56 = vpop.eup %7761  ;;  %v5682_v4 = vadd.f32 1.0, %v7760_v63 }
 0x669   : > { %7763 = vrcp.f32 %v5679_v25  ;;  %v5680_v23 = vadd.f32 1.0, %v7762_v56 }
 0x66a   : > { %7765 = vrcp.f32 %v5681_v17 }
 0x66b   : > { %7767 = vrcp.f32 %v5680_v23 }
 0x66c   : > { %7769 = vrcp.f32 %v5682_v4 }
 0x670   : > { %v7206_v38 = vpop.f32.mrb[20].mxu0 }
 0x671   : > { %v5481_v1 = vadd.f32 %v7206_v38, %v11408_v19  ;;  %v5472_v60 = vpop.f32.mrb[21].mxu0 }
 0x672   : > { %v5473_v24 = vadd.f32 %v11408_v19, %v5472_v60  ;;  %v7207_v26 = vpop.f32.mrb[22].mxu0 }
 0x673   : > { %v7764_v32 = vpop.eup %7763  ;;  %v6835_v22 = vmul.f32 -1.442695, %v5481_v1  ;;  %v5484_v47 = vadd.f32 %v7207_v26, %v11408_v19  ;;  %v5475_v59 = vpop.f32.mrb[23].mxu0 }
 0x674   : > { %v7766_v61 = vpop.eup %7765  ;;  %v6833_v3 = vmul.f32 -1.442695, %v5473_v24  ;;  %v5476_v16 = vadd.f32 %v11408_v19, %v5475_v59  ;;  %v5775_v58 = vmul.f32 %v7764_v32, %v5457_v18 }
 0x675   : > { %v7768_v50 = vpop.eup %7767  ;;  %7771 = vpow2.f32 %v6835_v22  ;;  %v6836_v5 = vmul.f32 -1.442695, %v5484_v47  ;;  %v5777_v53 = vmul.f32 %v7766_v61, %v5465_v57 }
 0x676   : > { %v5776_v35 = vmul.f32 %v7768_v50, %v5460_v55  ;;  %7773 = vpow2.f32 %v6833_v3  ;;  %v6834_v44 = vmul.f32 -1.442695, %v5476_v16  ;;  %v7770_v2 = vpop.eup %7769 }
 0x677   : > { %7775 = vpow2.f32 %v6836_v5  ;;  %v5778_v7 = vmul.f32 %v7770_v2, %v5468_v43 }
 0x678   : > { %v5807_v34 = vadd.f32 %v5776_v35, %v5775_v58  ;;  %7777 = vpow2.f32 %v6834_v44 }
 0x67a   : > { %v5808_v14 = vadd.f32 %v5807_v34, %v5777_v53 }
 0x67c   : > { %v5809_v40 = vadd.f32 %v5808_v14, %v5778_v7 }
 0x67f   : > { %v7772_v0 = vpop.eup %7771 }
 0x680   : > { %v7774_v36 = vpop.eup %7773  ;;  %v5685_v62 = vadd.f32 1.0, %v7772_v0 }
 0x681   : > { %v7776_v11 = vpop.eup %7775  ;;  %v5683_v54 = vadd.f32 1.0, %v7774_v36  ;;  %v7419_v36 = vld [vmem:[%s11791_s7] ss:$16 sps:$4 sm:$0xff]  }
 0x682   : > { %v7778_v46 = vpop.eup %7777  ;;  %v5686_v13 = vadd.f32 1.0, %v7776_v11 }
 0x683   : > { %7779 = vrcp.f32 %v5683_v54  ;;  %v5684_v12 = vadd.f32 1.0, %v7778_v46 }
 0x684   : > { %7781 = vrcp.f32 %v5685_v62  ;;  %v7421_v62 = vld [vmem:[%s11791_s7 + $0x4] ss:$16 sps:$4 sm:$0xff]  }
 0x685   : > { %7783 = vrcp.f32 %v5684_v12  ;;  %6061 = vmatprep.subr.bf16.mxu1 %v7421_v62 }
 0x686   : > { %7785 = vrcp.f32 %v5686_v13  ;;  %v7424_v13 = vld [vmem:[%s11791_s7 + $0x24] ss:$16 sps:$4 sm:$0xff]   ;;  %6062 = vmatpush1.bf16.msra.mxu1 %v7419_v36 }
 0x687   : > { %6063 = vmatprep.subr.bf16.mxu1 %v7424_v13 }
 0x688   : > { %v7210_v6 = vpop.f32.mrb[24].mxu0 }
 0x689   : > { %v5497_v21 = vadd.f32 %v7210_v6, %v11408_v19  ;;  %v5488_v9 = vpop.f32.mrb[25].mxu0 }
 0x68a   : > { %v5489_v27 = vadd.f32 %v11408_v19, %v5488_v9  ;;  %v7211_v52 = vpop.f32.mrb[26].mxu0 }
 0x68b   : > { %v6839_v42 = vmul.f32 -1.442695, %v5497_v21  ;;  %v5500_v28 = vadd.f32 %v7211_v52, %v11408_v19  ;;  %v5491_v45 = vpop.f32.mrb[27].mxu0 }
 0x68c   : > { %v6837_v20 = vmul.f32 -1.442695, %v5489_v27  ;;  %v5492_v10 = vadd.f32 %v11408_v19, %v5491_v45  ;;  %v7425_v45 = vld [vmem:[%s11791_s7 + $0x40] ss:$16 sps:$4 sm:$0xff]  }
 0x68d   : > { %v7780_v31 = vpop.eup %7779  ;;  %7787 = vpow2.f32 %v6839_v42  ;;  %v6840_v29 = vmul.f32 -1.442695, %v5500_v28 }
 0x68e   : > { %v7782_v48 = vpop.eup %7781  ;;  %v5779_v57 = vmul.f32 %v7780_v31, %v5473_v24  ;;  %7789 = vpow2.f32 %v6837_v20  ;;  %v6838_v51 = vmul.f32 -1.442695, %v5492_v10  ;;  %v7430_v20 = vld [vmem:[%s11791_s7 + $0x64] ss:$16 sps:$4 sm:$0xff]  }
 0x68f   : > { %v7784_v18 = vpop.eup %7783  ;;  %7791 = vpow2.f32 %v6840_v29  ;;  %v5781_v33 = vmul.f32 %v7782_v48, %v5481_v1 }
 0x690   : > { %v5810_v39 = vadd.f32 %v5809_v40, %v5779_v57  ;;  %v5780_v49 = vmul.f32 %v7784_v18, %v5476_v16  ;;  %7793 = vpow2.f32 %v6838_v51  ;;  %v7786_v43 = vpop.eup %7785  ;;  %v7428_v51 = vld [vmem:[%s11791_s7 + $0x60] ss:$16 sps:$4 sm:$0xff]  }
 0x691   : > { %v5782_v55 = vmul.f32 %v7786_v43, %v5484_v47  ;;  %v7433_v43 = vld [vmem:[%s11791_s7 + $0x84] ss:$16 sps:$4 sm:$0xff]  }
 0x692   : > { %v5811_v41 = vadd.f32 %v5810_v39, %v5780_v49 }
 0x694   : > { %v5812_v15 = vadd.f32 %v5811_v41, %v5781_v33 }
 0x696   : > { %v5813_v30 = vadd.f32 %v5812_v15, %v5782_v55 }
 0x697   : > { %v7788_v37 = vpop.eup %7787 }
 0x698   : > { %v7790_v8 = vpop.eup %7789  ;;  %v5689_v17 = vadd.f32 1.0, %v7788_v37 }
 0x699   : > { %v7792_v63 = vpop.eup %7791  ;;  %v5687_v25 = vadd.f32 1.0, %v7790_v8 }
 0x69a   : > { %v7794_v56 = vpop.eup %7793  ;;  %v5690_v4 = vadd.f32 1.0, %v7792_v63 }
 0x69b   : > { %7795 = vrcp.f32 %v5687_v25  ;;  %v5688_v23 = vadd.f32 1.0, %v7794_v56  ;;  %v7436_v25 = vld [vmem:[%s11791_s7 + $0xa4] ss:$16 sps:$4 sm:$0xff]  }
 0x69c   : > { %7797 = vrcp.f32 %v5689_v17  ;;  %v7431_v17 = vld [vmem:[%s11791_s7 + $0x80] ss:$16 sps:$4 sm:$0xff]  }
 0x69d   : > { %7799 = vrcp.f32 %v5688_v23 }
 0x69e   : > { %v7214_v38 = vpop.f32.mrb[28].mxu0  ;;  %7801 = vrcp.f32 %v5690_v4 }
 0x69f   : > { %v11423_v60 = vadd.f32 %v7214_v38, %v11408_v19  ;;  %v5504_v1 = vpop.f32.mrb[29].mxu0 }
 0x6a0   : > { %v11426_v24 = vadd.f32 %v11408_v19, %v5504_v1  ;;  %v7215_v26 = vpop.f32.mrb[30].mxu0 }
 0x6a1   : > { %v6843_v32 = vmul.f32 -1.442695, %v11423_v60  ;;  %v11430_v22 = vadd.f32 %v7215_v26, %v11408_v19  ;;  %v5507_v47 = vpop.f32.mrb[31].mxu0  ;;  %v7439_v26 = vld [vmem:[%s11791_s7 + $0xc4] ss:$16 sps:$4 sm:$0xff]  }
 0x6a2   : > { %v6841_v59 = vmul.f32 -1.442695, %v11426_v24  ;;  %v11434_v61 = vadd.f32 %v11408_v19, %v5507_v47 }
 0x6a3   : > { %7803 = vpow2.f32 %v6843_v32  ;;  %v6844_v3 = vmul.f32 -1.442695, %v11430_v22 }
 0x6a4   : > { %7805 = vpow2.f32 %v6841_v59  ;;  %v6842_v16 = vmul.f32 -1.442695, %v11434_v61 }
 0x6a5   : > { %v7796_v50 = vpop.eup %7795  ;;  %7807 = vpow2.f32 %v6844_v3  ;;  %v7442_v3 = vld [vmem:[%s11791_s7 + $0xe4] ss:$16 sps:$4 sm:$0xff]  }
 0x6a6   : > { %v7798_v5 = vpop.eup %7797  ;;  %v5783_v58 = vmul.f32 %v7796_v50, %v5489_v27  ;;  %7809 = vpow2.f32 %v6842_v16  ;;  %v7422_v27 = vld [vmem:[%s11791_s7 + $0x20] ss:$16 sps:$4 sm:$0xff]  }
 0x6a7   : > { %v7800_v35 = vpop.eup %7799  ;;  %v5785_v34 = vmul.f32 %v7798_v5, %v5497_v21  ;;  %v8116_v21 = vmov 0   ;;  %6064 = vmatpush1.bf16.msra.mxu1 %v7422_v27 }
 0x6a8   : > { %v5814_v44 = vadd.f32 %v5813_v30, %v5783_v58  ;;  %v5784_v2 = vmul.f32 %v7800_v35, %v5492_v10  ;;  %v7802_v53 = vpop.eup %7801  ;;  %6093 = vmatprep.mubr.bf16.mxu1 %v8116_v21 }
 0x6a9   : > { %v5786_v14 = vmul.f32 %v7802_v53, %v5500_v28  ;;  %v7427_v28 = vld [vmem:[%s11791_s7 + $0x44] ss:$16 sps:$4 sm:$0xff]   ;;  %v7445_v53 = vld [vmem:[%s11791_s7 + $0xc] ss:$16 sps:$4 sm:$0xff]  }
 0x6aa   : > { %v5815_v7 = vadd.f32 %v5814_v44, %v5784_v2  ;;  %6065 = vmatprep.subr.bf16.mxu1 %v7427_v28 }
 0x6ab   : > { %6066 = vmatpush1.bf16.msra.mxu1 %v7425_v45 }
 0x6ac   : > { %v5816_v40 = vadd.f32 %v5815_v7, %v5785_v34  ;;  %6067 = vmatprep.subr.bf16.mxu1 %v7430_v20 }
 0x6ad   : > { %v7804_v0 = vpop.eup %7803 }
 0x6ae   : > { %v7806_v11 = vpop.eup %7805  ;;  %v5693_v54 = vadd.f32 1.0, %v7804_v0  ;;  %v5817_v46 = vadd.f32 %v5816_v40, %v5786_v14 }
 0x6af   : > { %v7808_v12 = vpop.eup %7807  ;;  %v5691_v6 = vadd.f32 1.0, %v7806_v11  ;;  %6068 = vmatpush1.bf16.msra.mxu1 %v7428_v51  ;;  %v7468_v51 = vld [vmem:[%s11793_s9] sm:$0xff]  }
 0x6b0   : > { %v7810_v9 = vpop.eup %7809  ;;  %v5694_v52 = vadd.f32 1.0, %v7808_v12  ;;  %6069 = vmatprep.subr.bf16.mxu1 %v7433_v43 }
 0x6b1   : > { %7811 = vrcp.f32 %v5691_v6  ;;  %v5692_v42 = vadd.f32 1.0, %v7810_v9 }
 0x6b2   : > { %7813 = vrcp.f32 %v5693_v54 }
 0x6b3   : > { %7815 = vrcp.f32 %v5692_v42  ;;  %6070 = vmatpush1.bf16.msra.mxu1 %v7431_v17  ;;  %v7472_v17 = vld [vmem:[%s11793_s9 + $0x10] sm:$0xff]  }
 0x6b4   : > { %7817 = vrcp.f32 %v5694_v52  ;;  %6071 = vmatprep.subr.bf16.mxu1 %v7436_v25  ;;  %v7474_v25 = vld [vmem:[%s11793_s9 + $0x18] sm:$0xff]  }
 0x6b6   : > { %v7218_v10 = vpop.f32.mrb[32].mxu0 }
 0x6b7   : > { %v11461_v31 = vadd.f32 %v7218_v10, %v11408_v19  ;;  %v5520_v29 = vpop.f32.mrb[33].mxu0 }
 0x6b8   : > { %v11464_v48 = vadd.f32 %v11408_v19, %v5520_v29  ;;  %v7219_v57 = vpop.f32.mrb[34].mxu0 }
 0x6b9   : > { %v6847_v18 = vmul.f32 -1.442695, %v11461_v31  ;;  %v11471_v39 = vadd.f32 %v7219_v57, %v11408_v19  ;;  %v5523_v49 = vpop.f32.mrb[35].mxu0 }
 0x6ba   : > { %v6845_v33 = vmul.f32 -1.442695, %v11464_v48  ;;  %v11478_v41 = vadd.f32 %v11408_v19, %v5523_v49 }
 0x6bb   : > { %v7812_v55 = vpop.eup %7811  ;;  %7819 = vpow2.f32 %v6847_v18  ;;  %v6848_v15 = vmul.f32 -1.442695, %v11471_v39  ;;  %v7469_v18 = vld [vmem:[%s11793_s9 + $0x48] sm:$0xff]  }
 0x6bc   : > { %v7814_v30 = vpop.eup %7813  ;;  %v5787_v37 = vmul.f32 %v7812_v55, %v11426_v24  ;;  %7821 = vpow2.f32 %v6845_v33  ;;  %v6846_v8 = vmul.f32 -1.442695, %v11478_v41  ;;  %v7434_v24 = vld [vmem:[%s11791_s7 + $0xa0] ss:$16 sps:$4 sm:$0xff]  }
 0x6bd   : > { %v7816_v63 = vpop.eup %7815  ;;  %7823 = vpow2.f32 %v6848_v15  ;;  %v5789_v38 = vmul.f32 %v7814_v30, %v11423_v60  ;;  %6072 = vmatpush1.bf16.msra.mxu1 %v7434_v24  ;;  %v7437_v60 = vld [vmem:[%s11791_s7 + $0xc0] ss:$16 sps:$4 sm:$0xff]  }
 0x6be   : > { %v5818_v56 = vadd.f32 %v5817_v46, %v5787_v37  ;;  %v5788_v4 = vmul.f32 %v7816_v63, %v11434_v61  ;;  %7825 = vpow2.f32 %v6846_v8  ;;  %v7818_v23 = vpop.eup %7817  ;;  %6073 = vmatprep.subr.bf16.mxu1 %v7439_v26  ;;  %v7473_v63 = vld [vmem:[%s11793_s9 + $0x58] sm:$0xff]  }
 0x6bf   : > { %v5790_v32 = vmul.f32 %v7818_v23, %v11430_v22  ;;  %v7440_v22 = vld [vmem:[%s11791_s7 + $0xe0] ss:$16 sps:$4 sm:$0xff]  }
 0x6c0   : > { %v5819_v1 = vadd.f32 %v5818_v56, %v5788_v4  ;;  %v7475_v56 = vld [vmem:[%s11793_s9 + $0x60] sm:$0xff]  }
 0x6c1   : > { %6074 = vmatpush1.bf16.msra.mxu1 %v7437_v60 }
 0x6c2   : > { %v5820_v47 = vadd.f32 %v5819_v1, %v5789_v38  ;;  %6075 = vmatprep.subr.bf16.mxu1 %v7442_v3  ;;  %v7476_v1 = vld [vmem:[%s11793_s9 + $0x20] sm:$0xff]  }
 0x6c4   : > { %v5821_v59 = vadd.f32 %v5820_v47, %v5790_v32  ;;  %v7477_v32 = vld [vmem:[%s11793_s9 + $0x68] sm:$0xff]  }
 0x6c5   : > { %v7820_v61 = vpop.eup %7819  ;;  %6076 = vmatpush1.bf16.msra.mxu1 %v7440_v22  ;;  %v7478_v22 = vld [vmem:[%s11793_s9 + $0x28] sm:$0xff]  }
 0x6c6   : > { %v7822_v16 = vpop.eup %7821  ;;  %v5697_v50 = vadd.f32 1.0, %v7820_v61  ;;  %6102 = vmatprep.subr.bf16.mxu1 %v7445_v53 }
 0x6c7   : > { %v7824_v5 = vpop.eup %7823  ;;  %v5695_v58 = vadd.f32 1.0, %v7822_v16 }
 0x6c8   : > { %v7826_v35 = vpop.eup %7825  ;;  %v5698_v44 = vadd.f32 1.0, %v7824_v5 }
 0x6c9   : > { %7827 = vrcp.f32 %v5695_v58  ;;  %v5696_v2 = vadd.f32 1.0, %v7826_v35 }
 0x6ca   : > { %7829 = vrcp.f32 %v5697_v50 }
 0x6cb   : > { %7831 = vrcp.f32 %v5696_v2 }
 0x6cc   : > { %7833 = vrcp.f32 %v5698_v44 }
 0x6cf   : > { %v7222_v34 = vpop.f32.mrb[36].mxu0 }
 0x6d0   : > { %v11511_v7 = vadd.f32 %v7222_v34, %v11408_v19  ;;  %v5536_v14 = vpop.f32.mrb[37].mxu0 }
 0x6d1   : > { %v11514_v40 = vadd.f32 %v11408_v19, %v5536_v14  ;;  %v7223_v0 = vpop.f32.mrb[38].mxu0 }
 0x6d2   : > { %v6851_v36 = vmul.f32 -1.442695, %v11511_v7  ;;  %v11518_v62 = vadd.f32 %v7223_v0, %v11408_v19  ;;  %v5539_v11 = vpop.f32.mrb[39].mxu0 }
 0x6d3   : > { %v7828_v54 = vpop.eup %7827  ;;  %v6849_v46 = vmul.f32 -1.442695, %v11514_v40  ;;  %v11522_v13 = vadd.f32 %v11408_v19, %v5539_v11 }
 0x6d4   : > { %v7830_v12 = vpop.eup %7829  ;;  %v5791_v6 = vmul.f32 %v7828_v54, %v11464_v48  ;;  %7835 = vpow2.f32 %v6851_v36  ;;  %v6852_v9 = vmul.f32 -1.442695, %v11518_v62  ;;  %v7467_v48 = vld [vmem:[%s11793_s9 + $0x40] sm:$0xff]  }
 0x6d5   : > { %v7832_v27 = vpop.eup %7831  ;;  %7837 = vpow2.f32 %v6849_v46  ;;  %v6850_v52 = vmul.f32 -1.442695, %v11522_v13  ;;  %v5793_v20 = vmul.f32 %v7830_v12, %v11461_v31  ;;  %7020 = vmatprep.subr.bf16.mxu0 %v7467_v48  ;;  %v7470_v31 = vld [vmem:[%s11793_s9 + $0x8] sm:$0xff]  }
 0x6d6   : > { %v5822_v42 = vadd.f32 %v5821_v59, %v5791_v6  ;;  %v5792_v28 = vmul.f32 %v7832_v27, %v11478_v41  ;;  %7839 = vpow2.f32 %v6852_v9  ;;  %v7834_v45 = vpop.eup %7833  ;;  %7021 = vmatpush3.bf16.msra.mxu0 %v7468_v51  ;;  %v7471_v41 = vld [vmem:[%s11793_s9 + $0x50] sm:$0xff]  }
 0x6d7   : > { %7841 = vpow2.f32 %v6850_v52  ;;  %v5794_v29 = vmul.f32 %v7834_v45, %v11471_v39  ;;  %7022 = vmatprep.subr.bf16.mxu0 %v7469_v18 }
 0x6d8   : > { %v5823_v10 = vadd.f32 %v5822_v42, %v5792_v28 }
 0x6da   : > { %v5824_v57 = vadd.f32 %v5823_v10, %v5793_v20  ;;  %7023 = vmatpush3.bf16.msra.mxu0 %v7470_v31 }
 0x6db   : > { %7024 = vmatprep.subr.bf16.mxu0 %v7471_v41 }
 0x6dc   : > { %v5825_v49 = vadd.f32 %v5824_v57, %v5794_v29 }
 0x6de   : > { %v7836_v43 = vpop.eup %7835  ;;  %7025 = vmatpush3.bf16.msra.mxu0 %v7472_v17 }
 0x6df   : > { %v7838_v39 = vpop.eup %7837  ;;  %v5701_v33 = vadd.f32 1.0, %v7836_v43  ;;  %7026 = vmatprep.subr.bf16.mxu0 %v7473_v63 }
 0x6e0   : > { %v7840_v55 = vpop.eup %7839  ;;  %v5699_v15 = vadd.f32 1.0, %v7838_v39 }
 0x6e1   : > { %v7842_v30 = vpop.eup %7841  ;;  %v5702_v37 = vadd.f32 1.0, %v7840_v55 }
 0x6e2   : > { %7843 = vrcp.f32 %v5699_v15  ;;  %v5700_v8 = vadd.f32 1.0, %v7842_v30  ;;  %7027 = vmatpush3.bf16.msra.mxu0 %v7474_v25 }
 0x6e3   : > { %7845 = vrcp.f32 %v5701_v33  ;;  %7028 = vmatprep.subr.bf16.mxu0 %v7475_v56 }
 0x6e4   : > { %7847 = vrcp.f32 %v5700_v8 }
 0x6e5   : > { %7849 = vrcp.f32 %v5702_v37 }
 0x6e6   : > { %7029 = vmatpush3.bf16.msra.mxu0 %v7476_v1 }
 0x6e7   : > { %7030 = vmatprep.subr.bf16.mxu0 %v7477_v32 }
 0x6e9   : > { %v7226_v4 = vpop.f32.mrb[40].mxu0 }
 0x6ea   : > { %v11558_v23 = vadd.f32 %v7226_v4, %v11408_v19  ;;  %v5552_v38 = vpop.f32.mrb[41].mxu0  ;;  %7031 = vmatpush3.bf16.msra.mxu0 %v7478_v22 }
 0x6eb   : > { %v5553_v24 = vadd.f32 %v11408_v19, %v5552_v38  ;;  %v7227_v26 = vpop.f32.mrb[42].mxu0 }
 0x6ec   : > { %v7844_v47 = vpop.eup %7843  ;;  %v6855_v59 = vmul.f32 -1.442695, %v11558_v23  ;;  %v5564_v60 = vadd.f32 %v7227_v26, %v11408_v19  ;;  %v5555_v61 = vpop.f32.mrb[43].mxu0 }
 0x6ed   : > { %v7846_v3 = vpop.eup %7845  ;;  %v5795_v16 = vmul.f32 %v7844_v47, %v11514_v40  ;;  %v6853_v50 = vmul.f32 -1.442695, %v5553_v24  ;;  %v5556_v5 = vadd.f32 %v11408_v19, %v5555_v61 }
 0x6ee   : > { %v7848_v58 = vpop.eup %7847  ;;  %7851 = vpow2.f32 %v6855_v59  ;;  %v6856_v35 = vmul.f32 -1.442695, %v5564_v60  ;;  %v5797_v14 = vmul.f32 %v7846_v3, %v11511_v7 }
 0x6ef   : > { %v5826_v44 = vadd.f32 %v5825_v49, %v5795_v16  ;;  %v5796_v2 = vmul.f32 %v7848_v58, %v11522_v13  ;;  %7853 = vpow2.f32 %v6853_v50  ;;  %v6854_v53 = vmul.f32 -1.442695, %v5556_v5  ;;  %v7850_v34 = vpop.eup %7849 }
 0x6f0   : > { %7855 = vpow2.f32 %v6856_v35  ;;  %v5798_v0 = vmul.f32 %v7850_v34, %v11518_v62 }
 0x6f1   : > { %v5827_v40 = vadd.f32 %v5826_v44, %v5796_v2  ;;  %7857 = vpow2.f32 %v6854_v53 }
 0x6f3   : > { %v5828_v36 = vadd.f32 %v5827_v40, %v5797_v14  ;;  %v7443_v40 = vld [vmem:[%s11791_s7 + $0x8] ss:$16 sps:$4 sm:$0xff]  }
 0x6f5   : > { %v5829_v11 = vadd.f32 %v5828_v36, %v5798_v0  ;;  %v7448_v36 = vld [vmem:[%s11791_s7 + $0x2c] ss:$16 sps:$4 sm:$0xff]  }
 0x6f8   : > { %v7852_v54 = vpop.eup %7851 }
 0x6f9   : > { %v7854_v46 = vpop.eup %7853  ;;  %v5705_v12 = vadd.f32 1.0, %v7852_v54  ;;  %v7451_v54 = vld [vmem:[%s11791_s7 + $0x4c] ss:$16 sps:$4 sm:$0xff]  }
 0x6fa   : > { %v7856_v6 = vpop.eup %7855  ;;  %v5703_v9 = vadd.f32 1.0, %v7854_v46  ;;  %v7449_v46 = vld [vmem:[%s11791_s7 + $0x48] ss:$16 sps:$4 sm:$0xff]  }
 0x6fb   : > { %v7858_v13 = vpop.eup %7857  ;;  %v5706_v27 = vadd.f32 1.0, %v7856_v6  ;;  %v7457_v6 = vld [vmem:[%s11791_s7 + $0x8c] ss:$16 sps:$4 sm:$0xff]  }
 0x6fc   : > { %7859 = vrcp.f32 %v5703_v9  ;;  %v5704_v52 = vadd.f32 1.0, %v7858_v13  ;;  %v7455_v9 = vld [vmem:[%s11791_s7 + $0x88] ss:$16 sps:$4 sm:$0xff]   ;;  %v7460_v13 = vld [vmem:[%s11791_s7 + $0xac] ss:$16 sps:$4 sm:$0xff]  }
 0x6fd   : > { %7861 = vrcp.f32 %v5705_v12  ;;  %v7454_v12 = vld [vmem:[%s11791_s7 + $0x6c] ss:$16 sps:$4 sm:$0xff]  }
 0x6fe   : > { %7863 = vrcp.f32 %v5704_v52  ;;  %v7463_v52 = vld [vmem:[%s11791_s7 + $0xcc] ss:$16 sps:$4 sm:$0xff]  }
 0x6ff   : > { %7865 = vrcp.f32 %v5706_v27  ;;  %v7458_v27 = vld [vmem:[%s11791_s7 + $0xa8] ss:$16 sps:$4 sm:$0xff]  }
 0x703   : > { %v7230_v7 = vpop.f32.mrb[44].mxu0 }
 0x704   : > { %v5577_v42 = vadd.f32 %v7230_v7, %v11408_v19  ;;  %v5568_v28 = vpop.f32.mrb[45].mxu0  ;;  %v7461_v7 = vld [vmem:[%s11791_s7 + $0xc8] ss:$16 sps:$4 sm:$0xff]  }
 0x705   : > { %v5569_v62 = vadd.f32 %v11408_v19, %v5568_v28  ;;  %v7231_v45 = vpop.f32.mrb[46].mxu0  ;;  %v7464_v28 = vld [vmem:[%s11791_s7 + $0xe8] ss:$16 sps:$4 sm:$0xff]  }
 0x706   : > { %v7860_v20 = vpop.eup %7859  ;;  %v6859_v10 = vmul.f32 -1.442695, %v5577_v42  ;;  %v5580_v29 = vadd.f32 %v7231_v45, %v11408_v19  ;;  %v5571_v57 = vpop.f32.mrb[47].mxu0  ;;  %v7480_v45 = vld [vmem:[%s11793_s9 + $0x30] sm:$0xff]  }
 0x707   : > { %v7862_v48 = vpop.eup %7861  ;;  %v5799_v51 = vmul.f32 %v7860_v20, %v5553_v24  ;;  %v6857_v18 = vmul.f32 -1.442695, %v5569_v62  ;;  %v5572_v49 = vadd.f32 %v11408_v19, %v5571_v57  ;;  %v7481_v20 = vld [vmem:[%s11793_s9 + $0x78] sm:$0xff]   ;;  %v7484_v57 = vld [vmem:[%s12237_s10] sm:$0xff]  }
 0x708   : > { %v7864_v43 = vpop.eup %7863  ;;  %7867 = vpow2.f32 %v6859_v10  ;;  %v6860_v31 = vmul.f32 -1.442695, %v5580_v29  ;;  %v5801_v15 = vmul.f32 %v7862_v48, %v11558_v23  ;;  %v7483_v10 = vld [vmem:[%s12237_s10 + $0x40] sm:$0xff]   ;;  %v7485_v48 = vld [vmem:[%s12237_s10 + $0x48] sm:$0xff]  }
 0x709   : > { %v5830_v39 = vadd.f32 %v5829_v11, %v5799_v51  ;;  %v5800_v33 = vmul.f32 %v7864_v43, %v5556_v5  ;;  %7869 = vpow2.f32 %v6857_v18  ;;  %v6858_v41 = vmul.f32 -1.442695, %v5572_v49  ;;  %v7866_v55 = vpop.eup %7865  ;;  %v7446_v11 = vld [vmem:[%s11791_s7 + $0x28] ss:$16 sps:$4 sm:$0xff]   ;;  %v7487_v18 = vld [vmem:[%s12237_s10 + $0x50] sm:$0xff]  }
 0x70a   : > { %7871 = vpow2.f32 %v6860_v31  ;;  %v5802_v37 = vmul.f32 %v7866_v55, %v5564_v60  ;;  %v7486_v51 = vld [vmem:[%s12237_s10 + $0x8] sm:$0xff]   ;;  %v7489_v43 = vld [vmem:[%s12237_s10 + $0x58] sm:$0xff]  }
 0x70b   : > { %v5831_v30 = vadd.f32 %v5830_v39, %v5800_v33  ;;  %7873 = vpow2.f32 %v6858_v41  ;;  %v7490_v31 = vld [vmem:[%s12237_s10 + $0x18] sm:$0xff]   ;;  %v7491_v39 = vld [vmem:[%s12237_s10 + $0x60] sm:$0xff]   ;;  %v7493_v41 = vld [vmem:[%s12237_s10 + $0x68] sm:$0xff]  }
 0x70c   : > { %v7492_v33 = vld [vmem:[%s12237_s10 + $0x20] sm:$0xff]   ;;  %v7494_v55 = vld [vmem:[%s12237_s10 + $0x28] sm:$0xff]  }
 0x70d   : > { %v5832_v8 = vadd.f32 %v5831_v30, %v5801_v15  ;;  %v7495_v15 = vld [vmem:[%s12237_s10 + $0x70] sm:$0xff]  }
 0x70e   : > { %v7496_v30 = vld [vmem:[%s12237_s10 + $0x30] sm:$0xff]  }
 0x70f   : > { %v5833_v17 = vadd.f32 %v5832_v8, %v5802_v37  ;;  %v7497_v37 = vld [vmem:[%s12237_s10 + $0x78] sm:$0xff]  }
 0x710   : > { %v7498_v8 = vld [vmem:[%s12237_s10 + $0x38] sm:$0xff]  }
 0x712   : > { %v7868_v63 = vpop.eup %7867 }
 0x713   : > { %v7870_v25 = vpop.eup %7869  ;;  %v5709_v56 = vadd.f32 1.0, %v7868_v63  ;;  %v12239_v63 = vld [vmem:[#allocation21_spill] sm:$0xff] }
 0x714   : > { %v7872_v19 = vpop.eup %7871  ;;  %v5707_v4 = vadd.f32 1.0, %v7870_v25 }
 0x715   : > { %v7874_v38 = vpop.eup %7873  ;;  %v5710_v1 = vadd.f32 1.0, %v7872_v19 }
 0x716   : > { %7875 = vrcp.f32 %v5707_v4  ;;  %v5708_v24 = vadd.f32 1.0, %v7874_v38 }
 0x717   : > { %7877 = vrcp.f32 %v5709_v56  ;;  %v12240_v56 = vld [vmem:[#allocation22_spill] sm:$0xff] }
 0x718   : > { %7879 = vrcp.f32 %v5708_v24 }
 0x719   : > { %7881 = vrcp.f32 %v5710_v1 }
 0x720   : > { %v7876_v26 = vpop.eup %7875 }
 0x721   : > { %v7878_v32 = vpop.eup %7877  ;;  %v5803_v23 = vmul.f32 %v7876_v26, %v5569_v62  ;;  %v7479_v62 = vld [vmem:[%s11793_s9 + $0x70] sm:$0xff]  }
 0x722   : > { %v7880_v47 = vpop.eup %7879  ;;  %v5805_v3 = vmul.f32 %v7878_v32, %v5577_v42  ;;  %v7466_v42 = vld [vmem:[%s11791_s7 + $0xec] ss:$16 sps:$4 sm:$0xff]   ;;  %7032 = vmatprep.subr.bf16.mxu0 %v7479_v62 }
 0x723   : > { %v5834_v59 = vadd.f32 %v5833_v17, %v5803_v23  ;;  %v5804_v60 = vmul.f32 %v7880_v47, %v5572_v49  ;;  %v7882_v61 = vpop.eup %7881  ;;  %7033 = vmatpush3.bf16.msra.mxu0 %v7480_v45  ;;  %v7488_v49 = vld [vmem:[%s12237_s10 + $0x10] sm:$0xff]   ;;  %v5879_v17 = vld [vmem:[%s12238_s21] sm:$0xf]  ;;  %s8117_s21 = smov [#allocation11]  }
 0x724   : > { %v5806_v50 = vmul.f32 %v7882_v61, %v5580_v29  ;;  %v7482_v29 = vld [vmem:[%s11793_s9 + $0x38] sm:$0xff]   ;;  %7034 = vmatprep.subr.bf16.mxu0 %v7481_v20  ;;  %v6044_v25 = vrot.slane %v5879_v17, %v12239_v63  ;;  %v6048_v19 = vrot.slane %v5879_v17, %v12240_v56  ;;  %v12241_v61 = vld [vmem:[#allocation23_spill] sm:$0xff]  ;;  %s8002_s29 = sshll.u32 %s8117_s21, 4  ;;  %s8003_s29 = int_to_ptr.vmem [resolvable:$false] %s8002_s29 }
 0x725   : > { %v5835_v16 = vadd.f32 %v5834_v59, %v5804_v60  ;;  %s8004_s20 = scalar_lea.vmem %s8003_s29, 32  ;;  %p8005_p12 = scmp.lt.s32.totalorder %s11707_s27, %s8003_s29 }
 0x726   : > { %p8006_p1 = scmp.lt.s32.totalorder %s8004_s20, %s7998_s19 }
 0x727   : > { %v5836_v5 = vadd.f32 %v5835_v16, %v5805_v3  ;;  %7035 = vmatpush3.bf16.msra.mxu0 %v7482_v29  ;;  %v6052_v3 = vrot.slane %v5879_v17, %v12241_v61  ;;  %v12242_v16 = vld [vmem:[#allocation24_spill] sm:$0xff] }
 0x728   : > { %p8007_p2 = por %p8006_p1, %p8005_p12 }
 0x729   : > { %v5837_v58 = vadd.f32 %v5836_v5, %v5806_v50  ;;  %v6056_v50 = vrot.slane %v5879_v17, %v12242_v16 }
 0x72a   : > { %p8008_p4 = pnand %p8007_p2, %p8001_p7 }
 0x72b   : > { %v5838_v35 = vrot.slane %v5837_v58, 4 }
 0x72d   : > { %v5839_v22 = vadd.f32 %v5838_v35, %v5837_v58 }
 0x72f   : > { %v5840_v44 = vrot.slane %v5839_v22, 2 }
 0x731   : > { %v5841_v2 = vadd.f32 %v5840_v44, %v5839_v22 }
 0x733   : > { %v5842_v53 = vrot.slane %v5841_v2, 1 }
 0x735   : > { %v5843_v34 = vadd.f32 %v5842_v53, %v5841_v2 }
 0x737   : > { %v5845_v14 = vmul.f32 0.00390625, %v5843_v34 }
 0x739   : > { %v5846_v0 = vpack.c.bf16 %v5845_v14, %v5845_v14 }
 0x73b   : > { %6094 = vmatmul.mubr.bf16.vlgmr.msra.gmra.mrb[12].mxu1 %v5846_v0 }
 0x73c   : > { %6103 = vmatpush1.bf16.msra.mxu1 %v7443_v40  ;;  %6134 = vmatprep.mubr.bf16.mxu1 %v8116_v21  ;;  %v7452_v21 = vld [vmem:[%s11791_s7 + $0x68] ss:$16 sps:$4 sm:$0xff]  }
 0x73d   : > { %6104 = vmatprep.subr.bf16.mxu1 %v7448_v36  ;;  %v6181_v36 = vld [vmem:[%s12243_s26] sm:$0x1] }
 0x740   : > { %6105 = vmatpush1.bf16.msra.mxu1 %v7446_v11 }
 0x741   : > { %6106 = vmatprep.subr.bf16.mxu1 %v7451_v54 }
 0x744   : > { %6107 = vmatpush1.bf16.msra.mxu1 %v7449_v46 }
 0x745   : > { %6108 = vmatprep.subr.bf16.mxu1 %v7454_v12 }
 0x748   : > { %6109 = vmatpush1.bf16.msra.mxu1 %v7452_v21 }
 0x749   : > { %6110 = vmatprep.subr.bf16.mxu1 %v7457_v6 }
 0x74c   : > { %6111 = vmatpush1.bf16.msra.mxu1 %v7455_v9 }
 0x74d   : > { %6112 = vmatprep.subr.bf16.mxu1 %v7460_v13 }
 0x750   : > { %6113 = vmatpush1.bf16.msra.mxu1 %v7458_v27 }
 0x751   : > { %6114 = vmatprep.subr.bf16.mxu1 %v7463_v52 }
 0x754   : > { %6115 = vmatpush1.bf16.msra.mxu1 %v7461_v7 }
 0x755   : > { %6116 = vmatprep.subr.bf16.mxu1 %v7466_v42 }
 0x758   : > { %6117 = vmatpush1.bf16.msra.mxu1 %v7464_v28 }
 0x759   : > { %7042 = vmatprep.subr.bf16.mxu1 %v7483_v10 }
 0x75b   : > { %6135 = vmatmul.mubr.bf16.vlgmr.msra.gmra.mrb[16].mxu1 %v5846_v0 }
 0x75c   : > { %7043 = vmatpush3.bf16.msra.mxu1 %v7484_v57 }
 0x75d   : > { %7044 = vmatprep.subr.bf16.mxu1 %v7485_v48 }
 0x760   : > { %7045 = vmatpush3.bf16.msra.mxu1 %v7486_v51 }
 0x761   : > { %7046 = vmatprep.subr.bf16.mxu1 %v7487_v18 }
 0x764   : > { %7047 = vmatpush3.bf16.msra.mxu1 %v7488_v49 }
 0x765   : > { %7048 = vmatprep.subr.bf16.mxu1 %v7489_v43 }
 0x768   : > { %7049 = vmatpush3.bf16.msra.mxu1 %v7490_v31 }
 0x769   : > { %7050 = vmatprep.subr.bf16.mxu1 %v7491_v39 }
 0x76c   : > { %7051 = vmatpush3.bf16.msra.mxu1 %v7492_v33 }
 0x76d   : > { %7052 = vmatprep.subr.bf16.mxu1 %v7493_v41 }
 0x770   : > { %7053 = vmatpush3.bf16.msra.mxu1 %v7494_v55 }
 0x771   : > { %7054 = vmatprep.subr.bf16.mxu1 %v7495_v15 }
 0x774   : > { %7055 = vmatpush3.bf16.msra.mxu1 %v7496_v30 }
 0x775   : > { %7056 = vmatprep.subr.bf16.mxu1 %v7497_v37 }
 0x778   : > { %7057 = vmatpush3.bf16.msra.mxu1 %v7498_v8 }
 0x80e   : > { %v6095_v4 = vpop.f32.mrb[12].mxu1 }
 0x80f   : > { %v6096_v38 = vadd.f32 %v6095_v4, %v6044_v25  ;;  %v6097_v1 = vpop.f32.mrb[13].mxu1 }
 0x810   : > { %v6098_v24 = vadd.f32 %v6097_v1, %v6048_v19  ;;  %v6099_v26 = vpop.f32.mrb[14].mxu1 }
 0x811   : > { %v6143_v32 = vmax.f32 %v6096_v38, 0.0  ;;  %v6100_v23 = vpop.f32.mrb[15].mxu1 }
 0x812   : > { %v6144_v47 = vmax.f32 %v6098_v24, 0.0 }
 0x813   : > { %v6147_v60 = vpack.c.bf16 %v6143_v32, %v6143_v32 }
 0x814   : > { %v6148_v59 = vpack.c.bf16 %v6144_v47, %v6144_v47 }
 0x816   : > { %6310 = vmatprep.mubr.bf16.mxu0 %v6148_v59 }
 0x817   : > { %6311 = vmatmul.mubr.bf16.vlgmr.msra.gmra.mrb[48].mxu0 %v6147_v60 }
 0x82e   : > { %v6136_v5 = vpop.f32.mrb[16].mxu1 }
 0x82f   : > { %v6137_v58 = vadd.f32 %v6136_v5, %v6052_v3  ;;  %v6138_v35 = vpop.f32.mrb[17].mxu1 }
 0x830   : > { %v6139_v22 = vadd.f32 %v6138_v35, %v6056_v50  ;;  %v6140_v44 = vpop.f32.mrb[18].mxu1 }
 0x831   : > { %v6145_v2 = vmax.f32 %v6137_v58, 0.0  ;;  %v6141_v53 = vpop.f32.mrb[19].mxu1 }
 0x832   : > { %v6146_v34 = vmax.f32 %v6139_v22, 0.0 }
 0x833   : > { %v6318_v40 = vpack.c.bf16 %v6145_v2, %v6145_v2 }
 0x834   : > { %v6319_v14 = vpack.c.bf16 %v6146_v34, %v6146_v34 }
 0x836   : > { %6481 = vmatprep.mubr.bf16.mxu1 %v6319_v14 }
 0x837   : > { %6482 = vmatmul.mubr.bf16.vlgmr.msra.gmra.mrb[20].mxu1 %v6318_v40 }
 0x8ea   : > { %v7036_v0 = vpop.f32.mrb[48].mxu0 }
 0x8eb   : > { %v7037_v11 = vpop.f32.mrb[49].mxu0 }
 0x8ec   : > { %v7038_v54 = vadd.f32 %v7037_v11, %v7036_v0  ;;  %v7039_v46 = vpop.f32.mrb[50].mxu0 }
 0x8ed   : > { %v7040_v12 = vpop.f32.mrb[51].mxu0 }
 0x8ee   : > { %v6313_v21 = vadd.f32 %v7038_v54, %v6181_v36 }
 0x8f0   : > { %6490 = vst.msk [vmem:[%s530_s13] sm:$0x1] %vm6489_vm0, %v6313_v21 }
 0x8f1   : > { %8011 = shalt.err (!%p8008_p4)
}
 0x8f2   : > { %s8012_s26 = scalar_lea.hbm %s11705_s12, 16  ;;  %s8016_s23 = scalar_lea.hbm %s12244_s14, 32 }
 0x8f3   : > { %p8013_p9 = scmp.ne.s32.totalorder %s11705_s12, %s8012_s26  ;;  %p8017_p8 = scmp.lt.u32.totalorder %s11705_s12, %s12244_s14 }
 0x8f4   : > { %p8018_p13 = scmp.lt.u32.totalorder %s8016_s23, %s8012_s26  ;;  %p8020_p10 = scmp.lt.u32.totalorder %s8012_s26, %s11705_s12 }
 0x8f5   : > { %p8014_p0 = pnand %p8013_p9, %p8342_p5 }
 0x8f6   : > { %p8019_p6 = por %p8018_p13, %p8017_p8 }
 0x8f7   : > { %p8015_p11 = pneg %p8014_p0 }
 0x8f8   : > { %p8021_p3 = por %p8020_p10, %p8019_p6 }
 0x8fa   : > { %p8022_p7 = pnand %p8021_p3, %p8015_p11 }
 0x8fc   : > { %8025 = shalt.err (!%p8022_p7)
}
 0x8fd   : > { %7342 = dma.vmem_to_hbm [thread:$0]  (%p8342_p5), %s11707_s27, 16, %s11705_s12, %s6494_s24   ;;  %vm6491_vm8 = vcmask 16384  }
 0x8fe   : > { %s12245_s13 = sld [smem:[#allocation184_spill]]  ;;  %s536_s28 = scalar_lea.vmem [#allocation12], %s8393_s18 }
 0x8ff   : > { %s6523_s26 = sshll.u32 %s536_s28, 4  ;;  %s12246_s29 = sld [smem:[#allocation186_spill]]  ;;  %s11742_s26 = int_to_ptr.vmem [resolvable:$true] %s6523_s26 }
 0x900   : > { %s6498_s27 = scalar_lea.sflag [#allocation13], %s8393_s18  ;;  %s8026_s12 = scalar_lea.vmem %s11742_s26, 16 }
 0x901   : > { %p8027_p12 = scmp.ne.s32.totalorder %s11742_s26, %s8026_s12  ;;  %s8118_s24 = smov [#allocation12]  }
 0x902   : > { %s8030_s19 = sshll.u32 %s8118_s24, 4  ;;  %s8031_s19 = int_to_ptr.vmem [resolvable:$false] %s8030_s19 }
 0x903   : > { %p8028_p1 = pnand %p8027_p12, %p8342_p5  ;;  %s8032_s17 = scalar_lea.vmem %s8031_s19, 32 }
 0x904   : > { %v6352_v9 = vld [vmem:[%s12245_s13] sm:$0x1]  ;;  %p8033_p4 = scmp.lt.s32.totalorder %s11742_s26, %s8031_s19  ;;  %p8034_p9 = scmp.lt.s32.totalorder %s8032_s17, %s8026_s12 }
 0x905   : > { %s12247_s0 = smov %s12246_s29  ;;  %s11740_s1 = scalar_lea.hbm %s12246_s29, %s6925_s8 }
 0x906   : > { %p8029_p2 = pneg %p8028_p1  ;;  %p8035_p0 = por %p8034_p9, %p8033_p4 }
 0x908   : > { %p8036_p11 = pnand %p8035_p0, %p8029_p2 }
 0x90a   : > { %v7058_v6 = vpop.f32.mrb[20].mxu1 }
 0x90b   : > { %v7059_v13 = vpop.f32.mrb[21].mxu1 }
 0x90c   : > { %v7060_v27 = vadd.f32 %v7059_v13, %v7058_v6  ;;  %v7061_v52 = vpop.f32.mrb[22].mxu1 }
 0x90d   : > { %v7062_v7 = vpop.f32.mrb[23].mxu1 }
 0x90e   : > { %v6484_v42 = vadd.f32 %v7060_v27, %v6352_v9 }
 0x910   : > { %6492 = vst.msk [vmem:[%s536_s28] sm:$0x1] %vm6491_vm8, %v6484_v42 }
 0x911   : > { %8039 = shalt.err (!%p8036_p11)
}
 0x912   : > { %s8040_s18 = scalar_lea.hbm %s11740_s1, 16  ;;  %s8044_s13 = scalar_lea.hbm %s12247_s0, 32 }
 0x913   : > { %p8041_p8 = scmp.ne.s32.totalorder %s11740_s1, %s8040_s18  ;;  %p8045_p10 = scmp.lt.u32.totalorder %s11740_s1, %s12247_s0 }
 0x914   : > { %p8046_p3 = scmp.lt.u32.totalorder %s8044_s13, %s8040_s18  ;;  %p8048_p12 = scmp.lt.u32.totalorder %s8040_s18, %s11740_s1 }
 0x915   : > { %p8042_p13 = pnand %p8041_p8, %p8342_p5 }
 0x916   : > { %p8047_p7 = por %p8046_p3, %p8045_p10 }
 0x917   : > { %p8043_p6 = pneg %p8042_p13 }
 0x918   : > { %p8049_p1 = por %p8048_p12, %p8047_p7 }
 0x91a   : > { %p8050_p2 = pnand %p8049_p1, %p8043_p6 }
 0x91c   : > { %8053 = shalt.err (!%p8050_p2)
}
 0x91d   : > { %7343 = dma.vmem_to_hbm [thread:$0]  (%p8342_p5), %s11742_s26, 16, %s11740_s1, %s6498_s27  }
 0x91e PF: > { %s12248_s21 = sld [smem:[#allocation19_spill]]  ;;  %s12249_s29 = sld [smem:[#allocation20_spill]] }
 0x91f   : > { %p12251_p9 = scmp.ge.s32.totalorder %s8104_s16, 2 }
 0x924   : > { %s6535_s12 = sand.u32 1, %s12248_s21   ;;  %p12250_p4 = scmp.ne.s32.totalorder %s12249_s29, 0 }
 0x925   : > { %s6536_s24 = scalar_lea.sflag [#allocation5], %s6535_s12 }
 0x926   : > { %p7361_p0 = pnand %p12251_p9, %p12250_p4 }
 0x928   : > { %8083 = dma.done.wait (!%p7361_p0), %s6536_s24, 16  }
 0x929   : > { %8085 = vsyncadd (!%p7361_p0), %s6536_s24, 4294967280  ;;  %s6544_s19 = scalar_lea.sflag [#allocation13], %s6535_s12 }
 0x92a   : > { %8087 = dma.done.wait (!%p7361_p0), %s6544_s19, 16  }
 0x92b   : > { %8089 = vsyncadd (!%p7361_p0), %s6544_s19, 4294967280  ;;  %p33_p5 = scmp.ge.s32.totalorder %s8328_s11, 4   ;;  %s12252_s29 = smov %s8096_s30 }
 0x92c   : > { %s12253_s30 = smov %s8100_s15  ;;  %s12254_s15 = smov %s8338_s22 }
 0x92d   : > { %s12255_s16 = smov %s8328_s11  ;;  %35 = sbr.rel (!%p33_p5) target bundleno = 18 (0x12), region = 148 }
 0x934   :  { %6548 = vsyncpa [#allocation4], 1 }
 0x935   :  { %6550 = vsyncpa [#allocation4 + $0x1], 1 }
 0x936   :  { %6551 = vsyncpa [#allocation7], 1 }
 0x937   :  { %6552 = vsyncpa [#allocation10], 1 }
 0x938   :  { %6553 = vsyncpa [#allocation5], 1 }
 0x939   :  { %6555 = vsyncpa [#allocation5 + $0x1], 1 }
 0x93a   :  { %6556 = vsyncpa [#allocation13], 1 }
 0x93b   :  { %6558 = vsyncpa [#allocation13 + $0x1], 1 }

</bundles_post_ra>
